<compile_context>
chip_gen: v7x
topology: tpu7x:2x2x1
jax: 0.10.0
libtpu: 0.0.40
codegen_flags: <defaults>
</compile_context>

<pallas_src>
import functools
import math

import jax
import jax.numpy as jnp
from jax.experimental import pallas as pl
from jax.experimental.pallas import tpu as pltpu


# --------------------------------------------------------------------------- Pallas kernel
@functools.lru_cache(maxsize=None)
def _get_matmul_bias_act_call(B, M, K, Cout, TCout, relu):
    """(B, M, K) @ (K, Cout) + bias (+ReLU), tiled over (batch, Cout-tile).

    x is bf16, w is bf16, bias/output are f32; accumulation in f32 on the MXU."""

    def kernel(x_ref, w_ref, b_ref, o_ref):
        acc = jnp.dot(x_ref[0], w_ref[...], preferred_element_type=jnp.float32)
        acc = acc + b_ref[...]                      # bias added once per tile
        if relu:
            acc = jnp.maximum(acc, 0.0)
        o_ref[0] = acc                              # single dense (M, TCout) store

    n_co = Cout // TCout
    # Per-layer VMEM budget: double-buffered in/out blocks + generous headroom.
    per_iter = M * K * 2 + K * TCout * 2 + TCout * 4 + M * TCout * 4
    vmem_budget = min(4 * per_iter + (4 << 20), 32 * 1024 * 1024)

    return pl.pallas_call(
        kernel,
        out_shape=jax.ShapeDtypeStruct((B, M, Cout), jnp.float32),
        grid_spec=pltpu.PrefetchScalarGridSpec(
            num_scalar_prefetch=0,
            grid=(B, n_co),
            in_specs=[
                pl.BlockSpec((1, M, K), lambda b, co: (b, 0, 0)),        # im2col patches
                pl.BlockSpec((K, TCout), lambda b, co: (0, co)),         # weights
                pl.BlockSpec((1, TCout), lambda b, co: (0, co)),         # bias
            ],
            out_specs=pl.BlockSpec((1, M, TCout), lambda b, co: (b, 0, co)),
        ),
        compiler_params=pltpu.CompilerParams(
            dimension_semantics=("parallel", "parallel"),
            vmem_limit_bytes=vmem_budget,
        ),
    )


# --------------------------------------------------------------------------- conv wrapper
def conv2d_nhwc(x, w, b, *, stride=1, padding=0, relu=True):
    """Conv2d + bias (+ReLU) on an NHWC f32 input.

    Patch extraction (im2col, true stride) and padding are cheap XLA data movement;
    the compute (matmul + bias + ReLU) is the Pallas kernel above."""
    B, H, W, Cin = x.shape
    KH, KW, _, Cout = w.shape
    Ho = (H + 2 * padding - KH) // stride + 1
    Wo = (W + 2 * padding - KW) // stride + 1

    if padding:
        x = jnp.pad(x, ((0, 0), (padding, padding), (padding, padding), (0, 0)))

    if KH == 1 and KW == 1 and stride == 1:
        cols = x.reshape(B, Ho * Wo, Cin)                        # 1x1 conv: pure matmul
    else:
        # im2col with true stride: tap (kh, kw) samples rows kh, kh+s, ... / cols kw, kw+s, ...
        taps = [
            x[:, kh:kh + stride * Ho:stride, kw:kw + stride * Wo:stride, :]
            for kh in range(KH) for kw in range(KW)
        ]
        cols = jnp.concatenate(taps, axis=-1).reshape(B, Ho * Wo, KH * KW * Cin)

    cols = cols.astype(jnp.bfloat16)
    wmat = w.reshape(KH * KW * Cin, Cout).astype(jnp.bfloat16)   # (kh,kw,c) order matches taps
    bmat = b.reshape(1, Cout).astype(jnp.float32)

    K = KH * KW * Cin
    TCout = min(Cout, 256)                                       # 128 or 256: lane-dense stores
    y = _get_matmul_bias_act_call(B, Ho * Wo, K, Cout, TCout, bool(relu))(cols, wmat, bmat)
    return y.reshape(B, Ho, Wo, Cout)


# --------------------------------------------------------------------------- parameters
def build_params(key):
    defs = {
        'conv81': (1, 1, 1024, 256),
        'conv82': (3, 3, 256, 512),
        'conv91': (1, 1, 512, 128),
        'conv92': (3, 3, 128, 256),
        'conv101': (1, 1, 256, 128),
        'conv102': (3, 3, 128, 256),
        'conv111': (1, 1, 256, 128),
        'conv112': (3, 3, 128, 256),
    }
    params = {}
    names = sorted(defs)
    keys = jax.random.split(key, len(names))
    for name, k in zip(names, keys):
        kh, kw, cin, cout = defs[name]
        std = math.sqrt(2.0 / (cin * kh * kw))      # kaiming_normal_(fan_in, nonlinearity='relu')
        w = (std * jax.random.normal(k, (kh, kw, cin, cout))).astype(jnp.float32)
        b = jnp.full((cout,), 1e-4, jnp.float32)    # bias.data.fill_(0.0001)
        params[name] = (w, b)
    return params


# --------------------------------------------------------------------------- AuxConvs forward
def aux_convs_forward(conv7_feats, params):
    """Matches AuxConvs.forward: NCHW in, tuple of 4 NCHW feature maps out."""
    x = jnp.transpose(conv7_feats, (0, 2, 3, 1))    # NCHW -> NHWC (layout glue)

    def c(t, name, **kw):
        w, b = params[name]
        return conv2d_nhwc(t, w, b, **kw)

    out = c(x, 'conv81')                            # 1x1, 1024 -> 256, relu
    out = c(out, 'conv82', stride=2, padding=1)     # 3x3 s2 p1, 256 -> 512, relu
    conv82_feats = out
    out = c(out, 'conv91')                          # 1x1, 512 -> 128, relu
    out = c(out, 'conv92', stride=2, padding=1)     # 3x3 s2 p1, 128 -> 256, relu
    conv92_feats = out
    out = c(out, 'conv101')                         # 1x1, 256 -> 128, relu
    out = c(out, 'conv102')                         # 3x3 p0, 128 -> 256, relu
    conv102_feats = out
    out = c(out, 'conv111')                         # 1x1, 256 -> 128, relu
    out = c(out, 'conv112')                         # 3x3 p0, 128 -> 256, relu
    conv112_feats = out

    to_nchw = lambda t: jnp.transpose(t, (0, 3, 1, 2))
    return (to_nchw(conv82_feats), to_nchw(conv92_feats),
            to_nchw(conv102_feats), to_nchw(conv112_feats))


# --------------------------------------------------------------------------- main
if __name__ == "__main__":
    key = jax.random.PRNGKey(0)
    pkey, xkey = jax.random.split(key)
    params = build_params(pkey)

    # conv7_feats of an SSD-300: (B, 1024, 19, 19). Spatial chain: 19 -> 10 -> 5 -> 3 -> 1.
    B, C, H, W = 2, 1024, 19, 19
    conv7_feats = jax.random.normal(xkey, (B, C, H, W), jnp.float32)

    fwd = jax.jit(aux_convs_forward)
    feats = fwd(conv7_feats, params)
    jax.block_until_ready(feats)

    c82, c92, c102, c112 = feats
    assert c82.shape == (B, 512, 10, 10), c82.shape
    assert c92.shape == (B, 256, 5, 5), c92.shape
    assert c102.shape == (B, 256, 3, 3), c102.shape
    assert c112.shape == (B, 256, 1, 1), c112.shape
    assert all(bool(jnp.all(jnp.isfinite(f))) for f in feats)
    print("KERNEL_OK")
</pallas_src>

<mosaic_0001>
module attributes {stable_mosaic.version = 11 : i64} {
  func.func @kernel(%arg0: i32, %arg1: i32, %arg2: memref<1x361x1024xbf16, #tpu.memory_space<vmem>>, %arg3: memref<1024x256xbf16, #tpu.memory_space<vmem>>, %arg4: memref<1x256xf32, #tpu.memory_space<vmem>>, %arg5: memref<1x361x256xf32, #tpu.memory_space<vmem>>) attributes {dimension_semantics = [#tpu.dimension_semantics<parallel>, #tpu.dimension_semantics<parallel>], iteration_bounds = array<i64: 2, 1>, scalar_prefetch = 0 : i64, scratch_operands = 0 : i64, tpu.core_type = #tpu.core_type<tc>, window_params = [{transform_indices = @transform_0, window_bounds = array<i64: 1, 361, 1024>}, {transform_indices = @transform_1, window_bounds = array<i64: 1024, 256>}, {transform_indices = @transform_2, window_bounds = array<i64: 1, 256>}, {transform_indices = @transform_3, window_bounds = array<i64: 1, 361, 256>}]} {
    %c0 = arith.constant 0 : index
    %c0_0 = arith.constant 0 : index
    %c0_1 = arith.constant 0 : index
    %0 = vector.load %arg2[%c0, %c0_0, %c0_1] : memref<1x361x1024xbf16, #tpu.memory_space<vmem>>, vector<1x361x1024xbf16>
    %1 = vector.shape_cast %0 : vector<1x361x1024xbf16> to vector<361x1024xbf16>
    %c0_2 = arith.constant 0 : index
    %c0_3 = arith.constant 0 : index
    %2 = vector.load %arg3[%c0_2, %c0_3] : memref<1024x256xbf16, #tpu.memory_space<vmem>>, vector<1024x256xbf16>
    %cst = arith.constant dense<0.000000e+00> : vector<361x256xf32>
    %3 = tpu.matmul %1, %2, %cst {dimension_numbers = #tpu.dot_dimension_numbers<[1], [0], [0], [1], [0, 0, 1, 1], [], []>} : vector<361x1024xbf16>, vector<1024x256xbf16>, vector<361x256xf32> -> vector<361x256xf32>
    %c0_4 = arith.constant 0 : index
    %c0_5 = arith.constant 0 : index
    %4 = vector.load %arg4[%c0_4, %c0_5] : memref<1x256xf32, #tpu.memory_space<vmem>>, vector<1x256xf32>
    %5 = vector.broadcast %4 : vector<1x256xf32> to vector<361x256xf32>
    %6 = arith.addf %3, %5 : vector<361x256xf32>
    %cst_6 = arith.constant 0.000000e+00 : f32
    %7 = vector.broadcast %cst_6 : f32 to vector<361x256xf32>
    %8 = arith.maximumf %6, %7 : vector<361x256xf32>
    %c0_7 = arith.constant 0 : index
    %c0_8 = arith.constant 0 : index
    %c0_9 = arith.constant 0 : index
    %9 = vector.load %arg5[%c0_7, %c0_8, %c0_9] : memref<1x361x256xf32, #tpu.memory_space<vmem>>, vector<1x361x256xf32>
    %10 = vector.shape_cast %9 : vector<1x361x256xf32> to vector<361x256xf32>
    %11 = vector.shape_cast %8 : vector<361x256xf32> to vector<1x361x256xf32>
    tpu.vector_store %arg5[%c0_7, %c0_8, %c0_9], %11 {strides = array<i32>} : memref<1x361x256xf32, #tpu.memory_space<vmem>>, vector<1x361x256xf32>,
    return
  }
  func.func @transform_0(%arg0: i32, %arg1: i32) -> (i32, i32, i32) {
    %c0_i32 = arith.constant 0 : i32
    %c0_i32_0 = arith.constant 0 : i32
    %c0_i32_1 = arith.constant 0 : i32
    return %arg0, %c0_i32, %c0_i32_0 : i32, i32, i32
  }
  func.func @transform_1(%arg0: i32, %arg1: i32) -> (i32, i32) {
    %c0_i32 = arith.constant 0 : i32
    %c0_i32_0 = arith.constant 0 : i32
    return %c0_i32, %arg1 : i32, i32
  }
  func.func @transform_2(%arg0: i32, %arg1: i32) -> (i32, i32) {
    %c0_i32 = arith.constant 0 : i32
    %c0_i32_0 = arith.constant 0 : i32
    return %c0_i32, %arg1 : i32, i32
  }
  func.func @transform_3(%arg0: i32, %arg1: i32) -> (i32, i32, i32) {
    %c0_i32 = arith.constant 0 : i32
    %c0_i32_0 = arith.constant 0 : i32
    return %arg0, %c0_i32, %arg1 : i32, i32, i32
  }
}

module attributes {stable_mosaic.version = 11 : i64} {
  func.func @kernel(%arg0: i32, %arg1: i32, %arg2: memref<1x100x2304xbf16, #tpu.memory_space<vmem>>, %arg3: memref<2304x256xbf16, #tpu.memory_space<vmem>>, %arg4: memref<1x256xf32, #tpu.memory_space<vmem>>, %arg5: memref<1x100x256xf32, #tpu.memory_space<vmem>>) attributes {dimension_semantics = [#tpu.dimension_semantics<parallel>, #tpu.dimension_semantics<parallel>], iteration_bounds = array<i64: 2, 2>, scalar_prefetch = 0 : i64, scratch_operands = 0 : i64, tpu.core_type = #tpu.core_type<tc>, window_params = [{transform_indices = @transform_0, window_bounds = array<i64: 1, 100, 2304>}, {transform_indices = @transform_1, window_bounds = array<i64: 2304, 256>}, {transform_indices = @transform_2, window_bounds = array<i64: 1, 256>}, {transform_indices = @transform_3, window_bounds = array<i64: 1, 100, 256>}]} {
    %c0 = arith.constant 0 : index
    %c0_0 = arith.constant 0 : index
    %c0_1 = arith.constant 0 : index
    %0 = vector.load %arg2[%c0, %c0_0, %c0_1] : memref<1x100x2304xbf16, #tpu.memory_space<vmem>>, vector<1x100x2304xbf16>
    %1 = vector.shape_cast %0 : vector<1x100x2304xbf16> to vector<100x2304xbf16>
    %c0_2 = arith.constant 0 : index
    %c0_3 = arith.constant 0 : index
    %2 = vector.load %arg3[%c0_2, %c0_3] : memref<2304x256xbf16, #tpu.memory_space<vmem>>, vector<2304x256xbf16>
    %cst = arith.constant dense<0.000000e+00> : vector<100x256xf32>
    %3 = tpu.matmul %1, %2, %cst {dimension_numbers = #tpu.dot_dimension_numbers<[1], [0], [0], [1], [0, 0, 1, 1], [], []>} : vector<100x2304xbf16>, vector<2304x256xbf16>, vector<100x256xf32> -> vector<100x256xf32>
    %c0_4 = arith.constant 0 : index
    %c0_5 = arith.constant 0 : index
    %4 = vector.load %arg4[%c0_4, %c0_5] : memref<1x256xf32, #tpu.memory_space<vmem>>, vector<1x256xf32>
    %5 = vector.broadcast %4 : vector<1x256xf32> to vector<100x256xf32>
    %6 = arith.addf %3, %5 : vector<100x256xf32>
    %cst_6 = arith.constant 0.000000e+00 : f32
    %7 = vector.broadcast %cst_6 : f32 to vector<100x256xf32>
    %8 = arith.maximumf %6, %7 : vector<100x256xf32>
    %c0_7 = arith.constant 0 : index
    %c0_8 = arith.constant 0 : index
    %c0_9 = arith.constant 0 : index
    %9 = vector.load %arg5[%c0_7, %c0_8, %c0_9] : memref<1x100x256xf32, #tpu.memory_space<vmem>>, vector<1x100x256xf32>
    %10 = vector.shape_cast %9 : vector<1x100x256xf32> to vector<100x256xf32>
    %11 = vector.shape_cast %8 : vector<100x256xf32> to vector<1x100x256xf32>
    tpu.vector_store %arg5[%c0_7, %c0_8, %c0_9], %11 {strides = array<i32>} : memref<1x100x256xf32, #tpu.memory_space<vmem>>, vector<1x100x256xf32>,
    return
  }
  func.func @transform_0(%arg0: i32, %arg1: i32) -> (i32, i32, i32) {
    %c0_i32 = arith.constant 0 : i32
    %c0_i32_0 = arith.constant 0 : i32
    %c0_i32_1 = arith.constant 0 : i32
    return %arg0, %c0_i32, %c0_i32_0 : i32, i32, i32
  }
  func.func @transform_1(%arg0: i32, %arg1: i32) -> (i32, i32) {
    %c0_i32 = arith.constant 0 : i32
    %c0_i32_0 = arith.constant 0 : i32
    return %c0_i32, %arg1 : i32, i32
  }
  func.func @transform_2(%arg0: i32, %arg1: i32) -> (i32, i32) {
    %c0_i32 = arith.constant 0 : i32
    %c0_i32_0 = arith.constant 0 : i32
    return %c0_i32, %arg1 : i32, i32
  }
  func.func @transform_3(%arg0: i32, %arg1: i32) -> (i32, i32, i32) {
    %c0_i32 = arith.constant 0 : i32
    %c0_i32_0 = arith.constant 0 : i32
    return %arg0, %c0_i32, %arg1 : i32, i32, i32
  }
}

module attributes {stable_mosaic.version = 11 : i64} {
  func.func @kernel(%arg0: i32, %arg1: i32, %arg2: memref<1x100x512xbf16, #tpu.memory_space<vmem>>, %arg3: memref<512x128xbf16, #tpu.memory_space<vmem>>, %arg4: memref<1x128xf32, #tpu.memory_space<vmem>>, %arg5: memref<1x100x128xf32, #tpu.memory_space<vmem>>) attributes {dimension_semantics = [#tpu.dimension_semantics<parallel>, #tpu.dimension_semantics<parallel>], iteration_bounds = array<i64: 2, 1>, scalar_prefetch = 0 : i64, scratch_operands = 0 : i64, tpu.core_type = #tpu.core_type<tc>, window_params = [{transform_indices = @transform_0, window_bounds = array<i64: 1, 100, 512>}, {transform_indices = @transform_1, window_bounds = array<i64: 512, 128>}, {transform_indices = @transform_2, window_bounds = array<i64: 1, 128>}, {transform_indices = @transform_3, window_bounds = array<i64: 1, 100, 128>}]} {
    %c0 = arith.constant 0 : index
    %c0_0 = arith.constant 0 : index
    %c0_1 = arith.constant 0 : index
    %0 = vector.load %arg2[%c0, %c0_0, %c0_1] : memref<1x100x512xbf16, #tpu.memory_space<vmem>>, vector<1x100x512xbf16>
    %1 = vector.shape_cast %0 : vector<1x100x512xbf16> to vector<100x512xbf16>
    %c0_2 = arith.constant 0 : index
    %c0_3 = arith.constant 0 : index
    %2 = vector.load %arg3[%c0_2, %c0_3] : memref<512x128xbf16, #tpu.memory_space<vmem>>, vector<512x128xbf16>
    %cst = arith.constant dense<0.000000e+00> : vector<100x128xf32>
    %3 = tpu.matmul %1, %2, %cst {dimension_numbers = #tpu.dot_dimension_numbers<[1], [0], [0], [1], [0, 0, 1, 1], [], []>} : vector<100x512xbf16>, vector<512x128xbf16>, vector<100x128xf32> -> vector<100x128xf32>
    %c0_4 = arith.constant 0 : index
    %c0_5 = arith.constant 0 : index
    %4 = vector.load %arg4[%c0_4, %c0_5] : memref<1x128xf32, #tpu.memory_space<vmem>>, vector<1x128xf32>
    %5 = vector.broadcast %4 : vector<1x128xf32> to vector<100x128xf32>
    %6 = arith.addf %3, %5 : vector<100x128xf32>
    %cst_6 = arith.constant 0.000000e+00 : f32
    %7 = vector.broadcast %cst_6 : f32 to vector<100x128xf32>
    %8 = arith.maximumf %6, %7 : vector<100x128xf32>
    %c0_7 = arith.constant 0 : index
    %c0_8 = arith.constant 0 : index
    %c0_9 = arith.constant 0 : index
    %9 = vector.load %arg5[%c0_7, %c0_8, %c0_9] : memref<1x100x128xf32, #tpu.memory_space<vmem>>, vector<1x100x128xf32>
    %10 = vector.shape_cast %9 : vector<1x100x128xf32> to vector<100x128xf32>
    %11 = vector.shape_cast %8 : vector<100x128xf32> to vector<1x100x128xf32>
    tpu.vector_store %arg5[%c0_7, %c0_8, %c0_9], %11 {strides = array<i32>} : memref<1x100x128xf32, #tpu.memory_space<vmem>>, vector<1x100x128xf32>,
    return
  }
  func.func @transform_0(%arg0: i32, %arg1: i32) -> (i32, i32, i32) {
    %c0_i32 = arith.constant 0 : i32
    %c0_i32_0 = arith.constant 0 : i32
    %c0_i32_1 = arith.constant 0 : i32
    return %arg0, %c0_i32, %c0_i32_0 : i32, i32, i32
  }
  func.func @transform_1(%arg0: i32, %arg1: i32) -> (i32, i32) {
    %c0_i32 = arith.constant 0 : i32
    %c0_i32_0 = arith.constant 0 : i32
    return %c0_i32, %arg1 : i32, i32
  }
  func.func @transform_2(%arg0: i32, %arg1: i32) -> (i32, i32) {
    %c0_i32 = arith.constant 0 : i32
    %c0_i32_0 = arith.constant 0 : i32
    return %c0_i32, %arg1 : i32, i32
  }
  func.func @transform_3(%arg0: i32, %arg1: i32) -> (i32, i32, i32) {
    %c0_i32 = arith.constant 0 : i32
    %c0_i32_0 = arith.constant 0 : i32
    return %arg0, %c0_i32, %arg1 : i32, i32, i32
  }
}

module attributes {stable_mosaic.version = 11 : i64} {
  func.func @kernel(%arg0: i32, %arg1: i32, %arg2: memref<1x25x1152xbf16, #tpu.memory_space<vmem>>, %arg3: memref<1152x256xbf16, #tpu.memory_space<vmem>>, %arg4: memref<1x256xf32, #tpu.memory_space<vmem>>, %arg5: memref<1x25x256xf32, #tpu.memory_space<vmem>>) attributes {dimension_semantics = [#tpu.dimension_semantics<parallel>, #tpu.dimension_semantics<parallel>], iteration_bounds = array<i64: 2, 1>, scalar_prefetch = 0 : i64, scratch_operands = 0 : i64, tpu.core_type = #tpu.core_type<tc>, window_params = [{transform_indices = @transform_0, window_bounds = array<i64: 1, 25, 1152>}, {transform_indices = @transform_1, window_bounds = array<i64: 1152, 256>}, {transform_indices = @transform_2, window_bounds = array<i64: 1, 256>}, {transform_indices = @transform_3, window_bounds = array<i64: 1, 25, 256>}]} {
    %c0 = arith.constant 0 : index
    %c0_0 = arith.constant 0 : index
    %c0_1 = arith.constant 0 : index
    %0 = vector.load %arg2[%c0, %c0_0, %c0_1] : memref<1x25x1152xbf16, #tpu.memory_space<vmem>>, vector<1x25x1152xbf16>
    %1 = vector.shape_cast %0 : vector<1x25x1152xbf16> to vector<25x1152xbf16>
    %c0_2 = arith.constant 0 : index
    %c0_3 = arith.constant 0 : index
    %2 = vector.load %arg3[%c0_2, %c0_3] : memref<1152x256xbf16, #tpu.memory_space<vmem>>, vector<1152x256xbf16>
    %cst = arith.constant dense<0.000000e+00> : vector<25x256xf32>
    %3 = tpu.matmul %1, %2, %cst {dimension_numbers = #tpu.dot_dimension_numbers<[1], [0], [0], [1], [0, 0, 1, 1], [], []>} : vector<25x1152xbf16>, vector<1152x256xbf16>, vector<25x256xf32> -> vector<25x256xf32>
    %c0_4 = arith.constant 0 : index
    %c0_5 = arith.constant 0 : index
    %4 = vector.load %arg4[%c0_4, %c0_5] : memref<1x256xf32, #tpu.memory_space<vmem>>, vector<1x256xf32>
    %5 = vector.broadcast %4 : vector<1x256xf32> to vector<25x256xf32>
    %6 = arith.addf %3, %5 : vector<25x256xf32>
    %cst_6 = arith.constant 0.000000e+00 : f32
    %7 = vector.broadcast %cst_6 : f32 to vector<25x256xf32>
    %8 = arith.maximumf %6, %7 : vector<25x256xf32>
    %c0_7 = arith.constant 0 : index
    %c0_8 = arith.constant 0 : index
    %c0_9 = arith.constant 0 : index
    %9 = vector.load %arg5[%c0_7, %c0_8, %c0_9] : memref<1x25x256xf32, #tpu.memory_space<vmem>>, vector<1x25x256xf32>
    %10 = vector.shape_cast %9 : vector<1x25x256xf32> to vector<25x256xf32>
    %11 = vector.shape_cast %8 : vector<25x256xf32> to vector<1x25x256xf32>
    tpu.vector_store %arg5[%c0_7, %c0_8, %c0_9], %11 {strides = array<i32>} : memref<1x25x256xf32, #tpu.memory_space<vmem>>, vector<1x25x256xf32>,
    return
  }
  func.func @transform_0(%arg0: i32, %arg1: i32) -> (i32, i32, i32) {
    %c0_i32 = arith.constant 0 : i32
    %c0_i32_0 = arith.constant 0 : i32
    %c0_i32_1 = arith.constant 0 : i32
    return %arg0, %c0_i32, %c0_i32_0 : i32, i32, i32
  }
  func.func @transform_1(%arg0: i32, %arg1: i32) -> (i32, i32) {
    %c0_i32 = arith.constant 0 : i32
    %c0_i32_0 = arith.constant 0 : i32
    return %c0_i32, %arg1 : i32, i32
  }
  func.func @transform_2(%arg0: i32, %arg1: i32) -> (i32, i32) {
    %c0_i32 = arith.constant 0 : i32
    %c0_i32_0 = arith.constant 0 : i32
    return %c0_i32, %arg1 : i32, i32
  }
  func.func @transform_3(%arg0: i32, %arg1: i32) -> (i32, i32, i32) {
    %c0_i32 = arith.constant 0 : i32
    %c0_i32_0 = arith.constant 0 : i32
    return %arg0, %c0_i32, %arg1 : i32, i32, i32
  }
}

module attributes {stable_mosaic.version = 11 : i64} {
  func.func @kernel(%arg0: i32, %arg1: i32, %arg2: memref<1x25x256xbf16, #tpu.memory_space<vmem>>, %arg3: memref<256x128xbf16, #tpu.memory_space<vmem>>, %arg4: memref<1x128xf32, #tpu.memory_space<vmem>>, %arg5: memref<1x25x128xf32, #tpu.memory_space<vmem>>) attributes {dimension_semantics = [#tpu.dimension_semantics<parallel>, #tpu.dimension_semantics<parallel>], iteration_bounds = array<i64: 2, 1>, scalar_prefetch = 0 : i64, scratch_operands = 0 : i64, tpu.core_type = #tpu.core_type<tc>, window_params = [{transform_indices = @transform_0, window_bounds = array<i64: 1, 25, 256>}, {transform_indices = @transform_1, window_bounds = array<i64: 256, 128>}, {transform_indices = @transform_2, window_bounds = array<i64: 1, 128>}, {transform_indices = @transform_3, window_bounds = array<i64: 1, 25, 128>}]} {
    %c0 = arith.constant 0 : index
    %c0_0 = arith.constant 0 : index
    %c0_1 = arith.constant 0 : index
    %0 = vector.load %arg2[%c0, %c0_0, %c0_1] : memref<1x25x256xbf16, #tpu.memory_space<vmem>>, vector<1x25x256xbf16>
    %1 = vector.shape_cast %0 : vector<1x25x256xbf16> to vector<25x256xbf16>
    %c0_2 = arith.constant 0 : index
    %c0_3 = arith.constant 0 : index
    %2 = vector.load %arg3[%c0_2, %c0_3] : memref<256x128xbf16, #tpu.memory_space<vmem>>, vector<256x128xbf16>
    %cst = arith.constant dense<0.000000e+00> : vector<25x128xf32>
    %3 = tpu.matmul %1, %2, %cst {dimension_numbers = #tpu.dot_dimension_numbers<[1], [0], [0], [1], [0, 0, 1, 1], [], []>} : vector<25x256xbf16>, vector<256x128xbf16>, vector<25x128xf32> -> vector<25x128xf32>
    %c0_4 = arith.constant 0 : index
    %c0_5 = arith.constant 0 : index
    %4 = vector.load %arg4[%c0_4, %c0_5] : memref<1x128xf32, #tpu.memory_space<vmem>>, vector<1x128xf32>
    %5 = vector.broadcast %4 : vector<1x128xf32> to vector<25x128xf32>
    %6 = arith.addf %3, %5 : vector<25x128xf32>
    %cst_6 = arith.constant 0.000000e+00 : f32
    %7 = vector.broadcast %cst_6 : f32 to vector<25x128xf32>
    %8 = arith.maximumf %6, %7 : vector<25x128xf32>
    %c0_7 = arith.constant 0 : index
    %c0_8 = arith.constant 0 : index
    %c0_9 = arith.constant 0 : index
    %9 = vector.load %arg5[%c0_7, %c0_8, %c0_9] : memref<1x25x128xf32, #tpu.memory_space<vmem>>, vector<1x25x128xf32>
    %10 = vector.shape_cast %9 : vector<1x25x128xf32> to vector<25x128xf32>
    %11 = vector.shape_cast %8 : vector<25x128xf32> to vector<1x25x128xf32>
    tpu.vector_store %arg5[%c0_7, %c0_8, %c0_9], %11 {strides = array<i32>} : memref<1x25x128xf32, #tpu.memory_space<vmem>>, vector<1x25x128xf32>,
    return
  }
  func.func @transform_0(%arg0: i32, %arg1: i32) -> (i32, i32, i32) {
    %c0_i32 = arith.constant 0 : i32
    %c0_i32_0 = arith.constant 0 : i32
    %c0_i32_1 = arith.constant 0 : i32
    return %arg0, %c0_i32, %c0_i32_0 : i32, i32, i32
  }
  func.func @transform_1(%arg0: i32, %arg1: i32) -> (i32, i32) {
    %c0_i32 = arith.constant 0 : i32
    %c0_i32_0 = arith.constant 0 : i32
    return %c0_i32, %arg1 : i32, i32
  }
  func.func @transform_2(%arg0: i32, %arg1: i32) -> (i32, i32) {
    %c0_i32 = arith.constant 0 : i32
    %c0_i32_0 = arith.constant 0 : i32
    return %c0_i32, %arg1 : i32, i32
  }
  func.func @transform_3(%arg0: i32, %arg1: i32) -> (i32, i32, i32) {
    %c0_i32 = arith.constant 0 : i32
    %c0_i32_0 = arith.constant 0 : i32
    return %arg0, %c0_i32, %arg1 : i32, i32, i32
  }
}

module attributes {stable_mosaic.version = 11 : i64} {
  func.func @kernel(%arg0: i32, %arg1: i32, %arg2: memref<1x9x256xbf16, #tpu.memory_space<vmem>>, %arg3: memref<256x128xbf16, #tpu.memory_space<vmem>>, %arg4: memref<1x128xf32, #tpu.memory_space<vmem>>, %arg5: memref<1x9x128xf32, #tpu.memory_space<vmem>>) attributes {dimension_semantics = [#tpu.dimension_semantics<parallel>, #tpu.dimension_semantics<parallel>], iteration_bounds = array<i64: 2, 1>, scalar_prefetch = 0 : i64, scratch_operands = 0 : i64, tpu.core_type = #tpu.core_type<tc>, window_params = [{transform_indices = @transform_0, window_bounds = array<i64: 1, 9, 256>}, {transform_indices = @transform_1, window_bounds = array<i64: 256, 128>}, {transform_indices = @transform_2, window_bounds = array<i64: 1, 128>}, {transform_indices = @transform_3, window_bounds = array<i64: 1, 9, 128>}]} {
    %c0 = arith.constant 0 : index
    %c0_0 = arith.constant 0 : index
    %c0_1 = arith.constant 0 : index
    %0 = vector.load %arg2[%c0, %c0_0, %c0_1] : memref<1x9x256xbf16, #tpu.memory_space<vmem>>, vector<1x9x256xbf16>
    %1 = vector.shape_cast %0 : vector<1x9x256xbf16> to vector<9x256xbf16>
    %c0_2 = arith.constant 0 : index
    %c0_3 = arith.constant 0 : index
    %2 = vector.load %arg3[%c0_2, %c0_3] : memref<256x128xbf16, #tpu.memory_space<vmem>>, vector<256x128xbf16>
    %cst = arith.constant dense<0.000000e+00> : vector<9x128xf32>
    %3 = tpu.matmul %1, %2, %cst {dimension_numbers = #tpu.dot_dimension_numbers<[1], [0], [0], [1], [0, 0, 1, 1], [], []>} : vector<9x256xbf16>, vector<256x128xbf16>, vector<9x128xf32> -> vector<9x128xf32>
    %c0_4 = arith.constant 0 : index
    %c0_5 = arith.constant 0 : index
    %4 = vector.load %arg4[%c0_4, %c0_5] : memref<1x128xf32, #tpu.memory_space<vmem>>, vector<1x128xf32>
    %5 = vector.broadcast %4 : vector<1x128xf32> to vector<9x128xf32>
    %6 = arith.addf %3, %5 : vector<9x128xf32>
    %cst_6 = arith.constant 0.000000e+00 : f32
    %7 = vector.broadcast %cst_6 : f32 to vector<9x128xf32>
    %8 = arith.maximumf %6, %7 : vector<9x128xf32>
    %c0_7 = arith.constant 0 : index
    %c0_8 = arith.constant 0 : index
    %c0_9 = arith.constant 0 : index
    %9 = vector.load %arg5[%c0_7, %c0_8, %c0_9] : memref<1x9x128xf32, #tpu.memory_space<vmem>>, vector<1x9x128xf32>
    %10 = vector.shape_cast %9 : vector<1x9x128xf32> to vector<9x128xf32>
    %11 = vector.shape_cast %8 : vector<9x128xf32> to vector<1x9x128xf32>
    tpu.vector_store %arg5[%c0_7, %c0_8, %c0_9], %11 {strides = array<i32>} : memref<1x9x128xf32, #tpu.memory_space<vmem>>, vector<1x9x128xf32>,
    return
  }
  func.func @transform_0(%arg0: i32, %arg1: i32) -> (i32, i32, i32) {
    %c0_i32 = arith.constant 0 : i32
    %c0_i32_0 = arith.constant 0 : i32
    %c0_i32_1 = arith.constant 0 : i32
    return %arg0, %c0_i32, %c0_i32_0 : i32, i32, i32
  }
  func.func @transform_1(%arg0: i32, %arg1: i32) -> (i32, i32) {
    %c0_i32 = arith.constant 0 : i32
    %c0_i32_0 = arith.constant 0 : i32
    return %c0_i32, %arg1 : i32, i32
  }
  func.func @transform_2(%arg0: i32, %arg1: i32) -> (i32, i32) {
    %c0_i32 = arith.constant 0 : i32
    %c0_i32_0 = arith.constant 0 : i32
    return %c0_i32, %arg1 : i32, i32
  }
  func.func @transform_3(%arg0: i32, %arg1: i32) -> (i32, i32, i32) {
    %c0_i32 = arith.constant 0 : i32
    %c0_i32_0 = arith.constant 0 : i32
    return %arg0, %c0_i32, %arg1 : i32, i32, i32
  }
}

module attributes {stable_mosaic.version = 11 : i64} {
  func.func @kernel(%arg0: i32, %arg1: i32, %arg2: memref<1x9x1152xbf16, #tpu.memory_space<vmem>>, %arg3: memref<1152x256xbf16, #tpu.memory_space<vmem>>, %arg4: memref<1x256xf32, #tpu.memory_space<vmem>>, %arg5: memref<1x9x256xf32, #tpu.memory_space<vmem>>) attributes {dimension_semantics = [#tpu.dimension_semantics<parallel>, #tpu.dimension_semantics<parallel>], iteration_bounds = array<i64: 2, 1>, scalar_prefetch = 0 : i64, scratch_operands = 0 : i64, tpu.core_type = #tpu.core_type<tc>, window_params = [{transform_indices = @transform_0, window_bounds = array<i64: 1, 9, 1152>}, {transform_indices = @transform_1, window_bounds = array<i64: 1152, 256>}, {transform_indices = @transform_2, window_bounds = array<i64: 1, 256>}, {transform_indices = @transform_3, window_bounds = array<i64: 1, 9, 256>}]} {
    %c0 = arith.constant 0 : index
    %c0_0 = arith.constant 0 : index
    %c0_1 = arith.constant 0 : index
    %0 = vector.load %arg2[%c0, %c0_0, %c0_1] : memref<1x9x1152xbf16, #tpu.memory_space<vmem>>, vector<1x9x1152xbf16>
    %1 = vector.shape_cast %0 : vector<1x9x1152xbf16> to vector<9x1152xbf16>
    %c0_2 = arith.constant 0 : index
    %c0_3 = arith.constant 0 : index
    %2 = vector.load %arg3[%c0_2, %c0_3] : memref<1152x256xbf16, #tpu.memory_space<vmem>>, vector<1152x256xbf16>
    %cst = arith.constant dense<0.000000e+00> : vector<9x256xf32>
    %3 = tpu.matmul %1, %2, %cst {dimension_numbers = #tpu.dot_dimension_numbers<[1], [0], [0], [1], [0, 0, 1, 1], [], []>} : vector<9x1152xbf16>, vector<1152x256xbf16>, vector<9x256xf32> -> vector<9x256xf32>
    %c0_4 = arith.constant 0 : index
    %c0_5 = arith.constant 0 : index
    %4 = vector.load %arg4[%c0_4, %c0_5] : memref<1x256xf32, #tpu.memory_space<vmem>>, vector<1x256xf32>
    %5 = vector.broadcast %4 : vector<1x256xf32> to vector<9x256xf32>
    %6 = arith.addf %3, %5 : vector<9x256xf32>
    %cst_6 = arith.constant 0.000000e+00 : f32
    %7 = vector.broadcast %cst_6 : f32 to vector<9x256xf32>
    %8 = arith.maximumf %6, %7 : vector<9x256xf32>
    %c0_7 = arith.constant 0 : index
    %c0_8 = arith.constant 0 : index
    %c0_9 = arith.constant 0 : index
    %9 = vector.load %arg5[%c0_7, %c0_8, %c0_9] : memref<1x9x256xf32, #tpu.memory_space<vmem>>, vector<1x9x256xf32>
    %10 = vector.shape_cast %9 : vector<1x9x256xf32> to vector<9x256xf32>
    %11 = vector.shape_cast %8 : vector<9x256xf32> to vector<1x9x256xf32>
    tpu.vector_store %arg5[%c0_7, %c0_8, %c0_9], %11 {strides = array<i32>} : memref<1x9x256xf32, #tpu.memory_space<vmem>>, vector<1x9x256xf32>,
    return
  }
  func.func @transform_0(%arg0: i32, %arg1: i32) -> (i32, i32, i32) {
    %c0_i32 = arith.constant 0 : i32
    %c0_i32_0 = arith.constant 0 : i32
    %c0_i32_1 = arith.constant 0 : i32
    return %arg0, %c0_i32, %c0_i32_0 : i32, i32, i32
  }
  func.func @transform_1(%arg0: i32, %arg1: i32) -> (i32, i32) {
    %c0_i32 = arith.constant 0 : i32
    %c0_i32_0 = arith.constant 0 : i32
    return %c0_i32, %arg1 : i32, i32
  }
  func.func @transform_2(%arg0: i32, %arg1: i32) -> (i32, i32) {
    %c0_i32 = arith.constant 0 : i32
    %c0_i32_0 = arith.constant 0 : i32
    return %c0_i32, %arg1 : i32, i32
  }
  func.func @transform_3(%arg0: i32, %arg1: i32) -> (i32, i32, i32) {
    %c0_i32 = arith.constant 0 : i32
    %c0_i32_0 = arith.constant 0 : i32
    return %arg0, %c0_i32, %arg1 : i32, i32, i32
  }
}

module attributes {stable_mosaic.version = 11 : i64} {
  func.func @kernel(%arg0: i32, %arg1: i32, %arg2: memref<1x1x1152xbf16, #tpu.memory_space<vmem>>, %arg3: memref<1152x256xbf16, #tpu.memory_space<vmem>>, %arg4: memref<1x256xf32, #tpu.memory_space<vmem>>, %arg5: memref<1x1x256xf32, #tpu.memory_space<vmem>>) attributes {dimension_semantics = [#tpu.dimension_semantics<parallel>, #tpu.dimension_semantics<parallel>], iteration_bounds = array<i64: 2, 1>, scalar_prefetch = 0 : i64, scratch_operands = 0 : i64, tpu.core_type = #tpu.core_type<tc>, window_params = [{transform_indices = @transform_0, window_bounds = array<i64: 1, 1, 1152>}, {transform_indices = @transform_1, window_bounds = array<i64: 1152, 256>}, {transform_indices = @transform_2, window_bounds = array<i64: 1, 256>}, {transform_indices = @transform_3, window_bounds = array<i64: 1, 1, 256>}]} {
    %c0 = arith.constant 0 : index
    %c0_0 = arith.constant 0 : index
    %c0_1 = arith.constant 0 : index
    %0 = vector.load %arg2[%c0, %c0_0, %c0_1] : memref<1x1x1152xbf16, #tpu.memory_space<vmem>>, vector<1x1x1152xbf16>
    %1 = vector.shape_cast %0 : vector<1x1x1152xbf16> to vector<1x1152xbf16>
    %c0_2 = arith.constant 0 : index
    %c0_3 = arith.constant 0 : index
    %2 = vector.load %arg3[%c0_2, %c0_3] : memref<1152x256xbf16, #tpu.memory_space<vmem>>, vector<1152x256xbf16>
    %cst = arith.constant dense<0.000000e+00> : vector<1x256xf32>
    %3 = tpu.matmul %1, %2, %cst {dimension_numbers = #tpu.dot_dimension_numbers<[1], [0], [0], [1], [0, 0, 1, 1], [], []>} : vector<1x1152xbf16>, vector<1152x256xbf16>, vector<1x256xf32> -> vector<1x256xf32>
    %c0_4 = arith.constant 0 : index
    %c0_5 = arith.constant 0 : index
    %4 = vector.load %arg4[%c0_4, %c0_5] : memref<1x256xf32, #tpu.memory_space<vmem>>, vector<1x256xf32>
    %5 = arith.addf %3, %4 : vector<1x256xf32>
    %cst_6 = arith.constant 0.000000e+00 : f32
    %6 = vector.broadcast %cst_6 : f32 to vector<1x256xf32>
    %7 = arith.maximumf %5, %6 : vector<1x256xf32>
    %c0_7 = arith.constant 0 : index
    %c0_8 = arith.constant 0 : index
    %c0_9 = arith.constant 0 : index
    %8 = vector.load %arg5[%c0_7, %c0_8, %c0_9] : memref<1x1x256xf32, #tpu.memory_space<vmem>>, vector<1x1x256xf32>
    %9 = vector.shape_cast %8 : vector<1x1x256xf32> to vector<1x256xf32>
    %10 = vector.shape_cast %7 : vector<1x256xf32> to vector<1x1x256xf32>
    tpu.vector_store %arg5[%c0_7, %c0_8, %c0_9], %10 {strides = array<i32>} : memref<1x1x256xf32, #tpu.memory_space<vmem>>, vector<1x1x256xf32>,
    return
  }
  func.func @transform_0(%arg0: i32, %arg1: i32) -> (i32, i32, i32) {
    %c0_i32 = arith.constant 0 : i32
    %c0_i32_0 = arith.constant 0 : i32
    %c0_i32_1 = arith.constant 0 : i32
    return %arg0, %c0_i32, %c0_i32_0 : i32, i32, i32
  }
  func.func @transform_1(%arg0: i32, %arg1: i32) -> (i32, i32) {
    %c0_i32 = arith.constant 0 : i32
    %c0_i32_0 = arith.constant 0 : i32
    return %c0_i32, %arg1 : i32, i32
  }
  func.func @transform_2(%arg0: i32, %arg1: i32) -> (i32, i32) {
    %c0_i32 = arith.constant 0 : i32
    %c0_i32_0 = arith.constant 0 : i32
    return %c0_i32, %arg1 : i32, i32
  }
  func.func @transform_3(%arg0: i32, %arg1: i32) -> (i32, i32, i32) {
    %c0_i32 = arith.constant 0 : i32
    %c0_i32_0 = arith.constant 0 : i32
    return %arg0, %c0_i32, %arg1 : i32, i32, i32
  }
}

</mosaic_0001>

<bundles_post_ra>
// kernel: aux_convs_forward.8
= control target key start
LH: loop header
LB: loop body
LE: loop exit
PB: predicated region body
PF: predicated region fallthrough
CT: control target
= control target key end

     0   :  { %s4416_s12 = smov 0   ;;  %s4418_s13 = smov 0   ;;  %s5232_s0 = inlined_call_operand.vmem [shape: bf16[2,361,1024], index: 0, kind: input, shape index: {}]   ;;  %s5233_s1 = inlined_call_operand.vmem [shape: bf16[1024,256], index: 1, kind: input, shape index: {}]   ;;  %s5234_s2 = inlined_call_operand.vmem [shape: f32[1,256], index: 2, kind: input, shape index: {}]   ;;  %s5235_s3 = inlined_call_operand.vmem [shape: f32[2,361,256], index: 3, kind: output, shape index: {}]  }
   0x1   :  { %s4420_s14 = smov 0  }
   0x2 LB: > { %s25_s15 = sadd.s32 1, %s4390_s13  ;;  %p3469_p0 = scmp.ge.s32.totalorder %s4394_s14, 1  ;;  %s4394_s14 = sphi %s4420_s14, %s13_s14   ;;  %s4390_s13 = sphi %s4418_s13, %s5237_s13   ;;  %s4386_s12 = sphi %s4416_s12, %s5236_s12  }
   0x3   : > { %p27_p1 = scmp.ge.s32.totalorder %s25_s15, 2  ;;  %p172_p2 = scmp.lt.s32.totalorder %s4394_s14, 3 }
   0x5   : > { %s5239_s15 = smov (%p27_p1, %s25_s15), 0  ;;  %p173_p3 = pnand %p3469_p0, %p172_p2 }
   0x6   : > { %v4180_v0 = vld [vmem:[%s5233_s1 + $0x4] ss:$8 sps:$4 sm:$0xff] (!%p173_p3)   ;;  %v4184_v2 = vld [vmem:[%s5233_s1] ss:$8 sps:$4 sm:$0xff] (!%p173_p3)   ;;  %v4186_v4 = vld [vmem:[%s5233_s1 + $0x14] ss:$8 sps:$4 sm:$0xff] (!%p173_p3)  }
   0x7   : > { %176 = sbr.rel (%p173_p3) target bundleno = 653 (0x28d), region = 32  ;;  %v4182_v1 = vld [vmem:[%s5233_s1 + $0x204] ss:$8 sps:$4 sm:$0xff] (!%p173_p3)   ;;  %2119 = vmatprep.subr.bf16.mxu1 (!%p173_p3), %v4180_v0  ;;  %v4185_v3 = vld [vmem:[%s5233_s1 + $0x200] ss:$8 sps:$4 sm:$0xff] (!%p173_p3)   ;;  %p209_p4 = scmp.lt.s32.totalorder (!%p173_p3), %s4386_s12, 1 }
   0x8   : > { %2645 = vmatprep.subr.bf16.mxu0 (!%p173_p3), %v4182_v1  ;;  %2120 = vmatpush1.bf16.msra.mxu1 (!%p173_p3), %v4184_v2  ;;  %v4188_v5 = vld [vmem:[%s5233_s1 + $0x214] ss:$8 sps:$4 sm:$0xff] (!%p173_p3)   ;;  %v4190_v6 = vld [vmem:[%s5233_s1 + $0x10] ss:$8 sps:$4 sm:$0xff] (!%p173_p3)   ;;  %v4192_v8 = vld [vmem:[%s5233_s1 + $0x24] ss:$8 sps:$4 sm:$0xff] (!%p173_p3)  }
   0x9   : > { %2646 = vmatpush1.bf16.msra.mxu0 (!%p173_p3), %v4185_v3  ;;  %2121 = vmatprep.subr.bf16.mxu1 (!%p173_p3), %v4186_v4  ;;  %v4191_v7 = vld [vmem:[%s5233_s1 + $0x210] ss:$8 sps:$4 sm:$0xff] (!%p173_p3)   ;;  %v4194_v9 = vld [vmem:[%s5233_s1 + $0x224] ss:$8 sps:$4 sm:$0xff] (!%p173_p3)   ;;  %v4196_v10 = vld [vmem:[%s5233_s1 + $0x20] ss:$8 sps:$4 sm:$0xff] (!%p173_p3)  }
   0xa   : > { %2647 = vmatprep.subr.bf16.mxu0 (!%p173_p3), %v4188_v5  ;;  %v4197_v11 = vld [vmem:[%s5233_s1 + $0x220] ss:$8 sps:$4 sm:$0xff] (!%p173_p3)   ;;  %v4198_v12 = vld [vmem:[%s5233_s1 + $0x34] ss:$8 sps:$4 sm:$0xff] (!%p173_p3)   ;;  %v4202_v14 = vld [vmem:[%s5233_s1 + $0x30] ss:$8 sps:$4 sm:$0xff] (!%p173_p3)  }
   0xb   : > { %v4200_v13 = vld [vmem:[%s5233_s1 + $0x234] ss:$8 sps:$4 sm:$0xff] (!%p173_p3)   ;;  %v4203_v15 = vld [vmem:[%s5233_s1 + $0x230] ss:$8 sps:$4 sm:$0xff] (!%p173_p3)   ;;  %v4204_v16 = vld [vmem:[%s5233_s1 + $0x44] ss:$8 sps:$4 sm:$0xff] (!%p173_p3)  }
   0xc   : > { %2122 = vmatpush1.bf16.msra.mxu1 (!%p173_p3), %v4190_v6  ;;  %v4206_v17 = vld [vmem:[%s5233_s1 + $0x244] ss:$8 sps:$4 sm:$0xff] (!%p173_p3)   ;;  %v4208_v18 = vld [vmem:[%s5233_s1 + $0x40] ss:$8 sps:$4 sm:$0xff] (!%p173_p3)   ;;  %v4210_v20 = vld [vmem:[%s5233_s1 + $0x54] ss:$8 sps:$4 sm:$0xff] (!%p173_p3)  }
   0xd   : > { %2648 = vmatpush1.bf16.msra.mxu0 (!%p173_p3), %v4191_v7  ;;  %2123 = vmatprep.subr.bf16.mxu1 (!%p173_p3), %v4192_v8  ;;  %v4209_v19 = vld [vmem:[%s5233_s1 + $0x240] ss:$8 sps:$4 sm:$0xff] (!%p173_p3)   ;;  %v4212_v21 = vld [vmem:[%s5233_s1 + $0x254] ss:$8 sps:$4 sm:$0xff] (!%p173_p3)   ;;  %v4214_v22 = vld [vmem:[%s5233_s1 + $0x50] ss:$8 sps:$4 sm:$0xff] (!%p173_p3)  }
   0xe   : > { %2649 = vmatprep.subr.bf16.mxu0 %v4194_v9  ;;  %v4215_v23 = vld [vmem:[%s5233_s1 + $0x250] ss:$8 sps:$4 sm:$0xff]   ;;  %v4216_v24 = vld [vmem:[%s5233_s1 + $0x64] ss:$8 sps:$4 sm:$0xff]   ;;  %v4220_v26 = vld [vmem:[%s5233_s1 + $0x60] ss:$8 sps:$4 sm:$0xff]  }
   0xf   : > { %v4218_v25 = vld [vmem:[%s5233_s1 + $0x264] ss:$8 sps:$4 sm:$0xff]   ;;  %v4221_v27 = vld [vmem:[%s5233_s1 + $0x260] ss:$8 sps:$4 sm:$0xff]   ;;  %v4222_v28 = vld [vmem:[%s5233_s1 + $0x74] ss:$8 sps:$4 sm:$0xff]  }
  0x10   : > { %2124 = vmatpush1.bf16.msra.mxu1 %v4196_v10  ;;  %v4224_v29 = vld [vmem:[%s5233_s1 + $0x274] ss:$8 sps:$4 sm:$0xff]   ;;  %v4226_v30 = vld [vmem:[%s5233_s1 + $0x70] ss:$8 sps:$4 sm:$0xff]   ;;  %v4228_v32 = vld [vmem:[%s5233_s1 + $0x84] ss:$8 sps:$4 sm:$0xff]  }
  0x11   : > { %2650 = vmatpush1.bf16.msra.mxu0 %v4197_v11  ;;  %2125 = vmatprep.subr.bf16.mxu1 %v4198_v12  ;;  %v4227_v31 = vld [vmem:[%s5233_s1 + $0x270] ss:$8 sps:$4 sm:$0xff]   ;;  %v4230_v33 = vld [vmem:[%s5233_s1 + $0x284] ss:$8 sps:$4 sm:$0xff]   ;;  %v4232_v34 = vld [vmem:[%s5233_s1 + $0x80] ss:$8 sps:$4 sm:$0xff]  }
  0x12   : > { %2651 = vmatprep.subr.bf16.mxu0 %v4200_v13  ;;  %v4233_v35 = vld [vmem:[%s5233_s1 + $0x280] ss:$8 sps:$4 sm:$0xff]   ;;  %s5241_s12 = smov (!%p209_p4, %s4386_s12), 1  ;;  %v4234_v36 = vld [vmem:[%s5233_s1 + $0x94] ss:$8 sps:$4 sm:$0xff]  }
  0x13   : > { %v4236_v37 = vld [vmem:[%s5233_s1 + $0x294] ss:$8 sps:$4 sm:$0xff]   ;;  %v4238_v38 = vld [vmem:[%s5233_s1 + $0x90] ss:$8 sps:$4 sm:$0xff]   ;;  %s4154_s25 = smul.u32 1472, %s5241_s12 }
  0x14   : > { %2126 = vmatpush1.bf16.msra.mxu1 %v4202_v14  ;;  %v4239_v39 = vld [vmem:[%s5233_s1 + $0x290] ss:$8 sps:$4 sm:$0xff]   ;;  %v4240_v40 = vld [vmem:[%s5233_s1 + $0xa4] ss:$8 sps:$4 sm:$0xff]   ;;  %v4244_v42 = vld [vmem:[%s5233_s1 + $0xa0] ss:$8 sps:$4 sm:$0xff]  }
  0x15   : > { %2652 = vmatpush1.bf16.msra.mxu0 %v4203_v15  ;;  %2127 = vmatprep.subr.bf16.mxu1 %v4204_v16  ;;  %v4242_v41 = vld [vmem:[%s5233_s1 + $0x2a4] ss:$8 sps:$4 sm:$0xff]   ;;  %v4245_v43 = vld [vmem:[%s5233_s1 + $0x2a0] ss:$8 sps:$4 sm:$0xff]   ;;  %s4576_s11 = scalar_lea.vmem %s5232_s0, %s4154_s25  ;;  %v4246_v44 = vld [vmem:[%s5233_s1 + $0xb4] ss:$8 sps:$4 sm:$0xff]  }
  0x16   : > { %2653 = vmatprep.subr.bf16.mxu0 %v4206_v17  ;;  %v4248_v45 = vld [vmem:[%s5233_s1 + $0x2b4] ss:$8 sps:$4 sm:$0xff]   ;;  %v4250_v46 = vld [vmem:[%s5233_s1 + $0xb0] ss:$8 sps:$4 sm:$0xff]   ;;  %v4591_v48 = vld [vmem:[%s4576_s11] sm:$0xff] }
  0x17   : > { %v4251_v47 = vld [vmem:[%s5233_s1 + $0x2b0] ss:$8 sps:$4 sm:$0xff]   ;;  %v4594_v49 = vld [vmem:[%s4576_s11 + $0x20] sm:$0xff]  ;;  %v4258_v58 = vld [vmem:[%s5233_s1 + $0xd4] ss:$8 sps:$4 sm:$0xff]  }
  0x18   : > { %2128 = vmatpush1.bf16.msra.mxu1 %v4208_v18  ;;  %v4597_v50 = vld [vmem:[%s4576_s11 + $0x10] sm:$0xff]  ;;  %v4252_v52 = vld [vmem:[%s5233_s1 + $0xc4] ss:$8 sps:$4 sm:$0xff]   ;;  %v3473_v53 = vcombine.high %v4591_v48, %v4594_v49  ;;  %v4256_v56 = vld [vmem:[%s5233_s1 + $0xc0] ss:$8 sps:$4 sm:$0xff]   ;;  %v3472_v12 = vcombine.low %v4591_v48, %v4594_v49 }
  0x19   : > { %2654 = vmatpush1.bf16.msra.mxu0 %v4209_v19  ;;  %2129 = vmatprep.subr.bf16.mxu1 %v4210_v20  ;;  %v241_v51 = vld [vmem:[%s4576_s11 + $0x30] sm:$0xff]  ;;  %v4254_v54 = vld [vmem:[%s5233_s1 + $0x2c4] ss:$8 sps:$4 sm:$0xff]   ;;  %v4257_v57 = vld [vmem:[%s5233_s1 + $0x2c0] ss:$8 sps:$4 sm:$0xff]  }
  0x1a   : > { %2655 = vmatprep.subr.bf16.mxu0 %v4212_v21  ;;  %v3477_v55 = vcombine.high %v4597_v50, %v241_v51  ;;  %2151 = vmatprep.mubr.bf16.mxu1 %v3473_v53  ;;  %v4260_v59 = vld [vmem:[%s5233_s1 + $0x2d4] ss:$8 sps:$4 sm:$0xff]   ;;  %v4262_v60 = vld [vmem:[%s5233_s1 + $0xd0] ss:$8 sps:$4 sm:$0xff]   ;;  %v4264_v62 = vld [vmem:[%s5233_s1 + $0xe4] ss:$8 sps:$4 sm:$0xff]   ;;  %v3476_v13 = vcombine.low %v4597_v50, %v241_v51 }
  0x1b   : > { %v4263_v61 = vld [vmem:[%s5233_s1 + $0x2d0] ss:$8 sps:$4 sm:$0xff]   ;;  %v4266_v63 = vld [vmem:[%s5233_s1 + $0x2e4] ss:$8 sps:$4 sm:$0xff]   ;;  %v4268_v0 = vld [vmem:[%s5233_s1 + $0xe0] ss:$8 sps:$4 sm:$0xff]  }
  0x1c   : > { %2130 = vmatpush1.bf16.msra.mxu1 %v4214_v22  ;;  %2677 = vmatprep.mubr.bf16.mxu0 %v3477_v55  ;;  %v4269_v1 = vld [vmem:[%s5233_s1 + $0x2e0] ss:$8 sps:$4 sm:$0xff]   ;;  %v4270_v2 = vld [vmem:[%s5233_s1 + $0xf4] ss:$8 sps:$4 sm:$0xff]   ;;  %v4274_v4 = vld [vmem:[%s5233_s1 + $0xf0] ss:$8 sps:$4 sm:$0xff]  }
  0x1d   : > { %2656 = vmatpush1.bf16.msra.mxu0 %v4215_v23  ;;  %2131 = vmatprep.subr.bf16.mxu1 %v4216_v24  ;;  %v4272_v3 = vld [vmem:[%s5233_s1 + $0x2f4] ss:$8 sps:$4 sm:$0xff]   ;;  %v4275_v5 = vld [vmem:[%s5233_s1 + $0x2f0] ss:$8 sps:$4 sm:$0xff]   ;;  %v4278_v6 = vld [vmem:[%s5233_s1 + $0x104] ss:$8 sps:$4 sm:$0xff]  }
  0x1e   : > { %2657 = vmatprep.subr.bf16.mxu0 %v4218_v25  ;;  %v4281_v7 = vld [vmem:[%s5233_s1 + $0x304] ss:$8 sps:$4 sm:$0xff]   ;;  %v245_v10 = vld [vmem:[%s4576_s11 + $0x50] sm:$0xff]  ;;  %v4276_v14 = vld [vmem:[%s5233_s1 + $0x100] ss:$8 sps:$4 sm:$0xff]  }
  0x1f   : > { %v243_v8 = vld [vmem:[%s4576_s11 + $0x40] sm:$0xff]  ;;  %v249_v11 = vld [vmem:[%s4576_s11 + $0x70] sm:$0xff] }
  0x20   : > { %2132 = vmatpush1.bf16.msra.mxu1 %v4220_v26  ;;  %v247_v9 = vld [vmem:[%s4576_s11 + $0x60] sm:$0xff]  ;;  %v3485_v17 = vcombine.high %v245_v10, %v249_v11  ;;  %v4284_v18 = vld [vmem:[%s5233_s1 + $0x114] ss:$8 sps:$4 sm:$0xff]   ;;  %v4282_v19 = vld [vmem:[%s5233_s1 + $0x110] ss:$8 sps:$4 sm:$0xff]  }
  0x21   : > { %2658 = vmatpush1.bf16.msra.mxu0 %v4221_v27  ;;  %2133 = vmatprep.subr.bf16.mxu1 %v4222_v28  ;;  %v4279_v15 = vld [vmem:[%s5233_s1 + $0x300] ss:$8 sps:$4 sm:$0xff]   ;;  %v3481_v16 = vcombine.high %v243_v8, %v247_v9  ;;  %v4285_v20 = vld [vmem:[%s5233_s1 + $0x310] ss:$8 sps:$4 sm:$0xff]   ;;  %v4287_v21 = vld [vmem:[%s5233_s1 + $0x314] ss:$8 sps:$4 sm:$0xff]   ;;  %v3480_v28 = vcombine.low %v243_v8, %v247_v9 }
  0x22   : > { %2659 = vmatprep.subr.bf16.mxu0 %v4224_v29  ;;  %v251_v22 = vld [vmem:[%s4576_s11 + $0x80] sm:$0xff]  ;;  %v253_v24 = vld [vmem:[%s4576_s11 + $0x90] sm:$0xff]  ;;  %v3484_v29 = vcombine.low %v245_v10, %v249_v11 }
  0x23   : > { %v255_v23 = vld [vmem:[%s4576_s11 + $0xa0] sm:$0xff]  ;;  %v257_v25 = vld [vmem:[%s4576_s11 + $0xb0] sm:$0xff] }
  0x24   : > { %2134 = vmatpush1.bf16.msra.mxu1 %v4226_v30  ;;  %v4290_v26 = vld [vmem:[%s5233_s1 + $0x124] ss:$8 sps:$4 sm:$0xff]   ;;  %v3489_v30 = vcombine.high %v251_v22, %v255_v23  ;;  %v4300_v48 = vld [vmem:[%s5233_s1 + $0x140] ss:$8 sps:$4 sm:$0xff]   ;;  %v4308_v50 = vld [vmem:[%s5233_s1 + $0x154] ss:$8 sps:$4 sm:$0xff]  }
  0x25   : > { %2660 = vmatpush1.bf16.msra.mxu0 %v4227_v31  ;;  %2135 = vmatprep.subr.bf16.mxu1 %v4228_v32  ;;  %v4293_v27 = vld [vmem:[%s5233_s1 + $0x324] ss:$8 sps:$4 sm:$0xff]   ;;  %v3493_v31 = vcombine.high %v253_v24, %v257_v25  ;;  %v4288_v32 = vld [vmem:[%s5233_s1 + $0x120] ss:$8 sps:$4 sm:$0xff]   ;;  %v4311_v51 = vld [vmem:[%s5233_s1 + $0x354] ss:$8 sps:$4 sm:$0xff]  }
  0x26   : > { %2661 = vmatprep.subr.bf16.mxu0 %v4230_v33  ;;  %v4291_v33 = vld [vmem:[%s5233_s1 + $0x320] ss:$8 sps:$4 sm:$0xff]   ;;  %v273_v55 = vld [vmem:[%s4576_s11 + $0x130] sm:$0xff]  ;;  %v4326_v10 = vld [vmem:[%s5233_s1 + $0x184] ss:$8 sps:$4 sm:$0xff]  }
  0x27   : > { %v4303_v49 = vld [vmem:[%s5233_s1 + $0x340] ss:$8 sps:$4 sm:$0xff]   ;;  %v4318_v8 = vld [vmem:[%s5233_s1 + $0x170] ss:$8 sps:$4 sm:$0xff]   ;;  %v4329_v11 = vld [vmem:[%s5233_s1 + $0x384] ss:$8 sps:$4 sm:$0xff]  }
  0x28   : > { %2136 = vmatpush1.bf16.msra.mxu1 %v4232_v34  ;;  %v4296_v34 = vld [vmem:[%s5233_s1 + $0x134] ss:$8 sps:$4 sm:$0xff]   ;;  %v271_v53 = vld [vmem:[%s4576_s11 + $0x120] sm:$0xff]  ;;  %v4321_v9 = vld [vmem:[%s5233_s1 + $0x370] ss:$8 sps:$4 sm:$0xff]  }
  0x29   : > { %2662 = vmatpush1.bf16.msra.mxu0 %v4233_v35  ;;  %2137 = vmatprep.subr.bf16.mxu1 %v4234_v36  ;;  %v4299_v35 = vld [vmem:[%s5233_s1 + $0x334] ss:$8 sps:$4 sm:$0xff]   ;;  %v259_v36 = vld [vmem:[%s4576_s11 + $0xc0] sm:$0xff] }
  0x2a   : > { %2663 = vmatprep.subr.bf16.mxu0 %v4236_v37  ;;  %v263_v37 = vld [vmem:[%s4576_s11 + $0xe0] sm:$0xff] }
  0x2c   : > { %2138 = vmatpush1.bf16.msra.mxu1 %v4238_v38  ;;  %v261_v38 = vld [vmem:[%s4576_s11 + $0xd0] sm:$0xff] }
  0x2d   : > { %2664 = vmatpush1.bf16.msra.mxu0 %v4239_v39  ;;  %2139 = vmatprep.subr.bf16.mxu1 %v4240_v40  ;;  %v265_v39 = vld [vmem:[%s4576_s11 + $0xf0] sm:$0xff] }
  0x2e   : > { %2665 = vmatprep.subr.bf16.mxu0 %v4242_v41  ;;  %v4294_v40 = vld [vmem:[%s5233_s1 + $0x130] ss:$8 sps:$4 sm:$0xff]  }
  0x2f   : > { %v4297_v41 = vld [vmem:[%s5233_s1 + $0x330] ss:$8 sps:$4 sm:$0xff]  }
  0x30   : > { %2140 = vmatpush1.bf16.msra.mxu1 %v4244_v42  ;;  %v4302_v42 = vld [vmem:[%s5233_s1 + $0x144] ss:$8 sps:$4 sm:$0xff]  }
  0x31   : > { %2666 = vmatpush1.bf16.msra.mxu0 %v4245_v43  ;;  %2141 = vmatprep.subr.bf16.mxu1 %v4246_v44  ;;  %v4305_v43 = vld [vmem:[%s5233_s1 + $0x344] ss:$8 sps:$4 sm:$0xff]   ;;  %v3488_v44 = vcombine.low %v251_v22, %v255_v23  ;;  %v285_v22 = vld [vmem:[%s4576_s11 + $0x190] sm:$0xff] }
  0x32   : > { %2667 = vmatprep.subr.bf16.mxu0 %v4248_v45  ;;  %v3492_v45 = vcombine.low %v253_v24, %v257_v25  ;;  %v289_v23 = vld [vmem:[%s4576_s11 + $0x1b0] sm:$0xff] }
  0x33   : > { %v4330_v24 = vld [vmem:[%s5233_s1 + $0x190] ss:$8 sps:$4 sm:$0xff]  }
  0x34   : > { %2142 = vmatpush1.bf16.msra.mxu1 %v4250_v46  ;;  %v3497_v46 = vcombine.high %v259_v36, %v263_v37  ;;  %v4333_v25 = vld [vmem:[%s5233_s1 + $0x390] ss:$8 sps:$4 sm:$0xff]  }
  0x35   : > { %2668 = vmatpush1.bf16.msra.mxu0 %v4251_v47  ;;  %2143 = vmatprep.subr.bf16.mxu1 %v4252_v52  ;;  %v3501_v47 = vcombine.high %v261_v38, %v265_v39  ;;  %v267_v52 = vld [vmem:[%s4576_s11 + $0x100] sm:$0xff] }
  0x36   : > { %2669 = vmatprep.subr.bf16.mxu0 %v4254_v54  ;;  %v269_v54 = vld [vmem:[%s4576_s11 + $0x110] sm:$0xff] }
  0x38   : > { %2144 = vmatpush1.bf16.msra.mxu1 %v4256_v56  ;;  %v4306_v56 = vld [vmem:[%s5233_s1 + $0x150] ss:$8 sps:$4 sm:$0xff]  }
  0x39   : > { %2670 = vmatpush1.bf16.msra.mxu0 %v4257_v57  ;;  %2145 = vmatprep.subr.bf16.mxu1 %v4258_v58  ;;  %v4309_v57 = vld [vmem:[%s5233_s1 + $0x350] ss:$8 sps:$4 sm:$0xff]   ;;  %v4314_v58 = vld [vmem:[%s5233_s1 + $0x164] ss:$8 sps:$4 sm:$0xff]  }
  0x3a   : > { %2671 = vmatprep.subr.bf16.mxu0 %v4260_v59  ;;  %v4317_v59 = vld [vmem:[%s5233_s1 + $0x364] ss:$8 sps:$4 sm:$0xff]  }
  0x3c   : > { %2146 = vmatpush1.bf16.msra.mxu1 %v4262_v60  ;;  %v3496_v60 = vcombine.low %v259_v36, %v263_v37  ;;  %v291_v36 = vld [vmem:[%s4576_s11 + $0x1c0] sm:$0xff] }
  0x3d   : > { %2672 = vmatpush1.bf16.msra.mxu0 %v4263_v61  ;;  %2147 = vmatprep.subr.bf16.mxu1 %v4264_v62  ;;  %v3500_v61 = vcombine.low %v261_v38, %v265_v39  ;;  %v3505_v62 = vcombine.high %v267_v52, %v271_v53  ;;  %v295_v37 = vld [vmem:[%s4576_s11 + $0x1e0] sm:$0xff]  ;;  %v293_v38 = vld [vmem:[%s4576_s11 + $0x1d0] sm:$0xff] }
  0x3e   : > { %2673 = vmatprep.subr.bf16.mxu0 %v4266_v63  ;;  %v3509_v63 = vcombine.high %v269_v54, %v273_v55  ;;  %v297_v39 = vld [vmem:[%s4576_s11 + $0x1f0] sm:$0xff] }
  0x40   : > { %2148 = vmatpush1.bf16.msra.mxu1 %v4268_v0  ;;  %v4312_v0 = vld [vmem:[%s5233_s1 + $0x160] ss:$8 sps:$4 sm:$0xff]  }
  0x41   : > { %2674 = vmatpush1.bf16.msra.mxu0 %v4269_v1  ;;  %2149 = vmatprep.subr.bf16.mxu1 %v4270_v2  ;;  %v4315_v1 = vld [vmem:[%s5233_s1 + $0x360] ss:$8 sps:$4 sm:$0xff]   ;;  %v4320_v2 = vld [vmem:[%s5233_s1 + $0x174] ss:$8 sps:$4 sm:$0xff]  }
  0x42   : > { %2675 = vmatprep.subr.bf16.mxu0 %v4272_v3  ;;  %v4323_v3 = vld [vmem:[%s5233_s1 + $0x374] ss:$8 sps:$4 sm:$0xff]  }
  0x44   : > { %2150 = vmatpush1.bf16.msra.mxu1 %v4274_v4  ;;  %v275_v4 = vld [vmem:[%s4576_s11 + $0x140] sm:$0xff] }
  0x45   : > { %2676 = vmatpush1.bf16.msra.mxu0 %v4275_v5  ;;  %2382 = vmatprep.subr.bf16.mxu1 %v4278_v6  ;;  %v279_v5 = vld [vmem:[%s4576_s11 + $0x160] sm:$0xff]  ;;  %v277_v6 = vld [vmem:[%s4576_s11 + $0x150] sm:$0xff] }
  0x46   : > { %2908 = vmatprep.subr.bf16.mxu0 %v4281_v7  ;;  %v281_v7 = vld [vmem:[%s4576_s11 + $0x170] sm:$0xff] }
  0x47   : > { %2152 = vmatmul.mubr.bf16.vlgmr.msra.gmra.mrb[0].mxu1 %v3472_v12  ;;  %v3504_v12 = vcombine.low %v267_v52, %v271_v53  ;;  %v299_v52 = vld [vmem:[%s4576_s11 + $0x200] sm:$0xff] }
  0x48   : > { %2678 = vmatmul.mubr.bf16.vlgmr.msra.gmra.mrb[0].mxu0 %v3476_v13  ;;  %2383 = vmatpush1.bf16.msra.mxu1 %v4276_v14  ;;  %v3508_v13 = vcombine.low %v269_v54, %v273_v55  ;;  %v3513_v14 = vcombine.high %v275_v4, %v279_v5  ;;  %v303_v53 = vld [vmem:[%s4576_s11 + $0x220] sm:$0xff]  ;;  %v301_v54 = vld [vmem:[%s4576_s11 + $0x210] sm:$0xff] }
  0x49   : > { %2909 = vmatpush1.bf16.msra.mxu0 %v4279_v15  ;;  %2161 = vmatprep.mubr.bf16.mxu1 %v3481_v16  ;;  %v3517_v15 = vcombine.high %v277_v6, %v281_v7  ;;  %v4324_v16 = vld [vmem:[%s5233_s1 + $0x180] ss:$8 sps:$4 sm:$0xff]   ;;  %v305_v55 = vld [vmem:[%s4576_s11 + $0x230] sm:$0xff] }
  0x4a   : > { %2687 = vmatprep.mubr.bf16.mxu0 %v3485_v17  ;;  %2384 = vmatprep.subr.bf16.mxu1 %v4284_v18  ;;  %v4327_v17 = vld [vmem:[%s5233_s1 + $0x380] ss:$8 sps:$4 sm:$0xff]   ;;  %v4332_v18 = vld [vmem:[%s5233_s1 + $0x194] ss:$8 sps:$4 sm:$0xff]  }
  0x4b   : > { %2910 = vmatprep.subr.bf16.mxu0 %v4287_v21  ;;  %v287_v21 = vld [vmem:[%s4576_s11 + $0x1a0] sm:$0xff] }
  0x4c   : > { %2385 = vmatpush1.bf16.msra.mxu1 %v4282_v19  ;;  %v4335_v19 = vld [vmem:[%s5233_s1 + $0x394] ss:$8 sps:$4 sm:$0xff]  }
  0x4d   : > { %2911 = vmatpush1.bf16.msra.mxu0 %v4285_v20  ;;  %2386 = vmatprep.subr.bf16.mxu1 %v4290_v26  ;;  %v283_v20 = vld [vmem:[%s4576_s11 + $0x180] sm:$0xff] }
  0x4e   : > { %2912 = vmatprep.subr.bf16.mxu0 %v4293_v27  ;;  %v4338_v26 = vld [vmem:[%s5233_s1 + $0x1a4] ss:$8 sps:$4 sm:$0xff]  }
  0x4f   : > { %2162 = vmatmul.mubr.bf16.gmra.mrb[4].mxu1 %v3480_v28  ;;  %v4341_v27 = vld [vmem:[%s5233_s1 + $0x3a4] ss:$8 sps:$4 sm:$0xff]   ;;  %v3512_v28 = vcombine.low %v275_v4, %v279_v5 }
  0x50   : > { %2688 = vmatmul.mubr.bf16.gmra.mrb[4].mxu0 %v3484_v29  ;;  %2171 = vmatprep.mubr.bf16.mxu1 %v3489_v30  ;;  %v3516_v29 = vcombine.low %v277_v6, %v281_v7  ;;  %v3521_v30 = vcombine.high %v283_v20, %v287_v21  ;;  %v307_v4 = vld [vmem:[%s4576_s11 + $0x240] sm:$0xff]  ;;  %v309_v6 = vld [vmem:[%s4576_s11 + $0x250] sm:$0xff] }
  0x51   : > { %2697 = vmatprep.mubr.bf16.mxu0 %v3493_v31  ;;  %2387 = vmatpush1.bf16.msra.mxu1 %v4288_v32  ;;  %v3525_v31 = vcombine.high %v285_v22, %v289_v23  ;;  %v4336_v32 = vld [vmem:[%s5233_s1 + $0x1a0] ss:$8 sps:$4 sm:$0xff]   ;;  %v313_v7 = vld [vmem:[%s4576_s11 + $0x270] sm:$0xff] }
  0x52   : > { %2913 = vmatpush1.bf16.msra.mxu0 %v4291_v33  ;;  %2388 = vmatprep.subr.bf16.mxu1 %v4296_v34  ;;  %v4339_v33 = vld [vmem:[%s5233_s1 + $0x3a0] ss:$8 sps:$4 sm:$0xff]   ;;  %v4344_v34 = vld [vmem:[%s5233_s1 + $0x1b4] ss:$8 sps:$4 sm:$0xff]  }
  0x53   : > { %2914 = vmatprep.subr.bf16.mxu0 %v4299_v35  ;;  %v4347_v35 = vld [vmem:[%s5233_s1 + $0x3b4] ss:$8 sps:$4 sm:$0xff]   ;;  %v311_v5 = vld [vmem:[%s4576_s11 + $0x260] sm:$0xff] }
  0x55   : > { %2389 = vmatpush1.bf16.msra.mxu1 %v4294_v40  ;;  %v4342_v40 = vld [vmem:[%s5233_s1 + $0x1b0] ss:$8 sps:$4 sm:$0xff]  }
  0x56   : > { %2915 = vmatpush1.bf16.msra.mxu0 %v4297_v41  ;;  %2390 = vmatprep.subr.bf16.mxu1 %v4302_v42  ;;  %v4345_v41 = vld [vmem:[%s5233_s1 + $0x3b0] ss:$8 sps:$4 sm:$0xff]   ;;  %v4350_v42 = vld [vmem:[%s5233_s1 + $0x1c4] ss:$8 sps:$4 sm:$0xff]  }
  0x57   : > { %2916 = vmatprep.subr.bf16.mxu0 %v4305_v43  ;;  %2172 = vmatmul.mubr.bf16.gmra.mrb[8].mxu1 %v3488_v44  ;;  %v4353_v43 = vld [vmem:[%s5233_s1 + $0x3c4] ss:$8 sps:$4 sm:$0xff]   ;;  %v3520_v44 = vcombine.low %v283_v20, %v287_v21 }
  0x58   : > { %2698 = vmatmul.mubr.bf16.gmra.mrb[8].mxu0 %v3492_v45  ;;  %2181 = vmatprep.mubr.bf16.mxu1 %v3497_v46  ;;  %v3524_v45 = vcombine.low %v285_v22, %v289_v23  ;;  %v3529_v46 = vcombine.high %v291_v36, %v295_v37  ;;  %v323_v22 = vld [vmem:[%s4576_s11 + $0x2c0] sm:$0xff] }
  0x59   : > { %2707 = vmatprep.mubr.bf16.mxu0 %v3501_v47  ;;  %2391 = vmatpush1.bf16.msra.mxu1 %v4300_v48  ;;  %v3533_v47 = vcombine.high %v293_v38, %v297_v39  ;;  %v4348_v48 = vld [vmem:[%s5233_s1 + $0x1c0] ss:$8 sps:$4 sm:$0xff]  }
  0x5a   : > { %2917 = vmatpush1.bf16.msra.mxu0 %v4303_v49  ;;  %2392 = vmatprep.subr.bf16.mxu1 %v4308_v50  ;;  %v4351_v49 = vld [vmem:[%s5233_s1 + $0x3c0] ss:$8 sps:$4 sm:$0xff]   ;;  %v4356_v50 = vld [vmem:[%s5233_s1 + $0x1d4] ss:$8 sps:$4 sm:$0xff]  }
  0x5b   : > { %2918 = vmatprep.subr.bf16.mxu0 %v4311_v51  ;;  %v4359_v51 = vld [vmem:[%s5233_s1 + $0x3d4] ss:$8 sps:$4 sm:$0xff]   ;;  %v327_v23 = vld [vmem:[%s4576_s11 + $0x2e0] sm:$0xff] }
  0x5d   : > { %2393 = vmatpush1.bf16.msra.mxu1 %v4306_v56  ;;  %v4354_v56 = vld [vmem:[%s5233_s1 + $0x1d0] ss:$8 sps:$4 sm:$0xff]  }
  0x5e   : > { %2919 = vmatpush1.bf16.msra.mxu0 %v4309_v57  ;;  %2394 = vmatprep.subr.bf16.mxu1 %v4314_v58  ;;  %v4357_v57 = vld [vmem:[%s5233_s1 + $0x3d0] ss:$8 sps:$4 sm:$0xff]   ;;  %v4362_v58 = vld [vmem:[%s5233_s1 + $0x1e4] ss:$8 sps:$4 sm:$0xff]  }
  0x5f   : > { %2920 = vmatprep.subr.bf16.mxu0 %v4317_v59  ;;  %2182 = vmatmul.mubr.bf16.gmra.mrb[12].mxu1 %v3496_v60  ;;  %v4365_v59 = vld [vmem:[%s5233_s1 + $0x3e4] ss:$8 sps:$4 sm:$0xff]   ;;  %v3528_v60 = vcombine.low %v291_v36, %v295_v37 }
  0x60   : > { %2708 = vmatmul.mubr.bf16.gmra.mrb[12].mxu0 %v3500_v61  ;;  %2191 = vmatprep.mubr.bf16.mxu1 %v3505_v62  ;;  %v3532_v61 = vcombine.low %v293_v38, %v297_v39  ;;  %v3537_v62 = vcombine.high %v299_v52, %v303_v53  ;;  %v339_v38 = vld [vmem:[%s4576_s11 + $0x340] sm:$0xff] }
  0x61   : > { %2717 = vmatprep.mubr.bf16.mxu0 %v3509_v63  ;;  %2395 = vmatpush1.bf16.msra.mxu1 %v4312_v0  ;;  %v3541_v63 = vcombine.high %v301_v54, %v305_v55  ;;  %v4360_v0 = vld [vmem:[%s5233_s1 + $0x1e0] ss:$8 sps:$4 sm:$0xff]  }
  0x62   : > { %2921 = vmatpush1.bf16.msra.mxu0 %v4315_v1  ;;  %2396 = vmatprep.subr.bf16.mxu1 %v4320_v2  ;;  %v4363_v1 = vld [vmem:[%s5233_s1 + $0x3e0] ss:$8 sps:$4 sm:$0xff]   ;;  %v4368_v2 = vld [vmem:[%s5233_s1 + $0x1f4] ss:$8 sps:$4 sm:$0xff]  }
  0x63   : > { %2922 = vmatprep.subr.bf16.mxu0 %v4323_v3  ;;  %v4371_v3 = vld [vmem:[%s5233_s1 + $0x3f4] ss:$8 sps:$4 sm:$0xff]   ;;  %v343_v39 = vld [vmem:[%s4576_s11 + $0x360] sm:$0xff] }
  0x65   : > { %2397 = vmatpush1.bf16.msra.mxu1 %v4318_v8  ;;  %v4366_v8 = vld [vmem:[%s5233_s1 + $0x1f0] ss:$8 sps:$4 sm:$0xff]  }
  0x66   : > { %2923 = vmatpush1.bf16.msra.mxu0 %v4321_v9  ;;  %2398 = vmatprep.subr.bf16.mxu1 %v4326_v10  ;;  %v4369_v9 = vld [vmem:[%s5233_s1 + $0x3f0] ss:$8 sps:$4 sm:$0xff]   ;;  %v3536_v10 = vcombine.low %v299_v52, %v303_v53 }
  0x67   : > { %2924 = vmatprep.subr.bf16.mxu0 %v4329_v11  ;;  %2192 = vmatmul.mubr.bf16.gmra.mrb[16].mxu1 %v3504_v12  ;;  %v3540_v11 = vcombine.low %v301_v54, %v305_v55  ;;  %v3545_v12 = vcombine.high %v307_v4, %v311_v5  ;;  %v355_v54 = vld [vmem:[%s4576_s11 + $0x3c0] sm:$0xff] }
  0x68   : > { %2718 = vmatmul.mubr.bf16.gmra.mrb[16].mxu0 %v3508_v13  ;;  %2201 = vmatprep.mubr.bf16.mxu1 %v3513_v14  ;;  %v3549_v13 = vcombine.high %v309_v6, %v313_v7  ;;  %v315_v14 = vld [vmem:[%s4576_s11 + $0x280] sm:$0xff] }
  0x69   : > { %2727 = vmatprep.mubr.bf16.mxu0 %v3517_v15  ;;  %2399 = vmatpush1.bf16.msra.mxu1 %v4324_v16  ;;  %v319_v15 = vld [vmem:[%s4576_s11 + $0x2a0] sm:$0xff]  ;;  %v317_v16 = vld [vmem:[%s4576_s11 + $0x290] sm:$0xff] }
  0x6a   : > { %2925 = vmatpush1.bf16.msra.mxu0 %v4327_v17  ;;  %2400 = vmatprep.subr.bf16.mxu1 %v4332_v18  ;;  %v321_v17 = vld [vmem:[%s4576_s11 + $0x2b0] sm:$0xff]  ;;  %v3544_v18 = vcombine.low %v307_v4, %v311_v5  ;;  %v3553_v20 = vcombine.high %v315_v14, %v319_v15  ;;  %v359_v55 = vld [vmem:[%s4576_s11 + $0x3e0] sm:$0xff] }
  0x6b   : > { %2926 = vmatprep.subr.bf16.mxu0 %v4335_v19  ;;  %v3548_v19 = vcombine.low %v309_v6, %v313_v7  ;;  %v3557_v21 = vcombine.high %v317_v16, %v321_v17  ;;  %v371_v6 = vld [vmem:[%s4576_s11 + $0x440] sm:$0xff] }
  0x6c   : > { %v375_v7 = vld [vmem:[%s4576_s11 + $0x460] sm:$0xff] }
  0x6d   : > { %2401 = vmatpush1.bf16.msra.mxu1 %v4330_v24  ;;  %v325_v24 = vld [vmem:[%s4576_s11 + $0x2d0] sm:$0xff] }
  0x6e   : > { %2927 = vmatpush1.bf16.msra.mxu0 %v4333_v25  ;;  %2402 = vmatprep.subr.bf16.mxu1 %v4338_v26  ;;  %v329_v25 = vld [vmem:[%s4576_s11 + $0x2f0] sm:$0xff]  ;;  %v3552_v26 = vcombine.low %v315_v14, %v319_v15  ;;  %v379_v14 = vld [vmem:[%s4576_s11 + $0x480] sm:$0xff] }
  0x6f   : > { %2928 = vmatprep.subr.bf16.mxu0 %v4341_v27  ;;  %2202 = vmatmul.mubr.bf16.gmra.mrb[20].mxu1 %v3512_v28  ;;  %v3556_v27 = vcombine.low %v317_v16, %v321_v17  ;;  %v3561_v28 = vcombine.high %v323_v22, %v327_v23  ;;  %v383_v15 = vld [vmem:[%s4576_s11 + $0x4a0] sm:$0xff]  ;;  %v381_v16 = vld [vmem:[%s4576_s11 + $0x490] sm:$0xff] }
  0x70   : > { %2728 = vmatmul.mubr.bf16.gmra.mrb[20].mxu0 %v3516_v29  ;;  %2211 = vmatprep.mubr.bf16.mxu1 %v3521_v30  ;;  %v3565_v29 = vcombine.high %v325_v24, %v329_v25  ;;  %v331_v30 = vld [vmem:[%s4576_s11 + $0x300] sm:$0xff]  ;;  %v385_v17 = vld [vmem:[%s4576_s11 + $0x4b0] sm:$0xff] }
  0x71   : > { %2737 = vmatprep.mubr.bf16.mxu0 %v3525_v31  ;;  %2403 = vmatpush1.bf16.msra.mxu1 %v4336_v32  ;;  %v335_v31 = vld [vmem:[%s4576_s11 + $0x320] sm:$0xff]  ;;  %v333_v32 = vld [vmem:[%s4576_s11 + $0x310] sm:$0xff] }
  0x72   : > { %2929 = vmatpush1.bf16.msra.mxu0 %v4339_v33  ;;  %2404 = vmatprep.subr.bf16.mxu1 %v4344_v34  ;;  %v337_v33 = vld [vmem:[%s4576_s11 + $0x330] sm:$0xff]  ;;  %v3560_v34 = vcombine.low %v323_v22, %v327_v23  ;;  %v3569_v36 = vcombine.high %v331_v30, %v335_v31  ;;  %v387_v22 = vld [vmem:[%s4576_s11 + $0x4c0] sm:$0xff] }
  0x73   : > { %2930 = vmatprep.subr.bf16.mxu0 %v4347_v35  ;;  %v3564_v35 = vcombine.low %v325_v24, %v329_v25  ;;  %v3573_v37 = vcombine.high %v333_v32, %v337_v33  ;;  %v391_v23 = vld [vmem:[%s4576_s11 + $0x4e0] sm:$0xff]  ;;  %v389_v24 = vld [vmem:[%s4576_s11 + $0x4d0] sm:$0xff] }
  0x74   : > { %v393_v25 = vld [vmem:[%s4576_s11 + $0x4f0] sm:$0xff] }
  0x75   : > { %2405 = vmatpush1.bf16.msra.mxu1 %v4342_v40  ;;  %v341_v40 = vld [vmem:[%s4576_s11 + $0x350] sm:$0xff] }
  0x76   : > { %2931 = vmatpush1.bf16.msra.mxu0 %v4345_v41  ;;  %2406 = vmatprep.subr.bf16.mxu1 %v4350_v42  ;;  %v345_v41 = vld [vmem:[%s4576_s11 + $0x370] sm:$0xff]  ;;  %v3568_v42 = vcombine.low %v331_v30, %v335_v31  ;;  %v395_v30 = vld [vmem:[%s4576_s11 + $0x500] sm:$0xff] }
  0x77   : > { %2932 = vmatprep.subr.bf16.mxu0 %v4353_v43  ;;  %2212 = vmatmul.mubr.bf16.gmra.mrb[24].mxu1 %v3520_v44  ;;  %v3572_v43 = vcombine.low %v333_v32, %v337_v33  ;;  %v3577_v44 = vcombine.high %v339_v38, %v343_v39  ;;  %v399_v31 = vld [vmem:[%s4576_s11 + $0x520] sm:$0xff]  ;;  %v397_v32 = vld [vmem:[%s4576_s11 + $0x510] sm:$0xff] }
  0x78   : > { %2738 = vmatmul.mubr.bf16.gmra.mrb[24].mxu0 %v3524_v45  ;;  %2221 = vmatprep.mubr.bf16.mxu1 %v3529_v46  ;;  %v3581_v45 = vcombine.high %v341_v40, %v345_v41  ;;  %v347_v46 = vld [vmem:[%s4576_s11 + $0x380] sm:$0xff]  ;;  %v401_v33 = vld [vmem:[%s4576_s11 + $0x530] sm:$0xff] }
  0x79   : > { %2747 = vmatprep.mubr.bf16.mxu0 %v3533_v47  ;;  %2407 = vmatpush1.bf16.msra.mxu1 %v4348_v48  ;;  %v351_v47 = vld [vmem:[%s4576_s11 + $0x3a0] sm:$0xff]  ;;  %v349_v48 = vld [vmem:[%s4576_s11 + $0x390] sm:$0xff] }
  0x7a   : > { %2933 = vmatpush1.bf16.msra.mxu0 %v4351_v49  ;;  %2408 = vmatprep.subr.bf16.mxu1 %v4356_v50  ;;  %v353_v49 = vld [vmem:[%s4576_s11 + $0x3b0] sm:$0xff]  ;;  %v3576_v50 = vcombine.low %v339_v38, %v343_v39  ;;  %v3585_v52 = vcombine.high %v347_v46, %v351_v47  ;;  %v403_v38 = vld [vmem:[%s4576_s11 + $0x540] sm:$0xff] }
  0x7b   : > { %2934 = vmatprep.subr.bf16.mxu0 %v4359_v51  ;;  %v3580_v51 = vcombine.low %v341_v40, %v345_v41  ;;  %v3589_v53 = vcombine.high %v349_v48, %v353_v49  ;;  %v407_v39 = vld [vmem:[%s4576_s11 + $0x560] sm:$0xff]  ;;  %v405_v40 = vld [vmem:[%s4576_s11 + $0x550] sm:$0xff] }
  0x7c   : > { %v409_v41 = vld [vmem:[%s4576_s11 + $0x570] sm:$0xff] }
  0x7d   : > { %2409 = vmatpush1.bf16.msra.mxu1 %v4354_v56  ;;  %v357_v56 = vld [vmem:[%s4576_s11 + $0x3d0] sm:$0xff] }
  0x7e   : > { %2935 = vmatpush1.bf16.msra.mxu0 %v4357_v57  ;;  %2410 = vmatprep.subr.bf16.mxu1 %v4362_v58  ;;  %v361_v57 = vld [vmem:[%s4576_s11 + $0x3f0] sm:$0xff]  ;;  %v3584_v58 = vcombine.low %v347_v46, %v351_v47  ;;  %v411_v46 = vld [vmem:[%s4576_s11 + $0x580] sm:$0xff] }
  0x7f   : > { %2936 = vmatprep.subr.bf16.mxu0 %v4365_v59  ;;  %2222 = vmatmul.mubr.bf16.gmra.mrb[28].mxu1 %v3528_v60  ;;  %v3588_v59 = vcombine.low %v349_v48, %v353_v49  ;;  %v3593_v60 = vcombine.high %v355_v54, %v359_v55  ;;  %v415_v47 = vld [vmem:[%s4576_s11 + $0x5a0] sm:$0x11]  ;;  %v413_v48 = vld [vmem:[%s4576_s11 + $0x590] sm:$0xff] }
  0x80   : > { %2748 = vmatmul.mubr.bf16.gmra.mrb[28].mxu0 %v3532_v61  ;;  %2231 = vmatprep.mubr.bf16.mxu1 %v3537_v62  ;;  %v3597_v61 = vcombine.high %v357_v56, %v361_v57  ;;  %v363_v62 = vld [vmem:[%s4576_s11 + $0x400] sm:$0xff]  ;;  %v417_v49 = vld [vmem:[%s4576_s11 + $0x5b0] sm:$0x11] }
  0x81   : > { %2757 = vmatprep.mubr.bf16.mxu0 %v3541_v63  ;;  %2411 = vmatpush1.bf16.msra.mxu1 %v4360_v0  ;;  %v367_v63 = vld [vmem:[%s4576_s11 + $0x420] sm:$0xff]  ;;  %v365_v0 = vld [vmem:[%s4576_s11 + $0x410] sm:$0xff] }
  0x82   : > { %2937 = vmatpush1.bf16.msra.mxu0 %v4363_v1  ;;  %2412 = vmatprep.subr.bf16.mxu1 %v4368_v2  ;;  %v369_v1 = vld [vmem:[%s4576_s11 + $0x430] sm:$0xff]  ;;  %v3592_v2 = vcombine.low %v355_v54, %v359_v55  ;;  %v3601_v4 = vcombine.high %v363_v62, %v367_v63  ;;  %v236_v54 = vld [vmem:[%s4576_s11 + $0x8] sm:$0xff] }
  0x83   : > { %2938 = vmatprep.subr.bf16.mxu0 %v4371_v3  ;;  %v3596_v3 = vcombine.low %v357_v56, %v361_v57  ;;  %v3605_v5 = vcombine.high %v365_v0, %v369_v1  ;;  %v240_v55 = vld [vmem:[%s4576_s11 + $0x28] sm:$0xff]  ;;  %v238_v56 = vld [vmem:[%s4576_s11 + $0x18] sm:$0xff] }
  0x84   : > { %v242_v57 = vld [vmem:[%s4576_s11 + $0x38] sm:$0xff] }
  0x85   : > { %2413 = vmatpush1.bf16.msra.mxu1 %v4366_v8  ;;  %v373_v8 = vld [vmem:[%s4576_s11 + $0x450] sm:$0xff] }
  0x86   : > { %2939 = vmatpush1.bf16.msra.mxu0 %v4369_v9  ;;  %v377_v9 = vld [vmem:[%s4576_s11 + $0x470] sm:$0xff] }
  0x87   : > { %2232 = vmatmul.mubr.bf16.gmra.mrb[32].mxu1 %v3536_v10  ;;  %v3600_v10 = vcombine.low %v363_v62, %v367_v63  ;;  %v244_v62 = vld [vmem:[%s4576_s11 + $0x48] sm:$0xff] }
  0x88   : > { %2758 = vmatmul.mubr.bf16.gmra.mrb[32].mxu0 %v3540_v11  ;;  %2241 = vmatprep.mubr.bf16.mxu1 %v3545_v12  ;;  %v3604_v11 = vcombine.low %v365_v0, %v369_v1  ;;  %v3609_v12 = vcombine.high %v371_v6, %v375_v7  ;;  %v248_v63 = vld [vmem:[%s4576_s11 + $0x68] sm:$0xff]  ;;  %v246_v0 = vld [vmem:[%s4576_s11 + $0x58] sm:$0xff] }
  0x89   : > { %2767 = vmatprep.mubr.bf16.mxu0 %v3549_v13  ;;  %v3613_v13 = vcombine.high %v373_v8, %v377_v9  ;;  %v250_v1 = vld [vmem:[%s4576_s11 + $0x78] sm:$0xff] }
  0x8f   : > { %2242 = vmatmul.mubr.bf16.gmra.mrb[36].mxu1 %v3544_v18  ;;  %v3608_v18 = vcombine.low %v371_v6, %v375_v7  ;;  %v252_v6 = vld [vmem:[%s4576_s11 + $0x88] sm:$0xff] }
  0x90   : > { %2768 = vmatmul.mubr.bf16.gmra.mrb[36].mxu0 %v3548_v19  ;;  %2251 = vmatprep.mubr.bf16.mxu1 %v3553_v20  ;;  %v3612_v19 = vcombine.low %v373_v8, %v377_v9  ;;  %v3617_v20 = vcombine.high %v379_v14, %v383_v15  ;;  %v256_v7 = vld [vmem:[%s4576_s11 + $0xa8] sm:$0xff]  ;;  %v254_v8 = vld [vmem:[%s4576_s11 + $0x98] sm:$0xff] }
  0x91   : > { %2777 = vmatprep.mubr.bf16.mxu0 %v3557_v21  ;;  %v3621_v21 = vcombine.high %v381_v16, %v385_v17  ;;  %v258_v9 = vld [vmem:[%s4576_s11 + $0xb8] sm:$0xff] }
  0x97   : > { %2252 = vmatmul.mubr.bf16.gmra.mrb[40].mxu1 %v3552_v26  ;;  %v3616_v26 = vcombine.low %v379_v14, %v383_v15  ;;  %v260_v14 = vld [vmem:[%s4576_s11 + $0xc8] sm:$0xff] }
  0x98   : > { %2778 = vmatmul.mubr.bf16.gmra.mrb[40].mxu0 %v3556_v27  ;;  %2261 = vmatprep.mubr.bf16.mxu1 %v3561_v28  ;;  %v3620_v27 = vcombine.low %v381_v16, %v385_v17  ;;  %v3625_v28 = vcombine.high %v387_v22, %v391_v23  ;;  %v264_v15 = vld [vmem:[%s4576_s11 + $0xe8] sm:$0xff]  ;;  %v262_v16 = vld [vmem:[%s4576_s11 + $0xd8] sm:$0xff] }
  0x99   : > { %2787 = vmatprep.mubr.bf16.mxu0 %v3565_v29  ;;  %v3629_v29 = vcombine.high %v389_v24, %v393_v25  ;;  %v266_v17 = vld [vmem:[%s4576_s11 + $0xf8] sm:$0xff] }
  0x9f   : > { %2262 = vmatmul.mubr.bf16.gmra.mrb[44].mxu1 %v3560_v34  ;;  %v3624_v34 = vcombine.low %v387_v22, %v391_v23  ;;  %v268_v22 = vld [vmem:[%s4576_s11 + $0x108] sm:$0xff] }
  0xa0   : > { %2788 = vmatmul.mubr.bf16.gmra.mrb[44].mxu0 %v3564_v35  ;;  %2271 = vmatprep.mubr.bf16.mxu1 %v3569_v36  ;;  %v3628_v35 = vcombine.low %v389_v24, %v393_v25  ;;  %v3633_v36 = vcombine.high %v395_v30, %v399_v31  ;;  %v272_v23 = vld [vmem:[%s4576_s11 + $0x128] sm:$0xff]  ;;  %v270_v24 = vld [vmem:[%s4576_s11 + $0x118] sm:$0xff] }
  0xa1   : > { %2797 = vmatprep.mubr.bf16.mxu0 %v3573_v37  ;;  %v3637_v37 = vcombine.high %v397_v32, %v401_v33  ;;  %v274_v25 = vld [vmem:[%s4576_s11 + $0x138] sm:$0xff] }
  0xa7   : > { %2272 = vmatmul.mubr.bf16.gmra.mrb[48].mxu1 %v3568_v42  ;;  %v3632_v42 = vcombine.low %v395_v30, %v399_v31  ;;  %v276_v30 = vld [vmem:[%s4576_s11 + $0x148] sm:$0xff] }
  0xa8   : > { %2798 = vmatmul.mubr.bf16.gmra.mrb[48].mxu0 %v3572_v43  ;;  %2281 = vmatprep.mubr.bf16.mxu1 %v3577_v44  ;;  %v3636_v43 = vcombine.low %v397_v32, %v401_v33  ;;  %v3641_v44 = vcombine.high %v403_v38, %v407_v39  ;;  %v280_v31 = vld [vmem:[%s4576_s11 + $0x168] sm:$0xff]  ;;  %v278_v32 = vld [vmem:[%s4576_s11 + $0x158] sm:$0xff] }
  0xa9   : > { %2807 = vmatprep.mubr.bf16.mxu0 %v3581_v45  ;;  %v3645_v45 = vcombine.high %v405_v40, %v409_v41  ;;  %v282_v33 = vld [vmem:[%s4576_s11 + $0x178] sm:$0xff] }
  0xaf   : > { %2282 = vmatmul.mubr.bf16.gmra.mrb[52].mxu1 %v3576_v50  ;;  %v3640_v50 = vcombine.low %v403_v38, %v407_v39  ;;  %v284_v38 = vld [vmem:[%s4576_s11 + $0x188] sm:$0xff] }
  0xb0   : > { %2808 = vmatmul.mubr.bf16.gmra.mrb[52].mxu0 %v3580_v51  ;;  %2291 = vmatprep.mubr.bf16.mxu1 %v3585_v52  ;;  %v3644_v51 = vcombine.low %v405_v40, %v409_v41  ;;  %v3649_v52 = vcombine.high %v411_v46, %v415_v47  ;;  %v288_v39 = vld [vmem:[%s4576_s11 + $0x1a8] sm:$0xff]  ;;  %v286_v40 = vld [vmem:[%s4576_s11 + $0x198] sm:$0xff] }
  0xb1   : > { %2817 = vmatprep.mubr.bf16.mxu0 %v3589_v53  ;;  %v3653_v53 = vcombine.high %v413_v48, %v417_v49  ;;  %v290_v41 = vld [vmem:[%s4576_s11 + $0x1b8] sm:$0xff] }
  0xb7   : > { %2292 = vmatmul.mubr.bf16.gmra.mrb[56].mxu1 %v3584_v58  ;;  %v3648_v58 = vcombine.low %v411_v46, %v415_v47  ;;  %v292_v46 = vld [vmem:[%s4576_s11 + $0x1c8] sm:$0xff] }
  0xb8   : > { %2818 = vmatmul.mubr.bf16.gmra.mrb[56].mxu0 %v3588_v59  ;;  %2301 = vmatprep.mubr.bf16.mxu1 %v3593_v60  ;;  %v3652_v59 = vcombine.low %v413_v48, %v417_v49  ;;  %v3475_v60 = vcombine.high %v236_v54, %v240_v55  ;;  %v296_v47 = vld [vmem:[%s4576_s11 + $0x1e8] sm:$0xff]  ;;  %v294_v48 = vld [vmem:[%s4576_s11 + $0x1d8] sm:$0xff] }
  0xb9   : > { %2827 = vmatprep.mubr.bf16.mxu0 %v3597_v61  ;;  %v3479_v61 = vcombine.high %v238_v56, %v242_v57  ;;  %v298_v49 = vld [vmem:[%s4576_s11 + $0x1f8] sm:$0xff] }
  0xbf   : > { %2302 = vmatmul.mubr.bf16.gmra.mrb[60].mxu1 %v3592_v2  ;;  %v3474_v2 = vcombine.low %v236_v54, %v240_v55  ;;  %v300_v54 = vld [vmem:[%s4576_s11 + $0x208] sm:$0xff] }
  0xc0   : > { %2828 = vmatmul.mubr.bf16.gmra.mrb[60].mxu0 %v3596_v3  ;;  %2311 = vmatprep.mubr.bf16.mxu1 %v3601_v4  ;;  %v3478_v3 = vcombine.low %v238_v56, %v242_v57  ;;  %v3483_v4 = vcombine.high %v244_v62, %v248_v63  ;;  %v304_v55 = vld [vmem:[%s4576_s11 + $0x228] sm:$0xff]  ;;  %v302_v56 = vld [vmem:[%s4576_s11 + $0x218] sm:$0xff] }
  0xc1   : > { %2837 = vmatprep.mubr.bf16.mxu0 %v3605_v5  ;;  %v3487_v5 = vcombine.high %v246_v0, %v250_v1  ;;  %v306_v57 = vld [vmem:[%s4576_s11 + $0x238] sm:$0xff] }
  0xc7   : > { %2312 = vmatmul.mubr.bf16.gmra.mrb[64].mxu1 %v3600_v10  ;;  %v3482_v10 = vcombine.low %v244_v62, %v248_v63  ;;  %v308_v62 = vld [vmem:[%s4576_s11 + $0x248] sm:$0xff] }
  0xc8   : > { %2838 = vmatmul.mubr.bf16.gmra.mrb[64].mxu0 %v3604_v11  ;;  %2321 = vmatprep.mubr.bf16.mxu1 %v3609_v12  ;;  %v3486_v11 = vcombine.low %v246_v0, %v250_v1  ;;  %v3491_v12 = vcombine.high %v252_v6, %v256_v7  ;;  %v312_v63 = vld [vmem:[%s4576_s11 + $0x268] sm:$0xff]  ;;  %v310_v0 = vld [vmem:[%s4576_s11 + $0x258] sm:$0xff] }
  0xc9   : > { %2847 = vmatprep.mubr.bf16.mxu0 %v3613_v13  ;;  %v3495_v13 = vcombine.high %v254_v8, %v258_v9  ;;  %v314_v1 = vld [vmem:[%s4576_s11 + $0x278] sm:$0xff] }
  0xcf   : > { %2322 = vmatmul.mubr.bf16.gmra.mrb[68].mxu1 %v3608_v18  ;;  %v3490_v18 = vcombine.low %v252_v6, %v256_v7  ;;  %v316_v6 = vld [vmem:[%s4576_s11 + $0x288] sm:$0xff] }
  0xd0   : > { %2848 = vmatmul.mubr.bf16.gmra.mrb[68].mxu0 %v3612_v19  ;;  %2331 = vmatprep.mubr.bf16.mxu1 %v3617_v20  ;;  %v3494_v19 = vcombine.low %v254_v8, %v258_v9  ;;  %v3499_v20 = vcombine.high %v260_v14, %v264_v15  ;;  %v320_v7 = vld [vmem:[%s4576_s11 + $0x2a8] sm:$0xff]  ;;  %v318_v8 = vld [vmem:[%s4576_s11 + $0x298] sm:$0xff] }
  0xd1   : > { %2857 = vmatprep.mubr.bf16.mxu0 %v3621_v21  ;;  %v3503_v21 = vcombine.high %v262_v16, %v266_v17  ;;  %v322_v9 = vld [vmem:[%s4576_s11 + $0x2b8] sm:$0xff] }
  0xd7   : > { %2332 = vmatmul.mubr.bf16.gmra.mrb[72].mxu1 %v3616_v26  ;;  %v3498_v26 = vcombine.low %v260_v14, %v264_v15  ;;  %v324_v14 = vld [vmem:[%s4576_s11 + $0x2c8] sm:$0xff] }
  0xd8   : > { %2858 = vmatmul.mubr.bf16.gmra.mrb[72].mxu0 %v3620_v27  ;;  %2341 = vmatprep.mubr.bf16.mxu1 %v3625_v28  ;;  %v3502_v27 = vcombine.low %v262_v16, %v266_v17  ;;  %v3507_v28 = vcombine.high %v268_v22, %v272_v23  ;;  %v328_v15 = vld [vmem:[%s4576_s11 + $0x2e8] sm:$0xff]  ;;  %v326_v16 = vld [vmem:[%s4576_s11 + $0x2d8] sm:$0xff] }
  0xd9   : > { %2867 = vmatprep.mubr.bf16.mxu0 %v3629_v29  ;;  %v3511_v29 = vcombine.high %v270_v24, %v274_v25  ;;  %v330_v17 = vld [vmem:[%s4576_s11 + $0x2f8] sm:$0xff] }
  0xdf   : > { %2342 = vmatmul.mubr.bf16.gmra.mrb[76].mxu1 %v3624_v34  ;;  %v3506_v34 = vcombine.low %v268_v22, %v272_v23  ;;  %v332_v22 = vld [vmem:[%s4576_s11 + $0x308] sm:$0xff] }
  0xe0   : > { %2868 = vmatmul.mubr.bf16.gmra.mrb[76].mxu0 %v3628_v35  ;;  %2351 = vmatprep.mubr.bf16.mxu1 %v3633_v36  ;;  %v3510_v35 = vcombine.low %v270_v24, %v274_v25  ;;  %v3515_v36 = vcombine.high %v276_v30, %v280_v31  ;;  %v336_v23 = vld [vmem:[%s4576_s11 + $0x328] sm:$0xff]  ;;  %v334_v24 = vld [vmem:[%s4576_s11 + $0x318] sm:$0xff] }
  0xe1   : > { %2877 = vmatprep.mubr.bf16.mxu0 %v3637_v37  ;;  %v3519_v37 = vcombine.high %v278_v32, %v282_v33  ;;  %v338_v25 = vld [vmem:[%s4576_s11 + $0x338] sm:$0xff] }
  0xe7   : > { %2352 = vmatmul.mubr.bf16.gmra.mrb[80].mxu1 %v3632_v42  ;;  %v3514_v42 = vcombine.low %v276_v30, %v280_v31  ;;  %v340_v30 = vld [vmem:[%s4576_s11 + $0x348] sm:$0xff] }
  0xe8   : > { %2878 = vmatmul.mubr.bf16.gmra.mrb[80].mxu0 %v3636_v43  ;;  %2361 = vmatprep.mubr.bf16.mxu1 %v3641_v44  ;;  %v3518_v43 = vcombine.low %v278_v32, %v282_v33  ;;  %v3523_v44 = vcombine.high %v284_v38, %v288_v39  ;;  %v344_v31 = vld [vmem:[%s4576_s11 + $0x368] sm:$0xff]  ;;  %v342_v32 = vld [vmem:[%s4576_s11 + $0x358] sm:$0xff] }
  0xe9   : > { %2887 = vmatprep.mubr.bf16.mxu0 %v3645_v45  ;;  %v3527_v45 = vcombine.high %v286_v40, %v290_v41  ;;  %v346_v33 = vld [vmem:[%s4576_s11 + $0x378] sm:$0xff] }
  0xef   : > { %2362 = vmatmul.mubr.bf16.gmra.mrb[84].mxu1 %v3640_v50  ;;  %v3522_v50 = vcombine.low %v284_v38, %v288_v39  ;;  %v348_v38 = vld [vmem:[%s4576_s11 + $0x388] sm:$0xff] }
  0xf0   : > { %2888 = vmatmul.mubr.bf16.gmra.mrb[84].mxu0 %v3644_v51  ;;  %2371 = vmatprep.mubr.bf16.mxu1 %v3649_v52  ;;  %v3526_v51 = vcombine.low %v286_v40, %v290_v41  ;;  %v3531_v52 = vcombine.high %v292_v46, %v296_v47  ;;  %v352_v39 = vld [vmem:[%s4576_s11 + $0x3a8] sm:$0xff]  ;;  %v350_v40 = vld [vmem:[%s4576_s11 + $0x398] sm:$0xff] }
  0xf1   : > { %2897 = vmatprep.mubr.bf16.mxu0 %v3653_v53  ;;  %v3535_v53 = vcombine.high %v294_v48, %v298_v49  ;;  %v354_v41 = vld [vmem:[%s4576_s11 + $0x3b8] sm:$0xff] }
  0xf7   : > { %2372 = vmatmul.mubr.bf16.gmra.mrb[88].mxu1 %v3648_v58  ;;  %v3530_v58 = vcombine.low %v292_v46, %v296_v47  ;;  %v356_v46 = vld [vmem:[%s4576_s11 + $0x3c8] sm:$0xff] }
  0xf8   : > { %2898 = vmatmul.mubr.bf16.gmra.mrb[88].mxu0 %v3652_v59  ;;  %2414 = vmatprep.mubr.bf16.mxu1 %v3475_v60  ;;  %v3534_v59 = vcombine.low %v294_v48, %v298_v49  ;;  %v3539_v60 = vcombine.high %v300_v54, %v304_v55  ;;  %v360_v47 = vld [vmem:[%s4576_s11 + $0x3e8] sm:$0xff]  ;;  %v358_v48 = vld [vmem:[%s4576_s11 + $0x3d8] sm:$0xff] }
  0xf9   : > { %2940 = vmatprep.mubr.bf16.mxu0 %v3479_v61  ;;  %v3543_v61 = vcombine.high %v302_v56, %v306_v57  ;;  %v362_v49 = vld [vmem:[%s4576_s11 + $0x3f8] sm:$0xff] }
  0xff   : > { %2415 = vmatmul.mubr.bf16.vlgmr.msra.gmra.mrb[0].mxu1 %v3474_v2  ;;  %v3538_v2 = vcombine.low %v300_v54, %v304_v55  ;;  %v364_v54 = vld [vmem:[%s4576_s11 + $0x408] sm:$0xff] }
 0x100   : > { %2941 = vmatmul.mubr.bf16.vlgmr.msra.gmra.mrb[0].mxu0 %v3478_v3  ;;  %2424 = vmatprep.mubr.bf16.mxu1 %v3483_v4  ;;  %v3542_v3 = vcombine.low %v302_v56, %v306_v57  ;;  %v3547_v4 = vcombine.high %v308_v62, %v312_v63  ;;  %v368_v55 = vld [vmem:[%s4576_s11 + $0x428] sm:$0xff]  ;;  %v366_v56 = vld [vmem:[%s4576_s11 + $0x418] sm:$0xff] }
 0x101   : > { %2950 = vmatprep.mubr.bf16.mxu0 %v3487_v5  ;;  %v3551_v5 = vcombine.high %v310_v0, %v314_v1  ;;  %v370_v57 = vld [vmem:[%s4576_s11 + $0x438] sm:$0xff] }
 0x107   : > { %2425 = vmatmul.mubr.bf16.gmra.mrb[4].mxu1 %v3482_v10  ;;  %v3546_v10 = vcombine.low %v308_v62, %v312_v63  ;;  %v372_v62 = vld [vmem:[%s4576_s11 + $0x448] sm:$0xff] }
 0x108   : > { %2951 = vmatmul.mubr.bf16.gmra.mrb[4].mxu0 %v3486_v11  ;;  %2434 = vmatprep.mubr.bf16.mxu1 %v3491_v12  ;;  %v3550_v11 = vcombine.low %v310_v0, %v314_v1  ;;  %v3555_v12 = vcombine.high %v316_v6, %v320_v7  ;;  %v376_v63 = vld [vmem:[%s4576_s11 + $0x468] sm:$0xff]  ;;  %v374_v0 = vld [vmem:[%s4576_s11 + $0x458] sm:$0xff] }
 0x109   : > { %2960 = vmatprep.mubr.bf16.mxu0 %v3495_v13  ;;  %v3559_v13 = vcombine.high %v318_v8, %v322_v9  ;;  %v378_v1 = vld [vmem:[%s4576_s11 + $0x478] sm:$0xff] }
 0x10f   : > { %2435 = vmatmul.mubr.bf16.gmra.mrb[8].mxu1 %v3490_v18  ;;  %v3554_v18 = vcombine.low %v316_v6, %v320_v7  ;;  %v380_v6 = vld [vmem:[%s4576_s11 + $0x488] sm:$0xff] }
 0x110   : > { %2961 = vmatmul.mubr.bf16.gmra.mrb[8].mxu0 %v3494_v19  ;;  %2444 = vmatprep.mubr.bf16.mxu1 %v3499_v20  ;;  %v3558_v19 = vcombine.low %v318_v8, %v322_v9  ;;  %v3563_v20 = vcombine.high %v324_v14, %v328_v15  ;;  %v384_v7 = vld [vmem:[%s4576_s11 + $0x4a8] sm:$0xff]  ;;  %v382_v8 = vld [vmem:[%s4576_s11 + $0x498] sm:$0xff] }
 0x111   : > { %2970 = vmatprep.mubr.bf16.mxu0 %v3503_v21  ;;  %v3567_v21 = vcombine.high %v326_v16, %v330_v17  ;;  %v386_v9 = vld [vmem:[%s4576_s11 + $0x4b8] sm:$0xff] }
 0x117   : > { %2445 = vmatmul.mubr.bf16.gmra.mrb[12].mxu1 %v3498_v26  ;;  %v3562_v26 = vcombine.low %v324_v14, %v328_v15  ;;  %v388_v14 = vld [vmem:[%s4576_s11 + $0x4c8] sm:$0xff] }
 0x118   : > { %2971 = vmatmul.mubr.bf16.gmra.mrb[12].mxu0 %v3502_v27  ;;  %2454 = vmatprep.mubr.bf16.mxu1 %v3507_v28  ;;  %v3566_v27 = vcombine.low %v326_v16, %v330_v17  ;;  %v3571_v28 = vcombine.high %v332_v22, %v336_v23  ;;  %v392_v15 = vld [vmem:[%s4576_s11 + $0x4e8] sm:$0xff]  ;;  %v390_v16 = vld [vmem:[%s4576_s11 + $0x4d8] sm:$0xff] }
 0x119   : > { %2980 = vmatprep.mubr.bf16.mxu0 %v3511_v29  ;;  %v3575_v29 = vcombine.high %v334_v24, %v338_v25  ;;  %v394_v17 = vld [vmem:[%s4576_s11 + $0x4f8] sm:$0xff] }
 0x11f   : > { %2455 = vmatmul.mubr.bf16.gmra.mrb[16].mxu1 %v3506_v34  ;;  %v3570_v34 = vcombine.low %v332_v22, %v336_v23  ;;  %v396_v22 = vld [vmem:[%s4576_s11 + $0x508] sm:$0xff] }
 0x120   : > { %2981 = vmatmul.mubr.bf16.gmra.mrb[16].mxu0 %v3510_v35  ;;  %2464 = vmatprep.mubr.bf16.mxu1 %v3515_v36  ;;  %v3574_v35 = vcombine.low %v334_v24, %v338_v25  ;;  %v3579_v36 = vcombine.high %v340_v30, %v344_v31  ;;  %v400_v23 = vld [vmem:[%s4576_s11 + $0x528] sm:$0xff]  ;;  %v398_v24 = vld [vmem:[%s4576_s11 + $0x518] sm:$0xff] }
 0x121   : > { %2990 = vmatprep.mubr.bf16.mxu0 %v3519_v37  ;;  %v3583_v37 = vcombine.high %v342_v32, %v346_v33  ;;  %v402_v25 = vld [vmem:[%s4576_s11 + $0x538] sm:$0xff] }
 0x127   : > { %2465 = vmatmul.mubr.bf16.gmra.mrb[20].mxu1 %v3514_v42  ;;  %v3578_v42 = vcombine.low %v340_v30, %v344_v31  ;;  %v404_v30 = vld [vmem:[%s4576_s11 + $0x548] sm:$0xff] }
 0x128   : > { %2991 = vmatmul.mubr.bf16.gmra.mrb[20].mxu0 %v3518_v43  ;;  %2474 = vmatprep.mubr.bf16.mxu1 %v3523_v44  ;;  %v3582_v43 = vcombine.low %v342_v32, %v346_v33  ;;  %v3587_v44 = vcombine.high %v348_v38, %v352_v39  ;;  %v408_v31 = vld [vmem:[%s4576_s11 + $0x568] sm:$0xff]  ;;  %v406_v32 = vld [vmem:[%s4576_s11 + $0x558] sm:$0xff] }
 0x129   : > { %3000 = vmatprep.mubr.bf16.mxu0 %v3527_v45  ;;  %v3591_v45 = vcombine.high %v350_v40, %v354_v41  ;;  %v410_v33 = vld [vmem:[%s4576_s11 + $0x578] sm:$0xff] }
 0x12f   : > { %2475 = vmatmul.mubr.bf16.gmra.mrb[24].mxu1 %v3522_v50  ;;  %v3586_v50 = vcombine.low %v348_v38, %v352_v39  ;;  %v412_v38 = vld [vmem:[%s4576_s11 + $0x588] sm:$0xff] }
 0x130   : > { %3001 = vmatmul.mubr.bf16.gmra.mrb[24].mxu0 %v3526_v51  ;;  %2484 = vmatprep.mubr.bf16.mxu1 %v3531_v52  ;;  %v3590_v51 = vcombine.low %v350_v40, %v354_v41  ;;  %v3595_v52 = vcombine.high %v356_v46, %v360_v47  ;;  %v416_v39 = vld [vmem:[%s4576_s11 + $0x5a8] sm:$0x11]  ;;  %v414_v40 = vld [vmem:[%s4576_s11 + $0x598] sm:$0xff] }
 0x131   : > { %3010 = vmatprep.mubr.bf16.mxu0 %v3535_v53  ;;  %v3599_v53 = vcombine.high %v358_v48, %v362_v49  ;;  %v418_v41 = vld [vmem:[%s4576_s11 + $0x5b8] sm:$0x11]  ;;  %s4155_s11 = smul.u32 736, %s5241_s12 }
 0x133   : > { %s5040_s7 = scalar_lea.vmem %s5235_s3, %s4155_s11 }
 0x137   : > { %2485 = vmatmul.mubr.bf16.gmra.mrb[28].mxu1 %v3530_v58  ;;  %v3594_v58 = vcombine.low %v356_v46, %v360_v47  ;;  %v3650_v46 = vcombine.low %v412_v38, %v416_v39  ;;  %v3654_v47 = vcombine.low %v414_v40, %v418_v41 }
 0x138   : > { %3011 = vmatmul.mubr.bf16.gmra.mrb[28].mxu0 %v3534_v59  ;;  %2494 = vmatprep.mubr.bf16.mxu1 %v3539_v60  ;;  %v3598_v59 = vcombine.low %v358_v48, %v362_v49  ;;  %v3603_v60 = vcombine.high %v364_v54, %v368_v55  ;;  %v549_v48 = vlaneseq }
 0x139   : > { %3020 = vmatprep.mubr.bf16.mxu0 %v3543_v61  ;;  %v3607_v61 = vcombine.high %v366_v56, %v370_v57 }
 0x13a   : > { %v550_v49 = vshrl.u32 %v549_v48, 7 }
 0x13f   : > { %2495 = vmatmul.mubr.bf16.gmra.mrb[32].mxu1 %v3538_v2  ;;  %v3602_v2 = vcombine.low %v364_v54, %v368_v55 }
 0x140   : > { %3021 = vmatmul.mubr.bf16.gmra.mrb[32].mxu0 %v3542_v3  ;;  %2504 = vmatprep.mubr.bf16.mxu1 %v3547_v4  ;;  %v3606_v3 = vcombine.low %v366_v56, %v370_v57  ;;  %v3611_v4 = vcombine.high %v372_v62, %v376_v63 }
 0x141   : > { %3030 = vmatprep.mubr.bf16.mxu0 %v3551_v5  ;;  %v3615_v5 = vcombine.high %v374_v0, %v378_v1 }
 0x147   : > { %2505 = vmatmul.mubr.bf16.gmra.mrb[36].mxu1 %v3546_v10  ;;  %v3610_v10 = vcombine.low %v372_v62, %v376_v63 }
 0x148   : > { %3031 = vmatmul.mubr.bf16.gmra.mrb[36].mxu0 %v3550_v11  ;;  %2514 = vmatprep.mubr.bf16.mxu1 %v3555_v12  ;;  %v3614_v11 = vcombine.low %v374_v0, %v378_v1  ;;  %v3619_v12 = vcombine.high %v380_v6, %v384_v7 }
 0x149   : > { %3040 = vmatprep.mubr.bf16.mxu0 %v3559_v13  ;;  %v3623_v13 = vcombine.high %v382_v8, %v386_v9 }
 0x14f   : > { %2515 = vmatmul.mubr.bf16.gmra.mrb[40].mxu1 %v3554_v18  ;;  %v3618_v18 = vcombine.low %v380_v6, %v384_v7 }
 0x150   : > { %3041 = vmatmul.mubr.bf16.gmra.mrb[40].mxu0 %v3558_v19  ;;  %2524 = vmatprep.mubr.bf16.mxu1 %v3563_v20  ;;  %v3622_v19 = vcombine.low %v382_v8, %v386_v9  ;;  %v3627_v20 = vcombine.high %v388_v14, %v392_v15 }
 0x151   : > { %3050 = vmatprep.mubr.bf16.mxu0 %v3567_v21  ;;  %v3631_v21 = vcombine.high %v390_v16, %v394_v17 }
 0x157   : > { %2525 = vmatmul.mubr.bf16.gmra.mrb[44].mxu1 %v3562_v26  ;;  %v3626_v26 = vcombine.low %v388_v14, %v392_v15 }
 0x158   : > { %3051 = vmatmul.mubr.bf16.gmra.mrb[44].mxu0 %v3566_v27  ;;  %2534 = vmatprep.mubr.bf16.mxu1 %v3571_v28  ;;  %v3630_v27 = vcombine.low %v390_v16, %v394_v17  ;;  %v3635_v28 = vcombine.high %v396_v22, %v400_v23 }
 0x159   : > { %3060 = vmatprep.mubr.bf16.mxu0 %v3575_v29  ;;  %v3639_v29 = vcombine.high %v398_v24, %v402_v25 }
 0x15f   : > { %2535 = vmatmul.mubr.bf16.gmra.mrb[48].mxu1 %v3570_v34  ;;  %v3634_v34 = vcombine.low %v396_v22, %v400_v23 }
 0x160   : > { %3061 = vmatmul.mubr.bf16.gmra.mrb[48].mxu0 %v3574_v35  ;;  %2544 = vmatprep.mubr.bf16.mxu1 %v3579_v36  ;;  %v3638_v35 = vcombine.low %v398_v24, %v402_v25  ;;  %v3643_v36 = vcombine.high %v404_v30, %v408_v31 }
 0x161   : > { %3070 = vmatprep.mubr.bf16.mxu0 %v3583_v37  ;;  %v3647_v37 = vcombine.high %v406_v32, %v410_v33 }
 0x167   : > { %2545 = vmatmul.mubr.bf16.gmra.mrb[52].mxu1 %v3578_v42  ;;  %v3642_v42 = vcombine.low %v404_v30, %v408_v31 }
 0x168   : > { %3071 = vmatmul.mubr.bf16.gmra.mrb[52].mxu0 %v3582_v43  ;;  %2554 = vmatprep.mubr.bf16.mxu1 %v3587_v44  ;;  %v3646_v43 = vcombine.low %v406_v32, %v410_v33  ;;  %v3651_v44 = vcombine.high %v412_v38, %v416_v39 }
 0x169   : > { %3080 = vmatprep.mubr.bf16.mxu0 %v3591_v45  ;;  %v3655_v45 = vcombine.high %v414_v40, %v418_v41 }
 0x16f   : > { %2555 = vmatmul.mubr.bf16.gmra.mrb[56].mxu1 %v3586_v50  ;;  %v551_v50 = vsub.s32 0, %v550_v49 }
 0x170   : > { %3081 = vmatmul.mubr.bf16.gmra.mrb[56].mxu0 %v3590_v51  ;;  %2564 = vmatprep.mubr.bf16.mxu1 %v3595_v52  ;;  %v547_v51 = vld [vmem:[%s5234_s2] sm:$0x3]  ;;  %v555_v52 = vsub.s32 1, %v550_v49 }
 0x171   : > { %3090 = vmatprep.mubr.bf16.mxu0 %v3599_v53  ;;  %v5029_v53 = vrot.slane %v547_v51, %v551_v50 }
 0x172   : > { %v5031_v54 = vrot.slane %v547_v51, %v555_v52 }
 0x177   : > { %2565 = vmatmul.mubr.bf16.gmra.mrb[60].mxu1 %v3594_v58 }
 0x178   : > { %3091 = vmatmul.mubr.bf16.gmra.mrb[60].mxu0 %v3598_v59  ;;  %2574 = vmatprep.mubr.bf16.mxu1 %v3603_v60 }
 0x179   : > { %3100 = vmatprep.mubr.bf16.mxu0 %v3607_v61 }
 0x17f   : > { %2575 = vmatmul.mubr.bf16.gmra.mrb[64].mxu1 %v3602_v2 }
 0x180   : > { %3101 = vmatmul.mubr.bf16.gmra.mrb[64].mxu0 %v3606_v3  ;;  %2584 = vmatprep.mubr.bf16.mxu1 %v3611_v4 }
 0x181   : > { %3110 = vmatprep.mubr.bf16.mxu0 %v3615_v5 }
 0x187   : > { %2585 = vmatmul.mubr.bf16.gmra.mrb[68].mxu1 %v3610_v10 }
 0x188   : > { %3111 = vmatmul.mubr.bf16.gmra.mrb[68].mxu0 %v3614_v11  ;;  %2594 = vmatprep.mubr.bf16.mxu1 %v3619_v12 }
 0x189   : > { %3120 = vmatprep.mubr.bf16.mxu0 %v3623_v13 }
 0x18f   : > { %2595 = vmatmul.mubr.bf16.gmra.mrb[72].mxu1 %v3618_v18 }
 0x190   : > { %3121 = vmatmul.mubr.bf16.gmra.mrb[72].mxu0 %v3622_v19  ;;  %2604 = vmatprep.mubr.bf16.mxu1 %v3627_v20 }
 0x191   : > { %3130 = vmatprep.mubr.bf16.mxu0 %v3631_v21 }
 0x197   : > { %2605 = vmatmul.mubr.bf16.gmra.mrb[76].mxu1 %v3626_v26 }
 0x198   : > { %3131 = vmatmul.mubr.bf16.gmra.mrb[76].mxu0 %v3630_v27  ;;  %2614 = vmatprep.mubr.bf16.mxu1 %v3635_v28 }
 0x199   : > { %3140 = vmatprep.mubr.bf16.mxu0 %v3639_v29 }
 0x19f   : > { %2615 = vmatmul.mubr.bf16.gmra.mrb[80].mxu1 %v3634_v34 }
 0x1a0   : > { %3141 = vmatmul.mubr.bf16.gmra.mrb[80].mxu0 %v3638_v35  ;;  %2624 = vmatprep.mubr.bf16.mxu1 %v3643_v36 }
 0x1a1   : > { %3150 = vmatprep.mubr.bf16.mxu0 %v3647_v37 }
 0x1a7   : > { %2625 = vmatmul.mubr.bf16.gmra.mrb[84].mxu1 %v3642_v42 }
 0x1a8   : > { %3151 = vmatmul.mubr.bf16.gmra.mrb[84].mxu0 %v3646_v43  ;;  %2634 = vmatprep.mubr.bf16.mxu1 %v3651_v44 }
 0x1a9   : > { %3160 = vmatprep.mubr.bf16.mxu0 %v3655_v45 }
 0x1af   : > { %2635 = vmatmul.mubr.bf16.gmra.mrb[88].mxu1 %v3650_v46 }
 0x1b0   : > { %3161 = vmatmul.mubr.bf16.gmra.mrb[88].mxu0 %v3654_v47 }
 0x1d2   : > { %v2416_v55 = vpop.f32.mrb[0].mxu1 }
 0x1d3   : > { %v2942_v56 = vpop.f32.mrb[0].mxu0  ;;  %v3786_v57 = vadd.f32 %v2416_v55, %v5029_v53  ;;  %v2418_v58 = vpop.f32.mrb[1].mxu1 }
 0x1d4   : > { %v2944_v59 = vpop.f32.mrb[1].mxu0  ;;  %v3788_v60 = vadd.f32 %v2418_v58, %v5031_v54  ;;  %v2420_v61 = vpop.f32.mrb[2].mxu1 }
 0x1d5   : > { %v2946_v62 = vpop.f32.mrb[2].mxu0  ;;  %v3787_v63 = vadd.f32 %v3786_v57, %v2942_v56  ;;  %v3790_v0 = vadd.f32 %v2420_v61, %v5029_v53  ;;  %v2422_v1 = vpop.f32.mrb[3].mxu1 }
 0x1d6   : > { %v2948_v2 = vpop.f32.mrb[3].mxu0  ;;  %v3789_v3 = vadd.f32 %v3788_v60, %v2944_v59  ;;  %v3792_v4 = vadd.f32 %v2422_v1, %v5031_v54 }
 0x1d7   : > { %v3171_v5 = vmax.f32 %v3787_v63, 0.0  ;;  %v3791_v6 = vadd.f32 %v3790_v0, %v2946_v62 }
 0x1d8   : > { %v3172_v7 = vmax.f32 %v3789_v3, 0.0  ;;  %v3793_v8 = vadd.f32 %v3792_v4, %v2948_v2 }
 0x1d9   : > { %3263 = vst [vmem:[%s5040_s7] sm:$0xff] %v3171_v5  ;;  %v3173_v9 = vmax.f32 %v3791_v6, 0.0 }
 0x1da   : > { %3264 = vst [vmem:[%s5040_s7 + $0x8] sm:$0xff] %v3172_v7  ;;  %v3174_v10 = vmax.f32 %v3793_v8, 0.0  ;;  %v2426_v11 = vpop.f32.mrb[4].mxu1 }
 0x1db   : > { %v2952_v12 = vpop.f32.mrb[4].mxu0  ;;  %3265 = vst [vmem:[%s5040_s7 + $0x10] sm:$0xff] %v3173_v9  ;;  %v3794_v13 = vadd.f32 %v2426_v11, %v5029_v53  ;;  %v2428_v14 = vpop.f32.mrb[5].mxu1 }
 0x1dc   : > { %v2954_v15 = vpop.f32.mrb[5].mxu0  ;;  %3266 = vst [vmem:[%s5040_s7 + $0x18] sm:$0xff] %v3174_v10  ;;  %v3796_v16 = vadd.f32 %v2428_v14, %v5031_v54  ;;  %v2430_v17 = vpop.f32.mrb[6].mxu1 }
 0x1dd   : > { %v2956_v18 = vpop.f32.mrb[6].mxu0  ;;  %v3795_v19 = vadd.f32 %v3794_v13, %v2952_v12  ;;  %v3798_v20 = vadd.f32 %v2430_v17, %v5029_v53  ;;  %v2432_v21 = vpop.f32.mrb[7].mxu1 }
 0x1de   : > { %v2958_v22 = vpop.f32.mrb[7].mxu0  ;;  %v3797_v23 = vadd.f32 %v3796_v16, %v2954_v15  ;;  %v3800_v24 = vadd.f32 %v2432_v21, %v5031_v54 }
 0x1df   : > { %v3175_v25 = vmax.f32 %v3795_v19, 0.0  ;;  %v3799_v26 = vadd.f32 %v3798_v20, %v2956_v18 }
 0x1e0   : > { %v3176_v27 = vmax.f32 %v3797_v23, 0.0  ;;  %v3801_v28 = vadd.f32 %v3800_v24, %v2958_v22 }
 0x1e1   : > { %3267 = vst [vmem:[%s5040_s7 + $0x20] sm:$0xff] %v3175_v25  ;;  %v3177_v29 = vmax.f32 %v3799_v26, 0.0 }
 0x1e2   : > { %3268 = vst [vmem:[%s5040_s7 + $0x28] sm:$0xff] %v3176_v27  ;;  %v3178_v30 = vmax.f32 %v3801_v28, 0.0  ;;  %v2436_v31 = vpop.f32.mrb[8].mxu1 }
 0x1e3   : > { %v2962_v32 = vpop.f32.mrb[8].mxu0  ;;  %3269 = vst [vmem:[%s5040_s7 + $0x30] sm:$0xff] %v3177_v29  ;;  %v3802_v33 = vadd.f32 %v2436_v31, %v5029_v53  ;;  %v2438_v34 = vpop.f32.mrb[9].mxu1 }
 0x1e4   : > { %v2964_v35 = vpop.f32.mrb[9].mxu0  ;;  %3270 = vst [vmem:[%s5040_s7 + $0x38] sm:$0xff] %v3178_v30  ;;  %v3804_v36 = vadd.f32 %v2438_v34, %v5031_v54  ;;  %v2440_v37 = vpop.f32.mrb[10].mxu1 }
 0x1e5   : > { %v2966_v38 = vpop.f32.mrb[10].mxu0  ;;  %v3803_v39 = vadd.f32 %v3802_v33, %v2962_v32  ;;  %v3806_v40 = vadd.f32 %v2440_v37, %v5029_v53  ;;  %v2442_v41 = vpop.f32.mrb[11].mxu1 }
 0x1e6   : > { %v2968_v42 = vpop.f32.mrb[11].mxu0  ;;  %v3805_v43 = vadd.f32 %v3804_v36, %v2964_v35  ;;  %v3808_v44 = vadd.f32 %v2442_v41, %v5031_v54 }
 0x1e7   : > { %v3179_v45 = vmax.f32 %v3803_v39, 0.0  ;;  %v3807_v46 = vadd.f32 %v3806_v40, %v2966_v38 }
 0x1e8   : > { %v3180_v47 = vmax.f32 %v3805_v43, 0.0  ;;  %v3809_v48 = vadd.f32 %v3808_v44, %v2968_v42 }
 0x1e9   : > { %3271 = vst [vmem:[%s5040_s7 + $0x40] sm:$0xff] %v3179_v45  ;;  %v3181_v49 = vmax.f32 %v3807_v46, 0.0 }
 0x1ea   : > { %3272 = vst [vmem:[%s5040_s7 + $0x48] sm:$0xff] %v3180_v47  ;;  %v3182_v50 = vmax.f32 %v3809_v48, 0.0  ;;  %v2446_v51 = vpop.f32.mrb[12].mxu1 }
 0x1eb   : > { %v2972_v52 = vpop.f32.mrb[12].mxu0  ;;  %3273 = vst [vmem:[%s5040_s7 + $0x50] sm:$0xff] %v3181_v49  ;;  %v3810_v55 = vadd.f32 %v2446_v51, %v5029_v53  ;;  %v2448_v56 = vpop.f32.mrb[13].mxu1 }
 0x1ec   : > { %v2974_v57 = vpop.f32.mrb[13].mxu0  ;;  %3274 = vst [vmem:[%s5040_s7 + $0x58] sm:$0xff] %v3182_v50  ;;  %v3812_v58 = vadd.f32 %v2448_v56, %v5031_v54  ;;  %v2450_v59 = vpop.f32.mrb[14].mxu1 }
 0x1ed   : > { %v2976_v60 = vpop.f32.mrb[14].mxu0  ;;  %v3811_v61 = vadd.f32 %v3810_v55, %v2972_v52  ;;  %v3814_v62 = vadd.f32 %v2450_v59, %v5029_v53  ;;  %v2452_v63 = vpop.f32.mrb[15].mxu1 }
 0x1ee   : > { %v2978_v0 = vpop.f32.mrb[15].mxu0  ;;  %v3813_v1 = vadd.f32 %v3812_v58, %v2974_v57  ;;  %v3816_v2 = vadd.f32 %v2452_v63, %v5031_v54 }
 0x1ef   : > { %v3183_v3 = vmax.f32 %v3811_v61, 0.0  ;;  %v3815_v4 = vadd.f32 %v3814_v62, %v2976_v60 }
 0x1f0   : > { %v3184_v5 = vmax.f32 %v3813_v1, 0.0  ;;  %v3817_v6 = vadd.f32 %v3816_v2, %v2978_v0 }
 0x1f1   : > { %3275 = vst [vmem:[%s5040_s7 + $0x60] sm:$0xff] %v3183_v3  ;;  %v3185_v7 = vmax.f32 %v3815_v4, 0.0 }
 0x1f2   : > { %3276 = vst [vmem:[%s5040_s7 + $0x68] sm:$0xff] %v3184_v5  ;;  %v3186_v8 = vmax.f32 %v3817_v6, 0.0  ;;  %v2456_v9 = vpop.f32.mrb[16].mxu1 }
 0x1f3   : > { %v2982_v10 = vpop.f32.mrb[16].mxu0  ;;  %3277 = vst [vmem:[%s5040_s7 + $0x70] sm:$0xff] %v3185_v7  ;;  %v3818_v11 = vadd.f32 %v2456_v9, %v5029_v53  ;;  %v2458_v12 = vpop.f32.mrb[17].mxu1 }
 0x1f4   : > { %v2984_v13 = vpop.f32.mrb[17].mxu0  ;;  %3278 = vst [vmem:[%s5040_s7 + $0x78] sm:$0xff] %v3186_v8  ;;  %v3820_v14 = vadd.f32 %v2458_v12, %v5031_v54  ;;  %v2460_v15 = vpop.f32.mrb[18].mxu1 }
 0x1f5   : > { %v2986_v16 = vpop.f32.mrb[18].mxu0  ;;  %v3819_v17 = vadd.f32 %v3818_v11, %v2982_v10  ;;  %v3822_v18 = vadd.f32 %v2460_v15, %v5029_v53  ;;  %v2462_v19 = vpop.f32.mrb[19].mxu1 }
 0x1f6   : > { %v2988_v20 = vpop.f32.mrb[19].mxu0  ;;  %v3821_v21 = vadd.f32 %v3820_v14, %v2984_v13  ;;  %v3824_v22 = vadd.f32 %v2462_v19, %v5031_v54 }
 0x1f7   : > { %v3187_v23 = vmax.f32 %v3819_v17, 0.0  ;;  %v3823_v24 = vadd.f32 %v3822_v18, %v2986_v16 }
 0x1f8   : > { %v3188_v25 = vmax.f32 %v3821_v21, 0.0  ;;  %v3825_v26 = vadd.f32 %v3824_v22, %v2988_v20 }
 0x1f9   : > { %3279 = vst [vmem:[%s5040_s7 + $0x80] sm:$0xff] %v3187_v23  ;;  %v3189_v27 = vmax.f32 %v3823_v24, 0.0 }
 0x1fa   : > { %3280 = vst [vmem:[%s5040_s7 + $0x88] sm:$0xff] %v3188_v25  ;;  %v3190_v28 = vmax.f32 %v3825_v26, 0.0  ;;  %v2466_v29 = vpop.f32.mrb[20].mxu1 }
 0x1fb   : > { %v2992_v30 = vpop.f32.mrb[20].mxu0  ;;  %3281 = vst [vmem:[%s5040_s7 + $0x90] sm:$0xff] %v3189_v27  ;;  %v3826_v31 = vadd.f32 %v2466_v29, %v5029_v53  ;;  %v2468_v32 = vpop.f32.mrb[21].mxu1 }
 0x1fc   : > { %v2994_v33 = vpop.f32.mrb[21].mxu0  ;;  %3282 = vst [vmem:[%s5040_s7 + $0x98] sm:$0xff] %v3190_v28  ;;  %v3828_v34 = vadd.f32 %v2468_v32, %v5031_v54  ;;  %v2470_v35 = vpop.f32.mrb[22].mxu1 }
 0x1fd   : > { %v2996_v36 = vpop.f32.mrb[22].mxu0  ;;  %v3827_v37 = vadd.f32 %v3826_v31, %v2992_v30  ;;  %v3830_v38 = vadd.f32 %v2470_v35, %v5029_v53  ;;  %v2472_v39 = vpop.f32.mrb[23].mxu1 }
 0x1fe   : > { %v2998_v40 = vpop.f32.mrb[23].mxu0  ;;  %v3829_v41 = vadd.f32 %v3828_v34, %v2994_v33  ;;  %v3832_v42 = vadd.f32 %v2472_v39, %v5031_v54 }
 0x1ff   : > { %v3191_v43 = vmax.f32 %v3827_v37, 0.0  ;;  %v3831_v44 = vadd.f32 %v3830_v38, %v2996_v36 }
 0x200   : > { %v3192_v45 = vmax.f32 %v3829_v41, 0.0  ;;  %v3833_v46 = vadd.f32 %v3832_v42, %v2998_v40 }
 0x201   : > { %3283 = vst [vmem:[%s5040_s7 + $0xa0] sm:$0xff] %v3191_v43  ;;  %v3193_v47 = vmax.f32 %v3831_v44, 0.0 }
 0x202   : > { %3284 = vst [vmem:[%s5040_s7 + $0xa8] sm:$0xff] %v3192_v45  ;;  %v3194_v48 = vmax.f32 %v3833_v46, 0.0  ;;  %v2476_v49 = vpop.f32.mrb[24].mxu1 }
 0x203   : > { %v3002_v50 = vpop.f32.mrb[24].mxu0  ;;  %3285 = vst [vmem:[%s5040_s7 + $0xb0] sm:$0xff] %v3193_v47  ;;  %v3834_v51 = vadd.f32 %v2476_v49, %v5029_v53  ;;  %v2478_v52 = vpop.f32.mrb[25].mxu1 }
 0x204   : > { %v3004_v55 = vpop.f32.mrb[25].mxu0  ;;  %3286 = vst [vmem:[%s5040_s7 + $0xb8] sm:$0xff] %v3194_v48  ;;  %v3836_v56 = vadd.f32 %v2478_v52, %v5031_v54  ;;  %v2480_v57 = vpop.f32.mrb[26].mxu1 }
 0x205   : > { %v3006_v58 = vpop.f32.mrb[26].mxu0  ;;  %v3835_v59 = vadd.f32 %v3834_v51, %v3002_v50  ;;  %v3838_v60 = vadd.f32 %v2480_v57, %v5029_v53  ;;  %v2482_v61 = vpop.f32.mrb[27].mxu1 }
 0x206   : > { %v3008_v62 = vpop.f32.mrb[27].mxu0  ;;  %v3837_v63 = vadd.f32 %v3836_v56, %v3004_v55  ;;  %v3840_v0 = vadd.f32 %v2482_v61, %v5031_v54 }
 0x207   : > { %v3195_v1 = vmax.f32 %v3835_v59, 0.0  ;;  %v3839_v2 = vadd.f32 %v3838_v60, %v3006_v58 }
 0x208   : > { %v3196_v3 = vmax.f32 %v3837_v63, 0.0  ;;  %v3841_v4 = vadd.f32 %v3840_v0, %v3008_v62 }
 0x209   : > { %3287 = vst [vmem:[%s5040_s7 + $0xc0] sm:$0xff] %v3195_v1  ;;  %v3197_v5 = vmax.f32 %v3839_v2, 0.0 }
 0x20a   : > { %3288 = vst [vmem:[%s5040_s7 + $0xc8] sm:$0xff] %v3196_v3  ;;  %v3198_v6 = vmax.f32 %v3841_v4, 0.0  ;;  %v2486_v7 = vpop.f32.mrb[28].mxu1 }
 0x20b   : > { %v3012_v8 = vpop.f32.mrb[28].mxu0  ;;  %3289 = vst [vmem:[%s5040_s7 + $0xd0] sm:$0xff] %v3197_v5  ;;  %v3842_v9 = vadd.f32 %v2486_v7, %v5029_v53  ;;  %v2488_v10 = vpop.f32.mrb[29].mxu1 }
 0x20c   : > { %v3014_v11 = vpop.f32.mrb[29].mxu0  ;;  %3290 = vst [vmem:[%s5040_s7 + $0xd8] sm:$0xff] %v3198_v6  ;;  %v3844_v12 = vadd.f32 %v2488_v10, %v5031_v54  ;;  %v2490_v13 = vpop.f32.mrb[30].mxu1 }
 0x20d   : > { %v3016_v14 = vpop.f32.mrb[30].mxu0  ;;  %v3843_v15 = vadd.f32 %v3842_v9, %v3012_v8  ;;  %v3846_v16 = vadd.f32 %v2490_v13, %v5029_v53  ;;  %v2492_v17 = vpop.f32.mrb[31].mxu1 }
 0x20e   : > { %v3018_v18 = vpop.f32.mrb[31].mxu0  ;;  %v3845_v19 = vadd.f32 %v3844_v12, %v3014_v11  ;;  %v3848_v20 = vadd.f32 %v2492_v17, %v5031_v54 }
 0x20f   : > { %v3199_v21 = vmax.f32 %v3843_v15, 0.0  ;;  %v3847_v22 = vadd.f32 %v3846_v16, %v3016_v14 }
 0x210   : > { %v3200_v23 = vmax.f32 %v3845_v19, 0.0  ;;  %v3849_v24 = vadd.f32 %v3848_v20, %v3018_v18 }
 0x211   : > { %3291 = vst [vmem:[%s5040_s7 + $0xe0] sm:$0xff] %v3199_v21  ;;  %v3201_v25 = vmax.f32 %v3847_v22, 0.0 }
 0x212   : > { %3292 = vst [vmem:[%s5040_s7 + $0xe8] sm:$0xff] %v3200_v23  ;;  %v3202_v26 = vmax.f32 %v3849_v24, 0.0  ;;  %v2496_v27 = vpop.f32.mrb[32].mxu1 }
 0x213   : > { %v3022_v28 = vpop.f32.mrb[32].mxu0  ;;  %3293 = vst [vmem:[%s5040_s7 + $0xf0] sm:$0xff] %v3201_v25  ;;  %v3850_v29 = vadd.f32 %v2496_v27, %v5029_v53  ;;  %v2498_v30 = vpop.f32.mrb[33].mxu1 }
 0x214   : > { %v3024_v31 = vpop.f32.mrb[33].mxu0  ;;  %3294 = vst [vmem:[%s5040_s7 + $0xf8] sm:$0xff] %v3202_v26  ;;  %v3852_v32 = vadd.f32 %v2498_v30, %v5031_v54  ;;  %v2500_v33 = vpop.f32.mrb[34].mxu1 }
 0x215   : > { %v3026_v34 = vpop.f32.mrb[34].mxu0  ;;  %v3851_v35 = vadd.f32 %v3850_v29, %v3022_v28  ;;  %v3854_v36 = vadd.f32 %v2500_v33, %v5029_v53  ;;  %v2502_v37 = vpop.f32.mrb[35].mxu1 }
 0x216   : > { %v3028_v38 = vpop.f32.mrb[35].mxu0  ;;  %v3853_v39 = vadd.f32 %v3852_v32, %v3024_v31  ;;  %v3856_v40 = vadd.f32 %v2502_v37, %v5031_v54 }
 0x217   : > { %v3203_v41 = vmax.f32 %v3851_v35, 0.0  ;;  %v3855_v42 = vadd.f32 %v3854_v36, %v3026_v34 }
 0x218   : > { %v3204_v43 = vmax.f32 %v3853_v39, 0.0  ;;  %v3857_v44 = vadd.f32 %v3856_v40, %v3028_v38 }
 0x219   : > { %3295 = vst [vmem:[%s5040_s7 + $0x100] sm:$0xff] %v3203_v41  ;;  %v3205_v45 = vmax.f32 %v3855_v42, 0.0 }
 0x21a   : > { %3296 = vst [vmem:[%s5040_s7 + $0x108] sm:$0xff] %v3204_v43  ;;  %v3206_v46 = vmax.f32 %v3857_v44, 0.0  ;;  %v2506_v47 = vpop.f32.mrb[36].mxu1 }
 0x21b   : > { %v3032_v48 = vpop.f32.mrb[36].mxu0  ;;  %3297 = vst [vmem:[%s5040_s7 + $0x110] sm:$0xff] %v3205_v45  ;;  %v3858_v49 = vadd.f32 %v2506_v47, %v5029_v53  ;;  %v2508_v50 = vpop.f32.mrb[37].mxu1 }
 0x21c   : > { %v3034_v51 = vpop.f32.mrb[37].mxu0  ;;  %3298 = vst [vmem:[%s5040_s7 + $0x118] sm:$0xff] %v3206_v46  ;;  %v3860_v52 = vadd.f32 %v2508_v50, %v5031_v54  ;;  %v2510_v55 = vpop.f32.mrb[38].mxu1 }
 0x21d   : > { %v3036_v56 = vpop.f32.mrb[38].mxu0  ;;  %v3859_v57 = vadd.f32 %v3858_v49, %v3032_v48  ;;  %v3862_v58 = vadd.f32 %v2510_v55, %v5029_v53  ;;  %v2512_v59 = vpop.f32.mrb[39].mxu1 }
 0x21e   : > { %v3038_v60 = vpop.f32.mrb[39].mxu0  ;;  %v3861_v61 = vadd.f32 %v3860_v52, %v3034_v51  ;;  %v3864_v62 = vadd.f32 %v2512_v59, %v5031_v54 }
 0x21f   : > { %v3207_v63 = vmax.f32 %v3859_v57, 0.0  ;;  %v3863_v0 = vadd.f32 %v3862_v58, %v3036_v56 }
 0x220   : > { %v3208_v1 = vmax.f32 %v3861_v61, 0.0  ;;  %v3865_v2 = vadd.f32 %v3864_v62, %v3038_v60 }
 0x221   : > { %3299 = vst [vmem:[%s5040_s7 + $0x120] sm:$0xff] %v3207_v63  ;;  %v3209_v3 = vmax.f32 %v3863_v0, 0.0 }
 0x222   : > { %3300 = vst [vmem:[%s5040_s7 + $0x128] sm:$0xff] %v3208_v1  ;;  %v3210_v4 = vmax.f32 %v3865_v2, 0.0  ;;  %v2516_v5 = vpop.f32.mrb[40].mxu1 }
 0x223   : > { %v3042_v6 = vpop.f32.mrb[40].mxu0  ;;  %3301 = vst [vmem:[%s5040_s7 + $0x130] sm:$0xff] %v3209_v3  ;;  %v3866_v7 = vadd.f32 %v2516_v5, %v5029_v53  ;;  %v2518_v8 = vpop.f32.mrb[41].mxu1 }
 0x224   : > { %v3044_v9 = vpop.f32.mrb[41].mxu0  ;;  %3302 = vst [vmem:[%s5040_s7 + $0x138] sm:$0xff] %v3210_v4  ;;  %v3868_v10 = vadd.f32 %v2518_v8, %v5031_v54  ;;  %v2520_v11 = vpop.f32.mrb[42].mxu1 }
 0x225   : > { %v3046_v12 = vpop.f32.mrb[42].mxu0  ;;  %v3867_v13 = vadd.f32 %v3866_v7, %v3042_v6  ;;  %v3870_v14 = vadd.f32 %v2520_v11, %v5029_v53  ;;  %v2522_v15 = vpop.f32.mrb[43].mxu1 }
 0x226   : > { %v3048_v16 = vpop.f32.mrb[43].mxu0  ;;  %v3869_v17 = vadd.f32 %v3868_v10, %v3044_v9  ;;  %v3872_v18 = vadd.f32 %v2522_v15, %v5031_v54 }
 0x227   : > { %v3211_v19 = vmax.f32 %v3867_v13, 0.0  ;;  %v3871_v20 = vadd.f32 %v3870_v14, %v3046_v12 }
 0x228   : > { %v3212_v21 = vmax.f32 %v3869_v17, 0.0  ;;  %v3873_v22 = vadd.f32 %v3872_v18, %v3048_v16 }
 0x229   : > { %3303 = vst [vmem:[%s5040_s7 + $0x140] sm:$0xff] %v3211_v19  ;;  %v3213_v23 = vmax.f32 %v3871_v20, 0.0 }
 0x22a   : > { %3304 = vst [vmem:[%s5040_s7 + $0x148] sm:$0xff] %v3212_v21  ;;  %v3214_v24 = vmax.f32 %v3873_v22, 0.0  ;;  %v2526_v25 = vpop.f32.mrb[44].mxu1 }
 0x22b   : > { %v3052_v26 = vpop.f32.mrb[44].mxu0  ;;  %3305 = vst [vmem:[%s5040_s7 + $0x150] sm:$0xff] %v3213_v23  ;;  %v3874_v27 = vadd.f32 %v2526_v25, %v5029_v53  ;;  %v2528_v28 = vpop.f32.mrb[45].mxu1 }
 0x22c   : > { %v3054_v29 = vpop.f32.mrb[45].mxu0  ;;  %3306 = vst [vmem:[%s5040_s7 + $0x158] sm:$0xff] %v3214_v24  ;;  %v3876_v30 = vadd.f32 %v2528_v28, %v5031_v54  ;;  %v2530_v31 = vpop.f32.mrb[46].mxu1 }
 0x22d   : > { %v3056_v32 = vpop.f32.mrb[46].mxu0  ;;  %v3875_v33 = vadd.f32 %v3874_v27, %v3052_v26  ;;  %v3878_v34 = vadd.f32 %v2530_v31, %v5029_v53  ;;  %v2532_v35 = vpop.f32.mrb[47].mxu1 }
 0x22e   : > { %v3058_v36 = vpop.f32.mrb[47].mxu0  ;;  %v3877_v37 = vadd.f32 %v3876_v30, %v3054_v29  ;;  %v3880_v38 = vadd.f32 %v2532_v35, %v5031_v54 }
 0x22f   : > { %v3215_v39 = vmax.f32 %v3875_v33, 0.0  ;;  %v3879_v40 = vadd.f32 %v3878_v34, %v3056_v32 }
 0x230   : > { %v3216_v41 = vmax.f32 %v3877_v37, 0.0  ;;  %v3881_v42 = vadd.f32 %v3880_v38, %v3058_v36 }
 0x231   : > { %3307 = vst [vmem:[%s5040_s7 + $0x160] sm:$0xff] %v3215_v39  ;;  %v3217_v43 = vmax.f32 %v3879_v40, 0.0 }
 0x232   : > { %3308 = vst [vmem:[%s5040_s7 + $0x168] sm:$0xff] %v3216_v41  ;;  %v3218_v44 = vmax.f32 %v3881_v42, 0.0  ;;  %v2536_v45 = vpop.f32.mrb[48].mxu1 }
 0x233   : > { %v3062_v46 = vpop.f32.mrb[48].mxu0  ;;  %3309 = vst [vmem:[%s5040_s7 + $0x170] sm:$0xff] %v3217_v43  ;;  %v3882_v47 = vadd.f32 %v2536_v45, %v5029_v53  ;;  %v2538_v48 = vpop.f32.mrb[49].mxu1 }
 0x234   : > { %v3064_v49 = vpop.f32.mrb[49].mxu0  ;;  %3310 = vst [vmem:[%s5040_s7 + $0x178] sm:$0xff] %v3218_v44  ;;  %v3884_v50 = vadd.f32 %v2538_v48, %v5031_v54  ;;  %v2540_v51 = vpop.f32.mrb[50].mxu1 }
 0x235   : > { %v3066_v52 = vpop.f32.mrb[50].mxu0  ;;  %v3883_v55 = vadd.f32 %v3882_v47, %v3062_v46  ;;  %v3886_v56 = vadd.f32 %v2540_v51, %v5029_v53  ;;  %v2542_v57 = vpop.f32.mrb[51].mxu1 }
 0x236   : > { %v3068_v58 = vpop.f32.mrb[51].mxu0  ;;  %v3885_v59 = vadd.f32 %v3884_v50, %v3064_v49  ;;  %v3888_v60 = vadd.f32 %v2542_v57, %v5031_v54 }
 0x237   : > { %v3219_v61 = vmax.f32 %v3883_v55, 0.0  ;;  %v3887_v62 = vadd.f32 %v3886_v56, %v3066_v52 }
 0x238   : > { %v3220_v63 = vmax.f32 %v3885_v59, 0.0  ;;  %v3889_v0 = vadd.f32 %v3888_v60, %v3068_v58 }
 0x239   : > { %3311 = vst [vmem:[%s5040_s7 + $0x180] sm:$0xff] %v3219_v61  ;;  %v3221_v1 = vmax.f32 %v3887_v62, 0.0 }
 0x23a   : > { %3312 = vst [vmem:[%s5040_s7 + $0x188] sm:$0xff] %v3220_v63  ;;  %v3222_v2 = vmax.f32 %v3889_v0, 0.0  ;;  %v2546_v3 = vpop.f32.mrb[52].mxu1 }
 0x23b   : > { %v3072_v4 = vpop.f32.mrb[52].mxu0  ;;  %3313 = vst [vmem:[%s5040_s7 + $0x190] sm:$0xff] %v3221_v1  ;;  %v3890_v5 = vadd.f32 %v2546_v3, %v5029_v53  ;;  %v2548_v6 = vpop.f32.mrb[53].mxu1 }
 0x23c   : > { %v3074_v7 = vpop.f32.mrb[53].mxu0  ;;  %3314 = vst [vmem:[%s5040_s7 + $0x198] sm:$0xff] %v3222_v2  ;;  %v3892_v8 = vadd.f32 %v2548_v6, %v5031_v54  ;;  %v2550_v9 = vpop.f32.mrb[54].mxu1 }
 0x23d   : > { %v3076_v10 = vpop.f32.mrb[54].mxu0  ;;  %v3891_v11 = vadd.f32 %v3890_v5, %v3072_v4  ;;  %v3894_v12 = vadd.f32 %v2550_v9, %v5029_v53  ;;  %v2552_v13 = vpop.f32.mrb[55].mxu1 }
 0x23e   : > { %v3078_v14 = vpop.f32.mrb[55].mxu0  ;;  %v3893_v15 = vadd.f32 %v3892_v8, %v3074_v7  ;;  %v3896_v16 = vadd.f32 %v2552_v13, %v5031_v54 }
 0x23f   : > { %v3223_v17 = vmax.f32 %v3891_v11, 0.0  ;;  %v3895_v18 = vadd.f32 %v3894_v12, %v3076_v10 }
 0x240   : > { %v3224_v19 = vmax.f32 %v3893_v15, 0.0  ;;  %v3897_v20 = vadd.f32 %v3896_v16, %v3078_v14 }
 0x241   : > { %3315 = vst [vmem:[%s5040_s7 + $0x1a0] sm:$0xff] %v3223_v17  ;;  %v3225_v21 = vmax.f32 %v3895_v18, 0.0 }
 0x242   : > { %3316 = vst [vmem:[%s5040_s7 + $0x1a8] sm:$0xff] %v3224_v19  ;;  %v3226_v22 = vmax.f32 %v3897_v20, 0.0  ;;  %v2556_v23 = vpop.f32.mrb[56].mxu1 }
 0x243   : > { %v3082_v24 = vpop.f32.mrb[56].mxu0  ;;  %3317 = vst [vmem:[%s5040_s7 + $0x1b0] sm:$0xff] %v3225_v21  ;;  %v3898_v25 = vadd.f32 %v2556_v23, %v5029_v53  ;;  %v2558_v26 = vpop.f32.mrb[57].mxu1 }
 0x244   : > { %v3084_v27 = vpop.f32.mrb[57].mxu0  ;;  %3318 = vst [vmem:[%s5040_s7 + $0x1b8] sm:$0xff] %v3226_v22  ;;  %v3900_v28 = vadd.f32 %v2558_v26, %v5031_v54  ;;  %v2560_v29 = vpop.f32.mrb[58].mxu1 }
 0x245   : > { %v3086_v30 = vpop.f32.mrb[58].mxu0  ;;  %v3899_v31 = vadd.f32 %v3898_v25, %v3082_v24  ;;  %v3902_v32 = vadd.f32 %v2560_v29, %v5029_v53  ;;  %v2562_v33 = vpop.f32.mrb[59].mxu1 }
 0x246   : > { %v3088_v34 = vpop.f32.mrb[59].mxu0  ;;  %v3901_v35 = vadd.f32 %v3900_v28, %v3084_v27  ;;  %v3904_v36 = vadd.f32 %v2562_v33, %v5031_v54 }
 0x247   : > { %v3227_v37 = vmax.f32 %v3899_v31, 0.0  ;;  %v3903_v38 = vadd.f32 %v3902_v32, %v3086_v30 }
 0x248   : > { %v3228_v39 = vmax.f32 %v3901_v35, 0.0  ;;  %v3905_v40 = vadd.f32 %v3904_v36, %v3088_v34 }
 0x249   : > { %3319 = vst [vmem:[%s5040_s7 + $0x1c0] sm:$0xff] %v3227_v37  ;;  %v3229_v41 = vmax.f32 %v3903_v38, 0.0 }
 0x24a   : > { %3320 = vst [vmem:[%s5040_s7 + $0x1c8] sm:$0xff] %v3228_v39  ;;  %v3230_v42 = vmax.f32 %v3905_v40, 0.0  ;;  %v2566_v43 = vpop.f32.mrb[60].mxu1 }
 0x24b   : > { %v3092_v44 = vpop.f32.mrb[60].mxu0  ;;  %3321 = vst [vmem:[%s5040_s7 + $0x1d0] sm:$0xff] %v3229_v41  ;;  %v3906_v45 = vadd.f32 %v2566_v43, %v5029_v53  ;;  %v2568_v46 = vpop.f32.mrb[61].mxu1 }
 0x24c   : > { %v3094_v47 = vpop.f32.mrb[61].mxu0  ;;  %3322 = vst [vmem:[%s5040_s7 + $0x1d8] sm:$0xff] %v3230_v42  ;;  %v3908_v48 = vadd.f32 %v2568_v46, %v5031_v54  ;;  %v2570_v49 = vpop.f32.mrb[62].mxu1 }
 0x24d   : > { %v3096_v50 = vpop.f32.mrb[62].mxu0  ;;  %v3907_v51 = vadd.f32 %v3906_v45, %v3092_v44  ;;  %v3910_v52 = vadd.f32 %v2570_v49, %v5029_v53  ;;  %v2572_v55 = vpop.f32.mrb[63].mxu1 }
 0x24e   : > { %v3098_v56 = vpop.f32.mrb[63].mxu0  ;;  %v3909_v57 = vadd.f32 %v3908_v48, %v3094_v47  ;;  %v3912_v58 = vadd.f32 %v2572_v55, %v5031_v54 }
 0x24f   : > { %v3231_v59 = vmax.f32 %v3907_v51, 0.0  ;;  %v3911_v60 = vadd.f32 %v3910_v52, %v3096_v50 }
 0x250   : > { %v3232_v61 = vmax.f32 %v3909_v57, 0.0  ;;  %v3913_v62 = vadd.f32 %v3912_v58, %v3098_v56 }
 0x251   : > { %3323 = vst [vmem:[%s5040_s7 + $0x1e0] sm:$0xff] %v3231_v59  ;;  %v3233_v63 = vmax.f32 %v3911_v60, 0.0 }
 0x252   : > { %3324 = vst [vmem:[%s5040_s7 + $0x1e8] sm:$0xff] %v3232_v61  ;;  %v3234_v0 = vmax.f32 %v3913_v62, 0.0  ;;  %v2576_v1 = vpop.f32.mrb[64].mxu1 }
 0x253   : > { %v3102_v2 = vpop.f32.mrb[64].mxu0  ;;  %3325 = vst [vmem:[%s5040_s7 + $0x1f0] sm:$0xff] %v3233_v63  ;;  %v3914_v3 = vadd.f32 %v2576_v1, %v5029_v53  ;;  %v2578_v4 = vpop.f32.mrb[65].mxu1 }
 0x254   : > { %v3104_v5 = vpop.f32.mrb[65].mxu0  ;;  %3326 = vst [vmem:[%s5040_s7 + $0x1f8] sm:$0xff] %v3234_v0  ;;  %v3916_v6 = vadd.f32 %v2578_v4, %v5031_v54  ;;  %v2580_v7 = vpop.f32.mrb[66].mxu1 }
 0x255   : > { %v3106_v8 = vpop.f32.mrb[66].mxu0  ;;  %v3915_v9 = vadd.f32 %v3914_v3, %v3102_v2  ;;  %v3918_v10 = vadd.f32 %v2580_v7, %v5029_v53  ;;  %v2582_v11 = vpop.f32.mrb[67].mxu1 }
 0x256   : > { %v3108_v12 = vpop.f32.mrb[67].mxu0  ;;  %v3917_v13 = vadd.f32 %v3916_v6, %v3104_v5  ;;  %v3920_v14 = vadd.f32 %v2582_v11, %v5031_v54 }
 0x257   : > { %v3235_v15 = vmax.f32 %v3915_v9, 0.0  ;;  %v3919_v16 = vadd.f32 %v3918_v10, %v3106_v8 }
 0x258   : > { %v3236_v17 = vmax.f32 %v3917_v13, 0.0  ;;  %v3921_v18 = vadd.f32 %v3920_v14, %v3108_v12 }
 0x259   : > { %3327 = vst [vmem:[%s5040_s7 + $0x200] sm:$0xff] %v3235_v15  ;;  %v3237_v19 = vmax.f32 %v3919_v16, 0.0 }
 0x25a   : > { %3328 = vst [vmem:[%s5040_s7 + $0x208] sm:$0xff] %v3236_v17  ;;  %v3238_v20 = vmax.f32 %v3921_v18, 0.0  ;;  %v2586_v21 = vpop.f32.mrb[68].mxu1 }
 0x25b   : > { %v3112_v22 = vpop.f32.mrb[68].mxu0  ;;  %3329 = vst [vmem:[%s5040_s7 + $0x210] sm:$0xff] %v3237_v19  ;;  %v3922_v23 = vadd.f32 %v2586_v21, %v5029_v53  ;;  %v2588_v24 = vpop.f32.mrb[69].mxu1 }
 0x25c   : > { %v3114_v25 = vpop.f32.mrb[69].mxu0  ;;  %3330 = vst [vmem:[%s5040_s7 + $0x218] sm:$0xff] %v3238_v20  ;;  %v3924_v26 = vadd.f32 %v2588_v24, %v5031_v54  ;;  %v2590_v27 = vpop.f32.mrb[70].mxu1 }
 0x25d   : > { %v3116_v28 = vpop.f32.mrb[70].mxu0  ;;  %v3923_v29 = vadd.f32 %v3922_v23, %v3112_v22  ;;  %v3926_v30 = vadd.f32 %v2590_v27, %v5029_v53  ;;  %v2592_v31 = vpop.f32.mrb[71].mxu1 }
 0x25e   : > { %v3118_v32 = vpop.f32.mrb[71].mxu0  ;;  %v3925_v33 = vadd.f32 %v3924_v26, %v3114_v25  ;;  %v3928_v34 = vadd.f32 %v2592_v31, %v5031_v54 }
 0x25f   : > { %v3239_v35 = vmax.f32 %v3923_v29, 0.0  ;;  %v3927_v36 = vadd.f32 %v3926_v30, %v3116_v28 }
 0x260   : > { %v3240_v37 = vmax.f32 %v3925_v33, 0.0  ;;  %v3929_v38 = vadd.f32 %v3928_v34, %v3118_v32 }
 0x261   : > { %3331 = vst [vmem:[%s5040_s7 + $0x220] sm:$0xff] %v3239_v35  ;;  %v3241_v39 = vmax.f32 %v3927_v36, 0.0 }
 0x262   : > { %3332 = vst [vmem:[%s5040_s7 + $0x228] sm:$0xff] %v3240_v37  ;;  %v3242_v40 = vmax.f32 %v3929_v38, 0.0  ;;  %v2596_v41 = vpop.f32.mrb[72].mxu1 }
 0x263   : > { %v3122_v42 = vpop.f32.mrb[72].mxu0  ;;  %3333 = vst [vmem:[%s5040_s7 + $0x230] sm:$0xff] %v3241_v39  ;;  %v3930_v43 = vadd.f32 %v2596_v41, %v5029_v53  ;;  %v2598_v44 = vpop.f32.mrb[73].mxu1 }
 0x264   : > { %v3124_v45 = vpop.f32.mrb[73].mxu0  ;;  %3334 = vst [vmem:[%s5040_s7 + $0x238] sm:$0xff] %v3242_v40  ;;  %v3932_v46 = vadd.f32 %v2598_v44, %v5031_v54  ;;  %v2600_v47 = vpop.f32.mrb[74].mxu1 }
 0x265   : > { %v3126_v48 = vpop.f32.mrb[74].mxu0  ;;  %v3931_v49 = vadd.f32 %v3930_v43, %v3122_v42  ;;  %v3934_v50 = vadd.f32 %v2600_v47, %v5029_v53  ;;  %v2602_v51 = vpop.f32.mrb[75].mxu1 }
 0x266   : > { %v3128_v52 = vpop.f32.mrb[75].mxu0  ;;  %v3933_v55 = vadd.f32 %v3932_v46, %v3124_v45  ;;  %v3936_v56 = vadd.f32 %v2602_v51, %v5031_v54 }
 0x267   : > { %v3243_v57 = vmax.f32 %v3931_v49, 0.0  ;;  %v3935_v58 = vadd.f32 %v3934_v50, %v3126_v48 }
 0x268   : > { %v3244_v59 = vmax.f32 %v3933_v55, 0.0  ;;  %v3937_v60 = vadd.f32 %v3936_v56, %v3128_v52 }
 0x269   : > { %3335 = vst [vmem:[%s5040_s7 + $0x240] sm:$0xff] %v3243_v57  ;;  %v3245_v61 = vmax.f32 %v3935_v58, 0.0 }
 0x26a   : > { %3336 = vst [vmem:[%s5040_s7 + $0x248] sm:$0xff] %v3244_v59  ;;  %v3246_v62 = vmax.f32 %v3937_v60, 0.0  ;;  %v2606_v63 = vpop.f32.mrb[76].mxu1 }
 0x26b   : > { %v3132_v0 = vpop.f32.mrb[76].mxu0  ;;  %3337 = vst [vmem:[%s5040_s7 + $0x250] sm:$0xff] %v3245_v61  ;;  %v3938_v1 = vadd.f32 %v2606_v63, %v5029_v53  ;;  %v2608_v2 = vpop.f32.mrb[77].mxu1 }
 0x26c   : > { %v3134_v3 = vpop.f32.mrb[77].mxu0  ;;  %3338 = vst [vmem:[%s5040_s7 + $0x258] sm:$0xff] %v3246_v62  ;;  %v3940_v4 = vadd.f32 %v2608_v2, %v5031_v54  ;;  %v2610_v5 = vpop.f32.mrb[78].mxu1 }
 0x26d   : > { %v3136_v6 = vpop.f32.mrb[78].mxu0  ;;  %v3939_v7 = vadd.f32 %v3938_v1, %v3132_v0  ;;  %v3942_v8 = vadd.f32 %v2610_v5, %v5029_v53  ;;  %v2612_v9 = vpop.f32.mrb[79].mxu1 }
 0x26e   : > { %v3138_v10 = vpop.f32.mrb[79].mxu0  ;;  %v3941_v11 = vadd.f32 %v3940_v4, %v3134_v3  ;;  %v3944_v12 = vadd.f32 %v2612_v9, %v5031_v54 }
 0x26f   : > { %v3247_v13 = vmax.f32 %v3939_v7, 0.0  ;;  %v3943_v14 = vadd.f32 %v3942_v8, %v3136_v6 }
 0x270   : > { %v3248_v15 = vmax.f32 %v3941_v11, 0.0  ;;  %v3945_v16 = vadd.f32 %v3944_v12, %v3138_v10 }
 0x271   : > { %3339 = vst [vmem:[%s5040_s7 + $0x260] sm:$0xff] %v3247_v13  ;;  %v3249_v17 = vmax.f32 %v3943_v14, 0.0 }
 0x272   : > { %3340 = vst [vmem:[%s5040_s7 + $0x268] sm:$0xff] %v3248_v15  ;;  %v3250_v18 = vmax.f32 %v3945_v16, 0.0  ;;  %v2616_v19 = vpop.f32.mrb[80].mxu1 }
 0x273   : > { %v3142_v20 = vpop.f32.mrb[80].mxu0  ;;  %3341 = vst [vmem:[%s5040_s7 + $0x270] sm:$0xff] %v3249_v17  ;;  %v3946_v21 = vadd.f32 %v2616_v19, %v5029_v53  ;;  %v2618_v22 = vpop.f32.mrb[81].mxu1 }
 0x274   : > { %v3144_v23 = vpop.f32.mrb[81].mxu0  ;;  %3342 = vst [vmem:[%s5040_s7 + $0x278] sm:$0xff] %v3250_v18  ;;  %v3948_v24 = vadd.f32 %v2618_v22, %v5031_v54  ;;  %v2620_v25 = vpop.f32.mrb[82].mxu1 }
 0x275   : > { %v3146_v26 = vpop.f32.mrb[82].mxu0  ;;  %v3947_v27 = vadd.f32 %v3946_v21, %v3142_v20  ;;  %v3950_v28 = vadd.f32 %v2620_v25, %v5029_v53  ;;  %v2622_v29 = vpop.f32.mrb[83].mxu1 }
 0x276   : > { %v3148_v30 = vpop.f32.mrb[83].mxu0  ;;  %v3949_v31 = vadd.f32 %v3948_v24, %v3144_v23  ;;  %v3952_v32 = vadd.f32 %v2622_v29, %v5031_v54 }
 0x277   : > { %v3251_v33 = vmax.f32 %v3947_v27, 0.0  ;;  %v3951_v34 = vadd.f32 %v3950_v28, %v3146_v26 }
 0x278   : > { %v3252_v35 = vmax.f32 %v3949_v31, 0.0  ;;  %v3953_v36 = vadd.f32 %v3952_v32, %v3148_v30 }
 0x279   : > { %3343 = vst [vmem:[%s5040_s7 + $0x280] sm:$0xff] %v3251_v33  ;;  %v3253_v37 = vmax.f32 %v3951_v34, 0.0 }
 0x27a   : > { %3344 = vst [vmem:[%s5040_s7 + $0x288] sm:$0xff] %v3252_v35  ;;  %v3254_v38 = vmax.f32 %v3953_v36, 0.0  ;;  %v2626_v39 = vpop.f32.mrb[84].mxu1 }
 0x27b   : > { %v3152_v40 = vpop.f32.mrb[84].mxu0  ;;  %3345 = vst [vmem:[%s5040_s7 + $0x290] sm:$0xff] %v3253_v37  ;;  %v3954_v41 = vadd.f32 %v2626_v39, %v5029_v53  ;;  %v2628_v42 = vpop.f32.mrb[85].mxu1 }
 0x27c   : > { %v3154_v43 = vpop.f32.mrb[85].mxu0  ;;  %3346 = vst [vmem:[%s5040_s7 + $0x298] sm:$0xff] %v3254_v38  ;;  %v3956_v44 = vadd.f32 %v2628_v42, %v5031_v54  ;;  %v2630_v45 = vpop.f32.mrb[86].mxu1 }
 0x27d   : > { %v3156_v46 = vpop.f32.mrb[86].mxu0  ;;  %v3955_v47 = vadd.f32 %v3954_v41, %v3152_v40  ;;  %v3958_v48 = vadd.f32 %v2630_v45, %v5029_v53  ;;  %v2632_v49 = vpop.f32.mrb[87].mxu1 }
 0x27e   : > { %v3158_v50 = vpop.f32.mrb[87].mxu0  ;;  %v3957_v51 = vadd.f32 %v3956_v44, %v3154_v43  ;;  %v3960_v52 = vadd.f32 %v2632_v49, %v5031_v54 }
 0x27f   : > { %v3255_v55 = vmax.f32 %v3955_v47, 0.0  ;;  %v3959_v56 = vadd.f32 %v3958_v48, %v3156_v46 }
 0x280   : > { %v3256_v57 = vmax.f32 %v3957_v51, 0.0  ;;  %v3961_v58 = vadd.f32 %v3960_v52, %v3158_v50 }
 0x281   : > { %3347 = vst [vmem:[%s5040_s7 + $0x2a0] sm:$0xff] %v3255_v55  ;;  %v3257_v59 = vmax.f32 %v3959_v56, 0.0 }
 0x282   : > { %3348 = vst [vmem:[%s5040_s7 + $0x2a8] sm:$0xff] %v3256_v57  ;;  %v3258_v60 = vmax.f32 %v3961_v58, 0.0  ;;  %v2636_v61 = vpop.f32.mrb[88].mxu1 }
 0x283   : > { %v3162_v62 = vpop.f32.mrb[88].mxu0  ;;  %3349 = vst [vmem:[%s5040_s7 + $0x2b0] sm:$0xff] %v3257_v59  ;;  %v3962_v63 = vadd.f32 %v2636_v61, %v5029_v53  ;;  %v2638_v0 = vpop.f32.mrb[89].mxu1 }
 0x284   : > { %v3164_v1 = vpop.f32.mrb[89].mxu0  ;;  %3350 = vst [vmem:[%s5040_s7 + $0x2b8] sm:$0xff] %v3258_v60  ;;  %v3964_v2 = vadd.f32 %v2638_v0, %v5031_v54  ;;  %v2640_v3 = vpop.f32.mrb[90].mxu1 }
 0x285   : > { %v3166_v4 = vpop.f32.mrb[90].mxu0  ;;  %v3963_v5 = vadd.f32 %v3962_v63, %v3162_v62  ;;  %v3966_v6 = vadd.f32 %v2640_v3, %v5029_v53  ;;  %v2642_v7 = vpop.f32.mrb[91].mxu1 }
 0x286   : > { %v3168_v8 = vpop.f32.mrb[91].mxu0  ;;  %v3965_v9 = vadd.f32 %v3964_v2, %v3164_v1  ;;  %v3968_v10 = vadd.f32 %v2642_v7, %v5031_v54 }
 0x287   : > { %v3259_v11 = vmax.f32 %v3963_v5, 0.0  ;;  %v3967_v12 = vadd.f32 %v3966_v6, %v3166_v4 }
 0x288   : > { %v3260_v13 = vmax.f32 %v3965_v9, 0.0  ;;  %v3969_v14 = vadd.f32 %v3968_v10, %v3168_v8 }
 0x289   : > { %3351 = vst [vmem:[%s5040_s7 + $0x2c0] sm:$0xff] %v3259_v11  ;;  %v3261_v15 = vmax.f32 %v3967_v12, 0.0 }
 0x28a   : > { %3352 = vst [vmem:[%s5040_s7 + $0x2c8] sm:$0xff] %v3260_v13  ;;  %v3262_v16 = vmax.f32 %v3969_v14, 0.0 }
 0x28b   : > { %3353 = vst [vmem:[%s5040_s7 + $0x2d0] sm:$0x1] %v3261_v15 }
 0x28c   : > { %3354 = vst [vmem:[%s5040_s7 + $0x2d8] sm:$0x1] %v3262_v16 }
 0x28d PF: > { %s13_s14 = sadd.s32 1, %s4394_s14   ;;  %s5236_s12 = smov %s4390_s13 }
 0x28e   : > { %p10_p5 = scmp.ge.s32.totalorder %s13_s14, 4   ;;  %s5237_s13 = smov %s5239_s15 }
 0x290   :  { %12 = sbr.rel (!%p10_p5) target bundleno = 2 (0x2), region = 68 }

// kernel: aux_convs_forward.10
= control target key start
LH: loop header
LB: loop body
LE: loop exit
PB: predicated region body
PF: predicated region fallthrough
CT: control target
= control target key end

     0   :  { %s1283_s12 = smov 0   ;;  %s1285_s13 = smov 0   ;;  %s1481_s0 = inlined_call_operand.vmem [shape: bf16[2,100,512], index: 0, kind: input, shape index: {}]   ;;  %s1482_s1 = inlined_call_operand.vmem [shape: bf16[512,128], index: 1, kind: input, shape index: {}]   ;;  %s1483_s2 = inlined_call_operand.vmem [shape: f32[1,128], index: 2, kind: input, shape index: {}]   ;;  %s1484_s3 = inlined_call_operand.vmem [shape: f32[2,100,128], index: 3, kind: output, shape index: {}]  }
   0x1   :  { %s1287_s14 = smov 0  }
   0x2 LB: > { %s25_s15 = sadd.s32 1, %s1257_s13  ;;  %p959_p0 = scmp.ge.s32.totalorder %s1261_s14, 1  ;;  %s1261_s14 = sphi %s1287_s14, %s13_s14   ;;  %s1257_s13 = sphi %s1285_s13, %s1486_s13   ;;  %s1253_s12 = sphi %s1283_s12, %s1485_s12  }
   0x3   : > { %p27_p1 = scmp.ge.s32.totalorder %s25_s15, 2  ;;  %p168_p2 = scmp.lt.s32.totalorder %s1261_s14, 3 }
   0x5   : > { %s1488_s15 = smov (%p27_p1, %s25_s15), 0  ;;  %p169_p3 = pnand %p959_p0, %p168_p2 }
   0x6   : > { %v1167_v0 = vld [vmem:[%s1482_s1 + $0x40] sm:$0xff] (!%p169_p3)   ;;  %v1171_v4 = vld [vmem:[%s1482_s1 + $0x48] sm:$0xff] (!%p169_p3)   ;;  %v1175_v8 = vld [vmem:[%s1482_s1 + $0x50] sm:$0xff] (!%p169_p3)   ;;  %p202_p4 = scmp.lt.s32.totalorder (!%p169_p3), %s1253_s12, 1 }
   0x7   : > { %172 = sbr.rel (%p169_p3) target bundleno = 310 (0x136), region = 32  ;;  %v1168_v1 = vld [vmem:[%s1482_s1 + $0xc0] sm:$0xff] (!%p169_p3)   ;;  %1025 = vmatprep.subr.bf16.mxu0 (!%p169_p3), %v1167_v0  ;;  %v1172_v5 = vld [vmem:[%s1482_s1 + $0xc8] sm:$0xff] (!%p169_p3)   ;;  %v1176_v9 = vld [vmem:[%s1482_s1 + $0xd0] sm:$0xff] (!%p169_p3)  }
   0x8   : > { %v1169_v2 = vld [vmem:[%s1482_s1] sm:$0xff] (!%p169_p3)   ;;  %1083 = vmatprep.subr.bf16.mxu1 (!%p169_p3), %v1168_v1  ;;  %v1173_v6 = vld [vmem:[%s1482_s1 + $0x8] sm:$0xff] (!%p169_p3)   ;;  %v1177_v10 = vld [vmem:[%s1482_s1 + $0x10] sm:$0xff] (!%p169_p3)  }
   0x9   : > { %v1170_v3 = vld [vmem:[%s1482_s1 + $0x80] sm:$0xff] (!%p169_p3)   ;;  %1026 = vmatpush3.bf16.msra.mxu0 (!%p169_p3), %v1169_v2  ;;  %v1174_v7 = vld [vmem:[%s1482_s1 + $0x88] sm:$0xff] (!%p169_p3)   ;;  %v1178_v11 = vld [vmem:[%s1482_s1 + $0x90] sm:$0xff] (!%p169_p3)  }
   0xa   : > { %1084 = vmatpush3.bf16.msra.mxu1 (!%p169_p3), %v1170_v3  ;;  %1027 = vmatprep.subr.bf16.mxu0 (!%p169_p3), %v1171_v4  ;;  %v1179_v12 = vld [vmem:[%s1482_s1 + $0x58] sm:$0xff] (!%p169_p3)   ;;  %v1183_v16 = vld [vmem:[%s1482_s1 + $0x60] sm:$0xff] (!%p169_p3)   ;;  %v1187_v20 = vld [vmem:[%s1482_s1 + $0x68] sm:$0xff] (!%p169_p3)  }
   0xb   : > { %1085 = vmatprep.subr.bf16.mxu1 (!%p169_p3), %v1172_v5  ;;  %v1180_v13 = vld [vmem:[%s1482_s1 + $0xd8] sm:$0xff] (!%p169_p3)   ;;  %v1184_v17 = vld [vmem:[%s1482_s1 + $0xe0] sm:$0xff] (!%p169_p3)   ;;  %v1188_v21 = vld [vmem:[%s1482_s1 + $0xe8] sm:$0xff] (!%p169_p3)  }
   0xc   : > { %v1181_v14 = vld [vmem:[%s1482_s1 + $0x18] sm:$0xff] (!%p169_p3)   ;;  %v1185_v18 = vld [vmem:[%s1482_s1 + $0x20] sm:$0xff] (!%p169_p3)   ;;  %v1189_v22 = vld [vmem:[%s1482_s1 + $0x28] sm:$0xff] (!%p169_p3)  }
   0xd   : > { %1028 = vmatpush3.bf16.msra.mxu0 (!%p169_p3), %v1173_v6  ;;  %v1182_v15 = vld [vmem:[%s1482_s1 + $0x98] sm:$0xff] (!%p169_p3)   ;;  %v1186_v19 = vld [vmem:[%s1482_s1 + $0xa0] sm:$0xff] (!%p169_p3)   ;;  %v1190_v23 = vld [vmem:[%s1482_s1 + $0xa8] sm:$0xff] (!%p169_p3)  }
   0xe   : > { %1086 = vmatpush3.bf16.msra.mxu1 %v1174_v7  ;;  %1029 = vmatprep.subr.bf16.mxu0 %v1175_v8  ;;  %s1490_s12 = smov (!%p202_p4, %s1253_s12), 1  ;;  %v1191_v24 = vld [vmem:[%s1482_s1 + $0x70] sm:$0xff]   ;;  %v1195_v28 = vld [vmem:[%s1482_s1 + $0x78] sm:$0xff]   ;;  %v1438_v0 = vld [vmem:[%s1483_s2] ss:$0 sm:$0xff] }
   0xf   : > { %1087 = vmatprep.subr.bf16.mxu1 %v1176_v9  ;;  %v1192_v25 = vld [vmem:[%s1482_s1 + $0xf0] sm:$0xff]   ;;  %s1141_s22 = smul.u32 208, %s1490_s12  ;;  %v1196_v29 = vld [vmem:[%s1482_s1 + $0xf8] sm:$0xff]  }
  0x10   : > { %v1193_v26 = vld [vmem:[%s1482_s1 + $0x30] sm:$0xff]   ;;  %v1197_v30 = vld [vmem:[%s1482_s1 + $0x38] sm:$0xff]   ;;  %s1142_s17 = smul.u32 104, %s1490_s12 }
  0x11   : > { %1030 = vmatpush3.bf16.msra.mxu0 %v1177_v10  ;;  %v1194_v27 = vld [vmem:[%s1482_s1 + $0xb0] sm:$0xff]   ;;  %s1401_s6 = scalar_lea.vmem %s1481_s0, %s1141_s22  ;;  %v1198_v31 = vld [vmem:[%s1482_s1 + $0xb8] sm:$0xff]  }
  0x12   : > { %1088 = vmatpush3.bf16.msra.mxu1 %v1178_v11  ;;  %1031 = vmatprep.subr.bf16.mxu0 %v1179_v12  ;;  %v1199_v32 = vld [vmem:[%s1401_s6] ss:$16 sps:$4 sm:$0xff]   ;;  %v1201_v33 = vld [vmem:[%s1401_s6 + $0x4] ss:$16 sps:$4 sm:$0xff]   ;;  %v1202_v34 = vld [vmem:[%s1401_s6 + $0x8] ss:$16 sps:$4 sm:$0xff]   ;;  %s1446_s20 = scalar_lea.vmem %s1484_s3, %s1142_s17 }
  0x13   : > { %1089 = vmatprep.subr.bf16.mxu1 %v1180_v13  ;;  %v1204_v35 = vld [vmem:[%s1401_s6 + $0xc] ss:$16 sps:$4 sm:$0xff]   ;;  %678 = vmatprep.mubr.bf16.mxu0 %v1201_v33  ;;  %v1205_v36 = vld [vmem:[%s1401_s6 + $0x24] ss:$16 sps:$4 sm:$0xff]   ;;  %v1209_v38 = vld [vmem:[%s1401_s6 + $0x20] ss:$16 sps:$4 sm:$0xff]  }
  0x14   : > { %766 = vmatprep.mubr.bf16.mxu1 %v1204_v35  ;;  %v1207_v37 = vld [vmem:[%s1401_s6 + $0x2c] ss:$16 sps:$4 sm:$0xff]   ;;  %v1210_v39 = vld [vmem:[%s1401_s6 + $0x28] ss:$16 sps:$4 sm:$0xff]   ;;  %v1211_v40 = vld [vmem:[%s1401_s6 + $0x44] ss:$16 sps:$4 sm:$0xff]  }
  0x15   : > { %1032 = vmatpush3.bf16.msra.mxu0 %v1181_v14  ;;  %v1213_v41 = vld [vmem:[%s1401_s6 + $0x4c] ss:$16 sps:$4 sm:$0xff]   ;;  %v1215_v42 = vld [vmem:[%s1401_s6 + $0x40] ss:$16 sps:$4 sm:$0xff]   ;;  %v1216_v43 = vld [vmem:[%s1401_s6 + $0x48] ss:$16 sps:$4 sm:$0xff]  }
  0x16   : > { %1090 = vmatpush3.bf16.msra.mxu1 %v1182_v15  ;;  %1033 = vmatprep.subr.bf16.mxu0 %v1183_v16  ;;  %v1217_v44 = vld [vmem:[%s1401_s6 + $0x64] ss:$16 sps:$4 sm:$0xff]   ;;  %v1219_v45 = vld [vmem:[%s1401_s6 + $0x6c] ss:$16 sps:$4 sm:$0xff]   ;;  %v1221_v46 = vld [vmem:[%s1401_s6 + $0x60] ss:$16 sps:$4 sm:$0xff]  }
  0x17   : > { %1091 = vmatprep.subr.bf16.mxu1 %v1184_v17  ;;  %v1222_v47 = vld [vmem:[%s1401_s6 + $0x68] ss:$16 sps:$4 sm:$0xff]   ;;  %v1223_v48 = vld [vmem:[%s1401_s6 + $0x84] ss:$16 sps:$4 sm:$0xff]   ;;  %v1225_v49 = vld [vmem:[%s1401_s6 + $0x8c] ss:$16 sps:$4 sm:$0xff]  }
  0x18   : > { %v1227_v50 = vld [vmem:[%s1401_s6 + $0x80] ss:$16 sps:$4 sm:$0xff]   ;;  %v1228_v51 = vld [vmem:[%s1401_s6 + $0x88] ss:$16 sps:$4 sm:$0xff]   ;;  %v1229_v52 = vld [vmem:[%s1401_s6 + $0xa4] ss:$16 sps:$4 sm:$0xff]  }
  0x19   : > { %1034 = vmatpush3.bf16.msra.mxu0 %v1185_v18  ;;  %v1231_v53 = vld [vmem:[%s1401_s6 + $0xac] ss:$16 sps:$4 sm:$0xff]   ;;  %v247_v54 = vld [vmem:[%s1401_s6 + $0xc0] sm:$0x33]  ;;  %v1234_v57 = vld [vmem:[%s1401_s6 + $0xa8] ss:$16 sps:$4 sm:$0xff]  }
  0x1a   : > { %1092 = vmatpush3.bf16.msra.mxu1 %v1186_v19  ;;  %1035 = vmatprep.subr.bf16.mxu0 %v1187_v20  ;;  %v248_v55 = vld [vmem:[%s1401_s6 + $0xc8] sm:$0x33]  ;;  %v1233_v56 = vld [vmem:[%s1401_s6 + $0xa0] ss:$16 sps:$4 sm:$0xff]   ;;  %v988_v58 = vcombine.high %v247_v54, %v247_v54  ;;  %v987_v60 = vcombine.low %v247_v54, %v247_v54 }
  0x1b   : > { %1093 = vmatprep.subr.bf16.mxu1 %v1188_v21  ;;  %v990_v59 = vcombine.high %v248_v55, %v248_v55  ;;  %v989_v61 = vcombine.low %v248_v55, %v248_v55 }
  0x1d   : > { %1036 = vmatpush3.bf16.msra.mxu0 %v1189_v22 }
  0x1e   : > { %1094 = vmatpush3.bf16.msra.mxu1 %v1190_v23  ;;  %1037 = vmatprep.subr.bf16.mxu0 %v1191_v24 }
  0x1f   : > { %1095 = vmatprep.subr.bf16.mxu1 %v1192_v25 }
  0x21   : > { %1038 = vmatpush3.bf16.msra.mxu0 %v1193_v26 }
  0x22   : > { %1096 = vmatpush3.bf16.msra.mxu1 %v1194_v27  ;;  %1039 = vmatprep.subr.bf16.mxu0 %v1195_v28 }
  0x23   : > { %1097 = vmatprep.subr.bf16.mxu1 %v1196_v29 }
  0x25   : > { %1040 = vmatpush3.bf16.msra.mxu0 %v1197_v30 }
  0x26   : > { %1098 = vmatpush3.bf16.msra.mxu1 %v1198_v31 }
  0x28   : > { %679 = vmatmul.mubr.bf16.vlgmr.msra.gmra.mrb[0].mxu0 %v1199_v32 }
  0x29   : > { %767 = vmatmul.mubr.bf16.vlgmr.msra.gmra.mrb[0].mxu1 %v1202_v34  ;;  %686 = vmatprep.mubr.bf16.mxu0 %v1205_v36 }
  0x2a   : > { %774 = vmatprep.mubr.bf16.mxu1 %v1207_v37 }
  0x30   : > { %687 = vmatmul.mubr.bf16.gmra.mrb[4].mxu0 %v1209_v38 }
  0x31   : > { %775 = vmatmul.mubr.bf16.gmra.mrb[4].mxu1 %v1210_v39  ;;  %694 = vmatprep.mubr.bf16.mxu0 %v1211_v40 }
  0x32   : > { %782 = vmatprep.mubr.bf16.mxu1 %v1213_v41 }
  0x38   : > { %695 = vmatmul.mubr.bf16.gmra.mrb[8].mxu0 %v1215_v42 }
  0x39   : > { %783 = vmatmul.mubr.bf16.gmra.mrb[8].mxu1 %v1216_v43  ;;  %702 = vmatprep.mubr.bf16.mxu0 %v1217_v44 }
  0x3a   : > { %790 = vmatprep.mubr.bf16.mxu1 %v1219_v45 }
  0x40   : > { %703 = vmatmul.mubr.bf16.gmra.mrb[12].mxu0 %v1221_v46 }
  0x41   : > { %791 = vmatmul.mubr.bf16.gmra.mrb[12].mxu1 %v1222_v47  ;;  %710 = vmatprep.mubr.bf16.mxu0 %v1223_v48 }
  0x42   : > { %798 = vmatprep.mubr.bf16.mxu1 %v1225_v49 }
  0x48   : > { %711 = vmatmul.mubr.bf16.gmra.mrb[16].mxu0 %v1227_v50 }
  0x49   : > { %799 = vmatmul.mubr.bf16.gmra.mrb[16].mxu1 %v1228_v51  ;;  %718 = vmatprep.mubr.bf16.mxu0 %v1229_v52 }
  0x4a   : > { %806 = vmatprep.mubr.bf16.mxu1 %v1231_v53 }
  0x50   : > { %719 = vmatmul.mubr.bf16.gmra.mrb[20].mxu0 %v1233_v56 }
  0x51   : > { %807 = vmatmul.mubr.bf16.gmra.mrb[20].mxu1 %v1234_v57  ;;  %726 = vmatprep.mubr.bf16.mxu0 %v988_v58 }
  0x52   : > { %814 = vmatprep.mubr.bf16.mxu1 %v990_v59 }
  0x58   : > { %727 = vmatmul.mubr.bf16.gmra.mrb[24].mxu0 %v987_v60 }
  0x59   : > { %815 = vmatmul.mubr.bf16.gmra.mrb[24].mxu1 %v989_v61 }
  0xfb   : > { %v1041_v62 = vpop.f32.mrb[0].mxu0 }
  0xfc   : > { %v1099_v63 = vpop.f32.mrb[0].mxu1  ;;  %v1042_v1 = vpop.f32.mrb[1].mxu0 }
  0xfd   : > { %v1043_v2 = vadd.f32 %v1042_v1, %v1041_v62  ;;  %v1100_v3 = vpop.f32.mrb[1].mxu1  ;;  %v1044_v4 = vpop.f32.mrb[2].mxu0 }
  0xfe   : > { %v1101_v5 = vadd.f32 %v1100_v3, %v1099_v63  ;;  %v1102_v6 = vpop.f32.mrb[2].mxu1  ;;  %v1045_v7 = vpop.f32.mrb[3].mxu0 }
  0xff   : > { %v681_v8 = vadd.f32 %v1043_v2, %v1438_v0  ;;  %v1046_v9 = vadd.f32 %v1045_v7, %v1044_v4  ;;  %v1103_v10 = vpop.f32.mrb[3].mxu1 }
 0x100   : > { %v1104_v11 = vadd.f32 %v1103_v10, %v1102_v6 }
 0x101   : > { %v769_v12 = vadd.f32 %v1101_v5, %v681_v8  ;;  %v684_v13 = vadd.f32 %v1046_v9, %v1438_v0 }
 0x103   : > { %v822_v14 = vmax.f32 %v769_v12, 0.0  ;;  %v772_v15 = vadd.f32 %v1104_v11, %v684_v13  ;;  %v1047_v16 = vpop.f32.mrb[4].mxu0 }
 0x104   : > { %v1105_v17 = vpop.f32.mrb[4].mxu1  ;;  %v1048_v18 = vpop.f32.mrb[5].mxu0 }
 0x105   : > { %835 = vst [vmem:[%s1446_s20] sm:$0xff] %v822_v14  ;;  %v823_v19 = vmax.f32 %v772_v15, 0.0  ;;  %v1049_v20 = vadd.f32 %v1048_v18, %v1047_v16  ;;  %v1106_v21 = vpop.f32.mrb[5].mxu1  ;;  %v1050_v22 = vpop.f32.mrb[6].mxu0 }
 0x106   : > { %v1107_v23 = vadd.f32 %v1106_v21, %v1105_v17  ;;  %v1108_v24 = vpop.f32.mrb[6].mxu1  ;;  %v1051_v25 = vpop.f32.mrb[7].mxu0 }
 0x107   : > { %836 = vst [vmem:[%s1446_s20 + $0x8] sm:$0xff] %v823_v19  ;;  %v689_v26 = vadd.f32 %v1049_v20, %v1438_v0  ;;  %v1052_v27 = vadd.f32 %v1051_v25, %v1050_v22  ;;  %v1109_v28 = vpop.f32.mrb[7].mxu1 }
 0x108   : > { %v1110_v29 = vadd.f32 %v1109_v28, %v1108_v24 }
 0x109   : > { %v777_v30 = vadd.f32 %v1107_v23, %v689_v26  ;;  %v692_v31 = vadd.f32 %v1052_v27, %v1438_v0 }
 0x10b   : > { %v824_v32 = vmax.f32 %v777_v30, 0.0  ;;  %v780_v33 = vadd.f32 %v1110_v29, %v692_v31  ;;  %v1053_v34 = vpop.f32.mrb[8].mxu0 }
 0x10c   : > { %v1111_v35 = vpop.f32.mrb[8].mxu1  ;;  %v1054_v36 = vpop.f32.mrb[9].mxu0 }
 0x10d   : > { %837 = vst [vmem:[%s1446_s20 + $0x10] sm:$0xff] %v824_v32  ;;  %v825_v37 = vmax.f32 %v780_v33, 0.0  ;;  %v1055_v38 = vadd.f32 %v1054_v36, %v1053_v34  ;;  %v1112_v39 = vpop.f32.mrb[9].mxu1  ;;  %v1056_v40 = vpop.f32.mrb[10].mxu0 }
 0x10e   : > { %v1113_v41 = vadd.f32 %v1112_v39, %v1111_v35  ;;  %v1114_v42 = vpop.f32.mrb[10].mxu1  ;;  %v1057_v43 = vpop.f32.mrb[11].mxu0 }
 0x10f   : > { %838 = vst [vmem:[%s1446_s20 + $0x18] sm:$0xff] %v825_v37  ;;  %v697_v44 = vadd.f32 %v1055_v38, %v1438_v0  ;;  %v1058_v45 = vadd.f32 %v1057_v43, %v1056_v40  ;;  %v1115_v46 = vpop.f32.mrb[11].mxu1 }
 0x110   : > { %v1116_v47 = vadd.f32 %v1115_v46, %v1114_v42 }
 0x111   : > { %v785_v48 = vadd.f32 %v1113_v41, %v697_v44  ;;  %v700_v49 = vadd.f32 %v1058_v45, %v1438_v0 }
 0x113   : > { %v826_v50 = vmax.f32 %v785_v48, 0.0  ;;  %v788_v51 = vadd.f32 %v1116_v47, %v700_v49  ;;  %v1059_v52 = vpop.f32.mrb[12].mxu0 }
 0x114   : > { %v1117_v53 = vpop.f32.mrb[12].mxu1  ;;  %v1060_v54 = vpop.f32.mrb[13].mxu0 }
 0x115   : > { %839 = vst [vmem:[%s1446_s20 + $0x20] sm:$0xff] %v826_v50  ;;  %v827_v55 = vmax.f32 %v788_v51, 0.0  ;;  %v1061_v56 = vadd.f32 %v1060_v54, %v1059_v52  ;;  %v1118_v57 = vpop.f32.mrb[13].mxu1  ;;  %v1062_v58 = vpop.f32.mrb[14].mxu0 }
 0x116   : > { %v1119_v59 = vadd.f32 %v1118_v57, %v1117_v53  ;;  %v1120_v60 = vpop.f32.mrb[14].mxu1  ;;  %v1063_v61 = vpop.f32.mrb[15].mxu0 }
 0x117   : > { %840 = vst [vmem:[%s1446_s20 + $0x28] sm:$0xff] %v827_v55  ;;  %v705_v62 = vadd.f32 %v1061_v56, %v1438_v0  ;;  %v1064_v63 = vadd.f32 %v1063_v61, %v1062_v58  ;;  %v1121_v1 = vpop.f32.mrb[15].mxu1 }
 0x118   : > { %v1122_v2 = vadd.f32 %v1121_v1, %v1120_v60 }
 0x119   : > { %v793_v3 = vadd.f32 %v1119_v59, %v705_v62  ;;  %v708_v4 = vadd.f32 %v1064_v63, %v1438_v0 }
 0x11b   : > { %v828_v5 = vmax.f32 %v793_v3, 0.0  ;;  %v796_v6 = vadd.f32 %v1122_v2, %v708_v4  ;;  %v1065_v7 = vpop.f32.mrb[16].mxu0 }
 0x11c   : > { %v1123_v8 = vpop.f32.mrb[16].mxu1  ;;  %v1066_v9 = vpop.f32.mrb[17].mxu0 }
 0x11d   : > { %841 = vst [vmem:[%s1446_s20 + $0x30] sm:$0xff] %v828_v5  ;;  %v829_v10 = vmax.f32 %v796_v6, 0.0  ;;  %v1067_v11 = vadd.f32 %v1066_v9, %v1065_v7  ;;  %v1124_v12 = vpop.f32.mrb[17].mxu1  ;;  %v1068_v13 = vpop.f32.mrb[18].mxu0 }
 0x11e   : > { %v1125_v14 = vadd.f32 %v1124_v12, %v1123_v8  ;;  %v1126_v15 = vpop.f32.mrb[18].mxu1  ;;  %v1069_v16 = vpop.f32.mrb[19].mxu0 }
 0x11f   : > { %842 = vst [vmem:[%s1446_s20 + $0x38] sm:$0xff] %v829_v10  ;;  %v713_v17 = vadd.f32 %v1067_v11, %v1438_v0  ;;  %v1070_v18 = vadd.f32 %v1069_v16, %v1068_v13  ;;  %v1127_v19 = vpop.f32.mrb[19].mxu1 }
 0x120   : > { %v1128_v20 = vadd.f32 %v1127_v19, %v1126_v15 }
 0x121   : > { %v801_v21 = vadd.f32 %v1125_v14, %v713_v17  ;;  %v716_v22 = vadd.f32 %v1070_v18, %v1438_v0 }
 0x123   : > { %v830_v23 = vmax.f32 %v801_v21, 0.0  ;;  %v804_v24 = vadd.f32 %v1128_v20, %v716_v22  ;;  %v1071_v25 = vpop.f32.mrb[20].mxu0 }
 0x124   : > { %v1129_v26 = vpop.f32.mrb[20].mxu1  ;;  %v1072_v27 = vpop.f32.mrb[21].mxu0 }
 0x125   : > { %843 = vst [vmem:[%s1446_s20 + $0x40] sm:$0xff] %v830_v23  ;;  %v831_v28 = vmax.f32 %v804_v24, 0.0  ;;  %v1073_v29 = vadd.f32 %v1072_v27, %v1071_v25  ;;  %v1130_v30 = vpop.f32.mrb[21].mxu1  ;;  %v1074_v31 = vpop.f32.mrb[22].mxu0 }
 0x126   : > { %v1131_v32 = vadd.f32 %v1130_v30, %v1129_v26  ;;  %v1132_v33 = vpop.f32.mrb[22].mxu1  ;;  %v1075_v34 = vpop.f32.mrb[23].mxu0 }
 0x127   : > { %844 = vst [vmem:[%s1446_s20 + $0x48] sm:$0xff] %v831_v28  ;;  %v721_v35 = vadd.f32 %v1073_v29, %v1438_v0  ;;  %v1076_v36 = vadd.f32 %v1075_v34, %v1074_v31  ;;  %v1133_v37 = vpop.f32.mrb[23].mxu1 }
 0x128   : > { %v1134_v38 = vadd.f32 %v1133_v37, %v1132_v33 }
 0x129   : > { %v809_v39 = vadd.f32 %v1131_v32, %v721_v35  ;;  %v724_v40 = vadd.f32 %v1076_v36, %v1438_v0 }
 0x12b   : > { %v832_v41 = vmax.f32 %v809_v39, 0.0  ;;  %v812_v42 = vadd.f32 %v1134_v38, %v724_v40  ;;  %v1077_v43 = vpop.f32.mrb[24].mxu0 }
 0x12c   : > { %v1135_v44 = vpop.f32.mrb[24].mxu1  ;;  %v1078_v45 = vpop.f32.mrb[25].mxu0 }
 0x12d   : > { %845 = vst [vmem:[%s1446_s20 + $0x50] sm:$0xff] %v832_v41  ;;  %v833_v46 = vmax.f32 %v812_v42, 0.0  ;;  %v1079_v47 = vadd.f32 %v1078_v45, %v1077_v43  ;;  %v1136_v48 = vpop.f32.mrb[25].mxu1  ;;  %v1080_v49 = vpop.f32.mrb[26].mxu0 }
 0x12e   : > { %v1137_v50 = vadd.f32 %v1136_v48, %v1135_v44  ;;  %v1138_v51 = vpop.f32.mrb[26].mxu1  ;;  %v1081_v52 = vpop.f32.mrb[27].mxu0 }
 0x12f   : > { %846 = vst [vmem:[%s1446_s20 + $0x58] sm:$0xff] %v833_v46  ;;  %v729_v53 = vadd.f32 %v1079_v47, %v1438_v0  ;;  %v1139_v54 = vpop.f32.mrb[27].mxu1 }
 0x131   : > { %v817_v55 = vadd.f32 %v1137_v50, %v729_v53 }
 0x133   : > { %v834_v56 = vmax.f32 %v817_v55, 0.0 }
 0x135   : > { %847 = vst [vmem:[%s1446_s20 + $0x60] sm:$0xf] %v834_v56 }
 0x136 PF: > { %s13_s14 = sadd.s32 1, %s1261_s14   ;;  %s1485_s12 = smov %s1257_s13 }
 0x137   : > { %p10_p5 = scmp.ge.s32.totalorder %s13_s14, 4   ;;  %s1486_s13 = smov %s1488_s15 }
 0x139   :  { %12 = sbr.rel (!%p10_p5) target bundleno = 2 (0x2), region = 68 }

// kernel: aux_convs_forward.9
= control target key start
LH: loop header
LB: loop body
LE: loop exit
PB: predicated region body
PF: predicated region fallthrough
CT: control target
= control target key end

     0   :  { %s6482_s12 = smov 0   ;;  %s6484_s13 = smov 0   ;;  %s7780_s0 = inlined_call_operand.vmem [shape: bf16[2,100,2304], index: 0, kind: input, shape index: {}]   ;;  %s7781_s1 = inlined_call_operand.vmem [shape: bf16[2304,512], index: 1, kind: input, shape index: {}]   ;;  %s7782_s2 = inlined_call_operand.vmem [shape: f32[1,512], index: 2, kind: input, shape index: {}]   ;;  %s7783_s3 = inlined_call_operand.vmem [shape: f32[2,100,512], index: 3, kind: output, shape index: {}]  }
   0x1   :  { %s6486_s14 = smov 0   ;;  %s6488_s15 = smov 0  }
   0x2   :  { %s6490_s16 = smov 0   ;;  %s6492_s17 = smov 0  }
   0x3   :  { %s6494_s18 = smov 0   ;;  %s6496_s19 = smov 0  }
   0x4   :  { %s6498_s20 = smov 0  }
   0x5 LB: > { %s4995_s21 = sadd.s32 4294967295, %s6460_s20   ;;  %s22_s22 = sadd.s32 1, %s6452_s18  ;;  %s6460_s20 = sphi %s6498_s20, %s13_s20   ;;  %s6456_s19 = sphi %s6496_s19, %s7792_s19   ;;  %s6452_s18 = sphi %s6494_s18, %s7791_s18   ;;  %s6448_s17 = sphi %s6492_s17, %s7790_s17   ;;  %s6444_s16 = sphi %s6490_s16, %s7789_s16   ;;  %s6440_s15 = sphi %s6488_s15, %s7788_s15   ;;  %s6436_s14 = sphi %s6486_s14, %s7787_s14   ;;  %s6432_s13 = sphi %s6484_s13, %s7786_s13   ;;  %s6428_s12 = sphi %s6482_s12, %s7785_s12  }
   0x6   : > { %p23_p0 = scmp.ge.s32.totalorder %s22_s22, 2  ;;  %s25_s23 = sadd.s32 1, %s6456_s19 }
   0x7   : > { %s58_s24 = sadd.s32 1, %s6440_s15  ;;  %p65_p1 = scmp.ne.s32.totalorder %s6440_s15, %s6436_s14 }
   0x8   : > { %s7794_s22 = smov (%p23_p0, %s22_s22), 0  ;;  %s7796_s23 = smov (!%p23_p0, %s25_s23), %s6456_s19 }
   0x9   : > { %s55_s25 = ssub.s32 %s6452_s18, %s7794_s22  ;;  %p66_p2 = scmp.eq.s32.totalorder %s6460_s20, 0 }
   0xa   : > { %p27_p3 = scmp.ge.s32.totalorder %s7796_s23, 2  ;;  %p56_p4 = scmp.eq.s32.totalorder %s55_s25, 0 }
   0xb   : > { %p67_p5 = por %p66_p2, %p65_p1  ;;  %s112_s26 = sadd.s32 1, %s6432_s13 }
   0xc   : > { %s7798_s23 = smov (%p27_p3, %s7796_s23), 0  ;;  %p122_p6 = scmp.ne.s32.totalorder %s6432_s13, %s6428_s12 }
   0xd   : > { %s6543_s27 = scalar_select %p56_p4, %s6440_s15, %s58_s24  }
   0xe   : > { %s107_s28 = ssub.s32 %s6456_s19, %s7798_s23  ;;  %p123_p7 = scmp.eq.s32.totalorder %s4995_s21, 3 }
   0xf   : > { %s109_s29 = sor.u32 %s107_s28, %s55_s25  ;;  %p4998_p10 = scmp.ge.s32.totalorder %s6460_s20, 4 }
  0x10   : > { %p110_p8 = scmp.eq.s32.totalorder %s109_s29, 0  ;;  %p6549_p9 = por %p123_p7, %p122_p6 }
  0x11   : > { %145 = sbr.rel (%p4998_p10) target bundleno = 172 (0xac), region = 16 }
  0x12   : > { %s6554_s4 = scalar_select %p110_p8, %s6432_s13, %s112_s26  }
  0x18   : > { %156 = sbr.rel (!%p67_p5) target bundleno = 172 (0xac), region = 24  ;;  %s158_s5 = sand.u32 (%p67_p5), 1, %s6440_s15  }
  0x19   : > { %s5422_s6 = sshll.u32 (%p67_p5), %s6452_s18, 3  ;;  %s5701_s7 = smul.u32 (%p67_p5), 2304, %s158_s5 }
  0x1a   : > { %s6562_s10 = scalar_lea.vmem (%p67_p5), %s7781_s1, %s5422_s6 }
  0x1b   : > { %v765_v0 = vld [vmem:[%s6562_s10] sm:$0xff] (%p67_p5)  ;;  %v767_v1 = vld [vmem:[%s6562_s10 + $0x10] sm:$0xff] (%p67_p5)  ;;  %s6570_s11 = scalar_lea.vmem (%p67_p5), [#allocation2], %s5701_s7 }
  0x1c   : > { %v769_v2 = vld [vmem:[%s6562_s10 + $0x20] sm:$0xff] (%p67_p5)  ;;  %v771_v3 = vld [vmem:[%s6562_s10 + $0x30] sm:$0xff] (%p67_p5)  ;;  %766 = vst [vmem:[%s6570_s11] sm:$0xff] (%p67_p5), %v765_v0  ;;  %768 = vst [vmem:[%s6570_s11 + $0x8] sm:$0xff] (%p67_p5), %v767_v1 }
  0x1d   : > { %v773_v4 = vld [vmem:[%s6562_s10 + $0x40] sm:$0xff] (%p67_p5)  ;;  %v775_v5 = vld [vmem:[%s6562_s10 + $0x50] sm:$0xff] (%p67_p5)  ;;  %770 = vst [vmem:[%s6570_s11 + $0x10] sm:$0xff] (%p67_p5), %v769_v2  ;;  %772 = vst [vmem:[%s6570_s11 + $0x18] sm:$0xff] (%p67_p5), %v771_v3 }
  0x1e   : > { %774 = vst [vmem:[%s6570_s11 + $0x20] sm:$0xff] (%p67_p5), %v773_v4  ;;  %776 = vst [vmem:[%s6570_s11 + $0x28] sm:$0xff] (%p67_p5), %v775_v5  ;;  %v777_v6 = vld [vmem:[%s6562_s10 + $0x60] sm:$0xff] (%p67_p5)  ;;  %v779_v7 = vld [vmem:[%s6562_s10 + $0x70] sm:$0xff] (%p67_p5) }
  0x1f   : > { %v781_v8 = vld [vmem:[%s6562_s10 + $0x80] sm:$0xff]  ;;  %778 = vst [vmem:[%s6570_s11 + $0x30] sm:$0xff] %v777_v6  ;;  %780 = vst [vmem:[%s6570_s11 + $0x38] sm:$0xff] %v779_v7  ;;  %v783_v9 = vld [vmem:[%s6562_s10 + $0x90] sm:$0xff] }
  0x20   : > { %782 = vst [vmem:[%s6570_s11 + $0x40] sm:$0xff] %v781_v8  ;;  %v785_v10 = vld [vmem:[%s6562_s10 + $0xa0] sm:$0xff]  ;;  %v787_v11 = vld [vmem:[%s6562_s10 + $0xb0] sm:$0xff]  ;;  %784 = vst [vmem:[%s6570_s11 + $0x48] sm:$0xff] %v783_v9 }
  0x21   : > { %786 = vst [vmem:[%s6570_s11 + $0x50] sm:$0xff] %v785_v10  ;;  %788 = vst [vmem:[%s6570_s11 + $0x58] sm:$0xff] %v787_v11  ;;  %v789_v12 = vld [vmem:[%s6562_s10 + $0xc0] sm:$0xff]  ;;  %v791_v13 = vld [vmem:[%s6562_s10 + $0xd0] sm:$0xff] }
  0x22   : > { %v793_v14 = vld [vmem:[%s6562_s10 + $0xe0] sm:$0xff]  ;;  %790 = vst [vmem:[%s6570_s11 + $0x60] sm:$0xff] %v789_v12  ;;  %792 = vst [vmem:[%s6570_s11 + $0x68] sm:$0xff] %v791_v13  ;;  %v795_v15 = vld [vmem:[%s6562_s10 + $0xf0] sm:$0xff] }
  0x23   : > { %794 = vst [vmem:[%s6570_s11 + $0x70] sm:$0xff] %v793_v14  ;;  %v797_v16 = vld [vmem:[%s6562_s10 + $0x100] sm:$0xff]  ;;  %v799_v17 = vld [vmem:[%s6562_s10 + $0x110] sm:$0xff]  ;;  %796 = vst [vmem:[%s6570_s11 + $0x78] sm:$0xff] %v795_v15 }
  0x24   : > { %798 = vst [vmem:[%s6570_s11 + $0x80] sm:$0xff] %v797_v16  ;;  %800 = vst [vmem:[%s6570_s11 + $0x88] sm:$0xff] %v799_v17  ;;  %v801_v18 = vld [vmem:[%s6562_s10 + $0x120] sm:$0xff]  ;;  %v803_v19 = vld [vmem:[%s6562_s10 + $0x130] sm:$0xff] }
  0x25   : > { %v805_v20 = vld [vmem:[%s6562_s10 + $0x140] sm:$0xff]  ;;  %802 = vst [vmem:[%s6570_s11 + $0x90] sm:$0xff] %v801_v18  ;;  %804 = vst [vmem:[%s6570_s11 + $0x98] sm:$0xff] %v803_v19  ;;  %v807_v21 = vld [vmem:[%s6562_s10 + $0x150] sm:$0xff] }
  0x26   : > { %806 = vst [vmem:[%s6570_s11 + $0xa0] sm:$0xff] %v805_v20  ;;  %v809_v22 = vld [vmem:[%s6562_s10 + $0x160] sm:$0xff]  ;;  %v811_v23 = vld [vmem:[%s6562_s10 + $0x170] sm:$0xff]  ;;  %808 = vst [vmem:[%s6570_s11 + $0xa8] sm:$0xff] %v807_v21 }
  0x27   : > { %810 = vst [vmem:[%s6570_s11 + $0xb0] sm:$0xff] %v809_v22  ;;  %812 = vst [vmem:[%s6570_s11 + $0xb8] sm:$0xff] %v811_v23  ;;  %v813_v24 = vld [vmem:[%s6562_s10 + $0x180] sm:$0xff]  ;;  %v815_v25 = vld [vmem:[%s6562_s10 + $0x190] sm:$0xff] }
  0x28   : > { %v817_v26 = vld [vmem:[%s6562_s10 + $0x1a0] sm:$0xff]  ;;  %814 = vst [vmem:[%s6570_s11 + $0xc0] sm:$0xff] %v813_v24  ;;  %816 = vst [vmem:[%s6570_s11 + $0xc8] sm:$0xff] %v815_v25  ;;  %v819_v27 = vld [vmem:[%s6562_s10 + $0x1b0] sm:$0xff] }
  0x29   : > { %818 = vst [vmem:[%s6570_s11 + $0xd0] sm:$0xff] %v817_v26  ;;  %v821_v28 = vld [vmem:[%s6562_s10 + $0x1c0] sm:$0xff]  ;;  %v823_v29 = vld [vmem:[%s6562_s10 + $0x1d0] sm:$0xff]  ;;  %820 = vst [vmem:[%s6570_s11 + $0xd8] sm:$0xff] %v819_v27 }
  0x2a   : > { %822 = vst [vmem:[%s6570_s11 + $0xe0] sm:$0xff] %v821_v28  ;;  %824 = vst [vmem:[%s6570_s11 + $0xe8] sm:$0xff] %v823_v29  ;;  %v825_v30 = vld [vmem:[%s6562_s10 + $0x1e0] sm:$0xff]  ;;  %v827_v31 = vld [vmem:[%s6562_s10 + $0x1f0] sm:$0xff] }
  0x2b   : > { %v829_v32 = vld [vmem:[%s6562_s10 + $0x200] sm:$0xff]  ;;  %826 = vst [vmem:[%s6570_s11 + $0xf0] sm:$0xff] %v825_v30  ;;  %828 = vst [vmem:[%s6570_s11 + $0xf8] sm:$0xff] %v827_v31  ;;  %v831_v33 = vld [vmem:[%s6562_s10 + $0x210] sm:$0xff] }
  0x2c   : > { %830 = vst [vmem:[%s6570_s11 + $0x100] sm:$0xff] %v829_v32  ;;  %v833_v34 = vld [vmem:[%s6562_s10 + $0x220] sm:$0xff]  ;;  %v835_v35 = vld [vmem:[%s6562_s10 + $0x230] sm:$0xff]  ;;  %832 = vst [vmem:[%s6570_s11 + $0x108] sm:$0xff] %v831_v33 }
  0x2d   : > { %834 = vst [vmem:[%s6570_s11 + $0x110] sm:$0xff] %v833_v34  ;;  %836 = vst [vmem:[%s6570_s11 + $0x118] sm:$0xff] %v835_v35  ;;  %v837_v36 = vld [vmem:[%s6562_s10 + $0x240] sm:$0xff]  ;;  %v839_v37 = vld [vmem:[%s6562_s10 + $0x250] sm:$0xff] }
  0x2e   : > { %v841_v38 = vld [vmem:[%s6562_s10 + $0x260] sm:$0xff]  ;;  %838 = vst [vmem:[%s6570_s11 + $0x120] sm:$0xff] %v837_v36  ;;  %840 = vst [vmem:[%s6570_s11 + $0x128] sm:$0xff] %v839_v37  ;;  %v843_v39 = vld [vmem:[%s6562_s10 + $0x270] sm:$0xff] }
  0x2f   : > { %842 = vst [vmem:[%s6570_s11 + $0x130] sm:$0xff] %v841_v38  ;;  %v845_v40 = vld [vmem:[%s6562_s10 + $0x280] sm:$0xff]  ;;  %v847_v41 = vld [vmem:[%s6562_s10 + $0x290] sm:$0xff]  ;;  %844 = vst [vmem:[%s6570_s11 + $0x138] sm:$0xff] %v843_v39 }
  0x30   : > { %846 = vst [vmem:[%s6570_s11 + $0x140] sm:$0xff] %v845_v40  ;;  %848 = vst [vmem:[%s6570_s11 + $0x148] sm:$0xff] %v847_v41  ;;  %v849_v42 = vld [vmem:[%s6562_s10 + $0x2a0] sm:$0xff]  ;;  %v851_v43 = vld [vmem:[%s6562_s10 + $0x2b0] sm:$0xff] }
  0x31   : > { %v853_v44 = vld [vmem:[%s6562_s10 + $0x2c0] sm:$0xff]  ;;  %850 = vst [vmem:[%s6570_s11 + $0x150] sm:$0xff] %v849_v42  ;;  %852 = vst [vmem:[%s6570_s11 + $0x158] sm:$0xff] %v851_v43  ;;  %v855_v45 = vld [vmem:[%s6562_s10 + $0x2d0] sm:$0xff] }
  0x32   : > { %854 = vst [vmem:[%s6570_s11 + $0x160] sm:$0xff] %v853_v44  ;;  %v857_v46 = vld [vmem:[%s6562_s10 + $0x2e0] sm:$0xff]  ;;  %v859_v47 = vld [vmem:[%s6562_s10 + $0x2f0] sm:$0xff]  ;;  %856 = vst [vmem:[%s6570_s11 + $0x168] sm:$0xff] %v855_v45 }
  0x33   : > { %858 = vst [vmem:[%s6570_s11 + $0x170] sm:$0xff] %v857_v46  ;;  %860 = vst [vmem:[%s6570_s11 + $0x178] sm:$0xff] %v859_v47  ;;  %v861_v48 = vld [vmem:[%s6562_s10 + $0x300] sm:$0xff]  ;;  %v863_v49 = vld [vmem:[%s6562_s10 + $0x310] sm:$0xff] }
  0x34   : > { %v865_v50 = vld [vmem:[%s6562_s10 + $0x320] sm:$0xff]  ;;  %862 = vst [vmem:[%s6570_s11 + $0x180] sm:$0xff] %v861_v48  ;;  %864 = vst [vmem:[%s6570_s11 + $0x188] sm:$0xff] %v863_v49  ;;  %v867_v51 = vld [vmem:[%s6562_s10 + $0x330] sm:$0xff] }
  0x35   : > { %866 = vst [vmem:[%s6570_s11 + $0x190] sm:$0xff] %v865_v50  ;;  %v869_v52 = vld [vmem:[%s6562_s10 + $0x340] sm:$0xff]  ;;  %v871_v53 = vld [vmem:[%s6562_s10 + $0x350] sm:$0xff]  ;;  %868 = vst [vmem:[%s6570_s11 + $0x198] sm:$0xff] %v867_v51 }
  0x36   : > { %870 = vst [vmem:[%s6570_s11 + $0x1a0] sm:$0xff] %v869_v52  ;;  %872 = vst [vmem:[%s6570_s11 + $0x1a8] sm:$0xff] %v871_v53  ;;  %v873_v54 = vld [vmem:[%s6562_s10 + $0x360] sm:$0xff]  ;;  %v875_v55 = vld [vmem:[%s6562_s10 + $0x370] sm:$0xff] }
  0x37   : > { %v877_v56 = vld [vmem:[%s6562_s10 + $0x380] sm:$0xff]  ;;  %874 = vst [vmem:[%s6570_s11 + $0x1b0] sm:$0xff] %v873_v54  ;;  %876 = vst [vmem:[%s6570_s11 + $0x1b8] sm:$0xff] %v875_v55  ;;  %v879_v57 = vld [vmem:[%s6562_s10 + $0x390] sm:$0xff] }
  0x38   : > { %878 = vst [vmem:[%s6570_s11 + $0x1c0] sm:$0xff] %v877_v56  ;;  %v881_v58 = vld [vmem:[%s6562_s10 + $0x3a0] sm:$0xff]  ;;  %v883_v59 = vld [vmem:[%s6562_s10 + $0x3b0] sm:$0xff]  ;;  %880 = vst [vmem:[%s6570_s11 + $0x1c8] sm:$0xff] %v879_v57 }
  0x39   : > { %882 = vst [vmem:[%s6570_s11 + $0x1d0] sm:$0xff] %v881_v58  ;;  %884 = vst [vmem:[%s6570_s11 + $0x1d8] sm:$0xff] %v883_v59  ;;  %v885_v60 = vld [vmem:[%s6562_s10 + $0x3c0] sm:$0xff]  ;;  %v887_v61 = vld [vmem:[%s6562_s10 + $0x3d0] sm:$0xff] }
  0x3a   : > { %v889_v62 = vld [vmem:[%s6562_s10 + $0x3e0] sm:$0xff]  ;;  %886 = vst [vmem:[%s6570_s11 + $0x1e0] sm:$0xff] %v885_v60  ;;  %888 = vst [vmem:[%s6570_s11 + $0x1e8] sm:$0xff] %v887_v61  ;;  %v891_v63 = vld [vmem:[%s6562_s10 + $0x3f0] sm:$0xff] }
  0x3b   : > { %890 = vst [vmem:[%s6570_s11 + $0x1f0] sm:$0xff] %v889_v62  ;;  %v893_v0 = vld [vmem:[%s6562_s10 + $0x400] sm:$0xff]  ;;  %v895_v1 = vld [vmem:[%s6562_s10 + $0x410] sm:$0xff]  ;;  %892 = vst [vmem:[%s6570_s11 + $0x1f8] sm:$0xff] %v891_v63 }
  0x3c   : > { %894 = vst [vmem:[%s6570_s11 + $0x200] sm:$0xff] %v893_v0  ;;  %896 = vst [vmem:[%s6570_s11 + $0x208] sm:$0xff] %v895_v1  ;;  %v897_v2 = vld [vmem:[%s6562_s10 + $0x420] sm:$0xff]  ;;  %v899_v3 = vld [vmem:[%s6562_s10 + $0x430] sm:$0xff] }
  0x3d   : > { %v901_v4 = vld [vmem:[%s6562_s10 + $0x440] sm:$0xff]  ;;  %898 = vst [vmem:[%s6570_s11 + $0x210] sm:$0xff] %v897_v2  ;;  %900 = vst [vmem:[%s6570_s11 + $0x218] sm:$0xff] %v899_v3  ;;  %v903_v5 = vld [vmem:[%s6562_s10 + $0x450] sm:$0xff] }
  0x3e   : > { %902 = vst [vmem:[%s6570_s11 + $0x220] sm:$0xff] %v901_v4  ;;  %v905_v6 = vld [vmem:[%s6562_s10 + $0x460] sm:$0xff]  ;;  %v907_v7 = vld [vmem:[%s6562_s10 + $0x470] sm:$0xff]  ;;  %904 = vst [vmem:[%s6570_s11 + $0x228] sm:$0xff] %v903_v5 }
  0x3f   : > { %906 = vst [vmem:[%s6570_s11 + $0x230] sm:$0xff] %v905_v6  ;;  %908 = vst [vmem:[%s6570_s11 + $0x238] sm:$0xff] %v907_v7  ;;  %v909_v8 = vld [vmem:[%s6562_s10 + $0x480] sm:$0xff]  ;;  %v911_v9 = vld [vmem:[%s6562_s10 + $0x490] sm:$0xff] }
  0x40   : > { %v913_v10 = vld [vmem:[%s6562_s10 + $0x4a0] sm:$0xff]  ;;  %910 = vst [vmem:[%s6570_s11 + $0x240] sm:$0xff] %v909_v8  ;;  %912 = vst [vmem:[%s6570_s11 + $0x248] sm:$0xff] %v911_v9  ;;  %v915_v11 = vld [vmem:[%s6562_s10 + $0x4b0] sm:$0xff] }
  0x41   : > { %914 = vst [vmem:[%s6570_s11 + $0x250] sm:$0xff] %v913_v10  ;;  %v917_v12 = vld [vmem:[%s6562_s10 + $0x4c0] sm:$0xff]  ;;  %v919_v13 = vld [vmem:[%s6562_s10 + $0x4d0] sm:$0xff]  ;;  %916 = vst [vmem:[%s6570_s11 + $0x258] sm:$0xff] %v915_v11 }
  0x42   : > { %918 = vst [vmem:[%s6570_s11 + $0x260] sm:$0xff] %v917_v12  ;;  %920 = vst [vmem:[%s6570_s11 + $0x268] sm:$0xff] %v919_v13  ;;  %v921_v14 = vld [vmem:[%s6562_s10 + $0x4e0] sm:$0xff]  ;;  %v923_v15 = vld [vmem:[%s6562_s10 + $0x4f0] sm:$0xff] }
  0x43   : > { %v925_v16 = vld [vmem:[%s6562_s10 + $0x500] sm:$0xff]  ;;  %922 = vst [vmem:[%s6570_s11 + $0x270] sm:$0xff] %v921_v14  ;;  %924 = vst [vmem:[%s6570_s11 + $0x278] sm:$0xff] %v923_v15  ;;  %v927_v17 = vld [vmem:[%s6562_s10 + $0x510] sm:$0xff] }
  0x44   : > { %926 = vst [vmem:[%s6570_s11 + $0x280] sm:$0xff] %v925_v16  ;;  %v929_v18 = vld [vmem:[%s6562_s10 + $0x520] sm:$0xff]  ;;  %v931_v19 = vld [vmem:[%s6562_s10 + $0x530] sm:$0xff]  ;;  %928 = vst [vmem:[%s6570_s11 + $0x288] sm:$0xff] %v927_v17 }
  0x45   : > { %930 = vst [vmem:[%s6570_s11 + $0x290] sm:$0xff] %v929_v18  ;;  %932 = vst [vmem:[%s6570_s11 + $0x298] sm:$0xff] %v931_v19  ;;  %v933_v20 = vld [vmem:[%s6562_s10 + $0x540] sm:$0xff]  ;;  %v935_v21 = vld [vmem:[%s6562_s10 + $0x550] sm:$0xff] }
  0x46   : > { %v937_v22 = vld [vmem:[%s6562_s10 + $0x560] sm:$0xff]  ;;  %934 = vst [vmem:[%s6570_s11 + $0x2a0] sm:$0xff] %v933_v20  ;;  %936 = vst [vmem:[%s6570_s11 + $0x2a8] sm:$0xff] %v935_v21  ;;  %v939_v23 = vld [vmem:[%s6562_s10 + $0x570] sm:$0xff] }
  0x47   : > { %938 = vst [vmem:[%s6570_s11 + $0x2b0] sm:$0xff] %v937_v22  ;;  %v941_v24 = vld [vmem:[%s6562_s10 + $0x580] sm:$0xff]  ;;  %v943_v25 = vld [vmem:[%s6562_s10 + $0x590] sm:$0xff]  ;;  %940 = vst [vmem:[%s6570_s11 + $0x2b8] sm:$0xff] %v939_v23 }
  0x48   : > { %942 = vst [vmem:[%s6570_s11 + $0x2c0] sm:$0xff] %v941_v24  ;;  %944 = vst [vmem:[%s6570_s11 + $0x2c8] sm:$0xff] %v943_v25  ;;  %v945_v26 = vld [vmem:[%s6562_s10 + $0x5a0] sm:$0xff]  ;;  %v947_v27 = vld [vmem:[%s6562_s10 + $0x5b0] sm:$0xff] }
  0x49   : > { %v949_v28 = vld [vmem:[%s6562_s10 + $0x5c0] sm:$0xff]  ;;  %946 = vst [vmem:[%s6570_s11 + $0x2d0] sm:$0xff] %v945_v26  ;;  %948 = vst [vmem:[%s6570_s11 + $0x2d8] sm:$0xff] %v947_v27  ;;  %v951_v29 = vld [vmem:[%s6562_s10 + $0x5d0] sm:$0xff] }
  0x4a   : > { %950 = vst [vmem:[%s6570_s11 + $0x2e0] sm:$0xff] %v949_v28  ;;  %v953_v30 = vld [vmem:[%s6562_s10 + $0x5e0] sm:$0xff]  ;;  %v955_v31 = vld [vmem:[%s6562_s10 + $0x5f0] sm:$0xff]  ;;  %952 = vst [vmem:[%s6570_s11 + $0x2e8] sm:$0xff] %v951_v29 }
  0x4b   : > { %954 = vst [vmem:[%s6570_s11 + $0x2f0] sm:$0xff] %v953_v30  ;;  %956 = vst [vmem:[%s6570_s11 + $0x2f8] sm:$0xff] %v955_v31  ;;  %v957_v32 = vld [vmem:[%s6562_s10 + $0x600] sm:$0xff]  ;;  %v959_v33 = vld [vmem:[%s6562_s10 + $0x610] sm:$0xff] }
  0x4c   : > { %v961_v34 = vld [vmem:[%s6562_s10 + $0x620] sm:$0xff]  ;;  %958 = vst [vmem:[%s6570_s11 + $0x300] sm:$0xff] %v957_v32  ;;  %960 = vst [vmem:[%s6570_s11 + $0x308] sm:$0xff] %v959_v33  ;;  %v963_v35 = vld [vmem:[%s6562_s10 + $0x630] sm:$0xff] }
  0x4d   : > { %962 = vst [vmem:[%s6570_s11 + $0x310] sm:$0xff] %v961_v34  ;;  %v965_v36 = vld [vmem:[%s6562_s10 + $0x640] sm:$0xff]  ;;  %v967_v37 = vld [vmem:[%s6562_s10 + $0x650] sm:$0xff]  ;;  %964 = vst [vmem:[%s6570_s11 + $0x318] sm:$0xff] %v963_v35 }
  0x4e   : > { %966 = vst [vmem:[%s6570_s11 + $0x320] sm:$0xff] %v965_v36  ;;  %968 = vst [vmem:[%s6570_s11 + $0x328] sm:$0xff] %v967_v37  ;;  %v969_v38 = vld [vmem:[%s6562_s10 + $0x660] sm:$0xff]  ;;  %v971_v39 = vld [vmem:[%s6562_s10 + $0x670] sm:$0xff] }
  0x4f   : > { %v973_v40 = vld [vmem:[%s6562_s10 + $0x680] sm:$0xff]  ;;  %970 = vst [vmem:[%s6570_s11 + $0x330] sm:$0xff] %v969_v38  ;;  %972 = vst [vmem:[%s6570_s11 + $0x338] sm:$0xff] %v971_v39  ;;  %v975_v41 = vld [vmem:[%s6562_s10 + $0x690] sm:$0xff] }
  0x50   : > { %974 = vst [vmem:[%s6570_s11 + $0x340] sm:$0xff] %v973_v40  ;;  %v977_v42 = vld [vmem:[%s6562_s10 + $0x6a0] sm:$0xff]  ;;  %v979_v43 = vld [vmem:[%s6562_s10 + $0x6b0] sm:$0xff]  ;;  %976 = vst [vmem:[%s6570_s11 + $0x348] sm:$0xff] %v975_v41 }
  0x51   : > { %978 = vst [vmem:[%s6570_s11 + $0x350] sm:$0xff] %v977_v42  ;;  %980 = vst [vmem:[%s6570_s11 + $0x358] sm:$0xff] %v979_v43  ;;  %v981_v44 = vld [vmem:[%s6562_s10 + $0x6c0] sm:$0xff]  ;;  %v983_v45 = vld [vmem:[%s6562_s10 + $0x6d0] sm:$0xff] }
  0x52   : > { %v985_v46 = vld [vmem:[%s6562_s10 + $0x6e0] sm:$0xff]  ;;  %982 = vst [vmem:[%s6570_s11 + $0x360] sm:$0xff] %v981_v44  ;;  %984 = vst [vmem:[%s6570_s11 + $0x368] sm:$0xff] %v983_v45  ;;  %v987_v47 = vld [vmem:[%s6562_s10 + $0x6f0] sm:$0xff] }
  0x53   : > { %986 = vst [vmem:[%s6570_s11 + $0x370] sm:$0xff] %v985_v46  ;;  %v989_v48 = vld [vmem:[%s6562_s10 + $0x700] sm:$0xff]  ;;  %v991_v49 = vld [vmem:[%s6562_s10 + $0x710] sm:$0xff]  ;;  %988 = vst [vmem:[%s6570_s11 + $0x378] sm:$0xff] %v987_v47 }
  0x54   : > { %990 = vst [vmem:[%s6570_s11 + $0x380] sm:$0xff] %v989_v48  ;;  %992 = vst [vmem:[%s6570_s11 + $0x388] sm:$0xff] %v991_v49  ;;  %v993_v50 = vld [vmem:[%s6562_s10 + $0x720] sm:$0xff]  ;;  %v995_v51 = vld [vmem:[%s6562_s10 + $0x730] sm:$0xff] }
  0x55   : > { %v997_v52 = vld [vmem:[%s6562_s10 + $0x740] sm:$0xff]  ;;  %994 = vst [vmem:[%s6570_s11 + $0x390] sm:$0xff] %v993_v50  ;;  %996 = vst [vmem:[%s6570_s11 + $0x398] sm:$0xff] %v995_v51  ;;  %v999_v53 = vld [vmem:[%s6562_s10 + $0x750] sm:$0xff] }
  0x56   : > { %998 = vst [vmem:[%s6570_s11 + $0x3a0] sm:$0xff] %v997_v52  ;;  %v1001_v54 = vld [vmem:[%s6562_s10 + $0x760] sm:$0xff]  ;;  %v1003_v55 = vld [vmem:[%s6562_s10 + $0x770] sm:$0xff]  ;;  %1000 = vst [vmem:[%s6570_s11 + $0x3a8] sm:$0xff] %v999_v53 }
  0x57   : > { %1002 = vst [vmem:[%s6570_s11 + $0x3b0] sm:$0xff] %v1001_v54  ;;  %1004 = vst [vmem:[%s6570_s11 + $0x3b8] sm:$0xff] %v1003_v55  ;;  %v1005_v56 = vld [vmem:[%s6562_s10 + $0x780] sm:$0xff]  ;;  %v1007_v57 = vld [vmem:[%s6562_s10 + $0x790] sm:$0xff] }
  0x58   : > { %v1009_v58 = vld [vmem:[%s6562_s10 + $0x7a0] sm:$0xff]  ;;  %1006 = vst [vmem:[%s6570_s11 + $0x3c0] sm:$0xff] %v1005_v56  ;;  %1008 = vst [vmem:[%s6570_s11 + $0x3c8] sm:$0xff] %v1007_v57  ;;  %v1011_v59 = vld [vmem:[%s6562_s10 + $0x7b0] sm:$0xff] }
  0x59   : > { %1010 = vst [vmem:[%s6570_s11 + $0x3d0] sm:$0xff] %v1009_v58  ;;  %v1013_v60 = vld [vmem:[%s6562_s10 + $0x7c0] sm:$0xff]  ;;  %v1015_v61 = vld [vmem:[%s6562_s10 + $0x7d0] sm:$0xff]  ;;  %1012 = vst [vmem:[%s6570_s11 + $0x3d8] sm:$0xff] %v1011_v59 }
  0x5a   : > { %1014 = vst [vmem:[%s6570_s11 + $0x3e0] sm:$0xff] %v1013_v60  ;;  %1016 = vst [vmem:[%s6570_s11 + $0x3e8] sm:$0xff] %v1015_v61  ;;  %v1017_v62 = vld [vmem:[%s6562_s10 + $0x7e0] sm:$0xff]  ;;  %v1019_v63 = vld [vmem:[%s6562_s10 + $0x7f0] sm:$0xff] }
  0x5b   : > { %v1021_v0 = vld [vmem:[%s6562_s10 + $0x800] sm:$0xff]  ;;  %1018 = vst [vmem:[%s6570_s11 + $0x3f0] sm:$0xff] %v1017_v62  ;;  %1020 = vst [vmem:[%s6570_s11 + $0x3f8] sm:$0xff] %v1019_v63  ;;  %v1023_v1 = vld [vmem:[%s6562_s10 + $0x810] sm:$0xff] }
  0x5c   : > { %1022 = vst [vmem:[%s6570_s11 + $0x400] sm:$0xff] %v1021_v0  ;;  %v1025_v2 = vld [vmem:[%s6562_s10 + $0x820] sm:$0xff]  ;;  %v1027_v3 = vld [vmem:[%s6562_s10 + $0x830] sm:$0xff]  ;;  %1024 = vst [vmem:[%s6570_s11 + $0x408] sm:$0xff] %v1023_v1 }
  0x5d   : > { %1026 = vst [vmem:[%s6570_s11 + $0x410] sm:$0xff] %v1025_v2  ;;  %1028 = vst [vmem:[%s6570_s11 + $0x418] sm:$0xff] %v1027_v3  ;;  %v1029_v4 = vld [vmem:[%s6562_s10 + $0x840] sm:$0xff]  ;;  %v1031_v5 = vld [vmem:[%s6562_s10 + $0x850] sm:$0xff] }
  0x5e   : > { %v1033_v6 = vld [vmem:[%s6562_s10 + $0x860] sm:$0xff]  ;;  %1030 = vst [vmem:[%s6570_s11 + $0x420] sm:$0xff] %v1029_v4  ;;  %1032 = vst [vmem:[%s6570_s11 + $0x428] sm:$0xff] %v1031_v5  ;;  %v1035_v7 = vld [vmem:[%s6562_s10 + $0x870] sm:$0xff] }
  0x5f   : > { %1034 = vst [vmem:[%s6570_s11 + $0x430] sm:$0xff] %v1033_v6  ;;  %v1037_v8 = vld [vmem:[%s6562_s10 + $0x880] sm:$0xff]  ;;  %v1039_v9 = vld [vmem:[%s6562_s10 + $0x890] sm:$0xff]  ;;  %1036 = vst [vmem:[%s6570_s11 + $0x438] sm:$0xff] %v1035_v7 }
  0x60   : > { %1038 = vst [vmem:[%s6570_s11 + $0x440] sm:$0xff] %v1037_v8  ;;  %1040 = vst [vmem:[%s6570_s11 + $0x448] sm:$0xff] %v1039_v9  ;;  %v1041_v10 = vld [vmem:[%s6562_s10 + $0x8a0] sm:$0xff]  ;;  %v1043_v11 = vld [vmem:[%s6562_s10 + $0x8b0] sm:$0xff] }
  0x61   : > { %v1045_v12 = vld [vmem:[%s6562_s10 + $0x8c0] sm:$0xff]  ;;  %1042 = vst [vmem:[%s6570_s11 + $0x450] sm:$0xff] %v1041_v10  ;;  %1044 = vst [vmem:[%s6570_s11 + $0x458] sm:$0xff] %v1043_v11  ;;  %v1047_v13 = vld [vmem:[%s6562_s10 + $0x8d0] sm:$0xff] }
  0x62   : > { %1046 = vst [vmem:[%s6570_s11 + $0x460] sm:$0xff] %v1045_v12  ;;  %v1049_v14 = vld [vmem:[%s6562_s10 + $0x8e0] sm:$0xff]  ;;  %v1051_v15 = vld [vmem:[%s6562_s10 + $0x8f0] sm:$0xff]  ;;  %1048 = vst [vmem:[%s6570_s11 + $0x468] sm:$0xff] %v1047_v13 }
  0x63   : > { %1050 = vst [vmem:[%s6570_s11 + $0x470] sm:$0xff] %v1049_v14  ;;  %1052 = vst [vmem:[%s6570_s11 + $0x478] sm:$0xff] %v1051_v15  ;;  %v1053_v16 = vld [vmem:[%s6562_s10 + $0x900] sm:$0xff]  ;;  %v1055_v17 = vld [vmem:[%s6562_s10 + $0x910] sm:$0xff] }
  0x64   : > { %v1057_v18 = vld [vmem:[%s6562_s10 + $0x920] sm:$0xff]  ;;  %1054 = vst [vmem:[%s6570_s11 + $0x480] sm:$0xff] %v1053_v16  ;;  %1056 = vst [vmem:[%s6570_s11 + $0x488] sm:$0xff] %v1055_v17  ;;  %v1059_v19 = vld [vmem:[%s6562_s10 + $0x930] sm:$0xff] }
  0x65   : > { %1058 = vst [vmem:[%s6570_s11 + $0x490] sm:$0xff] %v1057_v18  ;;  %v1061_v20 = vld [vmem:[%s6562_s10 + $0x940] sm:$0xff]  ;;  %v1063_v21 = vld [vmem:[%s6562_s10 + $0x950] sm:$0xff]  ;;  %1060 = vst [vmem:[%s6570_s11 + $0x498] sm:$0xff] %v1059_v19 }
  0x66   : > { %1062 = vst [vmem:[%s6570_s11 + $0x4a0] sm:$0xff] %v1061_v20  ;;  %1064 = vst [vmem:[%s6570_s11 + $0x4a8] sm:$0xff] %v1063_v21  ;;  %v1065_v22 = vld [vmem:[%s6562_s10 + $0x960] sm:$0xff]  ;;  %v1067_v23 = vld [vmem:[%s6562_s10 + $0x970] sm:$0xff] }
  0x67   : > { %v1069_v24 = vld [vmem:[%s6562_s10 + $0x980] sm:$0xff]  ;;  %1066 = vst [vmem:[%s6570_s11 + $0x4b0] sm:$0xff] %v1065_v22  ;;  %1068 = vst [vmem:[%s6570_s11 + $0x4b8] sm:$0xff] %v1067_v23  ;;  %v1071_v25 = vld [vmem:[%s6562_s10 + $0x990] sm:$0xff] }
  0x68   : > { %1070 = vst [vmem:[%s6570_s11 + $0x4c0] sm:$0xff] %v1069_v24  ;;  %v1073_v26 = vld [vmem:[%s6562_s10 + $0x9a0] sm:$0xff]  ;;  %v1075_v27 = vld [vmem:[%s6562_s10 + $0x9b0] sm:$0xff]  ;;  %1072 = vst [vmem:[%s6570_s11 + $0x4c8] sm:$0xff] %v1071_v25 }
  0x69   : > { %1074 = vst [vmem:[%s6570_s11 + $0x4d0] sm:$0xff] %v1073_v26  ;;  %1076 = vst [vmem:[%s6570_s11 + $0x4d8] sm:$0xff] %v1075_v27  ;;  %v1077_v28 = vld [vmem:[%s6562_s10 + $0x9c0] sm:$0xff]  ;;  %v1079_v29 = vld [vmem:[%s6562_s10 + $0x9d0] sm:$0xff] }
  0x6a   : > { %v1081_v30 = vld [vmem:[%s6562_s10 + $0x9e0] sm:$0xff]  ;;  %1078 = vst [vmem:[%s6570_s11 + $0x4e0] sm:$0xff] %v1077_v28  ;;  %1080 = vst [vmem:[%s6570_s11 + $0x4e8] sm:$0xff] %v1079_v29  ;;  %v1083_v31 = vld [vmem:[%s6562_s10 + $0x9f0] sm:$0xff] }
  0x6b   : > { %1082 = vst [vmem:[%s6570_s11 + $0x4f0] sm:$0xff] %v1081_v30  ;;  %v1085_v32 = vld [vmem:[%s6562_s10 + $0xa00] sm:$0xff]  ;;  %v1087_v33 = vld [vmem:[%s6562_s10 + $0xa10] sm:$0xff]  ;;  %1084 = vst [vmem:[%s6570_s11 + $0x4f8] sm:$0xff] %v1083_v31 }
  0x6c   : > { %1086 = vst [vmem:[%s6570_s11 + $0x500] sm:$0xff] %v1085_v32  ;;  %1088 = vst [vmem:[%s6570_s11 + $0x508] sm:$0xff] %v1087_v33  ;;  %v1089_v34 = vld [vmem:[%s6562_s10 + $0xa20] sm:$0xff]  ;;  %v1091_v35 = vld [vmem:[%s6562_s10 + $0xa30] sm:$0xff] }
  0x6d   : > { %v1093_v36 = vld [vmem:[%s6562_s10 + $0xa40] sm:$0xff]  ;;  %1090 = vst [vmem:[%s6570_s11 + $0x510] sm:$0xff] %v1089_v34  ;;  %1092 = vst [vmem:[%s6570_s11 + $0x518] sm:$0xff] %v1091_v35  ;;  %v1095_v37 = vld [vmem:[%s6562_s10 + $0xa50] sm:$0xff] }
  0x6e   : > { %1094 = vst [vmem:[%s6570_s11 + $0x520] sm:$0xff] %v1093_v36  ;;  %v1097_v38 = vld [vmem:[%s6562_s10 + $0xa60] sm:$0xff]  ;;  %v1099_v39 = vld [vmem:[%s6562_s10 + $0xa70] sm:$0xff]  ;;  %1096 = vst [vmem:[%s6570_s11 + $0x528] sm:$0xff] %v1095_v37 }
  0x6f   : > { %1098 = vst [vmem:[%s6570_s11 + $0x530] sm:$0xff] %v1097_v38  ;;  %1100 = vst [vmem:[%s6570_s11 + $0x538] sm:$0xff] %v1099_v39  ;;  %v1101_v40 = vld [vmem:[%s6562_s10 + $0xa80] sm:$0xff]  ;;  %v1103_v41 = vld [vmem:[%s6562_s10 + $0xa90] sm:$0xff] }
  0x70   : > { %v1105_v42 = vld [vmem:[%s6562_s10 + $0xaa0] sm:$0xff]  ;;  %1102 = vst [vmem:[%s6570_s11 + $0x540] sm:$0xff] %v1101_v40  ;;  %1104 = vst [vmem:[%s6570_s11 + $0x548] sm:$0xff] %v1103_v41  ;;  %v1107_v43 = vld [vmem:[%s6562_s10 + $0xab0] sm:$0xff] }
  0x71   : > { %1106 = vst [vmem:[%s6570_s11 + $0x550] sm:$0xff] %v1105_v42  ;;  %v1109_v44 = vld [vmem:[%s6562_s10 + $0xac0] sm:$0xff]  ;;  %v1111_v45 = vld [vmem:[%s6562_s10 + $0xad0] sm:$0xff]  ;;  %1108 = vst [vmem:[%s6570_s11 + $0x558] sm:$0xff] %v1107_v43 }
  0x72   : > { %1110 = vst [vmem:[%s6570_s11 + $0x560] sm:$0xff] %v1109_v44  ;;  %1112 = vst [vmem:[%s6570_s11 + $0x568] sm:$0xff] %v1111_v45  ;;  %v1113_v46 = vld [vmem:[%s6562_s10 + $0xae0] sm:$0xff]  ;;  %v1115_v47 = vld [vmem:[%s6562_s10 + $0xaf0] sm:$0xff] }
  0x73   : > { %v1117_v48 = vld [vmem:[%s6562_s10 + $0xb00] sm:$0xff]  ;;  %1114 = vst [vmem:[%s6570_s11 + $0x570] sm:$0xff] %v1113_v46  ;;  %1116 = vst [vmem:[%s6570_s11 + $0x578] sm:$0xff] %v1115_v47  ;;  %v1119_v49 = vld [vmem:[%s6562_s10 + $0xb10] sm:$0xff] }
  0x74   : > { %1118 = vst [vmem:[%s6570_s11 + $0x580] sm:$0xff] %v1117_v48  ;;  %v1121_v50 = vld [vmem:[%s6562_s10 + $0xb20] sm:$0xff]  ;;  %v1123_v51 = vld [vmem:[%s6562_s10 + $0xb30] sm:$0xff]  ;;  %1120 = vst [vmem:[%s6570_s11 + $0x588] sm:$0xff] %v1119_v49 }
  0x75   : > { %1122 = vst [vmem:[%s6570_s11 + $0x590] sm:$0xff] %v1121_v50  ;;  %1124 = vst [vmem:[%s6570_s11 + $0x598] sm:$0xff] %v1123_v51  ;;  %v1125_v52 = vld [vmem:[%s6562_s10 + $0xb40] sm:$0xff]  ;;  %v1127_v53 = vld [vmem:[%s6562_s10 + $0xb50] sm:$0xff] }
  0x76   : > { %v1129_v54 = vld [vmem:[%s6562_s10 + $0xb60] sm:$0xff]  ;;  %1126 = vst [vmem:[%s6570_s11 + $0x5a0] sm:$0xff] %v1125_v52  ;;  %1128 = vst [vmem:[%s6570_s11 + $0x5a8] sm:$0xff] %v1127_v53  ;;  %v1131_v55 = vld [vmem:[%s6562_s10 + $0xb70] sm:$0xff] }
  0x77   : > { %1130 = vst [vmem:[%s6570_s11 + $0x5b0] sm:$0xff] %v1129_v54  ;;  %v1133_v56 = vld [vmem:[%s6562_s10 + $0xb80] sm:$0xff]  ;;  %v1135_v57 = vld [vmem:[%s6562_s10 + $0xb90] sm:$0xff]  ;;  %1132 = vst [vmem:[%s6570_s11 + $0x5b8] sm:$0xff] %v1131_v55 }
  0x78   : > { %1134 = vst [vmem:[%s6570_s11 + $0x5c0] sm:$0xff] %v1133_v56  ;;  %1136 = vst [vmem:[%s6570_s11 + $0x5c8] sm:$0xff] %v1135_v57  ;;  %v1137_v58 = vld [vmem:[%s6562_s10 + $0xba0] sm:$0xff]  ;;  %v1139_v59 = vld [vmem:[%s6562_s10 + $0xbb0] sm:$0xff] }
  0x79   : > { %v1141_v60 = vld [vmem:[%s6562_s10 + $0xbc0] sm:$0xff]  ;;  %1138 = vst [vmem:[%s6570_s11 + $0x5d0] sm:$0xff] %v1137_v58  ;;  %1140 = vst [vmem:[%s6570_s11 + $0x5d8] sm:$0xff] %v1139_v59  ;;  %v1143_v61 = vld [vmem:[%s6562_s10 + $0xbd0] sm:$0xff] }
  0x7a   : > { %1142 = vst [vmem:[%s6570_s11 + $0x5e0] sm:$0xff] %v1141_v60  ;;  %v1145_v62 = vld [vmem:[%s6562_s10 + $0xbe0] sm:$0xff]  ;;  %v1147_v63 = vld [vmem:[%s6562_s10 + $0xbf0] sm:$0xff]  ;;  %1144 = vst [vmem:[%s6570_s11 + $0x5e8] sm:$0xff] %v1143_v61 }
  0x7b   : > { %1146 = vst [vmem:[%s6570_s11 + $0x5f0] sm:$0xff] %v1145_v62  ;;  %1148 = vst [vmem:[%s6570_s11 + $0x5f8] sm:$0xff] %v1147_v63  ;;  %v1149_v0 = vld [vmem:[%s6562_s10 + $0xc00] sm:$0xff]  ;;  %v1151_v1 = vld [vmem:[%s6562_s10 + $0xc10] sm:$0xff] }
  0x7c   : > { %v1153_v2 = vld [vmem:[%s6562_s10 + $0xc20] sm:$0xff]  ;;  %1150 = vst [vmem:[%s6570_s11 + $0x600] sm:$0xff] %v1149_v0  ;;  %1152 = vst [vmem:[%s6570_s11 + $0x608] sm:$0xff] %v1151_v1  ;;  %v1155_v3 = vld [vmem:[%s6562_s10 + $0xc30] sm:$0xff] }
  0x7d   : > { %1154 = vst [vmem:[%s6570_s11 + $0x610] sm:$0xff] %v1153_v2  ;;  %v1157_v4 = vld [vmem:[%s6562_s10 + $0xc40] sm:$0xff]  ;;  %v1159_v5 = vld [vmem:[%s6562_s10 + $0xc50] sm:$0xff]  ;;  %1156 = vst [vmem:[%s6570_s11 + $0x618] sm:$0xff] %v1155_v3 }
  0x7e   : > { %1158 = vst [vmem:[%s6570_s11 + $0x620] sm:$0xff] %v1157_v4  ;;  %1160 = vst [vmem:[%s6570_s11 + $0x628] sm:$0xff] %v1159_v5  ;;  %v1161_v6 = vld [vmem:[%s6562_s10 + $0xc60] sm:$0xff]  ;;  %v1163_v7 = vld [vmem:[%s6562_s10 + $0xc70] sm:$0xff] }
  0x7f   : > { %v1165_v8 = vld [vmem:[%s6562_s10 + $0xc80] sm:$0xff]  ;;  %1162 = vst [vmem:[%s6570_s11 + $0x630] sm:$0xff] %v1161_v6  ;;  %1164 = vst [vmem:[%s6570_s11 + $0x638] sm:$0xff] %v1163_v7  ;;  %v1167_v9 = vld [vmem:[%s6562_s10 + $0xc90] sm:$0xff] }
  0x80   : > { %1166 = vst [vmem:[%s6570_s11 + $0x640] sm:$0xff] %v1165_v8  ;;  %v1169_v10 = vld [vmem:[%s6562_s10 + $0xca0] sm:$0xff]  ;;  %v1171_v11 = vld [vmem:[%s6562_s10 + $0xcb0] sm:$0xff]  ;;  %1168 = vst [vmem:[%s6570_s11 + $0x648] sm:$0xff] %v1167_v9 }
  0x81   : > { %1170 = vst [vmem:[%s6570_s11 + $0x650] sm:$0xff] %v1169_v10  ;;  %1172 = vst [vmem:[%s6570_s11 + $0x658] sm:$0xff] %v1171_v11  ;;  %v1173_v12 = vld [vmem:[%s6562_s10 + $0xcc0] sm:$0xff]  ;;  %v1175_v13 = vld [vmem:[%s6562_s10 + $0xcd0] sm:$0xff] }
  0x82   : > { %v1177_v14 = vld [vmem:[%s6562_s10 + $0xce0] sm:$0xff]  ;;  %1174 = vst [vmem:[%s6570_s11 + $0x660] sm:$0xff] %v1173_v12  ;;  %1176 = vst [vmem:[%s6570_s11 + $0x668] sm:$0xff] %v1175_v13  ;;  %v1179_v15 = vld [vmem:[%s6562_s10 + $0xcf0] sm:$0xff] }
  0x83   : > { %1178 = vst [vmem:[%s6570_s11 + $0x670] sm:$0xff] %v1177_v14  ;;  %v1181_v16 = vld [vmem:[%s6562_s10 + $0xd00] sm:$0xff]  ;;  %v1183_v17 = vld [vmem:[%s6562_s10 + $0xd10] sm:$0xff]  ;;  %1180 = vst [vmem:[%s6570_s11 + $0x678] sm:$0xff] %v1179_v15 }
  0x84   : > { %1182 = vst [vmem:[%s6570_s11 + $0x680] sm:$0xff] %v1181_v16  ;;  %1184 = vst [vmem:[%s6570_s11 + $0x688] sm:$0xff] %v1183_v17  ;;  %v1185_v18 = vld [vmem:[%s6562_s10 + $0xd20] sm:$0xff]  ;;  %v1187_v19 = vld [vmem:[%s6562_s10 + $0xd30] sm:$0xff] }
  0x85   : > { %v1189_v20 = vld [vmem:[%s6562_s10 + $0xd40] sm:$0xff]  ;;  %1186 = vst [vmem:[%s6570_s11 + $0x690] sm:$0xff] %v1185_v18  ;;  %1188 = vst [vmem:[%s6570_s11 + $0x698] sm:$0xff] %v1187_v19  ;;  %v1191_v21 = vld [vmem:[%s6562_s10 + $0xd50] sm:$0xff] }
  0x86   : > { %1190 = vst [vmem:[%s6570_s11 + $0x6a0] sm:$0xff] %v1189_v20  ;;  %v1193_v22 = vld [vmem:[%s6562_s10 + $0xd60] sm:$0xff]  ;;  %v1195_v23 = vld [vmem:[%s6562_s10 + $0xd70] sm:$0xff]  ;;  %1192 = vst [vmem:[%s6570_s11 + $0x6a8] sm:$0xff] %v1191_v21 }
  0x87   : > { %1194 = vst [vmem:[%s6570_s11 + $0x6b0] sm:$0xff] %v1193_v22  ;;  %1196 = vst [vmem:[%s6570_s11 + $0x6b8] sm:$0xff] %v1195_v23  ;;  %v1197_v24 = vld [vmem:[%s6562_s10 + $0xd80] sm:$0xff]  ;;  %v1199_v25 = vld [vmem:[%s6562_s10 + $0xd90] sm:$0xff] }
  0x88   : > { %v1201_v26 = vld [vmem:[%s6562_s10 + $0xda0] sm:$0xff]  ;;  %1198 = vst [vmem:[%s6570_s11 + $0x6c0] sm:$0xff] %v1197_v24  ;;  %1200 = vst [vmem:[%s6570_s11 + $0x6c8] sm:$0xff] %v1199_v25  ;;  %v1203_v27 = vld [vmem:[%s6562_s10 + $0xdb0] sm:$0xff] }
  0x89   : > { %1202 = vst [vmem:[%s6570_s11 + $0x6d0] sm:$0xff] %v1201_v26  ;;  %v1205_v28 = vld [vmem:[%s6562_s10 + $0xdc0] sm:$0xff]  ;;  %v1207_v29 = vld [vmem:[%s6562_s10 + $0xdd0] sm:$0xff]  ;;  %1204 = vst [vmem:[%s6570_s11 + $0x6d8] sm:$0xff] %v1203_v27 }
  0x8a   : > { %1206 = vst [vmem:[%s6570_s11 + $0x6e0] sm:$0xff] %v1205_v28  ;;  %1208 = vst [vmem:[%s6570_s11 + $0x6e8] sm:$0xff] %v1207_v29  ;;  %v1209_v30 = vld [vmem:[%s6562_s10 + $0xde0] sm:$0xff]  ;;  %v1211_v31 = vld [vmem:[%s6562_s10 + $0xdf0] sm:$0xff] }
  0x8b   : > { %v1213_v32 = vld [vmem:[%s6562_s10 + $0xe00] sm:$0xff]  ;;  %1210 = vst [vmem:[%s6570_s11 + $0x6f0] sm:$0xff] %v1209_v30  ;;  %1212 = vst [vmem:[%s6570_s11 + $0x6f8] sm:$0xff] %v1211_v31  ;;  %v1215_v33 = vld [vmem:[%s6562_s10 + $0xe10] sm:$0xff] }
  0x8c   : > { %1214 = vst [vmem:[%s6570_s11 + $0x700] sm:$0xff] %v1213_v32  ;;  %v1217_v34 = vld [vmem:[%s6562_s10 + $0xe20] sm:$0xff]  ;;  %v1219_v35 = vld [vmem:[%s6562_s10 + $0xe30] sm:$0xff]  ;;  %1216 = vst [vmem:[%s6570_s11 + $0x708] sm:$0xff] %v1215_v33 }
  0x8d   : > { %1218 = vst [vmem:[%s6570_s11 + $0x710] sm:$0xff] %v1217_v34  ;;  %1220 = vst [vmem:[%s6570_s11 + $0x718] sm:$0xff] %v1219_v35  ;;  %v1221_v36 = vld [vmem:[%s6562_s10 + $0xe40] sm:$0xff]  ;;  %v1223_v37 = vld [vmem:[%s6562_s10 + $0xe50] sm:$0xff] }
  0x8e   : > { %v1225_v38 = vld [vmem:[%s6562_s10 + $0xe60] sm:$0xff]  ;;  %1222 = vst [vmem:[%s6570_s11 + $0x720] sm:$0xff] %v1221_v36  ;;  %1224 = vst [vmem:[%s6570_s11 + $0x728] sm:$0xff] %v1223_v37  ;;  %v1227_v39 = vld [vmem:[%s6562_s10 + $0xe70] sm:$0xff] }
  0x8f   : > { %1226 = vst [vmem:[%s6570_s11 + $0x730] sm:$0xff] %v1225_v38  ;;  %v1229_v40 = vld [vmem:[%s6562_s10 + $0xe80] sm:$0xff]  ;;  %v1231_v41 = vld [vmem:[%s6562_s10 + $0xe90] sm:$0xff]  ;;  %1228 = vst [vmem:[%s6570_s11 + $0x738] sm:$0xff] %v1227_v39 }
  0x90   : > { %1230 = vst [vmem:[%s6570_s11 + $0x740] sm:$0xff] %v1229_v40  ;;  %1232 = vst [vmem:[%s6570_s11 + $0x748] sm:$0xff] %v1231_v41  ;;  %v1233_v42 = vld [vmem:[%s6562_s10 + $0xea0] sm:$0xff]  ;;  %v1235_v43 = vld [vmem:[%s6562_s10 + $0xeb0] sm:$0xff] }
  0x91   : > { %v1237_v44 = vld [vmem:[%s6562_s10 + $0xec0] sm:$0xff]  ;;  %1234 = vst [vmem:[%s6570_s11 + $0x750] sm:$0xff] %v1233_v42  ;;  %1236 = vst [vmem:[%s6570_s11 + $0x758] sm:$0xff] %v1235_v43  ;;  %v1239_v45 = vld [vmem:[%s6562_s10 + $0xed0] sm:$0xff] }
  0x92   : > { %1238 = vst [vmem:[%s6570_s11 + $0x760] sm:$0xff] %v1237_v44  ;;  %v1241_v46 = vld [vmem:[%s6562_s10 + $0xee0] sm:$0xff]  ;;  %v1243_v47 = vld [vmem:[%s6562_s10 + $0xef0] sm:$0xff]  ;;  %1240 = vst [vmem:[%s6570_s11 + $0x768] sm:$0xff] %v1239_v45 }
  0x93   : > { %1242 = vst [vmem:[%s6570_s11 + $0x770] sm:$0xff] %v1241_v46  ;;  %1244 = vst [vmem:[%s6570_s11 + $0x778] sm:$0xff] %v1243_v47  ;;  %v1245_v48 = vld [vmem:[%s6562_s10 + $0xf00] sm:$0xff]  ;;  %v1247_v49 = vld [vmem:[%s6562_s10 + $0xf10] sm:$0xff] }
  0x94   : > { %v1249_v50 = vld [vmem:[%s6562_s10 + $0xf20] sm:$0xff]  ;;  %1246 = vst [vmem:[%s6570_s11 + $0x780] sm:$0xff] %v1245_v48  ;;  %1248 = vst [vmem:[%s6570_s11 + $0x788] sm:$0xff] %v1247_v49  ;;  %v1251_v51 = vld [vmem:[%s6562_s10 + $0xf30] sm:$0xff] }
  0x95   : > { %1250 = vst [vmem:[%s6570_s11 + $0x790] sm:$0xff] %v1249_v50  ;;  %v1253_v52 = vld [vmem:[%s6562_s10 + $0xf40] sm:$0xff]  ;;  %v1255_v53 = vld [vmem:[%s6562_s10 + $0xf50] sm:$0xff]  ;;  %1252 = vst [vmem:[%s6570_s11 + $0x798] sm:$0xff] %v1251_v51 }
  0x96   : > { %1254 = vst [vmem:[%s6570_s11 + $0x7a0] sm:$0xff] %v1253_v52  ;;  %1256 = vst [vmem:[%s6570_s11 + $0x7a8] sm:$0xff] %v1255_v53  ;;  %v1257_v54 = vld [vmem:[%s6562_s10 + $0xf60] sm:$0xff]  ;;  %v1259_v55 = vld [vmem:[%s6562_s10 + $0xf70] sm:$0xff] }
  0x97   : > { %v1261_v56 = vld [vmem:[%s6562_s10 + $0xf80] sm:$0xff]  ;;  %1258 = vst [vmem:[%s6570_s11 + $0x7b0] sm:$0xff] %v1257_v54  ;;  %1260 = vst [vmem:[%s6570_s11 + $0x7b8] sm:$0xff] %v1259_v55  ;;  %v1263_v57 = vld [vmem:[%s6562_s10 + $0xf90] sm:$0xff] }
  0x98   : > { %1262 = vst [vmem:[%s6570_s11 + $0x7c0] sm:$0xff] %v1261_v56  ;;  %v1265_v58 = vld [vmem:[%s6562_s10 + $0xfa0] sm:$0xff]  ;;  %v1267_v59 = vld [vmem:[%s6562_s10 + $0xfb0] sm:$0xff]  ;;  %1264 = vst [vmem:[%s6570_s11 + $0x7c8] sm:$0xff] %v1263_v57 }
  0x99   : > { %1266 = vst [vmem:[%s6570_s11 + $0x7d0] sm:$0xff] %v1265_v58  ;;  %1268 = vst [vmem:[%s6570_s11 + $0x7d8] sm:$0xff] %v1267_v59  ;;  %v1269_v60 = vld [vmem:[%s6562_s10 + $0xfc0] sm:$0xff]  ;;  %v1271_v61 = vld [vmem:[%s6562_s10 + $0xfd0] sm:$0xff] }
  0x9a   : > { %v1273_v62 = vld [vmem:[%s6562_s10 + $0xfe0] sm:$0xff]  ;;  %1270 = vst [vmem:[%s6570_s11 + $0x7e0] sm:$0xff] %v1269_v60  ;;  %1272 = vst [vmem:[%s6570_s11 + $0x7e8] sm:$0xff] %v1271_v61  ;;  %v1275_v63 = vld [vmem:[%s6562_s10 + $0xff0] sm:$0xff] }
  0x9b   : > { %1274 = vst [vmem:[%s6570_s11 + $0x7f0] sm:$0xff] %v1273_v62  ;;  %v1277_v0 = vld [vmem:[%s6562_s10 + $0x1000] sm:$0xff]  ;;  %v1279_v1 = vld [vmem:[%s6562_s10 + $0x1010] sm:$0xff]  ;;  %1276 = vst [vmem:[%s6570_s11 + $0x7f8] sm:$0xff] %v1275_v63 }
  0x9c   : > { %1278 = vst [vmem:[%s6570_s11 + $0x800] sm:$0xff] %v1277_v0  ;;  %1280 = vst [vmem:[%s6570_s11 + $0x808] sm:$0xff] %v1279_v1  ;;  %v1281_v2 = vld [vmem:[%s6562_s10 + $0x1020] sm:$0xff]  ;;  %v1283_v3 = vld [vmem:[%s6562_s10 + $0x1030] sm:$0xff] }
  0x9d   : > { %v1285_v4 = vld [vmem:[%s6562_s10 + $0x1040] sm:$0xff]  ;;  %1282 = vst [vmem:[%s6570_s11 + $0x810] sm:$0xff] %v1281_v2  ;;  %1284 = vst [vmem:[%s6570_s11 + $0x818] sm:$0xff] %v1283_v3  ;;  %v1287_v5 = vld [vmem:[%s6562_s10 + $0x1050] sm:$0xff] }
  0x9e   : > { %1286 = vst [vmem:[%s6570_s11 + $0x820] sm:$0xff] %v1285_v4  ;;  %v1289_v6 = vld [vmem:[%s6562_s10 + $0x1060] sm:$0xff]  ;;  %v1291_v7 = vld [vmem:[%s6562_s10 + $0x1070] sm:$0xff]  ;;  %1288 = vst [vmem:[%s6570_s11 + $0x828] sm:$0xff] %v1287_v5 }
  0x9f   : > { %1290 = vst [vmem:[%s6570_s11 + $0x830] sm:$0xff] %v1289_v6  ;;  %1292 = vst [vmem:[%s6570_s11 + $0x838] sm:$0xff] %v1291_v7  ;;  %v1293_v8 = vld [vmem:[%s6562_s10 + $0x1080] sm:$0xff]  ;;  %v1295_v9 = vld [vmem:[%s6562_s10 + $0x1090] sm:$0xff] }
  0xa0   : > { %v1297_v10 = vld [vmem:[%s6562_s10 + $0x10a0] sm:$0xff]  ;;  %1294 = vst [vmem:[%s6570_s11 + $0x840] sm:$0xff] %v1293_v8  ;;  %1296 = vst [vmem:[%s6570_s11 + $0x848] sm:$0xff] %v1295_v9  ;;  %v1299_v11 = vld [vmem:[%s6562_s10 + $0x10b0] sm:$0xff] }
  0xa1   : > { %1298 = vst [vmem:[%s6570_s11 + $0x850] sm:$0xff] %v1297_v10  ;;  %v1301_v12 = vld [vmem:[%s6562_s10 + $0x10c0] sm:$0xff]  ;;  %v1303_v13 = vld [vmem:[%s6562_s10 + $0x10d0] sm:$0xff]  ;;  %1300 = vst [vmem:[%s6570_s11 + $0x858] sm:$0xff] %v1299_v11 }
  0xa2   : > { %1302 = vst [vmem:[%s6570_s11 + $0x860] sm:$0xff] %v1301_v12  ;;  %1304 = vst [vmem:[%s6570_s11 + $0x868] sm:$0xff] %v1303_v13  ;;  %v1305_v14 = vld [vmem:[%s6562_s10 + $0x10e0] sm:$0xff]  ;;  %v1307_v15 = vld [vmem:[%s6562_s10 + $0x10f0] sm:$0xff] }
  0xa3   : > { %v1309_v16 = vld [vmem:[%s6562_s10 + $0x1100] sm:$0xff]  ;;  %1306 = vst [vmem:[%s6570_s11 + $0x870] sm:$0xff] %v1305_v14  ;;  %1308 = vst [vmem:[%s6570_s11 + $0x878] sm:$0xff] %v1307_v15  ;;  %v1311_v17 = vld [vmem:[%s6562_s10 + $0x1110] sm:$0xff] }
  0xa4   : > { %1310 = vst [vmem:[%s6570_s11 + $0x880] sm:$0xff] %v1309_v16  ;;  %v1313_v18 = vld [vmem:[%s6562_s10 + $0x1120] sm:$0xff]  ;;  %v1315_v19 = vld [vmem:[%s6562_s10 + $0x1130] sm:$0xff]  ;;  %1312 = vst [vmem:[%s6570_s11 + $0x888] sm:$0xff] %v1311_v17 }
  0xa5   : > { %1314 = vst [vmem:[%s6570_s11 + $0x890] sm:$0xff] %v1313_v18  ;;  %1316 = vst [vmem:[%s6570_s11 + $0x898] sm:$0xff] %v1315_v19  ;;  %v1317_v20 = vld [vmem:[%s6562_s10 + $0x1140] sm:$0xff]  ;;  %v1319_v21 = vld [vmem:[%s6562_s10 + $0x1150] sm:$0xff] }
  0xa6   : > { %v1321_v22 = vld [vmem:[%s6562_s10 + $0x1160] sm:$0xff]  ;;  %1318 = vst [vmem:[%s6570_s11 + $0x8a0] sm:$0xff] %v1317_v20  ;;  %1320 = vst [vmem:[%s6570_s11 + $0x8a8] sm:$0xff] %v1319_v21  ;;  %v1323_v23 = vld [vmem:[%s6562_s10 + $0x1170] sm:$0xff] }
  0xa7   : > { %1322 = vst [vmem:[%s6570_s11 + $0x8b0] sm:$0xff] %v1321_v22  ;;  %v1325_v24 = vld [vmem:[%s6562_s10 + $0x1180] sm:$0xff]  ;;  %v1327_v25 = vld [vmem:[%s6562_s10 + $0x1190] sm:$0xff]  ;;  %1324 = vst [vmem:[%s6570_s11 + $0x8b8] sm:$0xff] %v1323_v23 }
  0xa8   : > { %1326 = vst [vmem:[%s6570_s11 + $0x8c0] sm:$0xff] %v1325_v24  ;;  %1328 = vst [vmem:[%s6570_s11 + $0x8c8] sm:$0xff] %v1327_v25  ;;  %v1329_v26 = vld [vmem:[%s6562_s10 + $0x11a0] sm:$0xff]  ;;  %v1331_v27 = vld [vmem:[%s6562_s10 + $0x11b0] sm:$0xff] }
  0xa9   : > { %v1333_v28 = vld [vmem:[%s6562_s10 + $0x11c0] sm:$0xff]  ;;  %1330 = vst [vmem:[%s6570_s11 + $0x8d0] sm:$0xff] %v1329_v26  ;;  %1332 = vst [vmem:[%s6570_s11 + $0x8d8] sm:$0xff] %v1331_v27  ;;  %v1335_v29 = vld [vmem:[%s6562_s10 + $0x11d0] sm:$0xff] }
  0xaa   : > { %1334 = vst [vmem:[%s6570_s11 + $0x8e0] sm:$0xff] %v1333_v28  ;;  %v1337_v30 = vld [vmem:[%s6562_s10 + $0x11e0] sm:$0xff]  ;;  %v1339_v31 = vld [vmem:[%s6562_s10 + $0x11f0] sm:$0xff]  ;;  %1336 = vst [vmem:[%s6570_s11 + $0x8e8] sm:$0xff] %v1335_v29 }
  0xab   : > { %1338 = vst [vmem:[%s6570_s11 + $0x8f0] sm:$0xff] %v1337_v30  ;;  %1340 = vst [vmem:[%s6570_s11 + $0x8f8] sm:$0xff] %v1339_v31 }
  0xac PF: > { %p5001_p11 = scmp.ge.s32.totalorder %s6460_s20, 1  ;;  %p1353_p12 = scmp.lt.s32.totalorder %s6460_s20, 5 }
  0xae   : > { %p1354_p13 = pnand %p5001_p11, %p1353_p12 }
  0xaf   : > { %s1360_s21 = sand.u32 (!%p1354_p13), 1, %s6436_s14   ;;  %p1391_p0 = scmp.lt.s32.totalorder (!%p1354_p13), %s6448_s17, 1 }
  0xb0   : > { %1357 = sbr.rel (%p1354_p13) target bundleno = 754 (0x2f2), region = 66  ;;  %s7576_s6 = sshll.u32 (!%p1354_p13), %s6444_s16, 1 }
  0xb1   : > { %s5702_s24 = smul.u32 (!%p1354_p13), 2304, %s1360_s21  ;;  %p1398_p1 = scmp.lt.s32.totalorder (!%p1354_p13), %s7576_s6, 3 }
  0xb2   : > { %s1388_s10 = sand.u32 (!%p1354_p13), 1, %s6428_s12  }
  0xb3   : > { %s7145_s25 = scalar_lea.vmem (!%p1354_p13), [#allocation2], %s5702_s24  ;;  %s5703_s11 = smul.u32 (!%p1354_p13), 208, %s1388_s10 }
  0xb4   : > { %v5778_v32 = vld [vmem:[%s7145_s25 + $0x4] ss:$8 sps:$4 sm:$0xff] (!%p1354_p13)   ;;  %v5782_v34 = vld [vmem:[%s7145_s25] ss:$8 sps:$4 sm:$0xff] (!%p1354_p13)   ;;  %v5784_v36 = vld [vmem:[%s7145_s25 + $0x14] ss:$8 sps:$4 sm:$0xff] (!%p1354_p13)  }
  0xb5   : > { %v5780_v33 = vld [vmem:[%s7145_s25 + $0x404] ss:$8 sps:$4 sm:$0xff] (!%p1354_p13)   ;;  %3863 = vmatprep.subr.bf16.mxu1 (!%p1354_p13), %v5778_v32  ;;  %v5783_v35 = vld [vmem:[%s7145_s25 + $0x400] ss:$8 sps:$4 sm:$0xff] (!%p1354_p13)   ;;  %v5786_v37 = vld [vmem:[%s7145_s25 + $0x414] ss:$8 sps:$4 sm:$0xff] (!%p1354_p13)  }
  0xb6   : > { %4267 = vmatprep.subr.bf16.mxu0 (!%p1354_p13), %v5780_v33  ;;  %3864 = vmatpush1.bf16.msra.mxu1 (!%p1354_p13), %v5782_v34  ;;  %v5788_v38 = vld [vmem:[%s7145_s25 + $0x10] ss:$8 sps:$4 sm:$0xff] (!%p1354_p13)   ;;  %v5790_v40 = vld [vmem:[%s7145_s25 + $0x24] ss:$8 sps:$4 sm:$0xff] (!%p1354_p13)   ;;  %v5794_v42 = vld [vmem:[%s7145_s25 + $0x20] ss:$8 sps:$4 sm:$0xff] (!%p1354_p13)  }
  0xb7   : > { %4268 = vmatpush1.bf16.msra.mxu0 %v5783_v35  ;;  %3865 = vmatprep.subr.bf16.mxu1 %v5784_v36  ;;  %v5789_v39 = vld [vmem:[%s7145_s25 + $0x410] ss:$8 sps:$4 sm:$0xff]   ;;  %v5792_v41 = vld [vmem:[%s7145_s25 + $0x424] ss:$8 sps:$4 sm:$0xff]   ;;  %v5795_v43 = vld [vmem:[%s7145_s25 + $0x420] ss:$8 sps:$4 sm:$0xff]  }
  0xb8   : > { %4269 = vmatprep.subr.bf16.mxu0 %v5786_v37  ;;  %v5796_v44 = vld [vmem:[%s7145_s25 + $0x34] ss:$8 sps:$4 sm:$0xff]   ;;  %v5800_v46 = vld [vmem:[%s7145_s25 + $0x30] ss:$8 sps:$4 sm:$0xff]   ;;  %v5802_v48 = vld [vmem:[%s7145_s25 + $0x44] ss:$8 sps:$4 sm:$0xff]  }
  0xb9   : > { %v5798_v45 = vld [vmem:[%s7145_s25 + $0x434] ss:$8 sps:$4 sm:$0xff]   ;;  %v5801_v47 = vld [vmem:[%s7145_s25 + $0x430] ss:$8 sps:$4 sm:$0xff]   ;;  %v5804_v49 = vld [vmem:[%s7145_s25 + $0x444] ss:$8 sps:$4 sm:$0xff]  }
  0xba   : > { %3866 = vmatpush1.bf16.msra.mxu1 %v5788_v38  ;;  %v5806_v50 = vld [vmem:[%s7145_s25 + $0x40] ss:$8 sps:$4 sm:$0xff]   ;;  %v5808_v52 = vld [vmem:[%s7145_s25 + $0x54] ss:$8 sps:$4 sm:$0xff]   ;;  %v5812_v54 = vld [vmem:[%s7145_s25 + $0x50] ss:$8 sps:$4 sm:$0xff]  }
  0xbb   : > { %4270 = vmatpush1.bf16.msra.mxu0 %v5789_v39  ;;  %3867 = vmatprep.subr.bf16.mxu1 %v5790_v40  ;;  %v5807_v51 = vld [vmem:[%s7145_s25 + $0x440] ss:$8 sps:$4 sm:$0xff]   ;;  %v5810_v53 = vld [vmem:[%s7145_s25 + $0x454] ss:$8 sps:$4 sm:$0xff]   ;;  %v5813_v55 = vld [vmem:[%s7145_s25 + $0x450] ss:$8 sps:$4 sm:$0xff]  }
  0xbc   : > { %4271 = vmatprep.subr.bf16.mxu0 %v5792_v41  ;;  %v5814_v56 = vld [vmem:[%s7145_s25 + $0x64] ss:$8 sps:$4 sm:$0xff]   ;;  %v5818_v58 = vld [vmem:[%s7145_s25 + $0x60] ss:$8 sps:$4 sm:$0xff]   ;;  %v5820_v60 = vld [vmem:[%s7145_s25 + $0x74] ss:$8 sps:$4 sm:$0xff]  }
  0xbd   : > { %v5816_v57 = vld [vmem:[%s7145_s25 + $0x464] ss:$8 sps:$4 sm:$0xff]   ;;  %v5819_v59 = vld [vmem:[%s7145_s25 + $0x460] ss:$8 sps:$4 sm:$0xff]   ;;  %v5822_v61 = vld [vmem:[%s7145_s25 + $0x474] ss:$8 sps:$4 sm:$0xff]  }
  0xbe   : > { %3868 = vmatpush1.bf16.msra.mxu1 %v5794_v42  ;;  %v5824_v62 = vld [vmem:[%s7145_s25 + $0x70] ss:$8 sps:$4 sm:$0xff]   ;;  %v5826_v0 = vld [vmem:[%s7145_s25 + $0x84] ss:$8 sps:$4 sm:$0xff]   ;;  %v5830_v2 = vld [vmem:[%s7145_s25 + $0x80] ss:$8 sps:$4 sm:$0xff]  }
  0xbf   : > { %4272 = vmatpush1.bf16.msra.mxu0 %v5795_v43  ;;  %3869 = vmatprep.subr.bf16.mxu1 %v5796_v44  ;;  %v5825_v63 = vld [vmem:[%s7145_s25 + $0x470] ss:$8 sps:$4 sm:$0xff]   ;;  %v5828_v1 = vld [vmem:[%s7145_s25 + $0x484] ss:$8 sps:$4 sm:$0xff]   ;;  %v5831_v3 = vld [vmem:[%s7145_s25 + $0x480] ss:$8 sps:$4 sm:$0xff]  }
  0xc0   : > { %4273 = vmatprep.subr.bf16.mxu0 %v5798_v45  ;;  %v5832_v4 = vld [vmem:[%s7145_s25 + $0x94] ss:$8 sps:$4 sm:$0xff]   ;;  %s1392_s14 = scalar_select %p1391_p0, %s6448_s17, 1  ;;  %v5836_v6 = vld [vmem:[%s7145_s25 + $0x90] ss:$8 sps:$4 sm:$0xff]  }
  0xc1   : > { %v5834_v5 = vld [vmem:[%s7145_s25 + $0x494] ss:$8 sps:$4 sm:$0xff]   ;;  %v5837_v7 = vld [vmem:[%s7145_s25 + $0x490] ss:$8 sps:$4 sm:$0xff]   ;;  %v5838_v8 = vld [vmem:[%s7145_s25 + $0xa4] ss:$8 sps:$4 sm:$0xff]  }
  0xc2   : > { %3870 = vmatpush1.bf16.msra.mxu1 %v5800_v46  ;;  %s5704_s26 = smul.u32 936, %s1392_s14  ;;  %v5840_v9 = vld [vmem:[%s7145_s25 + $0x4a4] ss:$8 sps:$4 sm:$0xff]   ;;  %v5842_v10 = vld [vmem:[%s7145_s25 + $0xa0] ss:$8 sps:$4 sm:$0xff]   ;;  %s7634_s12 = scalar_lea.vmem [#allocation3], %s5703_s11 }
  0xc3   : > { %4274 = vmatpush1.bf16.msra.mxu0 %v5801_v47  ;;  %3871 = vmatprep.subr.bf16.mxu1 %v5802_v48  ;;  %v5843_v11 = vld [vmem:[%s7145_s25 + $0x4a0] ss:$8 sps:$4 sm:$0xff]   ;;  %v5844_v12 = vld [vmem:[%s7145_s25 + $0xb4] ss:$8 sps:$4 sm:$0xff]   ;;  %v5848_v14 = vld [vmem:[%s7145_s25 + $0xb0] ss:$8 sps:$4 sm:$0xff]  }
  0xc4   : > { %4275 = vmatprep.subr.bf16.mxu0 %v5804_v49  ;;  %s7197_s5 = scalar_lea.vmem %s7780_s0, %s5704_s26  ;;  %v5846_v13 = vld [vmem:[%s7145_s25 + $0x4b4] ss:$8 sps:$4 sm:$0xff]   ;;  %v5849_v15 = vld [vmem:[%s7145_s25 + $0x4b0] ss:$8 sps:$4 sm:$0xff]   ;;  %v5850_v17 = vld [vmem:[%s7145_s25 + $0xc4] ss:$8 sps:$4 sm:$0xff]  }
  0xc5   : > { %v5876_v16 = vld [vmem:[%s7197_s5 + $0x4] ss:$72 sps:$4 sm:$0xff]   ;;  %v5854_v20 = vld [vmem:[%s7145_s25 + $0xc0] ss:$8 sps:$4 sm:$0xff]   ;;  %v5856_v22 = vld [vmem:[%s7145_s25 + $0xd4] ss:$8 sps:$4 sm:$0xff]  }
  0xc6   : > { %3872 = vmatpush1.bf16.msra.mxu1 %v5806_v50  ;;  %v5852_v18 = vld [vmem:[%s7145_s25 + $0x4c4] ss:$8 sps:$4 sm:$0xff]   ;;  %3895 = vmatprep.mubr.bf16.mxu1 %v5876_v16  ;;  %v5855_v21 = vld [vmem:[%s7145_s25 + $0x4c0] ss:$8 sps:$4 sm:$0xff]   ;;  %v5858_v23 = vld [vmem:[%s7145_s25 + $0x4d4] ss:$8 sps:$4 sm:$0xff]  }
  0xc7   : > { %4276 = vmatpush1.bf16.msra.mxu0 %v5807_v51  ;;  %3873 = vmatprep.subr.bf16.mxu1 %v5808_v52  ;;  %v5882_v19 = vld [vmem:[%s7197_s5 + $0x24] ss:$72 sps:$4 sm:$0xff]   ;;  %v5860_v24 = vld [vmem:[%s7145_s25 + $0xd0] ss:$8 sps:$4 sm:$0xff]   ;;  %v5866_v28 = vld [vmem:[%s7145_s25 + $0xe0] ss:$8 sps:$4 sm:$0xff]  }
  0xc8   : > { %4277 = vmatprep.subr.bf16.mxu0 %v5810_v53  ;;  %4299 = vmatprep.mubr.bf16.mxu0 %v5882_v19  ;;  %v5861_v25 = vld [vmem:[%s7145_s25 + $0x4d0] ss:$8 sps:$4 sm:$0xff]   ;;  %v5862_v26 = vld [vmem:[%s7145_s25 + $0xe4] ss:$8 sps:$4 sm:$0xff]   ;;  %v5867_v29 = vld [vmem:[%s7145_s25 + $0x4e0] ss:$8 sps:$4 sm:$0xff]  }
  0xc9   : > { %v5864_v27 = vld [vmem:[%s7145_s25 + $0x4e4] ss:$8 sps:$4 sm:$0xff]   ;;  %v5868_v30 = vld [vmem:[%s7145_s25 + $0xf4] ss:$8 sps:$4 sm:$0xff]   ;;  %v5872_v32 = vld [vmem:[%s7145_s25 + $0xf0] ss:$8 sps:$4 sm:$0xff]  }
  0xca   : > { %3874 = vmatpush1.bf16.msra.mxu1 %v5812_v54  ;;  %v5870_v31 = vld [vmem:[%s7145_s25 + $0x4f4] ss:$8 sps:$4 sm:$0xff]   ;;  %v5873_v33 = vld [vmem:[%s7145_s25 + $0x4f0] ss:$8 sps:$4 sm:$0xff]   ;;  %v5879_v34 = vld [vmem:[%s7145_s25 + $0x104] ss:$8 sps:$4 sm:$0xff]  }
  0xcb   : > { %4278 = vmatpush1.bf16.msra.mxu0 %v5813_v55  ;;  %3875 = vmatprep.subr.bf16.mxu1 %v5814_v56  ;;  %v5874_v35 = vld [vmem:[%s7197_s5] ss:$72 sps:$4 sm:$0xff]   ;;  %v5885_v36 = vld [vmem:[%s7145_s25 + $0x504] ss:$8 sps:$4 sm:$0xff]   ;;  %v5888_v40 = vld [vmem:[%s7145_s25 + $0x114] ss:$8 sps:$4 sm:$0xff]  }
  0xcc   : > { %4279 = vmatprep.subr.bf16.mxu0 %v5816_v57  ;;  %v5877_v37 = vld [vmem:[%s7145_s25 + $0x100] ss:$8 sps:$4 sm:$0xff]   ;;  %v5891_v41 = vld [vmem:[%s7145_s25 + $0x514] ss:$8 sps:$4 sm:$0xff]   ;;  %v5886_v44 = vld [vmem:[%s7145_s25 + $0x110] ss:$8 sps:$4 sm:$0xff]  }
  0xcd   : > { %v5880_v38 = vld [vmem:[%s7197_s5 + $0x20] ss:$72 sps:$4 sm:$0xff]   ;;  %v5904_v42 = vld [vmem:[%s7197_s5 + $0x94] ss:$72 sps:$4 sm:$0xff]   ;;  %v5889_v45 = vld [vmem:[%s7145_s25 + $0x510] ss:$8 sps:$4 sm:$0xff]  }
  0xce   : > { %3876 = vmatpush1.bf16.msra.mxu1 %v5818_v58  ;;  %v5883_v39 = vld [vmem:[%s7145_s25 + $0x500] ss:$8 sps:$4 sm:$0xff]   ;;  %v5909_v43 = vld [vmem:[%s7197_s5 + $0xb4] ss:$72 sps:$4 sm:$0xff]   ;;  %v5894_v46 = vld [vmem:[%s7145_s25 + $0x124] ss:$8 sps:$4 sm:$0xff]  }
  0xcf   : > { %4280 = vmatpush1.bf16.msra.mxu0 %v5819_v59  ;;  %3877 = vmatprep.subr.bf16.mxu1 %v5820_v60  ;;  %v5897_v47 = vld [vmem:[%s7145_s25 + $0x524] ss:$8 sps:$4 sm:$0xff]   ;;  %v5892_v48 = vld [vmem:[%s7145_s25 + $0x120] ss:$8 sps:$4 sm:$0xff]   ;;  %v5900_v50 = vld [vmem:[%s7145_s25 + $0x134] ss:$8 sps:$4 sm:$0xff]  }
  0xd0   : > { %4281 = vmatprep.subr.bf16.mxu0 %v5822_v61  ;;  %v5895_v49 = vld [vmem:[%s7145_s25 + $0x520] ss:$8 sps:$4 sm:$0xff]   ;;  %v5914_v51 = vld [vmem:[%s7197_s5 + $0x90] ss:$72 sps:$4 sm:$0xff]   ;;  %v5903_v53 = vld [vmem:[%s7145_s25 + $0x534] ss:$8 sps:$4 sm:$0xff]  }
  0xd1   : > { %v5915_v52 = vld [vmem:[%s7197_s5 + $0xb0] ss:$72 sps:$4 sm:$0xff]   ;;  %v5922_v54 = vld [vmem:[%s7197_s5 + $0x124] ss:$72 sps:$4 sm:$0xff]   ;;  %v5906_v60 = vld [vmem:[%s7145_s25 + $0x140] ss:$8 sps:$4 sm:$0xff]  }
  0xd2   : > { %3878 = vmatpush1.bf16.msra.mxu1 %v5824_v62  ;;  %v5927_v55 = vld [vmem:[%s7197_s5 + $0x144] ss:$72 sps:$4 sm:$0xff]   ;;  %v5898_v56 = vld [vmem:[%s7145_s25 + $0x130] ss:$8 sps:$4 sm:$0xff]   ;;  %v5911_v61 = vld [vmem:[%s7145_s25 + $0x540] ss:$8 sps:$4 sm:$0xff]  }
  0xd3   : > { %4282 = vmatpush1.bf16.msra.mxu0 %v5825_v63  ;;  %3879 = vmatprep.subr.bf16.mxu1 %v5826_v0  ;;  %v5901_v57 = vld [vmem:[%s7145_s25 + $0x530] ss:$8 sps:$4 sm:$0xff]   ;;  %v5908_v58 = vld [vmem:[%s7145_s25 + $0x144] ss:$8 sps:$4 sm:$0xff]   ;;  %v5918_v62 = vld [vmem:[%s7145_s25 + $0x154] ss:$8 sps:$4 sm:$0xff]  }
  0xd4   : > { %4283 = vmatprep.subr.bf16.mxu0 %v5828_v1  ;;  %v5913_v59 = vld [vmem:[%s7145_s25 + $0x544] ss:$8 sps:$4 sm:$0xff]   ;;  %v5932_v63 = vld [vmem:[%s7197_s5 + $0x120] ss:$72 sps:$4 sm:$0xff]   ;;  %v5921_v1 = vld [vmem:[%s7145_s25 + $0x554] ss:$8 sps:$4 sm:$0xff]  }
  0xd5   : > { %v5933_v0 = vld [vmem:[%s7197_s5 + $0x140] ss:$72 sps:$4 sm:$0xff]   ;;  %v5934_v16 = vld [vmem:[%s7145_s25 + $0x170] ss:$8 sps:$4 sm:$0xff]   ;;  %v5949_v19 = vld [vmem:[%s7145_s25 + $0x584] ss:$8 sps:$4 sm:$0xff]  }
  0xd6   : > { %3880 = vmatpush1.bf16.msra.mxu1 %v5830_v2  ;;  %v5940_v2 = vld [vmem:[%s7197_s5 + $0x1b4] ss:$72 sps:$4 sm:$0xff]   ;;  %s1399_s7 = scalar_select %p1398_p1, %s7576_s6, 3 }
  0xd7   : > { %4284 = vmatpush1.bf16.msra.mxu0 %v5831_v3  ;;  %3881 = vmatprep.subr.bf16.mxu1 %v5832_v4  ;;  %v5945_v3 = vld [vmem:[%s7197_s5 + $0x1d4] ss:$72 sps:$4 sm:$0xff]   ;;  %v5916_v4 = vld [vmem:[%s7145_s25 + $0x150] ss:$8 sps:$4 sm:$0xff]   ;;  %s5705_s21 = smul.u32 (%p6549_p9), 52, %s6448_s17 }
  0xd8   : > { %4285 = vmatprep.subr.bf16.mxu0 %v5834_v5  ;;  %v5919_v5 = vld [vmem:[%s7145_s25 + $0x550] ss:$8 sps:$4 sm:$0xff]   ;;  %s1400_s16 = scalar_lea.vmem %s7782_s2, %s1399_s7 }
  0xd9   : > { %s4833_s30 = sadd.s32 (%p6549_p9), %s5705_s21, %s7576_s6 }
  0xda   : > { %3882 = vmatpush1.bf16.msra.mxu1 %v5836_v6  ;;  %v5926_v6 = vld [vmem:[%s7145_s25 + $0x164] ss:$8 sps:$4 sm:$0xff]   ;;  %s5419_s24 = sshll.u32 (%p6549_p9), %s4833_s30, 3 }
  0xdb   : > { %4286 = vmatpush1.bf16.msra.mxu0 %v5837_v7  ;;  %3883 = vmatprep.subr.bf16.mxu1 %v5838_v8  ;;  %v5931_v7 = vld [vmem:[%s7145_s25 + $0x564] ss:$8 sps:$4 sm:$0xff]   ;;  %v5924_v8 = vld [vmem:[%s7145_s25 + $0x160] ss:$8 sps:$4 sm:$0xff]   ;;  %s7711_s17 = scalar_lea.vmem (%p6549_p9), %s7783_s3, %s5419_s24 }
  0xdc   : > { %4287 = vmatprep.subr.bf16.mxu0 %v5840_v9  ;;  %v5929_v9 = vld [vmem:[%s7145_s25 + $0x560] ss:$8 sps:$4 sm:$0xff]  }
  0xde   : > { %3884 = vmatpush1.bf16.msra.mxu1 %v5842_v10  ;;  %v5936_v10 = vld [vmem:[%s7145_s25 + $0x174] ss:$8 sps:$4 sm:$0xff]  }
  0xdf   : > { %4288 = vmatpush1.bf16.msra.mxu0 %v5843_v11  ;;  %3885 = vmatprep.subr.bf16.mxu1 %v5844_v12  ;;  %v5950_v11 = vld [vmem:[%s7197_s5 + $0x1b0] ss:$72 sps:$4 sm:$0xff]  }
  0xe0   : > { %4289 = vmatprep.subr.bf16.mxu0 %v5846_v13  ;;  %v5951_v12 = vld [vmem:[%s7197_s5 + $0x1d0] ss:$72 sps:$4 sm:$0xff]   ;;  %v5939_v13 = vld [vmem:[%s7145_s25 + $0x574] ss:$8 sps:$4 sm:$0xff]  }
  0xe2   : > { %3886 = vmatpush1.bf16.msra.mxu1 %v5848_v14  ;;  %v5958_v14 = vld [vmem:[%s7197_s5 + $0x244] ss:$72 sps:$4 sm:$0xff]  }
  0xe3   : > { %4290 = vmatpush1.bf16.msra.mxu0 %v5849_v15  ;;  %3887 = vmatprep.subr.bf16.mxu1 %v5850_v17  ;;  %v5963_v15 = vld [vmem:[%s7197_s5 + $0x264] ss:$72 sps:$4 sm:$0xff]   ;;  %v5937_v17 = vld [vmem:[%s7145_s25 + $0x570] ss:$8 sps:$4 sm:$0xff]  }
  0xe4   : > { %4291 = vmatprep.subr.bf16.mxu0 %v5852_v18  ;;  %v5944_v18 = vld [vmem:[%s7145_s25 + $0x184] ss:$8 sps:$4 sm:$0xff]  }
  0xe6   : > { %3888 = vmatpush1.bf16.msra.mxu1 %v5854_v20  ;;  %v5942_v20 = vld [vmem:[%s7145_s25 + $0x180] ss:$8 sps:$4 sm:$0xff]  }
  0xe7   : > { %4292 = vmatpush1.bf16.msra.mxu0 %v5855_v21  ;;  %3889 = vmatprep.subr.bf16.mxu1 %v5856_v22  ;;  %v5968_v21 = vld [vmem:[%s7197_s5 + $0x240] ss:$72 sps:$4 sm:$0xff]  }
  0xe8   : > { %4293 = vmatprep.subr.bf16.mxu0 %v5858_v23  ;;  %v5969_v22 = vld [vmem:[%s7197_s5 + $0x260] ss:$72 sps:$4 sm:$0xff]  }
  0xe9   : > { %v5947_v23 = vld [vmem:[%s7145_s25 + $0x580] ss:$8 sps:$4 sm:$0xff]  }
  0xea   : > { %3890 = vmatpush1.bf16.msra.mxu1 %v5860_v24  ;;  %v5954_v24 = vld [vmem:[%s7145_s25 + $0x194] ss:$8 sps:$4 sm:$0xff]  }
  0xeb   : > { %4294 = vmatpush1.bf16.msra.mxu0 %v5861_v25  ;;  %3891 = vmatprep.subr.bf16.mxu1 %v5862_v26  ;;  %v5957_v25 = vld [vmem:[%s7145_s25 + $0x594] ss:$8 sps:$4 sm:$0xff]  }
  0xec   : > { %4295 = vmatprep.subr.bf16.mxu0 %v5864_v27  ;;  %v5976_v26 = vld [vmem:[%s7197_s5 + $0x2d4] ss:$72 sps:$4 sm:$0xff]   ;;  %v5952_v27 = vld [vmem:[%s7145_s25 + $0x190] ss:$8 sps:$4 sm:$0xff]  }
  0xee   : > { %3892 = vmatpush1.bf16.msra.mxu1 %v5866_v28  ;;  %v5981_v28 = vld [vmem:[%s7197_s5 + $0x2f4] ss:$72 sps:$4 sm:$0xff]  }
  0xef   : > { %4296 = vmatpush1.bf16.msra.mxu0 %v5867_v29  ;;  %3893 = vmatprep.subr.bf16.mxu1 %v5868_v30  ;;  %v5955_v29 = vld [vmem:[%s7145_s25 + $0x590] ss:$8 sps:$4 sm:$0xff]   ;;  %v5962_v30 = vld [vmem:[%s7145_s25 + $0x1a4] ss:$8 sps:$4 sm:$0xff]  }
  0xf0   : > { %4297 = vmatprep.subr.bf16.mxu0 %v5870_v31  ;;  %v5967_v31 = vld [vmem:[%s7145_s25 + $0x5a4] ss:$8 sps:$4 sm:$0xff]  }
  0xf2   : > { %3894 = vmatpush1.bf16.msra.mxu1 %v5872_v32  ;;  %v5986_v32 = vld [vmem:[%s7197_s5 + $0x2d0] ss:$72 sps:$4 sm:$0xff]  }
  0xf3   : > { %4298 = vmatpush1.bf16.msra.mxu0 %v5873_v33  ;;  %3964 = vmatprep.subr.bf16.mxu1 %v5879_v34  ;;  %v5987_v33 = vld [vmem:[%s7197_s5 + $0x2f0] ss:$72 sps:$4 sm:$0xff]   ;;  %v1511_v34 = vld [vmem:[%s7197_s5 + $0x360] sm:$0x33] }
  0xf4   : > { %4368 = vmatprep.subr.bf16.mxu0 %v5885_v36  ;;  %v5960_v36 = vld [vmem:[%s7145_s25 + $0x1a0] ss:$8 sps:$4 sm:$0xff]  }
  0xf5   : > { %3896 = vmatmul.mubr.bf16.vlgmr.msra.gmra.mrb[0].mxu1 %v5874_v35  ;;  %v1515_v35 = vld [vmem:[%s7197_s5 + $0x380] sm:$0x33] }
  0xf6   : > { %4300 = vmatmul.mubr.bf16.vlgmr.msra.gmra.mrb[0].mxu0 %v5880_v38  ;;  %3965 = vmatpush1.bf16.msra.mxu1 %v5877_v37  ;;  %v5965_v37 = vld [vmem:[%s7145_s25 + $0x5a0] ss:$8 sps:$4 sm:$0xff]   ;;  %v5972_v38 = vld [vmem:[%s7145_s25 + $0x1b4] ss:$8 sps:$4 sm:$0xff]  }
  0xf7   : > { %4369 = vmatpush1.bf16.msra.mxu0 %v5883_v39  ;;  %3966 = vmatprep.subr.bf16.mxu1 %v5888_v40  ;;  %v5975_v39 = vld [vmem:[%s7145_s25 + $0x5b4] ss:$8 sps:$4 sm:$0xff]   ;;  %v5113_v40 = vcombine.high %v1511_v34, %v1511_v34 }
  0xf8   : > { %4370 = vmatprep.subr.bf16.mxu0 %v5891_v41  ;;  %3905 = vmatprep.mubr.bf16.mxu1 %v5904_v42  ;;  %v5121_v41 = vcombine.high %v1515_v35, %v1515_v35  ;;  %v5970_v42 = vld [vmem:[%s7145_s25 + $0x1b0] ss:$8 sps:$4 sm:$0xff]  }
  0xf9   : > { %4309 = vmatprep.mubr.bf16.mxu0 %v5909_v43  ;;  %v5973_v43 = vld [vmem:[%s7145_s25 + $0x5b0] ss:$8 sps:$4 sm:$0xff]  }
  0xfa   : > { %3967 = vmatpush1.bf16.msra.mxu1 %v5886_v44  ;;  %v5980_v44 = vld [vmem:[%s7145_s25 + $0x1c4] ss:$8 sps:$4 sm:$0xff]  }
  0xfb   : > { %4371 = vmatpush1.bf16.msra.mxu0 %v5889_v45  ;;  %3968 = vmatprep.subr.bf16.mxu1 %v5894_v46  ;;  %v5985_v45 = vld [vmem:[%s7145_s25 + $0x5c4] ss:$8 sps:$4 sm:$0xff]   ;;  %v5978_v46 = vld [vmem:[%s7145_s25 + $0x1c0] ss:$8 sps:$4 sm:$0xff]  }
  0xfc   : > { %4372 = vmatprep.subr.bf16.mxu0 %v5897_v47  ;;  %v5112_v47 = vcombine.low %v1511_v34, %v1511_v34  ;;  %v6052_v34 = vld [vmem:[%s7145_s25 + $0x250] ss:$8 sps:$4 sm:$0xff]  }
  0xfd   : > { %3906 = vmatmul.mubr.bf16.gmra.mrb[4].mxu1 %v5914_v51  ;;  %v5993_v51 = vld [vmem:[%s7145_s25 + $0x5d4] ss:$8 sps:$4 sm:$0xff]  }
  0xfe   : > { %4310 = vmatmul.mubr.bf16.gmra.mrb[4].mxu0 %v5915_v52  ;;  %3969 = vmatpush1.bf16.msra.mxu1 %v5892_v48  ;;  %v5120_v48 = vcombine.low %v1515_v35, %v1515_v35  ;;  %v6012_v52 = vld [vmem:[%s7197_s5 + $0xc] ss:$72 sps:$4 sm:$0xff]   ;;  %v6055_v35 = vld [vmem:[%s7145_s25 + $0x650] ss:$8 sps:$4 sm:$0xff]  }
  0xff   : > { %4373 = vmatpush1.bf16.msra.mxu0 %v5895_v49  ;;  %3970 = vmatprep.subr.bf16.mxu1 %v5900_v50  ;;  %v5983_v49 = vld [vmem:[%s7145_s25 + $0x5c0] ss:$8 sps:$4 sm:$0xff]   ;;  %v5990_v50 = vld [vmem:[%s7145_s25 + $0x1d4] ss:$8 sps:$4 sm:$0xff]  }
 0x100   : > { %4374 = vmatprep.subr.bf16.mxu0 %v5903_v53  ;;  %3915 = vmatprep.mubr.bf16.mxu1 %v5922_v54  ;;  %v6018_v53 = vld [vmem:[%s7197_s5 + $0x2c] ss:$72 sps:$4 sm:$0xff]   ;;  %v5988_v54 = vld [vmem:[%s7145_s25 + $0x1d0] ss:$8 sps:$4 sm:$0xff]  }
 0x101   : > { %4319 = vmatprep.mubr.bf16.mxu0 %v5927_v55  ;;  %v5991_v55 = vld [vmem:[%s7145_s25 + $0x5d0] ss:$8 sps:$4 sm:$0xff]  }
 0x102   : > { %3971 = vmatpush1.bf16.msra.mxu1 %v5898_v56  ;;  %v5997_v56 = vld [vmem:[%s7145_s25 + $0x1e4] ss:$8 sps:$4 sm:$0xff]  }
 0x103   : > { %4375 = vmatpush1.bf16.msra.mxu0 %v5901_v57  ;;  %3972 = vmatprep.subr.bf16.mxu1 %v5908_v58  ;;  %v6001_v57 = vld [vmem:[%s7145_s25 + $0x5e4] ss:$8 sps:$4 sm:$0xff]   ;;  %v5995_v58 = vld [vmem:[%s7145_s25 + $0x1e0] ss:$8 sps:$4 sm:$0xff]  }
 0x104   : > { %4376 = vmatprep.subr.bf16.mxu0 %v5913_v59  ;;  %v5999_v59 = vld [vmem:[%s7145_s25 + $0x5e0] ss:$8 sps:$4 sm:$0xff]  }
 0x105   : > { %3916 = vmatmul.mubr.bf16.gmra.mrb[8].mxu1 %v5932_v63  ;;  %v6007_v63 = vld [vmem:[%s7145_s25 + $0x5f0] ss:$8 sps:$4 sm:$0xff]  }
 0x106   : > { %4320 = vmatmul.mubr.bf16.gmra.mrb[8].mxu0 %v5933_v0  ;;  %3973 = vmatpush1.bf16.msra.mxu1 %v5906_v60  ;;  %v6006_v60 = vld [vmem:[%s7145_s25 + $0x1f4] ss:$8 sps:$4 sm:$0xff]   ;;  %v6015_v0 = vld [vmem:[%s7145_s25 + $0x204] ss:$8 sps:$4 sm:$0xff]  }
 0x107   : > { %4377 = vmatpush1.bf16.msra.mxu0 %v5911_v61  ;;  %3974 = vmatprep.subr.bf16.mxu1 %v5918_v62  ;;  %v6009_v61 = vld [vmem:[%s7145_s25 + $0x5f4] ss:$8 sps:$4 sm:$0xff]   ;;  %v6004_v62 = vld [vmem:[%s7145_s25 + $0x1f0] ss:$8 sps:$4 sm:$0xff]  }
 0x108   : > { %4378 = vmatprep.subr.bf16.mxu0 %v5921_v1  ;;  %3925 = vmatprep.mubr.bf16.mxu1 %v5940_v2  ;;  %v6021_v1 = vld [vmem:[%s7145_s25 + $0x604] ss:$8 sps:$4 sm:$0xff]   ;;  %v6010_v2 = vld [vmem:[%s7197_s5 + $0x8] ss:$72 sps:$4 sm:$0xff]  }
 0x109   : > { %4329 = vmatprep.mubr.bf16.mxu0 %v5945_v3  ;;  %v6013_v3 = vld [vmem:[%s7145_s25 + $0x200] ss:$8 sps:$4 sm:$0xff]  }
 0x10a   : > { %3975 = vmatpush1.bf16.msra.mxu1 %v5916_v4  ;;  %v6016_v4 = vld [vmem:[%s7197_s5 + $0x28] ss:$72 sps:$4 sm:$0xff]  }
 0x10b   : > { %4379 = vmatpush1.bf16.msra.mxu0 %v5919_v5  ;;  %3976 = vmatprep.subr.bf16.mxu1 %v5926_v6  ;;  %v6019_v5 = vld [vmem:[%s7145_s25 + $0x600] ss:$8 sps:$4 sm:$0xff]   ;;  %v6024_v6 = vld [vmem:[%s7145_s25 + $0x214] ss:$8 sps:$4 sm:$0xff]  }
 0x10c   : > { %4380 = vmatprep.subr.bf16.mxu0 %v5931_v7  ;;  %v6027_v7 = vld [vmem:[%s7145_s25 + $0x614] ss:$8 sps:$4 sm:$0xff]  }
 0x10d   : > { %3926 = vmatmul.mubr.bf16.gmra.mrb[12].mxu1 %v5950_v11  ;;  %v6025_v11 = vld [vmem:[%s7145_s25 + $0x610] ss:$8 sps:$4 sm:$0xff]  }
 0x10e   : > { %4330 = vmatmul.mubr.bf16.gmra.mrb[12].mxu0 %v5951_v12  ;;  %3977 = vmatpush1.bf16.msra.mxu1 %v5924_v8  ;;  %v6040_v8 = vld [vmem:[%s7197_s5 + $0x9c] ss:$72 sps:$4 sm:$0xff]  }
 0x10f   : > { %4381 = vmatpush1.bf16.msra.mxu0 %v5929_v9  ;;  %3978 = vmatprep.subr.bf16.mxu1 %v5936_v10  ;;  %v6045_v9 = vld [vmem:[%s7197_s5 + $0xbc] ss:$72 sps:$4 sm:$0xff]   ;;  %v6022_v10 = vld [vmem:[%s7145_s25 + $0x210] ss:$8 sps:$4 sm:$0xff]  }
 0x110   : > { %4382 = vmatprep.subr.bf16.mxu0 %v5939_v13  ;;  %3935 = vmatprep.mubr.bf16.mxu1 %v5958_v14  ;;  %v6030_v12 = vld [vmem:[%s7145_s25 + $0x224] ss:$8 sps:$4 sm:$0xff]   ;;  %v6028_v14 = vld [vmem:[%s7145_s25 + $0x220] ss:$8 sps:$4 sm:$0xff]  }
 0x111   : > { %4339 = vmatprep.mubr.bf16.mxu0 %v5963_v15  ;;  %v6033_v13 = vld [vmem:[%s7145_s25 + $0x624] ss:$8 sps:$4 sm:$0xff]   ;;  %v6050_v15 = vld [vmem:[%s7197_s5 + $0x98] ss:$72 sps:$4 sm:$0xff]  }
 0x112   : > { %3979 = vmatpush1.bf16.msra.mxu1 %v5934_v16  ;;  %v6051_v16 = vld [vmem:[%s7197_s5 + $0xb8] ss:$72 sps:$4 sm:$0xff]  }
 0x113   : > { %4383 = vmatpush1.bf16.msra.mxu0 %v5937_v17  ;;  %3980 = vmatprep.subr.bf16.mxu1 %v5944_v18  ;;  %v6031_v17 = vld [vmem:[%s7145_s25 + $0x620] ss:$8 sps:$4 sm:$0xff]   ;;  %v6036_v18 = vld [vmem:[%s7145_s25 + $0x234] ss:$8 sps:$4 sm:$0xff]  }
 0x114   : > { %4384 = vmatprep.subr.bf16.mxu0 %v5949_v19  ;;  %v6039_v19 = vld [vmem:[%s7145_s25 + $0x634] ss:$8 sps:$4 sm:$0xff]  }
 0x115   : > { %3936 = vmatmul.mubr.bf16.gmra.mrb[16].mxu1 %v5968_v21  ;;  %v6063_v21 = vld [vmem:[%s7197_s5 + $0x14c] ss:$72 sps:$4 sm:$0xff]  }
 0x116   : > { %4340 = vmatmul.mubr.bf16.gmra.mrb[16].mxu0 %v5969_v22  ;;  %3981 = vmatpush1.bf16.msra.mxu1 %v5942_v20  ;;  %v6058_v20 = vld [vmem:[%s7197_s5 + $0x12c] ss:$72 sps:$4 sm:$0xff]   ;;  %v6034_v22 = vld [vmem:[%s7145_s25 + $0x230] ss:$8 sps:$4 sm:$0xff]  }
 0x117   : > { %4385 = vmatpush1.bf16.msra.mxu0 %v5947_v23  ;;  %3982 = vmatprep.subr.bf16.mxu1 %v5954_v24  ;;  %v6037_v23 = vld [vmem:[%s7145_s25 + $0x630] ss:$8 sps:$4 sm:$0xff]   ;;  %v6044_v24 = vld [vmem:[%s7145_s25 + $0x244] ss:$8 sps:$4 sm:$0xff]  }
 0x118   : > { %4386 = vmatprep.subr.bf16.mxu0 %v5957_v25  ;;  %3945 = vmatprep.mubr.bf16.mxu1 %v5976_v26  ;;  %v6049_v25 = vld [vmem:[%s7145_s25 + $0x644] ss:$8 sps:$4 sm:$0xff]   ;;  %v6042_v26 = vld [vmem:[%s7145_s25 + $0x240] ss:$8 sps:$4 sm:$0xff]  }
 0x119   : > { %4349 = vmatprep.mubr.bf16.mxu0 %v5981_v28  ;;  %v6069_v28 = vld [vmem:[%s7197_s5 + $0x148] ss:$72 sps:$4 sm:$0xff]  }
 0x11a   : > { %3983 = vmatpush1.bf16.msra.mxu1 %v5952_v27  ;;  %v6068_v27 = vld [vmem:[%s7197_s5 + $0x128] ss:$72 sps:$4 sm:$0xff]  }
 0x11b   : > { %4387 = vmatpush1.bf16.msra.mxu0 %v5955_v29  ;;  %3984 = vmatprep.subr.bf16.mxu1 %v5962_v30  ;;  %v6047_v29 = vld [vmem:[%s7145_s25 + $0x640] ss:$8 sps:$4 sm:$0xff]   ;;  %v6054_v30 = vld [vmem:[%s7145_s25 + $0x254] ss:$8 sps:$4 sm:$0xff]  }
 0x11c   : > { %4388 = vmatprep.subr.bf16.mxu0 %v5967_v31  ;;  %v6057_v31 = vld [vmem:[%s7145_s25 + $0x654] ss:$8 sps:$4 sm:$0xff]  }
 0x11d   : > { %3946 = vmatmul.mubr.bf16.gmra.mrb[20].mxu1 %v5986_v32  ;;  %v6076_v32 = vld [vmem:[%s7197_s5 + $0x1bc] ss:$72 sps:$4 sm:$0xff]  }
 0x11e   : > { %4350 = vmatmul.mubr.bf16.gmra.mrb[20].mxu0 %v5987_v33  ;;  %3985 = vmatpush1.bf16.msra.mxu1 %v5960_v36  ;;  %v6081_v33 = vld [vmem:[%s7197_s5 + $0x1dc] ss:$72 sps:$4 sm:$0xff]  }
 0x11f   : > { %4389 = vmatpush1.bf16.msra.mxu0 %v5965_v37  ;;  %3986 = vmatprep.subr.bf16.mxu1 %v5972_v38  ;;  %v6062_v36 = vld [vmem:[%s7145_s25 + $0x264] ss:$8 sps:$4 sm:$0xff]   ;;  %v6060_v38 = vld [vmem:[%s7145_s25 + $0x260] ss:$8 sps:$4 sm:$0xff]  }
 0x120   : > { %4390 = vmatprep.subr.bf16.mxu0 %v5975_v39  ;;  %3955 = vmatprep.mubr.bf16.mxu1 %v5113_v40  ;;  %v6067_v37 = vld [vmem:[%s7145_s25 + $0x664] ss:$8 sps:$4 sm:$0xff]   ;;  %v6086_v39 = vld [vmem:[%s7197_s5 + $0x1b8] ss:$72 sps:$4 sm:$0xff]  }
 0x121   : > { %4359 = vmatprep.mubr.bf16.mxu0 %v5121_v41  ;;  %v6087_v40 = vld [vmem:[%s7197_s5 + $0x1d8] ss:$72 sps:$4 sm:$0xff]  }
 0x122   : > { %3987 = vmatpush1.bf16.msra.mxu1 %v5970_v42  ;;  %v6065_v41 = vld [vmem:[%s7145_s25 + $0x660] ss:$8 sps:$4 sm:$0xff]   ;;  %v6072_v42 = vld [vmem:[%s7145_s25 + $0x274] ss:$8 sps:$4 sm:$0xff]  }
 0x123   : > { %4391 = vmatpush1.bf16.msra.mxu0 %v5973_v43  ;;  %3988 = vmatprep.subr.bf16.mxu1 %v5980_v44  ;;  %v6075_v43 = vld [vmem:[%s7145_s25 + $0x674] ss:$8 sps:$4 sm:$0xff]  }
 0x124   : > { %4392 = vmatprep.subr.bf16.mxu0 %v5985_v45  ;;  %v6094_v44 = vld [vmem:[%s7197_s5 + $0x24c] ss:$72 sps:$4 sm:$0xff]  }
 0x125   : > { %3956 = vmatmul.mubr.bf16.gmra.mrb[24].mxu1 %v5112_v47  ;;  %v6099_v45 = vld [vmem:[%s7197_s5 + $0x26c] ss:$72 sps:$4 sm:$0xff]   ;;  %v6073_v47 = vld [vmem:[%s7145_s25 + $0x670] ss:$8 sps:$4 sm:$0xff]  }
 0x126   : > { %4360 = vmatmul.mubr.bf16.gmra.mrb[24].mxu0 %v5120_v48  ;;  %3989 = vmatpush1.bf16.msra.mxu1 %v5978_v46  ;;  %v6070_v46 = vld [vmem:[%s7145_s25 + $0x270] ss:$8 sps:$4 sm:$0xff]   ;;  %v6080_v48 = vld [vmem:[%s7145_s25 + $0x284] ss:$8 sps:$4 sm:$0xff]  }
 0x127   : > { %4393 = vmatpush1.bf16.msra.mxu0 %v5983_v49  ;;  %3990 = vmatprep.subr.bf16.mxu1 %v5990_v50  ;;  %v6085_v49 = vld [vmem:[%s7145_s25 + $0x684] ss:$8 sps:$4 sm:$0xff]   ;;  %v6078_v50 = vld [vmem:[%s7145_s25 + $0x280] ss:$8 sps:$4 sm:$0xff]  }
 0x128   : > { %4394 = vmatprep.subr.bf16.mxu0 %v5993_v51  ;;  %3996 = vmatprep.mubr.bf16.mxu1 %v6012_v52  ;;  %v6083_v51 = vld [vmem:[%s7145_s25 + $0x680] ss:$8 sps:$4 sm:$0xff]  }
 0x129   : > { %4400 = vmatprep.mubr.bf16.mxu0 %v6018_v53  ;;  %v6104_v52 = vld [vmem:[%s7197_s5 + $0x248] ss:$72 sps:$4 sm:$0xff]  }
 0x12a   : > { %3991 = vmatpush1.bf16.msra.mxu1 %v5988_v54  ;;  %v6105_v53 = vld [vmem:[%s7197_s5 + $0x268] ss:$72 sps:$4 sm:$0xff]   ;;  %v6090_v54 = vld [vmem:[%s7145_s25 + $0x294] ss:$8 sps:$4 sm:$0xff]  }
 0x12b   : > { %4395 = vmatpush1.bf16.msra.mxu0 %v5991_v55  ;;  %3992 = vmatprep.subr.bf16.mxu1 %v5997_v56  ;;  %v6093_v55 = vld [vmem:[%s7145_s25 + $0x694] ss:$8 sps:$4 sm:$0xff]  }
 0x12c   : > { %4396 = vmatprep.subr.bf16.mxu0 %v6001_v57  ;;  %v6112_v56 = vld [vmem:[%s7197_s5 + $0x2dc] ss:$72 sps:$4 sm:$0xff]  }
 0x12d   : > { %v6117_v57 = vld [vmem:[%s7197_s5 + $0x2fc] ss:$72 sps:$4 sm:$0xff]  }
 0x12e   : > { %3993 = vmatpush1.bf16.msra.mxu1 %v5995_v58  ;;  %v6088_v58 = vld [vmem:[%s7145_s25 + $0x290] ss:$8 sps:$4 sm:$0xff]  }
 0x12f   : > { %4397 = vmatpush1.bf16.msra.mxu0 %v5999_v59  ;;  %3994 = vmatprep.subr.bf16.mxu1 %v6006_v60  ;;  %v6091_v59 = vld [vmem:[%s7145_s25 + $0x690] ss:$8 sps:$4 sm:$0xff]   ;;  %v6098_v60 = vld [vmem:[%s7145_s25 + $0x2a4] ss:$8 sps:$4 sm:$0xff]  }
 0x130   : > { %4398 = vmatprep.subr.bf16.mxu0 %v6009_v61  ;;  %v6103_v61 = vld [vmem:[%s7145_s25 + $0x6a4] ss:$8 sps:$4 sm:$0xff]  }
 0x132   : > { %3995 = vmatpush1.bf16.msra.mxu1 %v6004_v62  ;;  %v6096_v62 = vld [vmem:[%s7145_s25 + $0x2a0] ss:$8 sps:$4 sm:$0xff]  }
 0x133   : > { %4399 = vmatpush1.bf16.msra.mxu0 %v6007_v63  ;;  %4065 = vmatprep.subr.bf16.mxu1 %v6015_v0  ;;  %v6101_v63 = vld [vmem:[%s7145_s25 + $0x6a0] ss:$8 sps:$4 sm:$0xff]  }
 0x134   : > { %4469 = vmatprep.subr.bf16.mxu0 %v6021_v1  ;;  %v6122_v0 = vld [vmem:[%s7197_s5 + $0x2d8] ss:$72 sps:$4 sm:$0xff]  }
 0x135   : > { %3997 = vmatmul.mubr.bf16.vlgmr.msra.gmra.mrb[0].mxu1 %v6010_v2  ;;  %v6123_v1 = vld [vmem:[%s7197_s5 + $0x2f8] ss:$72 sps:$4 sm:$0xff]   ;;  %v1512_v2 = vld [vmem:[%s7197_s5 + $0x368] sm:$0x33] }
 0x136   : > { %4401 = vmatmul.mubr.bf16.vlgmr.msra.gmra.mrb[0].mxu0 %v6016_v4  ;;  %4066 = vmatpush1.bf16.msra.mxu1 %v6013_v3  ;;  %v1516_v3 = vld [vmem:[%s7197_s5 + $0x388] sm:$0x33]  ;;  %v6108_v4 = vld [vmem:[%s7145_s25 + $0x2b4] ss:$8 sps:$4 sm:$0xff]  }
 0x137   : > { %4470 = vmatpush1.bf16.msra.mxu0 %v6019_v5  ;;  %4067 = vmatprep.subr.bf16.mxu1 %v6024_v6  ;;  %v6111_v5 = vld [vmem:[%s7145_s25 + $0x6b4] ss:$8 sps:$4 sm:$0xff]   ;;  %v5115_v6 = vcombine.high %v1512_v2, %v1512_v2 }
 0x138   : > { %4471 = vmatprep.subr.bf16.mxu0 %v6027_v7  ;;  %4006 = vmatprep.mubr.bf16.mxu1 %v6040_v8  ;;  %v5123_v7 = vcombine.high %v1516_v3, %v1516_v3  ;;  %v6106_v8 = vld [vmem:[%s7145_s25 + $0x2b0] ss:$8 sps:$4 sm:$0xff]  }
 0x139   : > { %4410 = vmatprep.mubr.bf16.mxu0 %v6045_v9  ;;  %v6109_v9 = vld [vmem:[%s7145_s25 + $0x6b0] ss:$8 sps:$4 sm:$0xff]  }
 0x13a   : > { %4068 = vmatpush1.bf16.msra.mxu1 %v6022_v10  ;;  %v6116_v10 = vld [vmem:[%s7145_s25 + $0x2c4] ss:$8 sps:$4 sm:$0xff]  }
 0x13b   : > { %4472 = vmatpush1.bf16.msra.mxu0 %v6025_v11  ;;  %4069 = vmatprep.subr.bf16.mxu1 %v6030_v12  ;;  %v6121_v11 = vld [vmem:[%s7145_s25 + $0x6c4] ss:$8 sps:$4 sm:$0xff]   ;;  %v6114_v12 = vld [vmem:[%s7145_s25 + $0x2c0] ss:$8 sps:$4 sm:$0xff]  }
 0x13c   : > { %4473 = vmatprep.subr.bf16.mxu0 %v6033_v13  ;;  %v5114_v13 = vcombine.low %v1512_v2, %v1512_v2  ;;  %v6201_v2 = vld [vmem:[%s7145_s25 + $0x364] ss:$8 sps:$4 sm:$0xff]  }
 0x13d   : > { %4007 = vmatmul.mubr.bf16.gmra.mrb[4].mxu1 %v6050_v15  ;;  %v6119_v15 = vld [vmem:[%s7145_s25 + $0x6c0] ss:$8 sps:$4 sm:$0xff]  }
 0x13e   : > { %4411 = vmatmul.mubr.bf16.gmra.mrb[4].mxu0 %v6051_v16  ;;  %4070 = vmatpush1.bf16.msra.mxu1 %v6028_v14  ;;  %v5122_v14 = vcombine.low %v1516_v3, %v1516_v3  ;;  %v6126_v16 = vld [vmem:[%s7145_s25 + $0x2d4] ss:$8 sps:$4 sm:$0xff]   ;;  %v6205_v3 = vld [vmem:[%s7145_s25 + $0x764] ss:$8 sps:$4 sm:$0xff]  }
 0x13f   : > { %4474 = vmatpush1.bf16.msra.mxu0 %v6031_v17  ;;  %4071 = vmatprep.subr.bf16.mxu1 %v6036_v18  ;;  %v6129_v17 = vld [vmem:[%s7145_s25 + $0x6d4] ss:$8 sps:$4 sm:$0xff]  }
 0x140   : > { %4475 = vmatprep.subr.bf16.mxu0 %v6039_v19  ;;  %4016 = vmatprep.mubr.bf16.mxu1 %v6058_v20  ;;  %v6148_v18 = vld [vmem:[%s7197_s5 + $0x14] ss:$72 sps:$4 sm:$0xff]   ;;  %v6124_v20 = vld [vmem:[%s7145_s25 + $0x2d0] ss:$8 sps:$4 sm:$0xff]  }
 0x141   : > { %4420 = vmatprep.mubr.bf16.mxu0 %v6063_v21  ;;  %v6154_v19 = vld [vmem:[%s7197_s5 + $0x34] ss:$72 sps:$4 sm:$0xff]   ;;  %v6127_v21 = vld [vmem:[%s7145_s25 + $0x6d0] ss:$8 sps:$4 sm:$0xff]  }
 0x142   : > { %4072 = vmatpush1.bf16.msra.mxu1 %v6034_v22  ;;  %v6133_v22 = vld [vmem:[%s7145_s25 + $0x2e4] ss:$8 sps:$4 sm:$0xff]  }
 0x143   : > { %4476 = vmatpush1.bf16.msra.mxu0 %v6037_v23  ;;  %4073 = vmatprep.subr.bf16.mxu1 %v6044_v24  ;;  %v6137_v23 = vld [vmem:[%s7145_s25 + $0x6e4] ss:$8 sps:$4 sm:$0xff]   ;;  %v6131_v24 = vld [vmem:[%s7145_s25 + $0x2e0] ss:$8 sps:$4 sm:$0xff]  }
 0x144   : > { %4477 = vmatprep.subr.bf16.mxu0 %v6049_v25  ;;  %v6135_v25 = vld [vmem:[%s7145_s25 + $0x6e0] ss:$8 sps:$4 sm:$0xff]  }
 0x145   : > { %4017 = vmatmul.mubr.bf16.gmra.mrb[8].mxu1 %v6068_v27  ;;  %v6145_v27 = vld [vmem:[%s7145_s25 + $0x6f4] ss:$8 sps:$4 sm:$0xff]  }
 0x146   : > { %4421 = vmatmul.mubr.bf16.gmra.mrb[8].mxu0 %v6069_v28  ;;  %4074 = vmatpush1.bf16.msra.mxu1 %v6042_v26  ;;  %v6142_v26 = vld [vmem:[%s7145_s25 + $0x2f4] ss:$8 sps:$4 sm:$0xff]   ;;  %v6140_v28 = vld [vmem:[%s7145_s25 + $0x2f0] ss:$8 sps:$4 sm:$0xff]  }
 0x147   : > { %4478 = vmatpush1.bf16.msra.mxu0 %v6047_v29  ;;  %4075 = vmatprep.subr.bf16.mxu1 %v6054_v30  ;;  %v6143_v29 = vld [vmem:[%s7145_s25 + $0x6f0] ss:$8 sps:$4 sm:$0xff]   ;;  %v6151_v30 = vld [vmem:[%s7145_s25 + $0x304] ss:$8 sps:$4 sm:$0xff]  }
 0x148   : > { %4479 = vmatprep.subr.bf16.mxu0 %v6057_v31  ;;  %4026 = vmatprep.mubr.bf16.mxu1 %v6076_v32  ;;  %v6157_v31 = vld [vmem:[%s7145_s25 + $0x704] ss:$8 sps:$4 sm:$0xff]   ;;  %v6146_v32 = vld [vmem:[%s7197_s5 + $0x10] ss:$72 sps:$4 sm:$0xff]  }
 0x149   : > { %4430 = vmatprep.mubr.bf16.mxu0 %v6081_v33  ;;  %v6149_v33 = vld [vmem:[%s7145_s25 + $0x300] ss:$8 sps:$4 sm:$0xff]  }
 0x14a   : > { %4076 = vmatpush1.bf16.msra.mxu1 %v6052_v34  ;;  %v6152_v34 = vld [vmem:[%s7197_s5 + $0x30] ss:$72 sps:$4 sm:$0xff]  }
 0x14b   : > { %4480 = vmatpush1.bf16.msra.mxu0 %v6055_v35  ;;  %4077 = vmatprep.subr.bf16.mxu1 %v6062_v36  ;;  %v6155_v35 = vld [vmem:[%s7145_s25 + $0x700] ss:$8 sps:$4 sm:$0xff]   ;;  %v6160_v36 = vld [vmem:[%s7145_s25 + $0x314] ss:$8 sps:$4 sm:$0xff]  }
 0x14c   : > { %4481 = vmatprep.subr.bf16.mxu0 %v6067_v37  ;;  %v6163_v37 = vld [vmem:[%s7145_s25 + $0x714] ss:$8 sps:$4 sm:$0xff]  }
 0x14d   : > { %4027 = vmatmul.mubr.bf16.gmra.mrb[12].mxu1 %v6086_v39  ;;  %v6178_v39 = vld [vmem:[%s7197_s5 + $0xc4] ss:$72 sps:$4 sm:$0xff]  }
 0x14e   : > { %4431 = vmatmul.mubr.bf16.gmra.mrb[12].mxu0 %v6087_v40  ;;  %4078 = vmatpush1.bf16.msra.mxu1 %v6060_v38  ;;  %v6176_v38 = vld [vmem:[%s7197_s5 + $0xa4] ss:$72 sps:$4 sm:$0xff]   ;;  %v6158_v40 = vld [vmem:[%s7145_s25 + $0x310] ss:$8 sps:$4 sm:$0xff]  }
 0x14f   : > { %4482 = vmatpush1.bf16.msra.mxu0 %v6065_v41  ;;  %4079 = vmatprep.subr.bf16.mxu1 %v6072_v42  ;;  %v6161_v41 = vld [vmem:[%s7145_s25 + $0x710] ss:$8 sps:$4 sm:$0xff]   ;;  %v6166_v42 = vld [vmem:[%s7145_s25 + $0x324] ss:$8 sps:$4 sm:$0xff]  }
 0x150   : > { %4483 = vmatprep.subr.bf16.mxu0 %v6075_v43  ;;  %4036 = vmatprep.mubr.bf16.mxu1 %v6094_v44  ;;  %v6169_v43 = vld [vmem:[%s7145_s25 + $0x724] ss:$8 sps:$4 sm:$0xff]   ;;  %v6164_v44 = vld [vmem:[%s7145_s25 + $0x320] ss:$8 sps:$4 sm:$0xff]  }
 0x151   : > { %4440 = vmatprep.mubr.bf16.mxu0 %v6099_v45  ;;  %v6180_v45 = vld [vmem:[%s7197_s5 + $0xa0] ss:$72 sps:$4 sm:$0xff]  }
 0x152   : > { %4080 = vmatpush1.bf16.msra.mxu1 %v6070_v46  ;;  %v6184_v46 = vld [vmem:[%s7197_s5 + $0xc0] ss:$72 sps:$4 sm:$0xff]  }
 0x153   : > { %4484 = vmatpush1.bf16.msra.mxu0 %v6073_v47  ;;  %4081 = vmatprep.subr.bf16.mxu1 %v6080_v48  ;;  %v6167_v47 = vld [vmem:[%s7145_s25 + $0x720] ss:$8 sps:$4 sm:$0xff]   ;;  %v6172_v48 = vld [vmem:[%s7145_s25 + $0x334] ss:$8 sps:$4 sm:$0xff]  }
 0x154   : > { %4485 = vmatprep.subr.bf16.mxu0 %v6085_v49  ;;  %v6175_v49 = vld [vmem:[%s7145_s25 + $0x734] ss:$8 sps:$4 sm:$0xff]  }
 0x155   : > { %4037 = vmatmul.mubr.bf16.gmra.mrb[16].mxu1 %v6104_v52  ;;  %v6170_v52 = vld [vmem:[%s7145_s25 + $0x330] ss:$8 sps:$4 sm:$0xff]  }
 0x156   : > { %4441 = vmatmul.mubr.bf16.gmra.mrb[16].mxu0 %v6105_v53  ;;  %4082 = vmatpush1.bf16.msra.mxu1 %v6078_v50  ;;  %v6194_v50 = vld [vmem:[%s7197_s5 + $0x134] ss:$72 sps:$4 sm:$0xff]   ;;  %v6173_v53 = vld [vmem:[%s7145_s25 + $0x730] ss:$8 sps:$4 sm:$0xff]  }
 0x157   : > { %4486 = vmatpush1.bf16.msra.mxu0 %v6083_v51  ;;  %4083 = vmatprep.subr.bf16.mxu1 %v6090_v54  ;;  %v6196_v51 = vld [vmem:[%s7197_s5 + $0x154] ss:$72 sps:$4 sm:$0xff]   ;;  %v6183_v54 = vld [vmem:[%s7145_s25 + $0x344] ss:$8 sps:$4 sm:$0xff]  }
 0x158   : > { %4487 = vmatprep.subr.bf16.mxu0 %v6093_v55  ;;  %4046 = vmatprep.mubr.bf16.mxu1 %v6112_v56  ;;  %v6187_v55 = vld [vmem:[%s7145_s25 + $0x744] ss:$8 sps:$4 sm:$0xff]   ;;  %v6181_v56 = vld [vmem:[%s7145_s25 + $0x340] ss:$8 sps:$4 sm:$0xff]  }
 0x159   : > { %4450 = vmatprep.mubr.bf16.mxu0 %v6117_v57  ;;  %v6198_v57 = vld [vmem:[%s7197_s5 + $0x130] ss:$72 sps:$4 sm:$0xff]  }
 0x15a   : > { %4084 = vmatpush1.bf16.msra.mxu1 %v6088_v58  ;;  %v6202_v58 = vld [vmem:[%s7197_s5 + $0x150] ss:$72 sps:$4 sm:$0xff]  }
 0x15b   : > { %4488 = vmatpush1.bf16.msra.mxu0 %v6091_v59  ;;  %4085 = vmatprep.subr.bf16.mxu1 %v6098_v60  ;;  %v6185_v59 = vld [vmem:[%s7145_s25 + $0x740] ss:$8 sps:$4 sm:$0xff]   ;;  %v6190_v60 = vld [vmem:[%s7145_s25 + $0x354] ss:$8 sps:$4 sm:$0xff]  }
 0x15c   : > { %4489 = vmatprep.subr.bf16.mxu0 %v6103_v61  ;;  %v6193_v61 = vld [vmem:[%s7145_s25 + $0x754] ss:$8 sps:$4 sm:$0xff]  }
 0x15d   : > { %4047 = vmatmul.mubr.bf16.gmra.mrb[20].mxu1 %v6122_v0  ;;  %v6188_v0 = vld [vmem:[%s7145_s25 + $0x350] ss:$8 sps:$4 sm:$0xff]  }
 0x15e   : > { %4451 = vmatmul.mubr.bf16.gmra.mrb[20].mxu0 %v6123_v1  ;;  %4086 = vmatpush1.bf16.msra.mxu1 %v6096_v62  ;;  %v6212_v62 = vld [vmem:[%s7197_s5 + $0x1c4] ss:$72 sps:$4 sm:$0xff]   ;;  %v6191_v1 = vld [vmem:[%s7145_s25 + $0x750] ss:$8 sps:$4 sm:$0xff]  }
 0x15f   : > { %4490 = vmatpush1.bf16.msra.mxu0 %v6101_v63  ;;  %4087 = vmatprep.subr.bf16.mxu1 %v6108_v4  ;;  %v6214_v63 = vld [vmem:[%s7197_s5 + $0x1e4] ss:$72 sps:$4 sm:$0xff]   ;;  %v6199_v4 = vld [vmem:[%s7145_s25 + $0x360] ss:$8 sps:$4 sm:$0xff]  }
 0x160   : > { %4491 = vmatprep.subr.bf16.mxu0 %v6111_v5  ;;  %4056 = vmatprep.mubr.bf16.mxu1 %v5115_v6  ;;  %v6216_v5 = vld [vmem:[%s7197_s5 + $0x1c0] ss:$72 sps:$4 sm:$0xff]  }
 0x161   : > { %4460 = vmatprep.mubr.bf16.mxu0 %v5123_v7  ;;  %v6220_v6 = vld [vmem:[%s7197_s5 + $0x1e0] ss:$72 sps:$4 sm:$0xff]  }
 0x162   : > { %4088 = vmatpush1.bf16.msra.mxu1 %v6106_v8  ;;  %v6203_v7 = vld [vmem:[%s7145_s25 + $0x760] ss:$8 sps:$4 sm:$0xff]   ;;  %v6208_v8 = vld [vmem:[%s7145_s25 + $0x374] ss:$8 sps:$4 sm:$0xff]  }
 0x163   : > { %4492 = vmatpush1.bf16.msra.mxu0 %v6109_v9  ;;  %4089 = vmatprep.subr.bf16.mxu1 %v6116_v10  ;;  %v6211_v9 = vld [vmem:[%s7145_s25 + $0x774] ss:$8 sps:$4 sm:$0xff]  }
 0x164   : > { %4493 = vmatprep.subr.bf16.mxu0 %v6121_v11  ;;  %v6230_v10 = vld [vmem:[%s7197_s5 + $0x254] ss:$72 sps:$4 sm:$0xff]  }
 0x165   : > { %4057 = vmatmul.mubr.bf16.gmra.mrb[24].mxu1 %v5114_v13  ;;  %v6232_v11 = vld [vmem:[%s7197_s5 + $0x274] ss:$72 sps:$4 sm:$0xff]   ;;  %v6209_v13 = vld [vmem:[%s7145_s25 + $0x770] ss:$8 sps:$4 sm:$0xff]  }
 0x166   : > { %4461 = vmatmul.mubr.bf16.gmra.mrb[24].mxu0 %v5122_v14  ;;  %4090 = vmatpush1.bf16.msra.mxu1 %v6114_v12  ;;  %v6206_v12 = vld [vmem:[%s7145_s25 + $0x370] ss:$8 sps:$4 sm:$0xff]   ;;  %v6219_v14 = vld [vmem:[%s7145_s25 + $0x384] ss:$8 sps:$4 sm:$0xff]  }
 0x167   : > { %4494 = vmatpush1.bf16.msra.mxu0 %v6119_v15  ;;  %4091 = vmatprep.subr.bf16.mxu1 %v6126_v16  ;;  %v6223_v15 = vld [vmem:[%s7145_s25 + $0x784] ss:$8 sps:$4 sm:$0xff]   ;;  %v6217_v16 = vld [vmem:[%s7145_s25 + $0x380] ss:$8 sps:$4 sm:$0xff]  }
 0x168   : > { %4495 = vmatprep.subr.bf16.mxu0 %v6129_v17  ;;  %4097 = vmatprep.mubr.bf16.mxu1 %v6148_v18  ;;  %v6234_v17 = vld [vmem:[%s7197_s5 + $0x250] ss:$72 sps:$4 sm:$0xff]  }
 0x169   : > { %4501 = vmatprep.mubr.bf16.mxu0 %v6154_v19  ;;  %v6238_v18 = vld [vmem:[%s7197_s5 + $0x270] ss:$72 sps:$4 sm:$0xff]   ;;  %v6221_v19 = vld [vmem:[%s7145_s25 + $0x780] ss:$8 sps:$4 sm:$0xff]  }
 0x16a   : > { %4092 = vmatpush1.bf16.msra.mxu1 %v6124_v20  ;;  %v6226_v20 = vld [vmem:[%s7145_s25 + $0x394] ss:$8 sps:$4 sm:$0xff]  }
 0x16b   : > { %4496 = vmatpush1.bf16.msra.mxu0 %v6127_v21  ;;  %4093 = vmatprep.subr.bf16.mxu1 %v6133_v22  ;;  %v6229_v21 = vld [vmem:[%s7145_s25 + $0x794] ss:$8 sps:$4 sm:$0xff]   ;;  %v6248_v22 = vld [vmem:[%s7197_s5 + $0x2e4] ss:$72 sps:$4 sm:$0xff]  }
 0x16c   : > { %4497 = vmatprep.subr.bf16.mxu0 %v6137_v23  ;;  %v6224_v23 = vld [vmem:[%s7145_s25 + $0x390] ss:$8 sps:$4 sm:$0xff]  }
 0x16e   : > { %4094 = vmatpush1.bf16.msra.mxu1 %v6131_v24  ;;  %v6250_v24 = vld [vmem:[%s7197_s5 + $0x304] ss:$72 sps:$4 sm:$0xff]  }
 0x16f   : > { %4498 = vmatpush1.bf16.msra.mxu0 %v6135_v25  ;;  %4095 = vmatprep.subr.bf16.mxu1 %v6142_v26  ;;  %v6227_v25 = vld [vmem:[%s7145_s25 + $0x790] ss:$8 sps:$4 sm:$0xff]   ;;  %v6237_v26 = vld [vmem:[%s7145_s25 + $0x3a4] ss:$8 sps:$4 sm:$0xff]  }
 0x170   : > { %4499 = vmatprep.subr.bf16.mxu0 %v6145_v27  ;;  %v6241_v27 = vld [vmem:[%s7145_s25 + $0x7a4] ss:$8 sps:$4 sm:$0xff]  }
 0x172   : > { %4096 = vmatpush1.bf16.msra.mxu1 %v6140_v28  ;;  %v6252_v28 = vld [vmem:[%s7197_s5 + $0x2e0] ss:$72 sps:$4 sm:$0xff]  }
 0x173   : > { %4500 = vmatpush1.bf16.msra.mxu0 %v6143_v29  ;;  %4166 = vmatprep.subr.bf16.mxu1 %v6151_v30  ;;  %v6256_v29 = vld [vmem:[%s7197_s5 + $0x300] ss:$72 sps:$4 sm:$0xff]  }
 0x174   : > { %4570 = vmatprep.subr.bf16.mxu0 %v6157_v31  ;;  %v6235_v30 = vld [vmem:[%s7145_s25 + $0x3a0] ss:$8 sps:$4 sm:$0xff]   ;;  %v1513_v31 = vld [vmem:[%s7197_s5 + $0x370] sm:$0x33] }
 0x175   : > { %4098 = vmatmul.mubr.bf16.vlgmr.msra.gmra.mrb[0].mxu1 %v6146_v32  ;;  %v1517_v32 = vld [vmem:[%s7197_s5 + $0x390] sm:$0x33] }
 0x176   : > { %4502 = vmatmul.mubr.bf16.vlgmr.msra.gmra.mrb[0].mxu0 %v6152_v34  ;;  %4167 = vmatpush1.bf16.msra.mxu1 %v6149_v33  ;;  %v6239_v33 = vld [vmem:[%s7145_s25 + $0x7a0] ss:$8 sps:$4 sm:$0xff]   ;;  %v6244_v34 = vld [vmem:[%s7145_s25 + $0x3b4] ss:$8 sps:$4 sm:$0xff]  }
 0x177   : > { %4571 = vmatpush1.bf16.msra.mxu0 %v6155_v35  ;;  %4168 = vmatprep.subr.bf16.mxu1 %v6160_v36  ;;  %v6247_v35 = vld [vmem:[%s7145_s25 + $0x7b4] ss:$8 sps:$4 sm:$0xff]   ;;  %v5117_v36 = vcombine.high %v1513_v31, %v1513_v31 }
 0x178   : > { %4572 = vmatprep.subr.bf16.mxu0 %v6163_v37  ;;  %4107 = vmatprep.mubr.bf16.mxu1 %v6176_v38  ;;  %v5125_v37 = vcombine.high %v1517_v32, %v1517_v32  ;;  %v6242_v38 = vld [vmem:[%s7145_s25 + $0x3b0] ss:$8 sps:$4 sm:$0xff]  }
 0x179   : > { %4511 = vmatprep.mubr.bf16.mxu0 %v6178_v39  ;;  %v6245_v39 = vld [vmem:[%s7145_s25 + $0x7b0] ss:$8 sps:$4 sm:$0xff]  }
 0x17a   : > { %4169 = vmatpush1.bf16.msra.mxu1 %v6158_v40  ;;  %v6255_v40 = vld [vmem:[%s7145_s25 + $0x3c4] ss:$8 sps:$4 sm:$0xff]  }
 0x17b   : > { %4573 = vmatpush1.bf16.msra.mxu0 %v6161_v41  ;;  %4170 = vmatprep.subr.bf16.mxu1 %v6166_v42  ;;  %v6259_v41 = vld [vmem:[%s7145_s25 + $0x7c4] ss:$8 sps:$4 sm:$0xff]   ;;  %v6253_v42 = vld [vmem:[%s7145_s25 + $0x3c0] ss:$8 sps:$4 sm:$0xff]  }
 0x17c   : > { %4574 = vmatprep.subr.bf16.mxu0 %v6169_v43  ;;  %v5116_v43 = vcombine.low %v1513_v31, %v1513_v31  ;;  %v6336_v31 = vld [vmem:[%s7145_s25 + $0x880] ss:$8 sps:$4 sm:$0xff]  }
 0x17d   : > { %4108 = vmatmul.mubr.bf16.gmra.mrb[4].mxu1 %v6180_v45  ;;  %v6257_v45 = vld [vmem:[%s7145_s25 + $0x7c0] ss:$8 sps:$4 sm:$0xff]  }
 0x17e   : > { %4512 = vmatmul.mubr.bf16.gmra.mrb[4].mxu0 %v6184_v46  ;;  %4171 = vmatpush1.bf16.msra.mxu1 %v6164_v44  ;;  %v5124_v44 = vcombine.low %v1517_v32, %v1517_v32  ;;  %v6262_v46 = vld [vmem:[%s7145_s25 + $0x3d4] ss:$8 sps:$4 sm:$0xff]  }
 0x17f   : > { %4575 = vmatpush1.bf16.msra.mxu0 %v6167_v47  ;;  %4172 = vmatprep.subr.bf16.mxu1 %v6172_v48  ;;  %v6265_v47 = vld [vmem:[%s7145_s25 + $0x7d4] ss:$8 sps:$4 sm:$0xff]  }
 0x180   : > { %4576 = vmatprep.subr.bf16.mxu0 %v6175_v49  ;;  %4117 = vmatprep.mubr.bf16.mxu1 %v6194_v50  ;;  %v6284_v48 = vld [vmem:[%s7197_s5 + $0x1c] ss:$72 sps:$4 sm:$0xff]   ;;  %v6260_v50 = vld [vmem:[%s7145_s25 + $0x3d0] ss:$8 sps:$4 sm:$0xff]  }
 0x181   : > { %4521 = vmatprep.mubr.bf16.mxu0 %v6196_v51  ;;  %v6287_v49 = vld [vmem:[%s7197_s5 + $0x3c] ss:$72 sps:$4 sm:$0xff]   ;;  %v6263_v51 = vld [vmem:[%s7145_s25 + $0x7d0] ss:$8 sps:$4 sm:$0xff]  }
 0x182   : > { %4173 = vmatpush1.bf16.msra.mxu1 %v6170_v52  ;;  %v6271_v52 = vld [vmem:[%s7145_s25 + $0x3e4] ss:$8 sps:$4 sm:$0xff]   ;;  %v6341_v32 = vld [vmem:[%s7145_s25 + $0x894] ss:$8 sps:$4 sm:$0xff]  }
 0x183   : > { %4577 = vmatpush1.bf16.msra.mxu0 %v6173_v53  ;;  %4174 = vmatprep.subr.bf16.mxu1 %v6183_v54  ;;  %v6275_v53 = vld [vmem:[%s7145_s25 + $0x7e4] ss:$8 sps:$4 sm:$0xff]   ;;  %v6269_v54 = vld [vmem:[%s7145_s25 + $0x3e0] ss:$8 sps:$4 sm:$0xff]  }
 0x184   : > { %4578 = vmatprep.subr.bf16.mxu0 %v6187_v55  ;;  %v6273_v55 = vld [vmem:[%s7145_s25 + $0x7e0] ss:$8 sps:$4 sm:$0xff]  }
 0x185   : > { %4118 = vmatmul.mubr.bf16.gmra.mrb[8].mxu1 %v6198_v57  ;;  %v6281_v57 = vld [vmem:[%s7145_s25 + $0x7f4] ss:$8 sps:$4 sm:$0xff]  }
 0x186   : > { %4522 = vmatmul.mubr.bf16.gmra.mrb[8].mxu0 %v6202_v58  ;;  %4175 = vmatpush1.bf16.msra.mxu1 %v6181_v56  ;;  %v6278_v56 = vld [vmem:[%s7145_s25 + $0x3f4] ss:$8 sps:$4 sm:$0xff]   ;;  %v6276_v58 = vld [vmem:[%s7145_s25 + $0x3f0] ss:$8 sps:$4 sm:$0xff]  }
 0x187   : > { %4579 = vmatpush1.bf16.msra.mxu0 %v6185_v59  ;;  %4176 = vmatprep.subr.bf16.mxu1 %v6190_v60  ;;  %v6279_v59 = vld [vmem:[%s7145_s25 + $0x7f0] ss:$8 sps:$4 sm:$0xff]   ;;  %v6290_v60 = vld [vmem:[%s7145_s25 + $0x804] ss:$8 sps:$4 sm:$0xff]  }
 0x188   : > { %4580 = vmatprep.subr.bf16.mxu0 %v6193_v61  ;;  %4127 = vmatprep.mubr.bf16.mxu1 %v6212_v62  ;;  %v6282_v61 = vld [vmem:[%s7197_s5 + $0x18] ss:$72 sps:$4 sm:$0xff]  }
 0x189   : > { %4531 = vmatprep.mubr.bf16.mxu0 %v6214_v63  ;;  %v6285_v62 = vld [vmem:[%s7197_s5 + $0x38] ss:$72 sps:$4 sm:$0xff]  }
 0x18a   : > { %4177 = vmatpush1.bf16.msra.mxu1 %v6188_v0  ;;  %v6288_v63 = vld [vmem:[%s7145_s25 + $0x800] ss:$8 sps:$4 sm:$0xff]   ;;  %v6293_v0 = vld [vmem:[%s7145_s25 + $0x814] ss:$8 sps:$4 sm:$0xff]  }
 0x18b   : > { %4581 = vmatpush1.bf16.msra.mxu0 %v6191_v1  ;;  %4178 = vmatprep.subr.bf16.mxu1 %v6201_v2  ;;  %v6294_v1 = vld [vmem:[%s7197_s5 + $0xac] ss:$72 sps:$4 sm:$0xff]  }
 0x18c   : > { %4582 = vmatprep.subr.bf16.mxu0 %v6205_v3  ;;  %v6296_v2 = vld [vmem:[%s7197_s5 + $0xcc] ss:$72 sps:$4 sm:$0xff]   ;;  %v6291_v3 = vld [vmem:[%s7145_s25 + $0x810] ss:$8 sps:$4 sm:$0xff]  }
 0x18d   : > { %4128 = vmatmul.mubr.bf16.gmra.mrb[12].mxu1 %v6216_v5  ;;  %v6298_v5 = vld [vmem:[%s7197_s5 + $0xa8] ss:$72 sps:$4 sm:$0xff]  }
 0x18e   : > { %4532 = vmatmul.mubr.bf16.gmra.mrb[12].mxu0 %v6220_v6  ;;  %4179 = vmatpush1.bf16.msra.mxu1 %v6199_v4  ;;  %v6302_v4 = vld [vmem:[%s7145_s25 + $0x824] ss:$8 sps:$4 sm:$0xff]   ;;  %v6299_v6 = vld [vmem:[%s7197_s5 + $0xc8] ss:$72 sps:$4 sm:$0xff]  }
 0x18f   : > { %4583 = vmatpush1.bf16.msra.mxu0 %v6203_v7  ;;  %4180 = vmatprep.subr.bf16.mxu1 %v6208_v8  ;;  %v6300_v7 = vld [vmem:[%s7145_s25 + $0x820] ss:$8 sps:$4 sm:$0xff]   ;;  %v6305_v8 = vld [vmem:[%s7145_s25 + $0x834] ss:$8 sps:$4 sm:$0xff]  }
 0x190   : > { %4584 = vmatprep.subr.bf16.mxu0 %v6211_v9  ;;  %4137 = vmatprep.mubr.bf16.mxu1 %v6230_v10  ;;  %v6306_v9 = vld [vmem:[%s7197_s5 + $0x13c] ss:$72 sps:$4 sm:$0xff]  }
 0x191   : > { %4541 = vmatprep.mubr.bf16.mxu0 %v6232_v11  ;;  %v6308_v10 = vld [vmem:[%s7197_s5 + $0x15c] ss:$72 sps:$4 sm:$0xff]   ;;  %v6303_v11 = vld [vmem:[%s7145_s25 + $0x830] ss:$8 sps:$4 sm:$0xff]  }
 0x192   : > { %4181 = vmatpush1.bf16.msra.mxu1 %v6206_v12  ;;  %v6314_v12 = vld [vmem:[%s7145_s25 + $0x844] ss:$8 sps:$4 sm:$0xff]  }
 0x193   : > { %4585 = vmatpush1.bf16.msra.mxu0 %v6209_v13  ;;  %4182 = vmatprep.subr.bf16.mxu1 %v6219_v14  ;;  %v6310_v13 = vld [vmem:[%s7197_s5 + $0x138] ss:$72 sps:$4 sm:$0xff]  }
 0x194   : > { %4586 = vmatprep.subr.bf16.mxu0 %v6223_v15  ;;  %v6311_v14 = vld [vmem:[%s7197_s5 + $0x158] ss:$72 sps:$4 sm:$0xff]  }
 0x195   : > { %4138 = vmatmul.mubr.bf16.gmra.mrb[16].mxu1 %v6234_v17  ;;  %v6312_v15 = vld [vmem:[%s7145_s25 + $0x840] ss:$8 sps:$4 sm:$0xff]   ;;  %v6318_v17 = vld [vmem:[%s7197_s5 + $0x1cc] ss:$72 sps:$4 sm:$0xff]  }
 0x196   : > { %4542 = vmatmul.mubr.bf16.gmra.mrb[16].mxu0 %v6238_v18  ;;  %4183 = vmatpush1.bf16.msra.mxu1 %v6217_v16  ;;  %v6317_v16 = vld [vmem:[%s7145_s25 + $0x854] ss:$8 sps:$4 sm:$0xff]  }
 0x197   : > { %4587 = vmatpush1.bf16.msra.mxu0 %v6221_v19  ;;  %4184 = vmatprep.subr.bf16.mxu1 %v6226_v20  ;;  %v6320_v18 = vld [vmem:[%s7197_s5 + $0x1ec] ss:$72 sps:$4 sm:$0xff]   ;;  %v6315_v19 = vld [vmem:[%s7145_s25 + $0x850] ss:$8 sps:$4 sm:$0xff]  }
 0x198   : > { %4588 = vmatprep.subr.bf16.mxu0 %v6229_v21  ;;  %4147 = vmatprep.mubr.bf16.mxu1 %v6248_v22  ;;  %v6326_v20 = vld [vmem:[%s7145_s25 + $0x864] ss:$8 sps:$4 sm:$0xff]   ;;  %v6322_v21 = vld [vmem:[%s7197_s5 + $0x1c8] ss:$72 sps:$4 sm:$0xff]  }
 0x199   : > { %4551 = vmatprep.mubr.bf16.mxu0 %v6250_v24  ;;  %v6323_v22 = vld [vmem:[%s7197_s5 + $0x1e8] ss:$72 sps:$4 sm:$0xff]   ;;  %v6329_v24 = vld [vmem:[%s7145_s25 + $0x874] ss:$8 sps:$4 sm:$0xff]  }
 0x19a   : > { %4185 = vmatpush1.bf16.msra.mxu1 %v6224_v23  ;;  %v6324_v23 = vld [vmem:[%s7145_s25 + $0x860] ss:$8 sps:$4 sm:$0xff]  }
 0x19b   : > { %4589 = vmatpush1.bf16.msra.mxu0 %v6227_v25  ;;  %4186 = vmatprep.subr.bf16.mxu1 %v6237_v26  ;;  %v6330_v25 = vld [vmem:[%s7197_s5 + $0x25c] ss:$72 sps:$4 sm:$0xff]  }
 0x19c   : > { %4590 = vmatprep.subr.bf16.mxu0 %v6241_v27  ;;  %v6332_v26 = vld [vmem:[%s7197_s5 + $0x27c] ss:$72 sps:$4 sm:$0xff]   ;;  %v6327_v27 = vld [vmem:[%s7145_s25 + $0x870] ss:$8 sps:$4 sm:$0xff]  }
 0x19d   : > { %4148 = vmatmul.mubr.bf16.gmra.mrb[20].mxu1 %v6252_v28  ;;  %v6338_v28 = vld [vmem:[%s7145_s25 + $0x884] ss:$8 sps:$4 sm:$0xff]  }
 0x19e   : > { %4552 = vmatmul.mubr.bf16.gmra.mrb[20].mxu0 %v6256_v29  ;;  %4187 = vmatpush1.bf16.msra.mxu1 %v6235_v30  ;;  %v6334_v29 = vld [vmem:[%s7197_s5 + $0x258] ss:$72 sps:$4 sm:$0xff]  }
 0x19f   : > { %4591 = vmatpush1.bf16.msra.mxu0 %v6239_v33  ;;  %4188 = vmatprep.subr.bf16.mxu1 %v6244_v34  ;;  %v6335_v30 = vld [vmem:[%s7197_s5 + $0x278] ss:$72 sps:$4 sm:$0xff]   ;;  %v6342_v33 = vld [vmem:[%s7197_s5 + $0x2ec] ss:$72 sps:$4 sm:$0xff]  }
 0x1a0   : > { %4592 = vmatprep.subr.bf16.mxu0 %v6247_v35  ;;  %4157 = vmatprep.mubr.bf16.mxu1 %v5117_v36  ;;  %v6344_v34 = vld [vmem:[%s7197_s5 + $0x30c] ss:$72 sps:$4 sm:$0xff]   ;;  %v6339_v35 = vld [vmem:[%s7145_s25 + $0x890] ss:$8 sps:$4 sm:$0xff]  }
 0x1a1   : > { %4561 = vmatprep.mubr.bf16.mxu0 %v5125_v37  ;;  %v6350_v36 = vld [vmem:[%s7145_s25 + $0x8a4] ss:$8 sps:$4 sm:$0xff]   ;;  %v6346_v37 = vld [vmem:[%s7197_s5 + $0x2e8] ss:$72 sps:$4 sm:$0xff]  }
 0x1a2   : > { %4189 = vmatpush1.bf16.msra.mxu1 %v6242_v38  ;;  %v6347_v38 = vld [vmem:[%s7197_s5 + $0x308] ss:$72 sps:$4 sm:$0xff]  }
 0x1a3   : > { %4593 = vmatpush1.bf16.msra.mxu0 %v6245_v39  ;;  %4190 = vmatprep.subr.bf16.mxu1 %v6255_v40  ;;  %v1514_v39 = vld [vmem:[%s7197_s5 + $0x378] sm:$0x33] }
 0x1a4   : > { %4594 = vmatprep.subr.bf16.mxu0 %v6259_v41  ;;  %v1518_v40 = vld [vmem:[%s7197_s5 + $0x398] sm:$0x33]  ;;  %v6348_v41 = vld [vmem:[%s7145_s25 + $0x8a0] ss:$8 sps:$4 sm:$0xff]  }
 0x1a5   : > { %4158 = vmatmul.mubr.bf16.gmra.mrb[24].mxu1 %v5116_v43  ;;  %v5119_v43 = vcombine.high %v1514_v39, %v1514_v39 }
 0x1a6   : > { %4562 = vmatmul.mubr.bf16.gmra.mrb[24].mxu0 %v5124_v44  ;;  %4191 = vmatpush1.bf16.msra.mxu1 %v6253_v42  ;;  %v6353_v42 = vld [vmem:[%s7145_s25 + $0x8b4] ss:$8 sps:$4 sm:$0xff]   ;;  %v5127_v44 = vcombine.high %v1518_v40, %v1518_v40 }
 0x1a7   : > { %4595 = vmatpush1.bf16.msra.mxu0 %v6257_v45  ;;  %4192 = vmatprep.subr.bf16.mxu1 %v6262_v46  ;;  %v6351_v45 = vld [vmem:[%s7145_s25 + $0x8b0] ss:$8 sps:$4 sm:$0xff]   ;;  %v6360_v46 = vld [vmem:[%s7145_s25 + $0x8c4] ss:$8 sps:$4 sm:$0xff]  }
 0x1a8   : > { %4596 = vmatprep.subr.bf16.mxu0 %v6265_v47  ;;  %4198 = vmatprep.mubr.bf16.mxu1 %v6284_v48  ;;  %v5118_v47 = vcombine.low %v1514_v39, %v1514_v39  ;;  %v5126_v48 = vcombine.low %v1518_v40, %v1518_v40 }
 0x1a9   : > { %4602 = vmatprep.mubr.bf16.mxu0 %v6287_v49  ;;  %v6358_v49 = vld [vmem:[%s7145_s25 + $0x8c0] ss:$8 sps:$4 sm:$0xff]  }
 0x1aa   : > { %4193 = vmatpush1.bf16.msra.mxu1 %v6260_v50  ;;  %v6363_v50 = vld [vmem:[%s7145_s25 + $0x8d4] ss:$8 sps:$4 sm:$0xff]  }
 0x1ab   : > { %4597 = vmatpush1.bf16.msra.mxu0 %v6263_v51  ;;  %4194 = vmatprep.subr.bf16.mxu1 %v6271_v52  ;;  %v6372_v51 = vld [vmem:[%s7197_s5 + $0x44] ss:$72 sps:$4 sm:$0xff]  }
 0x1ac   : > { %4598 = vmatprep.subr.bf16.mxu0 %v6275_v53  ;;  %v6375_v52 = vld [vmem:[%s7197_s5 + $0x284] ss:$72 sps:$4 sm:$0xff]   ;;  %v6361_v53 = vld [vmem:[%s7145_s25 + $0x8d0] ss:$8 sps:$4 sm:$0xff]  }
 0x1ae   : > { %4195 = vmatpush1.bf16.msra.mxu1 %v6269_v54  ;;  %v6366_v54 = vld [vmem:[%s7145_s25 + $0x8e4] ss:$8 sps:$4 sm:$0xff]  }
 0x1af   : > { %4599 = vmatpush1.bf16.msra.mxu0 %v6273_v55  ;;  %4196 = vmatprep.subr.bf16.mxu1 %v6278_v56  ;;  %v6364_v55 = vld [vmem:[%s7145_s25 + $0x8e0] ss:$8 sps:$4 sm:$0xff]   ;;  %v6369_v56 = vld [vmem:[%s7145_s25 + $0x8f4] ss:$8 sps:$4 sm:$0xff]  }
 0x1b0   : > { %4600 = vmatprep.subr.bf16.mxu0 %v6281_v57  ;;  %v6367_v57 = vld [vmem:[%s7145_s25 + $0x8f0] ss:$8 sps:$4 sm:$0xff]  }
 0x1b2   : > { %4197 = vmatpush1.bf16.msra.mxu1 %v6276_v58  ;;  %v6370_v58 = vld [vmem:[%s7197_s5 + $0x40] ss:$72 sps:$4 sm:$0xff]  }
 0x1b3   : > { %4601 = vmatpush1.bf16.msra.mxu0 %v6279_v59  ;;  %5423 = vmatprep.subr.bf16.mxu1 %v6290_v60  ;;  %v6373_v59 = vld [vmem:[%s7197_s5 + $0x280] ss:$72 sps:$4 sm:$0xff]  }
 0x1b4   : > { %4671 = vmatprep.subr.bf16.mxu0 %v6290_v60  ;;  %v6376_v60 = vld [vmem:[%s7197_s5 + $0xd4] ss:$72 sps:$4 sm:$0xff]  }
 0x1b5   : > { %4199 = vmatmul.mubr.bf16.vlgmr.msra.gmra.mrb[0].mxu1 %v6282_v61  ;;  %v6378_v61 = vld [vmem:[%s7197_s5 + $0x314] ss:$72 sps:$4 sm:$0xff]  }
 0x1b6   : > { %4603 = vmatmul.mubr.bf16.vlgmr.msra.gmra.mrb[0].mxu0 %v6285_v62  ;;  %5439 = vmatpush1.bf16.msra.mxu1 %v6288_v63  ;;  %v1519_v62 = vld [vmem:[%s7197_s5 + $0x3a0] sm:$0x33] }
 0x1b7   : > { %4672 = vmatpush1.bf16.msra.mxu0 %v6288_v63  ;;  %5424 = vmatprep.subr.bf16.mxu1 %v6293_v0  ;;  %v6380_v63 = vld [vmem:[%s7197_s5 + $0xd0] ss:$72 sps:$4 sm:$0xff]  }
 0x1b8   : > { %4673 = vmatprep.subr.bf16.mxu0 %v6293_v0  ;;  %4208 = vmatprep.mubr.bf16.mxu1 %v6294_v1  ;;  %v6381_v0 = vld [vmem:[%s7197_s5 + $0x310] ss:$72 sps:$4 sm:$0xff]   ;;  %v6382_v1 = vld [vmem:[%s7197_s5 + $0x164] ss:$72 sps:$4 sm:$0xff]  }
 0x1b9   : > { %4612 = vmatprep.mubr.bf16.mxu0 %v6296_v2  ;;  %v5129_v2 = vcombine.high %v1519_v62, %v1519_v62 }
 0x1ba   : > { %5440 = vmatpush1.bf16.msra.mxu1 %v6291_v3 }
 0x1bb   : > { %4674 = vmatpush1.bf16.msra.mxu0 %v6291_v3  ;;  %5425 = vmatprep.subr.bf16.mxu1 %v6302_v4  ;;  %v6385_v3 = vld [vmem:[%s7197_s5 + $0x160] ss:$72 sps:$4 sm:$0xff]  }
 0x1bc   : > { %4675 = vmatprep.subr.bf16.mxu0 %v6302_v4  ;;  %v5128_v4 = vcombine.low %v1519_v62, %v1519_v62 }
 0x1bd   : > { %4209 = vmatmul.mubr.bf16.gmra.mrb[4].mxu1 %v6298_v5  ;;  %v6387_v5 = vld [vmem:[%s7197_s5 + $0x1f4] ss:$72 sps:$4 sm:$0xff]  }
 0x1be   : > { %4613 = vmatmul.mubr.bf16.gmra.mrb[4].mxu0 %v6299_v6  ;;  %5441 = vmatpush1.bf16.msra.mxu1 %v6300_v7  ;;  %v6389_v6 = vld [vmem:[%s7197_s5 + $0x1f0] ss:$72 sps:$4 sm:$0xff]  }
 0x1bf   : > { %4676 = vmatpush1.bf16.msra.mxu0 %v6300_v7  ;;  %5426 = vmatprep.subr.bf16.mxu1 %v6305_v8 }
 0x1c0   : > { %4677 = vmatprep.subr.bf16.mxu0 %v6305_v8  ;;  %4218 = vmatprep.mubr.bf16.mxu1 %v6306_v9 }
 0x1c1   : > { %4622 = vmatprep.mubr.bf16.mxu0 %v6308_v10 }
 0x1c2   : > { %5442 = vmatpush1.bf16.msra.mxu1 %v6303_v11 }
 0x1c3   : > { %4678 = vmatpush1.bf16.msra.mxu0 %v6303_v11  ;;  %5427 = vmatprep.subr.bf16.mxu1 %v6314_v12 }
 0x1c4   : > { %4679 = vmatprep.subr.bf16.mxu0 %v6314_v12 }
 0x1c5   : > { %4219 = vmatmul.mubr.bf16.gmra.mrb[8].mxu1 %v6310_v13 }
 0x1c6   : > { %4623 = vmatmul.mubr.bf16.gmra.mrb[8].mxu0 %v6311_v14  ;;  %5443 = vmatpush1.bf16.msra.mxu1 %v6312_v15 }
 0x1c7   : > { %4680 = vmatpush1.bf16.msra.mxu0 %v6312_v15  ;;  %5428 = vmatprep.subr.bf16.mxu1 %v6317_v16 }
 0x1c8   : > { %4681 = vmatprep.subr.bf16.mxu0 %v6317_v16  ;;  %4228 = vmatprep.mubr.bf16.mxu1 %v6318_v17 }
 0x1c9   : > { %4632 = vmatprep.mubr.bf16.mxu0 %v6320_v18  ;;  %v1810_v18 = vlaneseq }
 0x1ca   : > { %5444 = vmatpush1.bf16.msra.mxu1 %v6315_v19 }
 0x1cb   : > { %4682 = vmatpush1.bf16.msra.mxu0 %v6315_v19  ;;  %5429 = vmatprep.subr.bf16.mxu1 %v6326_v20 }
 0x1cc   : > { %4683 = vmatprep.subr.bf16.mxu0 %v6326_v20  ;;  %v1811_v20 = vshrl.u32 %v1810_v18, 7 }
 0x1cd   : > { %4229 = vmatmul.mubr.bf16.gmra.mrb[12].mxu1 %v6322_v21 }
 0x1ce   : > { %4633 = vmatmul.mubr.bf16.gmra.mrb[12].mxu0 %v6323_v22  ;;  %5445 = vmatpush1.bf16.msra.mxu1 %v6324_v23 }
 0x1cf   : > { %4684 = vmatpush1.bf16.msra.mxu0 %v6324_v23  ;;  %5430 = vmatprep.subr.bf16.mxu1 %v6329_v24 }
 0x1d0   : > { %4685 = vmatprep.subr.bf16.mxu0 %v6329_v24  ;;  %4238 = vmatprep.mubr.bf16.mxu1 %v6330_v25  ;;  %v1812_v24 = vsub.s32 0, %v1811_v20 }
 0x1d1   : > { %4642 = vmatprep.mubr.bf16.mxu0 %v6332_v26  ;;  %v1808_v26 = vld [vmem:[%s1400_s16] sm:$0x3] }
 0x1d2   : > { %5446 = vmatpush1.bf16.msra.mxu1 %v6327_v27 }
 0x1d3   : > { %4686 = vmatpush1.bf16.msra.mxu0 %v6327_v27  ;;  %5431 = vmatprep.subr.bf16.mxu1 %v6338_v28  ;;  %v1816_v27 = vsub.s32 1, %v1811_v20 }
 0x1d4   : > { %4687 = vmatprep.subr.bf16.mxu0 %v6338_v28  ;;  %v7599_v28 = vrot.slane %v1808_v26, %v1812_v24 }
 0x1d5   : > { %4239 = vmatmul.mubr.bf16.gmra.mrb[16].mxu1 %v6334_v29  ;;  %v7601_v29 = vrot.slane %v1808_v26, %v1816_v27 }
 0x1d6   : > { %4643 = vmatmul.mubr.bf16.gmra.mrb[16].mxu0 %v6335_v30  ;;  %5447 = vmatpush1.bf16.msra.mxu1 %v6336_v31 }
 0x1d7   : > { %4688 = vmatpush1.bf16.msra.mxu0 %v6336_v31  ;;  %5432 = vmatprep.subr.bf16.mxu1 %v6341_v32 }
 0x1d8   : > { %4689 = vmatprep.subr.bf16.mxu0 %v6341_v32  ;;  %4248 = vmatprep.mubr.bf16.mxu1 %v6342_v33 }
 0x1d9   : > { %4652 = vmatprep.mubr.bf16.mxu0 %v6344_v34 }
 0x1da   : > { %5448 = vmatpush1.bf16.msra.mxu1 %v6339_v35 }
 0x1db   : > { %4690 = vmatpush1.bf16.msra.mxu0 %v6339_v35  ;;  %5433 = vmatprep.subr.bf16.mxu1 %v6350_v36 }
 0x1dc   : > { %4691 = vmatprep.subr.bf16.mxu0 %v6350_v36 }
 0x1dd   : > { %4249 = vmatmul.mubr.bf16.gmra.mrb[20].mxu1 %v6346_v37 }
 0x1de   : > { %4653 = vmatmul.mubr.bf16.gmra.mrb[20].mxu0 %v6347_v38  ;;  %5449 = vmatpush1.bf16.msra.mxu1 %v6348_v41 }
 0x1df   : > { %4692 = vmatpush1.bf16.msra.mxu0 %v6348_v41  ;;  %5434 = vmatprep.subr.bf16.mxu1 %v6353_v42 }
 0x1e0   : > { %4693 = vmatprep.subr.bf16.mxu0 %v6353_v42  ;;  %4258 = vmatprep.mubr.bf16.mxu1 %v5119_v43 }
 0x1e1   : > { %4662 = vmatprep.mubr.bf16.mxu0 %v5127_v44 }
 0x1e2   : > { %5450 = vmatpush1.bf16.msra.mxu1 %v6351_v45 }
 0x1e3   : > { %4694 = vmatpush1.bf16.msra.mxu0 %v6351_v45  ;;  %5435 = vmatprep.subr.bf16.mxu1 %v6360_v46 }
 0x1e4   : > { %4695 = vmatprep.subr.bf16.mxu0 %v6360_v46 }
 0x1e5   : > { %4259 = vmatmul.mubr.bf16.gmra.mrb[24].mxu1 %v5118_v47 }
 0x1e6   : > { %4663 = vmatmul.mubr.bf16.gmra.mrb[24].mxu0 %v5126_v48  ;;  %5451 = vmatpush1.bf16.msra.mxu1 %v6358_v49 }
 0x1e7   : > { %4696 = vmatpush1.bf16.msra.mxu0 %v6358_v49  ;;  %5436 = vmatprep.subr.bf16.mxu1 %v6363_v50 }
 0x1e8   : > { %4697 = vmatprep.subr.bf16.mxu0 %v6363_v50  ;;  %4703 = vmatprep.mubr.bf16.mxu0 %v6372_v51 }
 0x1e9   : > { %4743 = vmatprep.mubr.bf16.mxu1 %v6375_v52 }
 0x1ea   : > { %5452 = vmatpush1.bf16.msra.mxu1 %v6361_v53 }
 0x1eb   : > { %4698 = vmatpush1.bf16.msra.mxu0 %v6361_v53  ;;  %5437 = vmatprep.subr.bf16.mxu1 %v6366_v54 }
 0x1ec   : > { %4699 = vmatprep.subr.bf16.mxu0 %v6366_v54 }
 0x1ee   : > { %5453 = vmatpush1.bf16.msra.mxu1 %v6364_v55 }
 0x1ef   : > { %4700 = vmatpush1.bf16.msra.mxu0 %v6364_v55  ;;  %5438 = vmatprep.subr.bf16.mxu1 %v6369_v56 }
 0x1f0   : > { %4701 = vmatprep.subr.bf16.mxu0 %v6369_v56 }
 0x1f2   : > { %5454 = vmatpush1.bf16.msra.mxu1 %v6367_v57 }
 0x1f3   : > { %4702 = vmatpush1.bf16.msra.mxu0 %v6367_v57 }
 0x1f5   : > { %4744 = vmatmul.mubr.bf16.vlgmr.msra.gmra.mrb[28].mxu1 %v6373_v59 }
 0x1f6   : > { %4704 = vmatmul.mubr.bf16.vlgmr.msra.gmra.mrb[0].mxu0 %v6370_v58  ;;  %4753 = vmatprep.mubr.bf16.mxu1 %v6378_v61 }
 0x1f7   : > { %4713 = vmatprep.mubr.bf16.mxu0 %v6376_v60 }
 0x1fd   : > { %4754 = vmatmul.mubr.bf16.gmra.mrb[32].mxu1 %v6381_v0 }
 0x1fe   : > { %4714 = vmatmul.mubr.bf16.gmra.mrb[4].mxu0 %v6380_v63  ;;  %4763 = vmatprep.mubr.bf16.mxu1 %v5129_v2 }
 0x1ff   : > { %4723 = vmatprep.mubr.bf16.mxu0 %v6382_v1 }
 0x205   : > { %4764 = vmatmul.mubr.bf16.gmra.mrb[36].mxu1 %v5128_v4 }
 0x206   : > { %4724 = vmatmul.mubr.bf16.gmra.mrb[8].mxu0 %v6385_v3 }
 0x207   : > { %4733 = vmatprep.mubr.bf16.mxu0 %v6387_v5 }
 0x20e   : > { %4734 = vmatmul.mubr.bf16.gmra.mrb[12].mxu0 %v6389_v6 }
 0x288   : > { %v7559_v7 = vpop.f32.mrb[0].mxu1 }
 0x289   : > { %v7561_v8 = vpop.f32.mrb[1].mxu1  ;;  %v5455_v26 = vadd.f32 %v7559_v7, %v7599_v28 }
 0x28a   : > { %v7563_v9 = vpop.f32.mrb[2].mxu1  ;;  %v5457_v27 = vadd.f32 %v7561_v8, %v7601_v29 }
 0x28b   : > { %v7565_v10 = vpop.f32.mrb[3].mxu1 }
 0x290   : > { %v7567_v11 = vpop.f32.mrb[4].mxu1 }
 0x291   : > { %v7569_v12 = vpop.f32.mrb[5].mxu1 }
 0x292   : > { %v7571_v13 = vpop.f32.mrb[6].mxu1 }
 0x293   : > { %v7573_v14 = vpop.f32.mrb[7].mxu1 }
 0x298   : > { %v7578_v15 = vpop.f32.mrb[8].mxu1 }
 0x299   : > { %v7581_v16 = vpop.f32.mrb[9].mxu1 }
 0x29a   : > { %v7583_v17 = vpop.f32.mrb[10].mxu1 }
 0x29b   : > { %v7585_v19 = vpop.f32.mrb[11].mxu1 }
 0x2a0   : > { %v7588_v21 = vpop.f32.mrb[12].mxu1 }
 0x2a1   : > { %v7593_v22 = vpop.f32.mrb[13].mxu1 }
 0x2a2   : > { %v7595_v23 = vpop.f32.mrb[14].mxu1 }
 0x2a3   : > { %v7597_v25 = vpop.f32.mrb[15].mxu1 }
 0x2a8   : > { %v4240_v30 = vpop.f32.mrb[16].mxu1 }
 0x2a9   : > { %v4644_v31 = vpop.f32.mrb[16].mxu0  ;;  %v5487_v32 = vadd.f32 %v4240_v30, %v7599_v28  ;;  %v4242_v33 = vpop.f32.mrb[17].mxu1 }
 0x2aa   : > { %v4646_v34 = vpop.f32.mrb[17].mxu0  ;;  %v5490_v35 = vadd.f32 %v4242_v33, %v7601_v29  ;;  %v4244_v36 = vpop.f32.mrb[18].mxu1 }
 0x2ab   : > { %v4648_v37 = vpop.f32.mrb[18].mxu0  ;;  %v5488_v38 = vadd.f32 %v5487_v32, %v4644_v31  ;;  %v5493_v39 = vadd.f32 %v4244_v36, %v7599_v28  ;;  %v4246_v40 = vpop.f32.mrb[19].mxu1  ;;  %v5459_v32 = vadd.f32 %v7563_v9, %v7599_v28 }
 0x2ac   : > { %v4650_v41 = vpop.f32.mrb[19].mxu0  ;;  %v5491_v42 = vadd.f32 %v5490_v35, %v4646_v34  ;;  %v5496_v43 = vadd.f32 %v4246_v40, %v7601_v29 }
 0x2ad   : > { %v5494_v44 = vadd.f32 %v5493_v39, %v4648_v37  ;;  %v5461_v37 = vadd.f32 %v7565_v10, %v7601_v29 }
 0x2ae   : > { %v5497_v45 = vadd.f32 %v5496_v43, %v4650_v41 }
 0x2b0   : > { %v4250_v46 = vpop.f32.mrb[20].mxu1 }
 0x2b1   : > { %v4654_v47 = vpop.f32.mrb[20].mxu0  ;;  %v5499_v48 = vadd.f32 %v4250_v46, %v7599_v28  ;;  %v4252_v49 = vpop.f32.mrb[21].mxu1 }
 0x2b2   : > { %v4656_v50 = vpop.f32.mrb[21].mxu0  ;;  %v5502_v51 = vadd.f32 %v4252_v49, %v7601_v29  ;;  %v4254_v52 = vpop.f32.mrb[22].mxu1 }
 0x2b3   : > { %v4658_v53 = vpop.f32.mrb[22].mxu0  ;;  %v7609_v54 = vadd.f32 %v5499_v48, %v4654_v47  ;;  %v5505_v55 = vadd.f32 %v4254_v52, %v7599_v28  ;;  %v4256_v56 = vpop.f32.mrb[23].mxu1 }
 0x2b4   : > { %v4660_v57 = vpop.f32.mrb[23].mxu0  ;;  %v7612_v58 = vadd.f32 %v5502_v51, %v4656_v50  ;;  %v5508_v59 = vadd.f32 %v4256_v56, %v7601_v29 }
 0x2b5   : > { %v7615_v60 = vadd.f32 %v5505_v55, %v4658_v53  ;;  %v5465_v53 = vadd.f32 %v7569_v12, %v7601_v29 }
 0x2b6   : > { %v7617_v61 = vadd.f32 %v5508_v59, %v4660_v57  ;;  %v5467_v57 = vadd.f32 %v7571_v13, %v7599_v28 }
 0x2b8   : > { %v4260_v62 = vpop.f32.mrb[24].mxu1 }
 0x2b9   : > { %v4664_v63 = vpop.f32.mrb[24].mxu0  ;;  %v5511_v0 = vadd.f32 %v4260_v62, %v7599_v28  ;;  %v4262_v1 = vpop.f32.mrb[25].mxu1 }
 0x2ba   : > { %v4666_v2 = vpop.f32.mrb[25].mxu0  ;;  %v5514_v3 = vadd.f32 %v4262_v1, %v7601_v29  ;;  %v4264_v4 = vpop.f32.mrb[26].mxu1 }
 0x2bb   : > { %v4668_v5 = vpop.f32.mrb[26].mxu0  ;;  %v7621_v6 = vadd.f32 %v5511_v0, %v4664_v63  ;;  %v4265_v18 = vpop.f32.mrb[27].mxu1 }
 0x2bc   : > { %v4669_v20 = vpop.f32.mrb[27].mxu0  ;;  %v7623_v24 = vadd.f32 %v5514_v3, %v4666_v2 }
 0x2c8   : > { %v4745_v31 = vpop.f32.mrb[28].mxu1 }
 0x2c9   : > { %v4705_v30 = vpop.f32.mrb[0].mxu0  ;;  %v5489_v34 = vadd.f32 %v5488_v38, %v4745_v31  ;;  %v4747_v36 = vpop.f32.mrb[29].mxu1 }
 0x2ca   : > { %v5456_v33 = vadd.f32 %v5455_v26, %v4705_v30  ;;  %v4707_v35 = vpop.f32.mrb[1].mxu0  ;;  %v5492_v40 = vadd.f32 %v5491_v42, %v4747_v36  ;;  %v4749_v43 = vpop.f32.mrb[30].mxu1  ;;  %v5475_v36 = vadd.f32 %v7583_v17, %v7599_v28 }
 0x2cb   : > { %v5458_v39 = vadd.f32 %v5457_v27, %v4707_v35  ;;  %v4709_v41 = vpop.f32.mrb[2].mxu0  ;;  %v4788_v46 = vmax.f32 %v5489_v34, 0.0  ;;  %v5495_v8 = vadd.f32 %v5494_v44, %v4749_v43  ;;  %v4751_v49 = vpop.f32.mrb[31].mxu1  ;;  %v5473_v34 = vadd.f32 %v7581_v16, %v7601_v29 }
 0x2cc   : > { %v4772_v7 = vmax.f32 %v5456_v33, 0.0  ;;  %v5460_v47 = vadd.f32 %v5459_v32, %v4709_v41  ;;  %v4711_v48 = vpop.f32.mrb[3].mxu0  ;;  %v4789_v51 = vmax.f32 %v5492_v40, 0.0  ;;  %v5498_v52 = vadd.f32 %v5497_v45, %v4751_v49 }
 0x2cd   : > { %v4773_v50 = vmax.f32 %v5458_v39, 0.0  ;;  %v5462_v9 = vadd.f32 %v5461_v37, %v4711_v48  ;;  %4814 = vst [vmem:[%s7634_s12 + $0x80] sm:$0xff] %v4788_v46  ;;  %v4790_v38 = vmax.f32 %v5495_v8, 0.0  ;;  %v5463_v45 = vadd.f32 %v7567_v11, %v7599_v28 }
 0x2ce   : > { %4798 = vst [vmem:[%s7634_s12] sm:$0xff] %v4772_v7  ;;  %v4774_v10 = vmax.f32 %v5460_v47, 0.0  ;;  %4815 = vst [vmem:[%s7634_s12 + $0x88] sm:$0xff] %v4789_v51  ;;  %v4791_v44 = vmax.f32 %v5498_v52, 0.0  ;;  %v5469_v11 = vadd.f32 %v7573_v14, %v7601_v29  ;;  %v5481_v52 = vadd.f32 %v7593_v22, %v7601_v29 }
 0x2cf   : > { %4799 = vst [vmem:[%s7634_s12 + $0x8] sm:$0xff] %v4773_v50  ;;  %v4775_v42 = vmax.f32 %v5462_v9, 0.0  ;;  %4816 = vst [vmem:[%s7634_s12 + $0x90] sm:$0xff] %v4790_v38  ;;  %v5483_v38 = vadd.f32 %v7595_v23, %v7599_v28 }
 0x2d0   : > { %4800 = vst [vmem:[%s7634_s12 + $0x10] sm:$0xff] %v4774_v10  ;;  %4817 = vst [vmem:[%s7634_s12 + $0x98] sm:$0xff] %v4791_v44  ;;  %v4755_v56 = vpop.f32.mrb[32].mxu1 }
 0x2d1   : > { %4801 = vst [vmem:[%s7634_s12 + $0x18] sm:$0xff] %v4775_v42  ;;  %v4715_v55 = vpop.f32.mrb[4].mxu0  ;;  %v5501_v62 = vadd.f32 %v7609_v54, %v4755_v56  ;;  %v4757_v0 = vpop.f32.mrb[33].mxu1 }
 0x2d2   : > { %v5464_v59 = vadd.f32 %v5463_v45, %v4715_v55  ;;  %v4717_v63 = vpop.f32.mrb[5].mxu0  ;;  %v5504_v12 = vadd.f32 %v7612_v58, %v4757_v0  ;;  %v4759_v3 = vpop.f32.mrb[34].mxu1  ;;  %v5485_v45 = vadd.f32 %v7597_v25, %v7601_v29 }
 0x2d3   : > { %v5466_v1 = vadd.f32 %v5465_v53, %v4717_v63  ;;  %v4719_v2 = vpop.f32.mrb[6].mxu0  ;;  %v4792_v5 = vmax.f32 %v5501_v62, 0.0  ;;  %v5507_v18 = vadd.f32 %v7615_v60, %v4759_v3  ;;  %v4761_v20 = vpop.f32.mrb[35].mxu1  ;;  %v5471_v60 = vadd.f32 %v7578_v15, %v7599_v28 }
 0x2d4   : > { %v4776_v4 = vmax.f32 %v5464_v59, 0.0  ;;  %v5468_v13 = vadd.f32 %v5467_v57, %v4719_v2  ;;  %v4721_v54 = vpop.f32.mrb[7].mxu0  ;;  %v4793_v14 = vmax.f32 %v5504_v12, 0.0  ;;  %v5510_v58 = vadd.f32 %v7617_v61, %v4761_v20 }
 0x2d5   : > { %v4777_v26 = vmax.f32 %v5466_v1, 0.0  ;;  %v5470_v27 = vadd.f32 %v5469_v11, %v4721_v54  ;;  %4818 = vst [vmem:[%s7634_s12 + $0xa0] sm:$0xff] %v4792_v5  ;;  %v4794_v31 = vmax.f32 %v5507_v18, 0.0  ;;  %v5477_v15 = vadd.f32 %v7585_v19, %v7601_v29  ;;  %v4848_v23 = vld [vmem:[%s7634_s12] sm:$0xff] (%p6549_p9) }
 0x2d6   : > { %4802 = vst [vmem:[%s7634_s12 + $0x20] sm:$0xff] %v4776_v4  ;;  %v4778_v30 = vmax.f32 %v5468_v13, 0.0  ;;  %4819 = vst [vmem:[%s7634_s12 + $0xa8] sm:$0xff] %v4793_v14  ;;  %v4795_v33 = vmax.f32 %v5510_v58, 0.0  ;;  %v4850_v25 = vld [vmem:[%s7634_s12 + $0x8] sm:$0xff] (%p6549_p9) }
 0x2d7   : > { %4803 = vst [vmem:[%s7634_s12 + $0x28] sm:$0xff] %v4777_v26  ;;  %v4779_v32 = vmax.f32 %v5470_v27, 0.0  ;;  %4820 = vst [vmem:[%s7634_s12 + $0xb0] sm:$0xff] %v4794_v31  ;;  %v4880_v26 = vld [vmem:[%s7634_s12 + $0x80] sm:$0xff] (%p6549_p9)  ;;  %v4882_v14 = vld [vmem:[%s7634_s12 + $0x88] sm:$0xff] (%p6549_p9) }
 0x2d8   : > { %4804 = vst [vmem:[%s7634_s12 + $0x30] sm:$0xff] %v4778_v30  ;;  %4821 = vst [vmem:[%s7634_s12 + $0xb8] sm:$0xff] %v4795_v33  ;;  %v4765_v61 = vpop.f32.mrb[36].mxu1  ;;  %v4854_v29 = vld [vmem:[%s7634_s12 + $0x18] sm:$0xff] (%p6549_p9)  ;;  %v4884_v27 = vld [vmem:[%s7634_s12 + $0x90] sm:$0xff] (%p6549_p9) }
 0x2d9   : > { %4805 = vst [vmem:[%s7634_s12 + $0x38] sm:$0xff] %v4779_v32  ;;  %v4725_v35 = vpop.f32.mrb[8].mxu0  ;;  %v5513_v39 = vadd.f32 %v7621_v6, %v4765_v61  ;;  %v4767_v41 = vpop.f32.mrb[37].mxu1  ;;  %4849 = vst [vmem:[%s7711_s17] sm:$0xff] (%p6549_p9), %v4848_v23  ;;  %v4886_v58 = vld [vmem:[%s7634_s12 + $0x98] sm:$0xff] (%p6549_p9) }
 0x2da   : > { %v5472_v37 = vadd.f32 %v5471_v60, %v4725_v35  ;;  %v4727_v40 = vpop.f32.mrb[9].mxu0  ;;  %v5516_v16 = vadd.f32 %v7623_v24, %v4767_v41  ;;  %v4769_v46 = vpop.f32.mrb[38].mxu1  ;;  %v5479_v24 = vadd.f32 %v7588_v21, %v7599_v28  ;;  %v4852_v28 = vld [vmem:[%s7634_s12 + $0x10] sm:$0xff] (%p6549_p9)  ;;  %4851 = vst [vmem:[%s7711_s17 + $0x8] sm:$0xff] (%p6549_p9), %v4850_v25  ;;  %4855 = vst [vmem:[%s7711_s17 + $0x28] sm:$0xff] (%p6549_p9), %v4854_v29 }
 0x2db   : > { %v5474_v43 = vadd.f32 %v5473_v34, %v4727_v40  ;;  %v4729_v7 = vpop.f32.mrb[10].mxu0  ;;  %v4796_v17 = vmax.f32 %v5513_v39, 0.0  ;;  %v4770_v48 = vpop.f32.mrb[39].mxu1  ;;  %4853 = vst [vmem:[%s7711_s17 + $0x20] sm:$0xff] (%p6549_p9), %v4852_v28  ;;  %4881 = vst [vmem:[%s7711_s17 + $0x100] sm:$0xff] (%p6549_p9), %v4880_v26 }
 0x2dc   : > { %v4780_v47 = vmax.f32 %v5472_v37, 0.0  ;;  %v5476_v8 = vadd.f32 %v5475_v36, %v4729_v7  ;;  %v4731_v6 = vpop.f32.mrb[11].mxu0  ;;  %v4797_v50 = vmax.f32 %v5516_v16, 0.0  ;;  %4883 = vst [vmem:[%s7711_s17 + $0x108] sm:$0xff] (%p6549_p9), %v4882_v14  ;;  %v4888_v30 = vld [vmem:[%s7634_s12 + $0xa0] sm:$0xff] (%p6549_p9)  ;;  %4885 = vst [vmem:[%s7711_s17 + $0x120] sm:$0xff] (%p6549_p9), %v4884_v27 }
 0x2dd   : > { %v4781_v49 = vmax.f32 %v5474_v43, 0.0  ;;  %v5478_v51 = vadd.f32 %v5477_v15, %v4731_v6  ;;  %4822 = vst [vmem:[%s7634_s12 + $0xc0] sm:$0xf] %v4796_v17  ;;  %v4856_v0 = vld [vmem:[%s7634_s12 + $0x20] sm:$0xff] (%p6549_p9)  ;;  %4887 = vst [vmem:[%s7711_s17 + $0x128] sm:$0xff] (%p6549_p9), %v4886_v58  ;;  %v4890_v31 = vld [vmem:[%s7634_s12 + $0xa8] sm:$0xff] (%p6549_p9) }
 0x2de   : > { %4806 = vst [vmem:[%s7634_s12 + $0x40] sm:$0xff] %v4780_v47  ;;  %v4782_v19 = vmax.f32 %v5476_v8, 0.0  ;;  %4823 = vst [vmem:[%s7634_s12 + $0xc8] sm:$0xf] %v4797_v50  ;;  %v4858_v11 = vld [vmem:[%s7634_s12 + $0x28] sm:$0xff] (%p6549_p9)  ;;  %v4892_v32 = vld [vmem:[%s7634_s12 + $0xb0] sm:$0xff] (%p6549_p9) }
 0x2df   : > { %4807 = vst [vmem:[%s7634_s12 + $0x48] sm:$0xff] %v4781_v49  ;;  %v4783_v9 = vmax.f32 %v5478_v51, 0.0  ;;  %v4860_v1 = vld [vmem:[%s7634_s12 + $0x30] sm:$0xff] (%p6549_p9)  ;;  %4857 = vst [vmem:[%s7711_s17 + $0x40] sm:$0xff] (%p6549_p9), %v4856_v0  ;;  %v4894_v33 = vld [vmem:[%s7634_s12 + $0xb8] sm:$0xff] (%p6549_p9) }
 0x2e0   : > { %4808 = vst [vmem:[%s7634_s12 + $0x50] sm:$0xff] %v4782_v19  ;;  %v4862_v12 = vld [vmem:[%s7634_s12 + $0x38] sm:$0xff] (%p6549_p9)  ;;  %4859 = vst [vmem:[%s7711_s17 + $0x48] sm:$0xff] (%p6549_p9), %v4858_v11 }
 0x2e1   : > { %4809 = vst [vmem:[%s7634_s12 + $0x58] sm:$0xff] %v4783_v9  ;;  %v4735_v10 = vpop.f32.mrb[12].mxu0  ;;  %4861 = vst [vmem:[%s7711_s17 + $0x60] sm:$0xff] (%p6549_p9), %v4860_v1 }
 0x2e2   : > { %v5480_v42 = vadd.f32 %v5479_v24, %v4735_v10  ;;  %v4737_v44 = vpop.f32.mrb[13].mxu0  ;;  %4863 = vst [vmem:[%s7711_s17 + $0x68] sm:$0xff] (%p6549_p9), %v4862_v12  ;;  %4889 = vst [vmem:[%s7711_s17 + $0x140] sm:$0xff] (%p6549_p9), %v4888_v30 }
 0x2e3   : > { %v5482_v53 = vadd.f32 %v5481_v52, %v4737_v44  ;;  %v4739_v21 = vpop.f32.mrb[14].mxu0  ;;  %4830 = sbr.rel (!%p6549_p9) target bundleno = 754 (0x2f2), region = 74  ;;  %4891 = vst [vmem:[%s7711_s17 + $0x148] sm:$0xff] (%p6549_p9), %v4890_v31  ;;  %4893 = vst [vmem:[%s7711_s17 + $0x160] sm:$0xff] (%p6549_p9), %v4892_v32 }
 0x2e4   : > { %v4784_v55 = vmax.f32 %v5480_v42, 0.0  ;;  %v5484_v56 = vadd.f32 %v5483_v38, %v4739_v21  ;;  %v4741_v57 = vpop.f32.mrb[15].mxu0  ;;  %4895 = vst [vmem:[%s7711_s17 + $0x168] sm:$0xff] (%p6549_p9), %v4894_v33  ;;  %v4896_v60 = vld [vmem:[%s7634_s12 + $0xc0] sm:$0xff] (%p6549_p9) }
 0x2e5   : > { %v4785_v59 = vmax.f32 %v5482_v53, 0.0  ;;  %v5486_v22 = vadd.f32 %v5485_v45, %v4741_v57  ;;  %v4864_v2 = vld [vmem:[%s7634_s12 + $0x40] sm:$0xff] (%p6549_p9)  ;;  %v4898_v34 = vld [vmem:[%s7634_s12 + $0xc8] sm:$0xff] (%p6549_p9)  ;;  %4897 = vst [vmem:[%s7711_s17 + $0x180] sm:$0xff] (%p6549_p9), %v4896_v60 }
 0x2e6   : > { %4810 = vst [vmem:[%s7634_s12 + $0x60] sm:$0xff] %v4784_v55  ;;  %v4786_v62 = vmax.f32 %v5484_v56, 0.0  ;;  %v4866_v3 = vld [vmem:[%s7634_s12 + $0x48] sm:$0xff] (%p6549_p9)  ;;  %4865 = vst [vmem:[%s7711_s17 + $0x80] sm:$0xff] (%p6549_p9), %v4864_v2 }
 0x2e7   : > { %4811 = vst [vmem:[%s7634_s12 + $0x68] sm:$0xff] %v4785_v59  ;;  %v4787_v63 = vmax.f32 %v5486_v22, 0.0  ;;  %v4868_v4 = vld [vmem:[%s7634_s12 + $0x50] sm:$0xff] (%p6549_p9)  ;;  %4867 = vst [vmem:[%s7711_s17 + $0x88] sm:$0xff] (%p6549_p9), %v4866_v3 }
 0x2e8   : > { %4812 = vst [vmem:[%s7634_s12 + $0x70] sm:$0xff] %v4786_v62  ;;  %v4870_v5 = vld [vmem:[%s7634_s12 + $0x58] sm:$0xff] (%p6549_p9)  ;;  %4869 = vst [vmem:[%s7711_s17 + $0xa0] sm:$0xff] (%p6549_p9), %v4868_v4 }
 0x2e9   : > { %4813 = vst [vmem:[%s7634_s12 + $0x78] sm:$0xff] %v4787_v63  ;;  %4871 = vst [vmem:[%s7711_s17 + $0xa8] sm:$0xff] (%p6549_p9), %v4870_v5 }
 0x2ea   : > { %4899 = vst [vmem:[%s7711_s17 + $0x188] sm:$0xff] %v4898_v34 }
 0x2ed   : > { %v4872_v13 = vld [vmem:[%s7634_s12 + $0x60] sm:$0xff] }
 0x2ee   : > { %v4874_v18 = vld [vmem:[%s7634_s12 + $0x68] sm:$0xff]  ;;  %4873 = vst [vmem:[%s7711_s17 + $0xc0] sm:$0xff] %v4872_v13 }
 0x2ef   : > { %v4876_v54 = vld [vmem:[%s7634_s12 + $0x70] sm:$0xff]  ;;  %4875 = vst [vmem:[%s7711_s17 + $0xc8] sm:$0xff] %v4874_v18 }
 0x2f0   : > { %4877 = vst [vmem:[%s7711_s17 + $0xe0] sm:$0xff] %v4876_v54  ;;  %v4878_v20 = vld [vmem:[%s7634_s12 + $0x78] sm:$0xff] }
 0x2f1   : > { %4879 = vst [vmem:[%s7711_s17 + $0xe8] sm:$0xff] %v4878_v20 }
 0x2f2 PF: > { %s13_s20 = sadd.s32 1, %s6460_s20   ;;  %s7785_s12 = smov %s6432_s13 }
 0x2f3   : > { %p10_p2 = scmp.ge.s32.totalorder %s13_s20, 6   ;;  %s7786_s13 = smov %s6554_s4 }
 0x2f4   : > { %s7787_s14 = smov %s6440_s15  ;;  %s7788_s15 = smov %s6543_s27 }
 0x2f5   : > { %s7789_s16 = smov %s6452_s18  ;;  %s7790_s17 = smov %s6456_s19 }
 0x2f6   : > { %s7791_s18 = smov %s7794_s22  ;;  %s7792_s19 = smov %s7798_s23 }
 0x2f7   :  { %12 = sbr.rel (!%p10_p2) target bundleno = 5 (0x5), region = 134 }

// kernel: aux_convs_forward.11
= control target key start
LH: loop header
LB: loop body
LE: loop exit
PB: predicated region body
PF: predicated region fallthrough
CT: control target
= control target key end

     0   :  { %s2157_s12 = smov 0   ;;  %s2159_s13 = smov 0   ;;  %s2653_s0 = inlined_call_operand.vmem [shape: bf16[2,25,1152], index: 0, kind: input, shape index: {}]   ;;  %s2654_s1 = inlined_call_operand.vmem [shape: bf16[1152,256], index: 1, kind: input, shape index: {}]   ;;  %s2655_s2 = inlined_call_operand.vmem [shape: f32[1,256], index: 2, kind: input, shape index: {}]   ;;  %s2656_s3 = inlined_call_operand.vmem [shape: f32[2,25,256], index: 3, kind: output, shape index: {}]  }
   0x1   :  { %s2161_s14 = smov 0  }
   0x2 LB: > { %s25_s15 = sadd.s32 1, %s2130_s13  ;;  %p1619_p0 = scmp.ge.s32.totalorder %s2134_s14, 1  ;;  %s2134_s14 = sphi %s2161_s14, %s13_s14   ;;  %s2130_s13 = sphi %s2159_s13, %s2658_s13   ;;  %s2126_s12 = sphi %s2157_s12, %s2657_s12  }
   0x3   : > { %p27_p1 = scmp.ge.s32.totalorder %s25_s15, 2  ;;  %p172_p2 = scmp.lt.s32.totalorder %s2134_s14, 3 }
   0x5   : > { %s2660_s15 = smov (%p27_p1, %s25_s15), 0  ;;  %p173_p3 = pnand %p1619_p0, %p172_p2 }
   0x6   : > { %v1870_v0 = vld [vmem:[%s2654_s1 + $0x4] ss:$8 sps:$4 sm:$0xff] (!%p173_p3)   ;;  %v1874_v2 = vld [vmem:[%s2654_s1] ss:$8 sps:$4 sm:$0xff] (!%p173_p3)   ;;  %v1876_v4 = vld [vmem:[%s2654_s1 + $0x14] ss:$8 sps:$4 sm:$0xff] (!%p173_p3)  }
   0x7   : > { %176 = sbr.rel (%p173_p3) target bundleno = 388 (0x184), region = 32  ;;  %v1872_v1 = vld [vmem:[%s2654_s1 + $0x204] ss:$8 sps:$4 sm:$0xff] (!%p173_p3)   ;;  %1224 = vmatprep.subr.bf16.mxu1 (!%p173_p3), %v1870_v0  ;;  %v1875_v3 = vld [vmem:[%s2654_s1 + $0x200] ss:$8 sps:$4 sm:$0xff] (!%p173_p3)   ;;  %p209_p4 = scmp.lt.s32.totalorder (!%p173_p3), %s2126_s12, 1 }
   0x8   : > { %1330 = vmatprep.subr.bf16.mxu0 (!%p173_p3), %v1872_v1  ;;  %1225 = vmatpush1.bf16.msra.mxu1 (!%p173_p3), %v1874_v2  ;;  %v1878_v5 = vld [vmem:[%s2654_s1 + $0x214] ss:$8 sps:$4 sm:$0xff] (!%p173_p3)   ;;  %v1880_v6 = vld [vmem:[%s2654_s1 + $0x10] ss:$8 sps:$4 sm:$0xff] (!%p173_p3)   ;;  %v1882_v8 = vld [vmem:[%s2654_s1 + $0x24] ss:$8 sps:$4 sm:$0xff] (!%p173_p3)  }
   0x9   : > { %1331 = vmatpush1.bf16.msra.mxu0 (!%p173_p3), %v1875_v3  ;;  %1226 = vmatprep.subr.bf16.mxu1 (!%p173_p3), %v1876_v4  ;;  %v1881_v7 = vld [vmem:[%s2654_s1 + $0x210] ss:$8 sps:$4 sm:$0xff] (!%p173_p3)   ;;  %v1884_v9 = vld [vmem:[%s2654_s1 + $0x224] ss:$8 sps:$4 sm:$0xff] (!%p173_p3)   ;;  %v1886_v10 = vld [vmem:[%s2654_s1 + $0x20] ss:$8 sps:$4 sm:$0xff] (!%p173_p3)  }
   0xa   : > { %1332 = vmatprep.subr.bf16.mxu0 (!%p173_p3), %v1878_v5  ;;  %v1887_v11 = vld [vmem:[%s2654_s1 + $0x220] ss:$8 sps:$4 sm:$0xff] (!%p173_p3)   ;;  %v1888_v12 = vld [vmem:[%s2654_s1 + $0x34] ss:$8 sps:$4 sm:$0xff] (!%p173_p3)   ;;  %v1892_v14 = vld [vmem:[%s2654_s1 + $0x30] ss:$8 sps:$4 sm:$0xff] (!%p173_p3)  }
   0xb   : > { %v1890_v13 = vld [vmem:[%s2654_s1 + $0x234] ss:$8 sps:$4 sm:$0xff] (!%p173_p3)   ;;  %v1893_v15 = vld [vmem:[%s2654_s1 + $0x230] ss:$8 sps:$4 sm:$0xff] (!%p173_p3)   ;;  %v1894_v16 = vld [vmem:[%s2654_s1 + $0x44] ss:$8 sps:$4 sm:$0xff] (!%p173_p3)  }
   0xc   : > { %1227 = vmatpush1.bf16.msra.mxu1 (!%p173_p3), %v1880_v6  ;;  %v1896_v17 = vld [vmem:[%s2654_s1 + $0x244] ss:$8 sps:$4 sm:$0xff] (!%p173_p3)   ;;  %v1898_v18 = vld [vmem:[%s2654_s1 + $0x40] ss:$8 sps:$4 sm:$0xff] (!%p173_p3)   ;;  %v1900_v20 = vld [vmem:[%s2654_s1 + $0x54] ss:$8 sps:$4 sm:$0xff] (!%p173_p3)  }
   0xd   : > { %1333 = vmatpush1.bf16.msra.mxu0 (!%p173_p3), %v1881_v7  ;;  %1228 = vmatprep.subr.bf16.mxu1 (!%p173_p3), %v1882_v8  ;;  %v1899_v19 = vld [vmem:[%s2654_s1 + $0x240] ss:$8 sps:$4 sm:$0xff] (!%p173_p3)   ;;  %v1902_v21 = vld [vmem:[%s2654_s1 + $0x254] ss:$8 sps:$4 sm:$0xff] (!%p173_p3)   ;;  %v1904_v22 = vld [vmem:[%s2654_s1 + $0x50] ss:$8 sps:$4 sm:$0xff] (!%p173_p3)  }
   0xe   : > { %1334 = vmatprep.subr.bf16.mxu0 %v1884_v9  ;;  %v1905_v23 = vld [vmem:[%s2654_s1 + $0x250] ss:$8 sps:$4 sm:$0xff]   ;;  %v1906_v24 = vld [vmem:[%s2654_s1 + $0x64] ss:$8 sps:$4 sm:$0xff]   ;;  %v1910_v26 = vld [vmem:[%s2654_s1 + $0x60] ss:$8 sps:$4 sm:$0xff]  }
   0xf   : > { %v1908_v25 = vld [vmem:[%s2654_s1 + $0x264] ss:$8 sps:$4 sm:$0xff]   ;;  %v1911_v27 = vld [vmem:[%s2654_s1 + $0x260] ss:$8 sps:$4 sm:$0xff]   ;;  %v1912_v28 = vld [vmem:[%s2654_s1 + $0x74] ss:$8 sps:$4 sm:$0xff]  }
  0x10   : > { %1229 = vmatpush1.bf16.msra.mxu1 %v1886_v10  ;;  %v1914_v29 = vld [vmem:[%s2654_s1 + $0x274] ss:$8 sps:$4 sm:$0xff]   ;;  %v1916_v30 = vld [vmem:[%s2654_s1 + $0x70] ss:$8 sps:$4 sm:$0xff]   ;;  %v1918_v32 = vld [vmem:[%s2654_s1 + $0x84] ss:$8 sps:$4 sm:$0xff]  }
  0x11   : > { %1335 = vmatpush1.bf16.msra.mxu0 %v1887_v11  ;;  %1230 = vmatprep.subr.bf16.mxu1 %v1888_v12  ;;  %v1917_v31 = vld [vmem:[%s2654_s1 + $0x270] ss:$8 sps:$4 sm:$0xff]   ;;  %v1920_v33 = vld [vmem:[%s2654_s1 + $0x284] ss:$8 sps:$4 sm:$0xff]   ;;  %v1922_v34 = vld [vmem:[%s2654_s1 + $0x80] ss:$8 sps:$4 sm:$0xff]  }
  0x12   : > { %1336 = vmatprep.subr.bf16.mxu0 %v1890_v13  ;;  %v1923_v35 = vld [vmem:[%s2654_s1 + $0x280] ss:$8 sps:$4 sm:$0xff]   ;;  %v1924_v36 = vld [vmem:[%s2654_s1 + $0x94] ss:$8 sps:$4 sm:$0xff]   ;;  %s2662_s12 = smov (!%p209_p4, %s2126_s12), 1 }
  0x13   : > { %v1926_v37 = vld [vmem:[%s2654_s1 + $0x294] ss:$8 sps:$4 sm:$0xff]   ;;  %v1928_v38 = vld [vmem:[%s2654_s1 + $0x90] ss:$8 sps:$4 sm:$0xff]   ;;  %v1930_v40 = vld [vmem:[%s2654_s1 + $0xa4] ss:$8 sps:$4 sm:$0xff]  }
  0x14   : > { %1231 = vmatpush1.bf16.msra.mxu1 %v1892_v14  ;;  %v1929_v39 = vld [vmem:[%s2654_s1 + $0x290] ss:$8 sps:$4 sm:$0xff]   ;;  %s1844_s29 = smul.u32 144, %s2662_s12  ;;  %v1932_v41 = vld [vmem:[%s2654_s1 + $0x2a4] ss:$8 sps:$4 sm:$0xff]  }
  0x15   : > { %1337 = vmatpush1.bf16.msra.mxu0 %v1893_v15  ;;  %1232 = vmatprep.subr.bf16.mxu1 %v1894_v16  ;;  %v1934_v42 = vld [vmem:[%s2654_s1 + $0xa0] ss:$8 sps:$4 sm:$0xff]   ;;  %v1936_v44 = vld [vmem:[%s2654_s1 + $0xb4] ss:$8 sps:$4 sm:$0xff]   ;;  %v1940_v46 = vld [vmem:[%s2654_s1 + $0xb0] ss:$8 sps:$4 sm:$0xff]  }
  0x16   : > { %1338 = vmatprep.subr.bf16.mxu0 %v1896_v17  ;;  %v1935_v43 = vld [vmem:[%s2654_s1 + $0x2a0] ss:$8 sps:$4 sm:$0xff]   ;;  %s2320_s17 = scalar_lea.vmem %s2653_s0, %s1844_s29  ;;  %v1938_v45 = vld [vmem:[%s2654_s1 + $0x2b4] ss:$8 sps:$4 sm:$0xff]   ;;  %v1941_v47 = vld [vmem:[%s2654_s1 + $0x2b0] ss:$8 sps:$4 sm:$0xff]  }
  0x17   : > { %v1968_v48 = vld [vmem:[%s2320_s17 + $0x4] ss:$36 sps:$4 sm:$0xff]   ;;  %v1974_v51 = vld [vmem:[%s2320_s17 + $0x14] ss:$36 sps:$4 sm:$0xff]  }
  0x18   : > { %1233 = vmatpush1.bf16.msra.mxu1 %v1898_v18  ;;  %v1942_v49 = vld [vmem:[%s2654_s1 + $0xc4] ss:$8 sps:$4 sm:$0xff]   ;;  %1256 = vmatprep.mubr.bf16.mxu1 %v1968_v48  ;;  %v1946_v52 = vld [vmem:[%s2654_s1 + $0xc0] ss:$8 sps:$4 sm:$0xff]   ;;  %v1948_v54 = vld [vmem:[%s2654_s1 + $0xd4] ss:$8 sps:$4 sm:$0xff]  }
  0x19   : > { %1339 = vmatpush1.bf16.msra.mxu0 %v1899_v19  ;;  %1234 = vmatprep.subr.bf16.mxu1 %v1900_v20  ;;  %v1944_v50 = vld [vmem:[%s2654_s1 + $0x2c4] ss:$8 sps:$4 sm:$0xff]   ;;  %v1947_v53 = vld [vmem:[%s2654_s1 + $0x2c0] ss:$8 sps:$4 sm:$0xff]   ;;  %v1950_v55 = vld [vmem:[%s2654_s1 + $0x2d4] ss:$8 sps:$4 sm:$0xff]  }
  0x1a   : > { %1340 = vmatprep.subr.bf16.mxu0 %v1902_v21  ;;  %1362 = vmatprep.mubr.bf16.mxu0 %v1974_v51  ;;  %v1952_v56 = vld [vmem:[%s2654_s1 + $0xd0] ss:$8 sps:$4 sm:$0xff]   ;;  %v1954_v58 = vld [vmem:[%s2654_s1 + $0xe4] ss:$8 sps:$4 sm:$0xff]   ;;  %v1958_v60 = vld [vmem:[%s2654_s1 + $0xe0] ss:$8 sps:$4 sm:$0xff]  }
  0x1b   : > { %v1953_v57 = vld [vmem:[%s2654_s1 + $0x2d0] ss:$8 sps:$4 sm:$0xff]   ;;  %v1956_v59 = vld [vmem:[%s2654_s1 + $0x2e4] ss:$8 sps:$4 sm:$0xff]   ;;  %v1959_v61 = vld [vmem:[%s2654_s1 + $0x2e0] ss:$8 sps:$4 sm:$0xff]  }
  0x1c   : > { %1235 = vmatpush1.bf16.msra.mxu1 %v1904_v22  ;;  %v1960_v62 = vld [vmem:[%s2654_s1 + $0xf4] ss:$8 sps:$4 sm:$0xff]   ;;  %v1964_v0 = vld [vmem:[%s2654_s1 + $0xf0] ss:$8 sps:$4 sm:$0xff]   ;;  %v1971_v2 = vld [vmem:[%s2654_s1 + $0x104] ss:$8 sps:$4 sm:$0xff]  }
  0x1d   : > { %1341 = vmatpush1.bf16.msra.mxu0 %v1905_v23  ;;  %1236 = vmatprep.subr.bf16.mxu1 %v1906_v24  ;;  %v1962_v63 = vld [vmem:[%s2654_s1 + $0x2f4] ss:$8 sps:$4 sm:$0xff]   ;;  %v1965_v1 = vld [vmem:[%s2654_s1 + $0x2f0] ss:$8 sps:$4 sm:$0xff]   ;;  %v1977_v3 = vld [vmem:[%s2654_s1 + $0x304] ss:$8 sps:$4 sm:$0xff]  }
  0x1e   : > { %1342 = vmatprep.subr.bf16.mxu0 %v1908_v25  ;;  %v1966_v4 = vld [vmem:[%s2320_s17] ss:$36 sps:$4 sm:$0xff]   ;;  %v1972_v6 = vld [vmem:[%s2320_s17 + $0x10] ss:$36 sps:$4 sm:$0xff]  }
  0x1f   : > { %v1969_v5 = vld [vmem:[%s2654_s1 + $0x100] ss:$8 sps:$4 sm:$0xff]   ;;  %v1980_v8 = vld [vmem:[%s2654_s1 + $0x114] ss:$8 sps:$4 sm:$0xff]   ;;  %v1978_v10 = vld [vmem:[%s2654_s1 + $0x110] ss:$8 sps:$4 sm:$0xff]  }
  0x20   : > { %1237 = vmatpush1.bf16.msra.mxu1 %v1910_v26  ;;  %v1975_v7 = vld [vmem:[%s2654_s1 + $0x300] ss:$8 sps:$4 sm:$0xff]   ;;  %v1983_v9 = vld [vmem:[%s2654_s1 + $0x314] ss:$8 sps:$4 sm:$0xff]   ;;  %v1981_v11 = vld [vmem:[%s2654_s1 + $0x310] ss:$8 sps:$4 sm:$0xff]  }
  0x21   : > { %1343 = vmatpush1.bf16.msra.mxu0 %v1911_v27  ;;  %1238 = vmatprep.subr.bf16.mxu1 %v1912_v28  ;;  %v1986_v12 = vld [vmem:[%s2654_s1 + $0x124] ss:$8 sps:$4 sm:$0xff]   ;;  %v1984_v14 = vld [vmem:[%s2654_s1 + $0x120] ss:$8 sps:$4 sm:$0xff]   ;;  %v1992_v16 = vld [vmem:[%s2654_s1 + $0x134] ss:$8 sps:$4 sm:$0xff]  }
  0x22   : > { %1344 = vmatprep.subr.bf16.mxu0 %v1914_v29  ;;  %v1989_v13 = vld [vmem:[%s2654_s1 + $0x324] ss:$8 sps:$4 sm:$0xff]   ;;  %v1987_v15 = vld [vmem:[%s2654_s1 + $0x320] ss:$8 sps:$4 sm:$0xff]   ;;  %v1995_v17 = vld [vmem:[%s2654_s1 + $0x334] ss:$8 sps:$4 sm:$0xff]  }
  0x23   : > { %v1990_v18 = vld [vmem:[%s2654_s1 + $0x130] ss:$8 sps:$4 sm:$0xff]   ;;  %v1998_v20 = vld [vmem:[%s2654_s1 + $0x144] ss:$8 sps:$4 sm:$0xff]   ;;  %v1996_v22 = vld [vmem:[%s2654_s1 + $0x140] ss:$8 sps:$4 sm:$0xff]  }
  0x24   : > { %1239 = vmatpush1.bf16.msra.mxu1 %v1916_v30  ;;  %v1993_v19 = vld [vmem:[%s2654_s1 + $0x330] ss:$8 sps:$4 sm:$0xff]   ;;  %v2001_v21 = vld [vmem:[%s2654_s1 + $0x344] ss:$8 sps:$4 sm:$0xff]   ;;  %v1999_v23 = vld [vmem:[%s2654_s1 + $0x340] ss:$8 sps:$4 sm:$0xff]  }
  0x25   : > { %1345 = vmatpush1.bf16.msra.mxu0 %v1917_v31  ;;  %1240 = vmatprep.subr.bf16.mxu1 %v1918_v32  ;;  %v2004_v24 = vld [vmem:[%s2654_s1 + $0x154] ss:$8 sps:$4 sm:$0xff]   ;;  %v2002_v26 = vld [vmem:[%s2654_s1 + $0x150] ss:$8 sps:$4 sm:$0xff]   ;;  %v2010_v28 = vld [vmem:[%s2654_s1 + $0x164] ss:$8 sps:$4 sm:$0xff]  }
  0x26   : > { %1346 = vmatprep.subr.bf16.mxu0 %v1920_v33  ;;  %v2007_v25 = vld [vmem:[%s2654_s1 + $0x354] ss:$8 sps:$4 sm:$0xff]   ;;  %v2005_v27 = vld [vmem:[%s2654_s1 + $0x350] ss:$8 sps:$4 sm:$0xff]   ;;  %v2013_v31 = vld [vmem:[%s2654_s1 + $0x364] ss:$8 sps:$4 sm:$0xff]  }
  0x27   : > { %v2056_v29 = vld [vmem:[%s2320_s17 + $0x4c] ss:$36 sps:$4 sm:$0x1f]   ;;  %v2058_v30 = vld [vmem:[%s2320_s17 + $0x5c] ss:$36 sps:$4 sm:$0x1f]  }
  0x28   : > { %1241 = vmatpush1.bf16.msra.mxu1 %v1922_v34  ;;  %v2060_v32 = vld [vmem:[%s2320_s17 + $0x48] ss:$36 sps:$4 sm:$0x1f]   ;;  %v2064_v33 = vld [vmem:[%s2320_s17 + $0x58] ss:$36 sps:$4 sm:$0x1f]  }
  0x29   : > { %1347 = vmatpush1.bf16.msra.mxu0 %v1923_v35  ;;  %1242 = vmatprep.subr.bf16.mxu1 %v1924_v36  ;;  %v2008_v34 = vld [vmem:[%s2654_s1 + $0x160] ss:$8 sps:$4 sm:$0xff]   ;;  %v2016_v36 = vld [vmem:[%s2654_s1 + $0x174] ss:$8 sps:$4 sm:$0xff]   ;;  %v2026_v48 = vld [vmem:[%s2654_s1 + $0x190] ss:$8 sps:$4 sm:$0xff]  }
  0x2a   : > { %1348 = vmatprep.subr.bf16.mxu0 %v1926_v37  ;;  %v2011_v35 = vld [vmem:[%s2654_s1 + $0x360] ss:$8 sps:$4 sm:$0xff]   ;;  %v2019_v37 = vld [vmem:[%s2654_s1 + $0x374] ss:$8 sps:$4 sm:$0xff]   ;;  %v2037_v51 = vld [vmem:[%s2654_s1 + $0x3a4] ss:$8 sps:$4 sm:$0xff]  }
  0x2c   : > { %1243 = vmatpush1.bf16.msra.mxu1 %v1928_v38  ;;  %v2014_v38 = vld [vmem:[%s2654_s1 + $0x170] ss:$8 sps:$4 sm:$0xff]  }
  0x2d   : > { %1349 = vmatpush1.bf16.msra.mxu0 %v1929_v39  ;;  %1244 = vmatprep.subr.bf16.mxu1 %v1930_v40  ;;  %v2017_v39 = vld [vmem:[%s2654_s1 + $0x370] ss:$8 sps:$4 sm:$0xff]   ;;  %v2022_v40 = vld [vmem:[%s2654_s1 + $0x184] ss:$8 sps:$4 sm:$0xff]  }
  0x2e   : > { %1350 = vmatprep.subr.bf16.mxu0 %v1932_v41  ;;  %v2076_v41 = vld [vmem:[%s2320_s17 + $0xc] ss:$36 sps:$4 sm:$0xff]  }
  0x30   : > { %1245 = vmatpush1.bf16.msra.mxu1 %v1934_v42  ;;  %v2025_v42 = vld [vmem:[%s2654_s1 + $0x384] ss:$8 sps:$4 sm:$0xff]  }
  0x31   : > { %1351 = vmatpush1.bf16.msra.mxu0 %v1935_v43  ;;  %1246 = vmatprep.subr.bf16.mxu1 %v1936_v44  ;;  %v2079_v43 = vld [vmem:[%s2320_s17 + $0x1c] ss:$36 sps:$4 sm:$0xff]  }
  0x32   : > { %1352 = vmatprep.subr.bf16.mxu0 %v1938_v45  ;;  %v2020_v44 = vld [vmem:[%s2654_s1 + $0x180] ss:$8 sps:$4 sm:$0xff]  }
  0x33   : > { %v2023_v45 = vld [vmem:[%s2654_s1 + $0x380] ss:$8 sps:$4 sm:$0xff]  }
  0x34   : > { %1247 = vmatpush1.bf16.msra.mxu1 %v1940_v46  ;;  %v2028_v46 = vld [vmem:[%s2654_s1 + $0x194] ss:$8 sps:$4 sm:$0xff]  }
  0x35   : > { %1353 = vmatpush1.bf16.msra.mxu0 %v1941_v47  ;;  %1248 = vmatprep.subr.bf16.mxu1 %v1942_v49  ;;  %v2031_v47 = vld [vmem:[%s2654_s1 + $0x394] ss:$8 sps:$4 sm:$0xff]   ;;  %v2029_v49 = vld [vmem:[%s2654_s1 + $0x390] ss:$8 sps:$4 sm:$0xff]  }
  0x36   : > { %1354 = vmatprep.subr.bf16.mxu0 %v1944_v50  ;;  %v2034_v50 = vld [vmem:[%s2654_s1 + $0x1a4] ss:$8 sps:$4 sm:$0xff]  }
  0x38   : > { %1249 = vmatpush1.bf16.msra.mxu1 %v1946_v52  ;;  %v2032_v52 = vld [vmem:[%s2654_s1 + $0x1a0] ss:$8 sps:$4 sm:$0xff]  }
  0x39   : > { %1355 = vmatpush1.bf16.msra.mxu0 %v1947_v53  ;;  %1250 = vmatprep.subr.bf16.mxu1 %v1948_v54  ;;  %v2035_v53 = vld [vmem:[%s2654_s1 + $0x3a0] ss:$8 sps:$4 sm:$0xff]   ;;  %v2040_v54 = vld [vmem:[%s2654_s1 + $0x1b4] ss:$8 sps:$4 sm:$0xff]  }
  0x3a   : > { %1356 = vmatprep.subr.bf16.mxu0 %v1950_v55  ;;  %v2043_v55 = vld [vmem:[%s2654_s1 + $0x3b4] ss:$8 sps:$4 sm:$0xff]  }
  0x3c   : > { %1251 = vmatpush1.bf16.msra.mxu1 %v1952_v56  ;;  %v2038_v56 = vld [vmem:[%s2654_s1 + $0x1b0] ss:$8 sps:$4 sm:$0xff]  }
  0x3d   : > { %1357 = vmatpush1.bf16.msra.mxu0 %v1953_v57  ;;  %1252 = vmatprep.subr.bf16.mxu1 %v1954_v58  ;;  %v2041_v57 = vld [vmem:[%s2654_s1 + $0x3b0] ss:$8 sps:$4 sm:$0xff]   ;;  %v2046_v58 = vld [vmem:[%s2654_s1 + $0x1c4] ss:$8 sps:$4 sm:$0xff]  }
  0x3e   : > { %1358 = vmatprep.subr.bf16.mxu0 %v1956_v59  ;;  %v2049_v59 = vld [vmem:[%s2654_s1 + $0x3c4] ss:$8 sps:$4 sm:$0xff]  }
  0x40   : > { %1253 = vmatpush1.bf16.msra.mxu1 %v1958_v60  ;;  %v2044_v60 = vld [vmem:[%s2654_s1 + $0x1c0] ss:$8 sps:$4 sm:$0xff]  }
  0x41   : > { %1359 = vmatpush1.bf16.msra.mxu0 %v1959_v61  ;;  %1254 = vmatprep.subr.bf16.mxu1 %v1960_v62  ;;  %v2047_v61 = vld [vmem:[%s2654_s1 + $0x3c0] ss:$8 sps:$4 sm:$0xff]   ;;  %v2052_v62 = vld [vmem:[%s2654_s1 + $0x1d4] ss:$8 sps:$4 sm:$0xff]  }
  0x42   : > { %1360 = vmatprep.subr.bf16.mxu0 %v1962_v63  ;;  %v2055_v63 = vld [vmem:[%s2654_s1 + $0x3d4] ss:$8 sps:$4 sm:$0xff]  }
  0x44   : > { %1255 = vmatpush1.bf16.msra.mxu1 %v1964_v0  ;;  %v2050_v0 = vld [vmem:[%s2654_s1 + $0x1d0] ss:$8 sps:$4 sm:$0xff]  }
  0x45   : > { %1361 = vmatpush1.bf16.msra.mxu0 %v1965_v1  ;;  %1277 = vmatprep.subr.bf16.mxu1 %v1971_v2  ;;  %v2053_v1 = vld [vmem:[%s2654_s1 + $0x3d0] ss:$8 sps:$4 sm:$0xff]   ;;  %v2063_v2 = vld [vmem:[%s2654_s1 + $0x1e4] ss:$8 sps:$4 sm:$0xff]  }
  0x46   : > { %1383 = vmatprep.subr.bf16.mxu0 %v1977_v3  ;;  %v2067_v3 = vld [vmem:[%s2654_s1 + $0x3e4] ss:$8 sps:$4 sm:$0xff]  }
  0x47   : > { %1257 = vmatmul.mubr.bf16.vlgmr.msra.gmra.mrb[0].mxu1 %v1966_v4  ;;  %v2061_v4 = vld [vmem:[%s2654_s1 + $0x1e0] ss:$8 sps:$4 sm:$0xff]  }
  0x48   : > { %1363 = vmatmul.mubr.bf16.vlgmr.msra.gmra.mrb[0].mxu0 %v1972_v6  ;;  %1278 = vmatpush1.bf16.msra.mxu1 %v1969_v5  ;;  %v2065_v5 = vld [vmem:[%s2654_s1 + $0x3e0] ss:$8 sps:$4 sm:$0xff]   ;;  %v2070_v6 = vld [vmem:[%s2654_s1 + $0x1f4] ss:$8 sps:$4 sm:$0xff]  }
  0x49   : > { %1384 = vmatpush1.bf16.msra.mxu0 %v1975_v7  ;;  %1279 = vmatprep.subr.bf16.mxu1 %v1980_v8  ;;  %v2073_v7 = vld [vmem:[%s2654_s1 + $0x3f4] ss:$8 sps:$4 sm:$0xff]   ;;  %v2068_v8 = vld [vmem:[%s2654_s1 + $0x1f0] ss:$8 sps:$4 sm:$0xff]  }
  0x4a   : > { %1385 = vmatprep.subr.bf16.mxu0 %v1983_v9  ;;  %1266 = vmatprep.mubr.bf16.mxu1 %v2056_v29  ;;  %v2071_v9 = vld [vmem:[%s2654_s1 + $0x3f0] ss:$8 sps:$4 sm:$0xff]   ;;  %v2106_v29 = vld [vmem:[%s2654_s1 + $0x464] ss:$8 sps:$4 sm:$0xff]  }
  0x4b   : > { %1372 = vmatprep.mubr.bf16.mxu0 %v2058_v30  ;;  %v2104_v30 = vld [vmem:[%s2654_s1 + $0x460] ss:$8 sps:$4 sm:$0xff]  }
  0x4c   : > { %1280 = vmatpush1.bf16.msra.mxu1 %v1978_v10  ;;  %v2082_v10 = vld [vmem:[%s2654_s1 + $0x404] ss:$8 sps:$4 sm:$0xff]  }
  0x4d   : > { %1386 = vmatpush1.bf16.msra.mxu0 %v1981_v11  ;;  %1281 = vmatprep.subr.bf16.mxu1 %v1986_v12  ;;  %v2074_v11 = vld [vmem:[%s2320_s17 + $0x8] ss:$36 sps:$4 sm:$0xff]   ;;  %v2077_v12 = vld [vmem:[%s2320_s17 + $0x18] ss:$36 sps:$4 sm:$0xff]  }
  0x4e   : > { %1387 = vmatprep.subr.bf16.mxu0 %v1989_v13  ;;  %v2080_v13 = vld [vmem:[%s2654_s1 + $0x400] ss:$8 sps:$4 sm:$0xff]  }
  0x4f   : > { %1267 = vmatmul.mubr.bf16.gmra.mrb[4].mxu1 %v2060_v32  ;;  %v2107_v32 = vld [vmem:[%s2654_s1 + $0x470] ss:$8 sps:$4 sm:$0xff]  }
  0x50   : > { %1282 = vmatpush1.bf16.msra.mxu1 %v1984_v14  ;;  %1373 = vmatmul.mubr.bf16.gmra.mrb[4].mxu0 %v2064_v33  ;;  %v2085_v14 = vld [vmem:[%s2654_s1 + $0x414] ss:$8 sps:$4 sm:$0xff]   ;;  %v2110_v33 = vld [vmem:[%s2320_s17 + $0x20] ss:$36 sps:$4 sm:$0xff]  }
  0x51   : > { %1388 = vmatpush1.bf16.msra.mxu0 %v1987_v15  ;;  %1283 = vmatprep.subr.bf16.mxu1 %v1992_v16  ;;  %v2086_v15 = vld [vmem:[%s2320_s17 + $0x54] ss:$36 sps:$4 sm:$0x1f]   ;;  %v2088_v16 = vld [vmem:[%s2320_s17 + $0x64] ss:$36 sps:$4 sm:$0x1f]  }
  0x52   : > { %1389 = vmatprep.subr.bf16.mxu0 %v1995_v17  ;;  %1309 = vmatprep.mubr.bf16.mxu1 %v2076_v41  ;;  %v2083_v17 = vld [vmem:[%s2654_s1 + $0x410] ss:$8 sps:$4 sm:$0xff]  }
  0x53   : > { %1415 = vmatprep.mubr.bf16.mxu0 %v2079_v43 }
  0x54   : > { %1284 = vmatpush1.bf16.msra.mxu1 %v1990_v18  ;;  %v2094_v18 = vld [vmem:[%s2654_s1 + $0x424] ss:$8 sps:$4 sm:$0xff]  }
  0x55   : > { %1390 = vmatpush1.bf16.msra.mxu0 %v1993_v19  ;;  %1285 = vmatprep.subr.bf16.mxu1 %v1998_v20  ;;  %v2090_v19 = vld [vmem:[%s2320_s17 + $0x50] ss:$36 sps:$4 sm:$0x1f]   ;;  %v2091_v20 = vld [vmem:[%s2320_s17 + $0x60] ss:$36 sps:$4 sm:$0x1f]  }
  0x56   : > { %1391 = vmatprep.subr.bf16.mxu0 %v2001_v21  ;;  %v2092_v21 = vld [vmem:[%s2654_s1 + $0x420] ss:$8 sps:$4 sm:$0xff]  }
  0x58   : > { %1286 = vmatpush1.bf16.msra.mxu1 %v1996_v22  ;;  %v2097_v22 = vld [vmem:[%s2654_s1 + $0x434] ss:$8 sps:$4 sm:$0xff]  }
  0x59   : > { %1392 = vmatpush1.bf16.msra.mxu0 %v1999_v23  ;;  %1287 = vmatprep.subr.bf16.mxu1 %v2004_v24  ;;  %v2095_v23 = vld [vmem:[%s2654_s1 + $0x430] ss:$8 sps:$4 sm:$0xff]   ;;  %v2100_v24 = vld [vmem:[%s2654_s1 + $0x444] ss:$8 sps:$4 sm:$0xff]  }
  0x5a   : > { %1393 = vmatprep.subr.bf16.mxu0 %v2007_v25  ;;  %v2136_v25 = vmov 0  }
  0x5c   : > { %1288 = vmatpush1.bf16.msra.mxu1 %v2002_v26  ;;  %v2098_v26 = vld [vmem:[%s2654_s1 + $0x440] ss:$8 sps:$4 sm:$0xff]  }
  0x5d   : > { %1394 = vmatpush1.bf16.msra.mxu0 %v2005_v27  ;;  %1289 = vmatprep.subr.bf16.mxu1 %v2010_v28  ;;  %v2103_v27 = vld [vmem:[%s2654_s1 + $0x454] ss:$8 sps:$4 sm:$0xff]   ;;  %v2101_v28 = vld [vmem:[%s2654_s1 + $0x450] ss:$8 sps:$4 sm:$0xff]  }
  0x5e   : > { %1395 = vmatprep.subr.bf16.mxu0 %v2013_v31  ;;  %v2109_v31 = vld [vmem:[%s2654_s1 + $0x474] ss:$8 sps:$4 sm:$0xff]  }
  0x60   : > { %1290 = vmatpush1.bf16.msra.mxu1 %v2008_v34  ;;  %v2111_v34 = vld [vmem:[%s2320_s17 + $0x68] ss:$36 sps:$4 sm:$0x1f]   ;;  %s1787_s17 = sshll.u32 %s2662_s12, 6 }
  0x61   : > { %1396 = vmatpush1.bf16.msra.mxu0 %v2011_v35  ;;  %1291 = vmatprep.subr.bf16.mxu1 %v2016_v36  ;;  %v402_v35 = vlaneseq  ;;  %s233_s22 = scalar_lea.vmem %s2656_s3, %s1787_s17 }
  0x62   : > { %1397 = vmatprep.subr.bf16.mxu0 %v2019_v37 }
  0x63   : > { %v403_v36 = vshrl.u32 %v402_v35, 7 }
  0x64   : > { %1292 = vmatpush1.bf16.msra.mxu1 %v2014_v38 }
  0x65   : > { %1398 = vmatpush1.bf16.msra.mxu0 %v2017_v39  ;;  %1293 = vmatprep.subr.bf16.mxu1 %v2022_v40  ;;  %v404_v40 = vsub.s32 0, %v403_v36  ;;  %v408_v43 = vsub.s32 1, %v403_v36 }
  0x66   : > { %1399 = vmatprep.subr.bf16.mxu0 %v2025_v42  ;;  %v400_v42 = vld [vmem:[%s2655_s2] sm:$0x3] }
  0x68   : > { %1294 = vmatpush1.bf16.msra.mxu1 %v2020_v44  ;;  %v405_v44 = vrot.slane %v400_v42, %v404_v40 }
  0x69   : > { %1400 = vmatpush1.bf16.msra.mxu0 %v2023_v45  ;;  %1295 = vmatprep.subr.bf16.mxu1 %v2028_v46  ;;  %v409_v45 = vrot.slane %v400_v42, %v408_v43 }
  0x6a   : > { %1401 = vmatprep.subr.bf16.mxu0 %v2031_v47 }
  0x6c   : > { %1296 = vmatpush1.bf16.msra.mxu1 %v2026_v48 }
  0x6d   : > { %1402 = vmatpush1.bf16.msra.mxu0 %v2029_v49  ;;  %1297 = vmatprep.subr.bf16.mxu1 %v2034_v50 }
  0x6e   : > { %1403 = vmatprep.subr.bf16.mxu0 %v2037_v51 }
  0x70   : > { %1298 = vmatpush1.bf16.msra.mxu1 %v2032_v52 }
  0x71   : > { %1404 = vmatpush1.bf16.msra.mxu0 %v2035_v53  ;;  %1299 = vmatprep.subr.bf16.mxu1 %v2040_v54 }
  0x72   : > { %1405 = vmatprep.subr.bf16.mxu0 %v2043_v55 }
  0x74   : > { %1300 = vmatpush1.bf16.msra.mxu1 %v2038_v56 }
  0x75   : > { %1406 = vmatpush1.bf16.msra.mxu0 %v2041_v57  ;;  %1301 = vmatprep.subr.bf16.mxu1 %v2046_v58 }
  0x76   : > { %1407 = vmatprep.subr.bf16.mxu0 %v2049_v59 }
  0x78   : > { %1302 = vmatpush1.bf16.msra.mxu1 %v2044_v60 }
  0x79   : > { %1408 = vmatpush1.bf16.msra.mxu0 %v2047_v61  ;;  %1303 = vmatprep.subr.bf16.mxu1 %v2052_v62 }
  0x7a   : > { %1409 = vmatprep.subr.bf16.mxu0 %v2055_v63 }
  0x7c   : > { %1304 = vmatpush1.bf16.msra.mxu1 %v2050_v0 }
  0x7d   : > { %1410 = vmatpush1.bf16.msra.mxu0 %v2053_v1  ;;  %1305 = vmatprep.subr.bf16.mxu1 %v2063_v2 }
  0x7e   : > { %1411 = vmatprep.subr.bf16.mxu0 %v2067_v3 }
  0x80   : > { %1306 = vmatpush1.bf16.msra.mxu1 %v2061_v4 }
  0x81   : > { %1412 = vmatpush1.bf16.msra.mxu0 %v2065_v5  ;;  %1307 = vmatprep.subr.bf16.mxu1 %v2070_v6 }
  0x82   : > { %1413 = vmatprep.subr.bf16.mxu0 %v2073_v7 }
  0x84   : > { %1308 = vmatpush1.bf16.msra.mxu1 %v2068_v8 }
  0x85   : > { %1414 = vmatpush1.bf16.msra.mxu0 %v2071_v9  ;;  %1788 = vmatprep.subr.bf16.mxu1 %v2082_v10 }
  0x86   : > { %1436 = vmatprep.subr.bf16.mxu0 %v2082_v10 }
  0x87   : > { %1310 = vmatmul.mubr.bf16.vlgmr.msra.gmra.mrb[0].mxu1 %v2074_v11 }
  0x88   : > { %1416 = vmatmul.mubr.bf16.vlgmr.msra.gmra.mrb[0].mxu0 %v2077_v12  ;;  %1796 = vmatpush1.bf16.msra.mxu1 %v2080_v13 }
  0x89   : > { %1437 = vmatpush1.bf16.msra.mxu0 %v2080_v13  ;;  %1789 = vmatprep.subr.bf16.mxu1 %v2085_v14 }
  0x8a   : > { %1438 = vmatprep.subr.bf16.mxu0 %v2085_v14  ;;  %1319 = vmatprep.mubr.bf16.mxu1 %v2086_v15 }
  0x8b   : > { %1425 = vmatprep.mubr.bf16.mxu0 %v2088_v16 }
  0x8c   : > { %1797 = vmatpush1.bf16.msra.mxu1 %v2083_v17 }
  0x8d   : > { %1439 = vmatpush1.bf16.msra.mxu0 %v2083_v17  ;;  %1790 = vmatprep.subr.bf16.mxu1 %v2094_v18 }
  0x8e   : > { %1440 = vmatprep.subr.bf16.mxu0 %v2094_v18 }
  0x8f   : > { %1320 = vmatmul.mubr.bf16.gmra.mrb[4].mxu1 %v2090_v19 }
  0x90   : > { %1426 = vmatmul.mubr.bf16.gmra.mrb[4].mxu0 %v2091_v20  ;;  %1798 = vmatpush1.bf16.msra.mxu1 %v2092_v21 }
  0x91   : > { %1441 = vmatpush1.bf16.msra.mxu0 %v2092_v21  ;;  %1791 = vmatprep.subr.bf16.mxu1 %v2097_v22 }
  0x92   : > { %1442 = vmatprep.subr.bf16.mxu0 %v2097_v22  ;;  %1468 = vmatprep.mubr.bf16.mxu0 %v2136_v25 }
  0x93   : > { %1478 = vmatprep.mubr.bf16.mxu1 %v2136_v25 }
  0x94   : > { %1799 = vmatpush1.bf16.msra.mxu1 %v2095_v23 }
  0x95   : > { %1443 = vmatpush1.bf16.msra.mxu0 %v2095_v23  ;;  %1792 = vmatprep.subr.bf16.mxu1 %v2100_v24 }
  0x96   : > { %1444 = vmatprep.subr.bf16.mxu0 %v2100_v24 }
  0x98   : > { %1800 = vmatpush1.bf16.msra.mxu1 %v2098_v26 }
  0x99   : > { %1445 = vmatpush1.bf16.msra.mxu0 %v2098_v26  ;;  %1793 = vmatprep.subr.bf16.mxu1 %v2103_v27 }
  0x9a   : > { %1446 = vmatprep.subr.bf16.mxu0 %v2103_v27 }
  0x9c   : > { %1801 = vmatpush1.bf16.msra.mxu1 %v2101_v28 }
  0x9d   : > { %1447 = vmatpush1.bf16.msra.mxu0 %v2101_v28  ;;  %1794 = vmatprep.subr.bf16.mxu1 %v2106_v29 }
  0x9e   : > { %1448 = vmatprep.subr.bf16.mxu0 %v2106_v29 }
  0xa0   : > { %1802 = vmatpush1.bf16.msra.mxu1 %v2104_v30 }
  0xa1   : > { %1449 = vmatpush1.bf16.msra.mxu0 %v2104_v30  ;;  %1795 = vmatprep.subr.bf16.mxu1 %v2109_v31 }
  0xa2   : > { %1450 = vmatprep.subr.bf16.mxu0 %v2109_v31 }
  0xa4   : > { %1803 = vmatpush1.bf16.msra.mxu1 %v2107_v32 }
  0xa5   : > { %1451 = vmatpush1.bf16.msra.mxu0 %v2107_v32 }
  0xa7   : > { %1479 = vmatmul.mubr.bf16.vlgmr.msra.gmra.mrb[8].mxu1 %v2111_v34 }
  0xa8   : > { %1469 = vmatmul.mubr.bf16.vlgmr.msra.gmra.mrb[0].mxu0 %v2110_v33 }
 0x15a   : > { %v1311_v37 = vpop.f32.mrb[0].mxu1 }
 0x15b   : > { %v1313_v38 = vpop.f32.mrb[1].mxu1  ;;  %v1804_v62 = vadd.f32 %v1311_v37, %v405_v44 }
 0x15c   : > { %v1315_v39 = vpop.f32.mrb[2].mxu1  ;;  %v1806_v63 = vadd.f32 %v1313_v38, %v409_v45 }
 0x15d   : > { %v1317_v41 = vpop.f32.mrb[3].mxu1  ;;  %v1808_v2 = vadd.f32 %v1315_v39, %v405_v44 }
 0x15e   : > { %v1810_v7 = vadd.f32 %v1317_v41, %v409_v45 }
 0x162   : > { %v1321_v46 = vpop.f32.mrb[4].mxu1 }
 0x163   : > { %v1427_v47 = vpop.f32.mrb[4].mxu0  ;;  %v1812_v48 = vadd.f32 %v1321_v46, %v405_v44  ;;  %v1323_v49 = vpop.f32.mrb[5].mxu1 }
 0x164   : > { %v1429_v50 = vpop.f32.mrb[5].mxu0  ;;  %v1815_v51 = vadd.f32 %v1323_v49, %v409_v45  ;;  %v1325_v52 = vpop.f32.mrb[6].mxu1 }
 0x165   : > { %v1431_v53 = vpop.f32.mrb[6].mxu0  ;;  %v1813_v54 = vadd.f32 %v1812_v48, %v1427_v47  ;;  %v1818_v55 = vadd.f32 %v1325_v52, %v405_v44  ;;  %v1327_v56 = vpop.f32.mrb[7].mxu1 }
 0x166   : > { %v1433_v57 = vpop.f32.mrb[7].mxu0  ;;  %v1816_v58 = vadd.f32 %v1815_v51, %v1429_v50  ;;  %v1821_v59 = vadd.f32 %v1327_v56, %v409_v45 }
 0x167   : > { %v1819_v60 = vadd.f32 %v1818_v55, %v1431_v53 }
 0x168   : > { %v1822_v61 = vadd.f32 %v1821_v59, %v1433_v57 }
 0x17a   : > { %v1480_v1 = vpop.f32.mrb[8].mxu1 }
 0x17b   : > { %v1470_v0 = vpop.f32.mrb[0].mxu0  ;;  %v1814_v4 = vadd.f32 %v1813_v54, %v1480_v1  ;;  %v1482_v6 = vpop.f32.mrb[9].mxu1 }
 0x17c   : > { %v1805_v3 = vadd.f32 %v1804_v62, %v1470_v0  ;;  %v1472_v5 = vpop.f32.mrb[1].mxu0  ;;  %v1817_v9 = vadd.f32 %v1816_v58, %v1482_v6  ;;  %v1484_v11 = vpop.f32.mrb[10].mxu1 }
 0x17d   : > { %v1807_v8 = vadd.f32 %v1806_v63, %v1472_v5  ;;  %v1474_v10 = vpop.f32.mrb[2].mxu0  ;;  %v1493_v13 = vmax.f32 %v1814_v4, 0.0  ;;  %v1820_v15 = vadd.f32 %v1819_v60, %v1484_v11  ;;  %v1486_v17 = vpop.f32.mrb[11].mxu1 }
 0x17e   : > { %v1489_v12 = vmax.f32 %v1805_v3, 0.0  ;;  %v1809_v14 = vadd.f32 %v1808_v2, %v1474_v10  ;;  %v1476_v16 = vpop.f32.mrb[3].mxu0  ;;  %v1494_v19 = vmax.f32 %v1817_v9, 0.0  ;;  %v1823_v21 = vadd.f32 %v1822_v61, %v1486_v17 }
 0x17f   : > { %v1490_v18 = vmax.f32 %v1807_v8, 0.0  ;;  %v1811_v20 = vadd.f32 %v1810_v7, %v1476_v16  ;;  %1501 = vst [vmem:[%s233_s22 + $0x20] sm:$0xff] %v1493_v13  ;;  %v1495_v23 = vmax.f32 %v1820_v15, 0.0 }
 0x180   : > { %1497 = vst [vmem:[%s233_s22] sm:$0xff] %v1489_v12  ;;  %v1491_v22 = vmax.f32 %v1809_v14, 0.0  ;;  %1502 = vst [vmem:[%s233_s22 + $0x28] sm:$0xff] %v1494_v19  ;;  %v1496_v25 = vmax.f32 %v1823_v21, 0.0 }
 0x181   : > { %1498 = vst [vmem:[%s233_s22 + $0x8] sm:$0xff] %v1490_v18  ;;  %v1492_v24 = vmax.f32 %v1811_v20, 0.0  ;;  %1503 = vst [vmem:[%s233_s22 + $0x30] sm:$0x1] %v1495_v23 }
 0x182   : > { %1499 = vst [vmem:[%s233_s22 + $0x10] sm:$0xff] %v1491_v22  ;;  %1504 = vst [vmem:[%s233_s22 + $0x38] sm:$0x1] %v1496_v25 }
 0x183   : > { %1500 = vst [vmem:[%s233_s22 + $0x18] sm:$0xff] %v1492_v24 }
 0x184 PF: > { %s13_s14 = sadd.s32 1, %s2134_s14   ;;  %s2657_s12 = smov %s2130_s13 }
 0x185   : > { %p10_p5 = scmp.ge.s32.totalorder %s13_s14, 4   ;;  %s2658_s13 = smov %s2660_s15 }
 0x187   :  { %12 = sbr.rel (!%p10_p5) target bundleno = 2 (0x2), region = 68 }

// kernel: aux_convs_forward.12
= control target key start
LH: loop header
LB: loop body
LE: loop exit
PB: predicated region body
PF: predicated region fallthrough
CT: control target
= control target key end

     0   :  { %s714_s12 = smov 0   ;;  %s716_s13 = smov 0   ;;  %s805_s0 = inlined_call_operand.vmem [shape: bf16[2,25,256], index: 0, kind: input, shape index: {}]   ;;  %s806_s1 = inlined_call_operand.vmem [shape: bf16[256,128], index: 1, kind: input, shape index: {}]   ;;  %s807_s2 = inlined_call_operand.vmem [shape: f32[1,128], index: 2, kind: input, shape index: {}]   ;;  %s808_s3 = inlined_call_operand.vmem [shape: f32[2,25,128], index: 3, kind: output, shape index: {}]  }
   0x1   :  { %s718_s14 = smov 0  }
   0x2 LB: > { %s25_s15 = sadd.s32 1, %s688_s13  ;;  %p550_p0 = scmp.ge.s32.totalorder %s692_s14, 1  ;;  %s692_s14 = sphi %s718_s14, %s13_s14   ;;  %s688_s13 = sphi %s716_s13, %s810_s13   ;;  %s684_s12 = sphi %s714_s12, %s809_s12  }
   0x3   : > { %p27_p1 = scmp.ge.s32.totalorder %s25_s15, 2  ;;  %p168_p2 = scmp.lt.s32.totalorder %s692_s14, 3 }
   0x5   : > { %s812_s15 = smov (%p27_p1, %s25_s15), 0  ;;  %p169_p3 = pnand %p550_p0, %p168_p2 }
   0x6   : > { %v648_v0 = vld [vmem:[%s806_s1 + $0x40] sm:$0xff] (!%p169_p3)   ;;  %v650_v2 = vld [vmem:[%s806_s1 + $0x48] sm:$0xff] (!%p169_p3)   ;;  %p202_p4 = scmp.lt.s32.totalorder (!%p169_p3), %s684_s12, 1  ;;  %v652_v4 = vld [vmem:[%s806_s1 + $0x50] sm:$0xff] (!%p169_p3)  }
   0x7   : > { %172 = sbr.rel (%p169_p3) target bundleno = 261 (0x105), region = 32  ;;  %v649_v1 = vld [vmem:[%s806_s1] sm:$0xff] (!%p169_p3)   ;;  %580 = vmatprep.subr.bf16.mxu0 (!%p169_p3), %v648_v0  ;;  %608 = vmatprep.subr.bf16.mxu1 (!%p169_p3), %v648_v0  ;;  %v651_v3 = vld [vmem:[%s806_s1 + $0x8] sm:$0xff] (!%p169_p3)   ;;  %v653_v5 = vld [vmem:[%s806_s1 + $0x10] sm:$0xff] (!%p169_p3)  }
   0x8   : > { %581 = vmatpush3.bf16.msra.mxu0 (!%p169_p3), %v649_v1  ;;  %616 = vmatpush3.bf16.msra.mxu1 (!%p169_p3), %v649_v1  ;;  %v654_v6 = vld [vmem:[%s806_s1 + $0x58] sm:$0xff] (!%p169_p3)   ;;  %v656_v8 = vld [vmem:[%s806_s1 + $0x60] sm:$0xff] (!%p169_p3)   ;;  %v658_v10 = vld [vmem:[%s806_s1 + $0x68] sm:$0xff] (!%p169_p3)  }
   0x9   : > { %582 = vmatprep.subr.bf16.mxu0 (!%p169_p3), %v650_v2  ;;  %609 = vmatprep.subr.bf16.mxu1 (!%p169_p3), %v650_v2  ;;  %v655_v7 = vld [vmem:[%s806_s1 + $0x18] sm:$0xff] (!%p169_p3)   ;;  %v657_v9 = vld [vmem:[%s806_s1 + $0x20] sm:$0xff] (!%p169_p3)   ;;  %v659_v13 = vld [vmem:[%s806_s1 + $0x28] sm:$0xff] (!%p169_p3)  }
   0xa   : > { %v660_v14 = vld [vmem:[%s806_s1 + $0x70] sm:$0xff] (!%p169_p3)   ;;  %v662_v16 = vld [vmem:[%s806_s1 + $0x78] sm:$0xff] (!%p169_p3)   ;;  %v555_v22 = vld [vmem:[%s807_s2] ss:$0 sm:$0xff] (!%p169_p3) }
   0xb   : > { %v661_v15 = vld [vmem:[%s806_s1 + $0x30] sm:$0xff] (!%p169_p3)   ;;  %v663_v17 = vld [vmem:[%s806_s1 + $0x38] sm:$0xff] (!%p169_p3)  }
   0xc   : > { %583 = vmatpush3.bf16.msra.mxu0 (!%p169_p3), %v651_v3  ;;  %617 = vmatpush3.bf16.msra.mxu1 (!%p169_p3), %v651_v3 }
   0xd   : > { %584 = vmatprep.subr.bf16.mxu0 (!%p169_p3), %v652_v4  ;;  %610 = vmatprep.subr.bf16.mxu1 (!%p169_p3), %v652_v4 }
   0xe   : > { %s814_s12 = smov (!%p202_p4, %s684_s12), 1 }
   0xf   : > { %s578_s5 = sshll.u32 %s814_s12, 5 }
  0x10   : > { %585 = vmatpush3.bf16.msra.mxu0 %v653_v5  ;;  %618 = vmatpush3.bf16.msra.mxu1 %v653_v5  ;;  %s206_s10 = scalar_lea.vmem %s805_s0, %s578_s5  ;;  %s221_s7 = scalar_lea.vmem %s808_s3, %s578_s5 }
  0x11   : > { %586 = vmatprep.subr.bf16.mxu0 %v654_v6  ;;  %611 = vmatprep.subr.bf16.mxu1 %v654_v6  ;;  %v666_v11 = vld [vmem:[%s206_s10 + $0x4] ss:$8 sps:$4 sm:$0xff]   ;;  %v669_v12 = vld [vmem:[%s206_s10 + $0x14] ss:$8 sps:$4 sm:$0x1f]  }
  0x12   : > { %414 = vmatprep.mubr.bf16.mxu0 %v666_v11  ;;  %422 = vmatprep.mubr.bf16.mxu1 %v669_v12  ;;  %v664_v18 = vld [vmem:[%s206_s10] ss:$8 sps:$4 sm:$0xff]   ;;  %v667_v19 = vld [vmem:[%s206_s10 + $0x10] ss:$8 sps:$4 sm:$0x1f]  }
  0x14   : > { %587 = vmatpush3.bf16.msra.mxu0 %v655_v7  ;;  %619 = vmatpush3.bf16.msra.mxu1 %v655_v7 }
  0x15   : > { %588 = vmatprep.subr.bf16.mxu0 %v656_v8  ;;  %612 = vmatprep.subr.bf16.mxu1 %v656_v8 }
  0x18   : > { %589 = vmatpush3.bf16.msra.mxu0 %v657_v9  ;;  %620 = vmatpush3.bf16.msra.mxu1 %v657_v9 }
  0x19   : > { %590 = vmatprep.subr.bf16.mxu0 %v658_v10  ;;  %613 = vmatprep.subr.bf16.mxu1 %v658_v10 }
  0x1c   : > { %591 = vmatpush3.bf16.msra.mxu0 %v659_v13  ;;  %621 = vmatpush3.bf16.msra.mxu1 %v659_v13 }
  0x1d   : > { %592 = vmatprep.subr.bf16.mxu0 %v660_v14  ;;  %614 = vmatprep.subr.bf16.mxu1 %v660_v14 }
  0x20   : > { %593 = vmatpush3.bf16.msra.mxu0 %v661_v15  ;;  %622 = vmatpush3.bf16.msra.mxu1 %v661_v15 }
  0x21   : > { %594 = vmatprep.subr.bf16.mxu0 %v662_v16  ;;  %615 = vmatprep.subr.bf16.mxu1 %v662_v16 }
  0x24   : > { %595 = vmatpush3.bf16.msra.mxu0 %v663_v17  ;;  %623 = vmatpush3.bf16.msra.mxu1 %v663_v17 }
  0x27   : > { %415 = vmatmul.mubr.bf16.vlgmr.msra.gmra.mrb[0].mxu0 %v664_v18  ;;  %423 = vmatmul.mubr.bf16.vlgmr.msra.gmra.mrb[0].mxu1 %v667_v19 }
  0xfa   : > { %v596_v20 = vpop.f32.mrb[0].mxu0  ;;  %v602_v21 = vpop.f32.mrb[0].mxu1 }
  0xfb   : > { %v597_v23 = vpop.f32.mrb[1].mxu0  ;;  %v603_v24 = vpop.f32.mrb[1].mxu1 }
  0xfc   : > { %v598_v25 = vadd.f32 %v597_v23, %v596_v20  ;;  %v604_v26 = vadd.f32 %v603_v24, %v602_v21  ;;  %v599_v27 = vpop.f32.mrb[2].mxu0  ;;  %v605_v28 = vpop.f32.mrb[2].mxu1 }
  0xfd   : > { %v600_v29 = vpop.f32.mrb[3].mxu0  ;;  %v606_v30 = vpop.f32.mrb[3].mxu1 }
  0xfe   : > { %v417_v31 = vadd.f32 %v598_v25, %v555_v22  ;;  %v425_v32 = vadd.f32 %v604_v26, %v555_v22  ;;  %v601_v33 = vadd.f32 %v600_v29, %v599_v27  ;;  %v607_v34 = vadd.f32 %v606_v30, %v605_v28 }
 0x100   : > { %v431_v35 = vmax.f32 %v417_v31, 0.0  ;;  %v433_v36 = vmax.f32 %v425_v32, 0.0  ;;  %v420_v37 = vadd.f32 %v601_v33, %v555_v22  ;;  %v428_v38 = vadd.f32 %v607_v34, %v555_v22 }
 0x102   : > { %435 = vst [vmem:[%s221_s7] sm:$0xff] %v431_v35  ;;  %437 = vst [vmem:[%s221_s7 + $0x10] sm:$0xff] %v433_v36  ;;  %v432_v39 = vmax.f32 %v420_v37, 0.0  ;;  %v434_v40 = vmax.f32 %v428_v38, 0.0 }
 0x104   : > { %436 = vst [vmem:[%s221_s7 + $0x8] sm:$0xff] %v432_v39  ;;  %438 = vst [vmem:[%s221_s7 + $0x18] sm:$0x1] %v434_v40 }
 0x105 PF: > { %s13_s14 = sadd.s32 1, %s692_s14   ;;  %s809_s12 = smov %s688_s13 }
 0x106   : > { %p10_p5 = scmp.ge.s32.totalorder %s13_s14, 4   ;;  %s810_s13 = smov %s812_s15 }
 0x108   :  { %12 = sbr.rel (!%p10_p5) target bundleno = 2 (0x2), region = 68 }

// kernel: aux_convs_forward.14
= control target key start
LH: loop header
LB: loop body
LE: loop exit
PB: predicated region body
PF: predicated region fallthrough
CT: control target
= control target key end

     0   :  { %s663_s12 = smov 0   ;;  %s665_s13 = smov 0   ;;  %s754_s0 = inlined_call_operand.vmem [shape: bf16[2,9,256], index: 0, kind: input, shape index: {}]   ;;  %s755_s1 = inlined_call_operand.vmem [shape: bf16[256,128], index: 1, kind: input, shape index: {}]   ;;  %s756_s2 = inlined_call_operand.vmem [shape: f32[1,128], index: 2, kind: input, shape index: {}]   ;;  %s757_s3 = inlined_call_operand.vmem [shape: f32[2,9,128], index: 3, kind: output, shape index: {}]  }
   0x1   :  { %s667_s14 = smov 0  }
   0x2 LB: > { %s25_s15 = sadd.s32 1, %s637_s13  ;;  %p526_p0 = scmp.ge.s32.totalorder %s641_s14, 1  ;;  %s641_s14 = sphi %s667_s14, %s13_s14   ;;  %s637_s13 = sphi %s665_s13, %s759_s13   ;;  %s633_s12 = sphi %s663_s12, %s758_s12  }
   0x3   : > { %p27_p1 = scmp.ge.s32.totalorder %s25_s15, 2  ;;  %p168_p2 = scmp.lt.s32.totalorder %s641_s14, 3 }
   0x5   : > { %s761_s15 = smov (%p27_p1, %s25_s15), 0  ;;  %p169_p3 = pnand %p526_p0, %p168_p2 }
   0x6   : > { %v600_v0 = vld [vmem:[%s755_s1 + $0x40] sm:$0xff] (!%p169_p3)   ;;  %v602_v2 = vld [vmem:[%s755_s1 + $0x48] sm:$0xff] (!%p169_p3)   ;;  %p202_p4 = scmp.lt.s32.totalorder (!%p169_p3), %s633_s12, 1  ;;  %v604_v4 = vld [vmem:[%s755_s1 + $0x50] sm:$0xff] (!%p169_p3)  }
   0x7   : > { %172 = sbr.rel (%p169_p3) target bundleno = 261 (0x105), region = 32  ;;  %v601_v1 = vld [vmem:[%s755_s1] sm:$0xff] (!%p169_p3)   ;;  %554 = vmatprep.subr.bf16.mxu0 (!%p169_p3), %v600_v0  ;;  %v603_v3 = vld [vmem:[%s755_s1 + $0x8] sm:$0xff] (!%p169_p3)   ;;  %v605_v5 = vld [vmem:[%s755_s1 + $0x10] sm:$0xff] (!%p169_p3)  }
   0x8   : > { %555 = vmatpush3.bf16.msra.mxu0 (!%p169_p3), %v601_v1  ;;  %v606_v6 = vld [vmem:[%s755_s1 + $0x58] sm:$0xff] (!%p169_p3)   ;;  %v608_v8 = vld [vmem:[%s755_s1 + $0x60] sm:$0xff] (!%p169_p3)   ;;  %v610_v10 = vld [vmem:[%s755_s1 + $0x68] sm:$0xff] (!%p169_p3)  }
   0x9   : > { %556 = vmatprep.subr.bf16.mxu0 (!%p169_p3), %v602_v2  ;;  %v607_v7 = vld [vmem:[%s755_s1 + $0x18] sm:$0xff] (!%p169_p3)   ;;  %v609_v9 = vld [vmem:[%s755_s1 + $0x20] sm:$0xff] (!%p169_p3)   ;;  %v611_v12 = vld [vmem:[%s755_s1 + $0x28] sm:$0xff] (!%p169_p3)  }
   0xa   : > { %v612_v13 = vld [vmem:[%s755_s1 + $0x70] sm:$0xff] (!%p169_p3)   ;;  %v614_v15 = vld [vmem:[%s755_s1 + $0x78] sm:$0xff] (!%p169_p3)   ;;  %v531_v19 = vld [vmem:[%s756_s2] ss:$0 sm:$0xff] (!%p169_p3) }
   0xb   : > { %v613_v14 = vld [vmem:[%s755_s1 + $0x30] sm:$0xff] (!%p169_p3)   ;;  %v615_v16 = vld [vmem:[%s755_s1 + $0x38] sm:$0xff] (!%p169_p3)  }
   0xc   : > { %557 = vmatpush3.bf16.msra.mxu0 (!%p169_p3), %v603_v3 }
   0xd   : > { %558 = vmatprep.subr.bf16.mxu0 (!%p169_p3), %v604_v4 }
   0xe   : > { %s763_s12 = smov (!%p202_p4, %s633_s12), 1 }
   0xf   : > { %s552_s5 = sshll.u32 %s763_s12, 4 }
  0x10   : > { %559 = vmatpush3.bf16.msra.mxu0 %v605_v5  ;;  %s206_s10 = scalar_lea.vmem %s754_s0, %s552_s5  ;;  %s221_s7 = scalar_lea.vmem %s757_s3, %s552_s5 }
  0x11   : > { %560 = vmatprep.subr.bf16.mxu0 %v606_v6  ;;  %v618_v11 = vld [vmem:[%s206_s10 + $0x4] ss:$8 sps:$4 sm:$0x1f]   ;;  %v616_v17 = vld [vmem:[%s206_s10] ss:$8 sps:$4 sm:$0x1f]  }
  0x12   : > { %402 = vmatprep.mubr.bf16.mxu0 %v618_v11 }
  0x14   : > { %561 = vmatpush3.bf16.msra.mxu0 %v607_v7 }
  0x15   : > { %562 = vmatprep.subr.bf16.mxu0 %v608_v8 }
  0x18   : > { %563 = vmatpush3.bf16.msra.mxu0 %v609_v9 }
  0x19   : > { %564 = vmatprep.subr.bf16.mxu0 %v610_v10 }
  0x1c   : > { %565 = vmatpush3.bf16.msra.mxu0 %v611_v12 }
  0x1d   : > { %566 = vmatprep.subr.bf16.mxu0 %v612_v13 }
  0x20   : > { %567 = vmatpush3.bf16.msra.mxu0 %v613_v14 }
  0x21   : > { %568 = vmatprep.subr.bf16.mxu0 %v614_v15 }
  0x24   : > { %569 = vmatpush3.bf16.msra.mxu0 %v615_v16 }
  0x27   : > { %403 = vmatmul.mubr.bf16.vlgmr.msra.gmra.mrb[0].mxu0 %v616_v17 }
  0xfa   : > { %v570_v18 = vpop.f32.mrb[0].mxu0 }
  0xfb   : > { %v571_v20 = vpop.f32.mrb[1].mxu0 }
  0xfc   : > { %v572_v21 = vadd.f32 %v571_v20, %v570_v18  ;;  %v573_v22 = vpop.f32.mrb[2].mxu0 }
  0xfd   : > { %v574_v23 = vpop.f32.mrb[3].mxu0 }
  0xfe   : > { %v405_v24 = vadd.f32 %v572_v21, %v531_v19  ;;  %v575_v25 = vadd.f32 %v574_v23, %v573_v22 }
 0x100   : > { %v411_v26 = vmax.f32 %v405_v24, 0.0  ;;  %v408_v27 = vadd.f32 %v575_v25, %v531_v19 }
 0x102   : > { %413 = vst [vmem:[%s221_s7] sm:$0xff] %v411_v26  ;;  %v412_v28 = vmax.f32 %v408_v27, 0.0 }
 0x104   : > { %414 = vst [vmem:[%s221_s7 + $0x8] sm:$0x1] %v412_v28 }
 0x105 PF: > { %s13_s14 = sadd.s32 1, %s641_s14   ;;  %s758_s12 = smov %s637_s13 }
 0x106   : > { %p10_p5 = scmp.ge.s32.totalorder %s13_s14, 4   ;;  %s759_s13 = smov %s761_s15 }
 0x108   :  { %12 = sbr.rel (!%p10_p5) target bundleno = 2 (0x2), region = 68 }

// kernel: aux_convs_forward.13
= control target key start
LH: loop header
LB: loop body
LE: loop exit
PB: predicated region body
PF: predicated region fallthrough
CT: control target
= control target key end

     0   :  { %s1985_s12 = smov 0   ;;  %s1987_s13 = smov 0   ;;  %s2472_s0 = inlined_call_operand.vmem [shape: bf16[2,9,1152], index: 0, kind: input, shape index: {}]   ;;  %s2473_s1 = inlined_call_operand.vmem [shape: bf16[1152,256], index: 1, kind: input, shape index: {}]   ;;  %s2474_s2 = inlined_call_operand.vmem [shape: f32[1,256], index: 2, kind: input, shape index: {}]   ;;  %s2475_s3 = inlined_call_operand.vmem [shape: f32[2,9,256], index: 3, kind: output, shape index: {}]  }
   0x1   :  { %s1989_s14 = smov 0  }
   0x2 LB: > { %s25_s15 = sadd.s32 1, %s1958_s13  ;;  %p1505_p0 = scmp.ge.s32.totalorder %s1962_s14, 1  ;;  %s1962_s14 = sphi %s1989_s14, %s13_s14   ;;  %s1958_s13 = sphi %s1987_s13, %s2477_s13   ;;  %s1954_s12 = sphi %s1985_s12, %s2476_s12  }
   0x3   : > { %p27_p1 = scmp.ge.s32.totalorder %s25_s15, 2  ;;  %p172_p2 = scmp.lt.s32.totalorder %s1962_s14, 3 }
   0x5   : > { %s2479_s15 = smov (%p27_p1, %s25_s15), 0  ;;  %p173_p3 = pnand %p1505_p0, %p172_p2 }
   0x6   : > { %v1711_v0 = vld [vmem:[%s2473_s1 + $0x4] ss:$8 sps:$4 sm:$0xff] (!%p173_p3)   ;;  %v1715_v2 = vld [vmem:[%s2473_s1] ss:$8 sps:$4 sm:$0xff] (!%p173_p3)   ;;  %v1717_v4 = vld [vmem:[%s2473_s1 + $0x14] ss:$8 sps:$4 sm:$0xff] (!%p173_p3)  }
   0x7   : > { %176 = sbr.rel (%p173_p3) target bundleno = 388 (0x184), region = 32  ;;  %v1713_v1 = vld [vmem:[%s2473_s1 + $0x204] ss:$8 sps:$4 sm:$0xff] (!%p173_p3)   ;;  %1168 = vmatprep.subr.bf16.mxu1 (!%p173_p3), %v1711_v0  ;;  %v1716_v3 = vld [vmem:[%s2473_s1 + $0x200] ss:$8 sps:$4 sm:$0xff] (!%p173_p3)   ;;  %p209_p4 = scmp.lt.s32.totalorder (!%p173_p3), %s1954_s12, 1 }
   0x8   : > { %1254 = vmatprep.subr.bf16.mxu0 (!%p173_p3), %v1713_v1  ;;  %1169 = vmatpush1.bf16.msra.mxu1 (!%p173_p3), %v1715_v2  ;;  %v1719_v5 = vld [vmem:[%s2473_s1 + $0x214] ss:$8 sps:$4 sm:$0xff] (!%p173_p3)   ;;  %v1721_v6 = vld [vmem:[%s2473_s1 + $0x10] ss:$8 sps:$4 sm:$0xff] (!%p173_p3)   ;;  %v1723_v8 = vld [vmem:[%s2473_s1 + $0x24] ss:$8 sps:$4 sm:$0xff] (!%p173_p3)  }
   0x9   : > { %1255 = vmatpush1.bf16.msra.mxu0 (!%p173_p3), %v1716_v3  ;;  %1170 = vmatprep.subr.bf16.mxu1 (!%p173_p3), %v1717_v4  ;;  %v1722_v7 = vld [vmem:[%s2473_s1 + $0x210] ss:$8 sps:$4 sm:$0xff] (!%p173_p3)   ;;  %v1725_v9 = vld [vmem:[%s2473_s1 + $0x224] ss:$8 sps:$4 sm:$0xff] (!%p173_p3)   ;;  %v1727_v10 = vld [vmem:[%s2473_s1 + $0x20] ss:$8 sps:$4 sm:$0xff] (!%p173_p3)  }
   0xa   : > { %1256 = vmatprep.subr.bf16.mxu0 (!%p173_p3), %v1719_v5  ;;  %v1728_v11 = vld [vmem:[%s2473_s1 + $0x220] ss:$8 sps:$4 sm:$0xff] (!%p173_p3)   ;;  %v1729_v12 = vld [vmem:[%s2473_s1 + $0x34] ss:$8 sps:$4 sm:$0xff] (!%p173_p3)   ;;  %v1733_v14 = vld [vmem:[%s2473_s1 + $0x30] ss:$8 sps:$4 sm:$0xff] (!%p173_p3)  }
   0xb   : > { %v1731_v13 = vld [vmem:[%s2473_s1 + $0x234] ss:$8 sps:$4 sm:$0xff] (!%p173_p3)   ;;  %v1734_v15 = vld [vmem:[%s2473_s1 + $0x230] ss:$8 sps:$4 sm:$0xff] (!%p173_p3)   ;;  %v1735_v16 = vld [vmem:[%s2473_s1 + $0x44] ss:$8 sps:$4 sm:$0xff] (!%p173_p3)  }
   0xc   : > { %1171 = vmatpush1.bf16.msra.mxu1 (!%p173_p3), %v1721_v6  ;;  %v1737_v17 = vld [vmem:[%s2473_s1 + $0x244] ss:$8 sps:$4 sm:$0xff] (!%p173_p3)   ;;  %v1739_v18 = vld [vmem:[%s2473_s1 + $0x40] ss:$8 sps:$4 sm:$0xff] (!%p173_p3)   ;;  %v1741_v20 = vld [vmem:[%s2473_s1 + $0x54] ss:$8 sps:$4 sm:$0xff] (!%p173_p3)  }
   0xd   : > { %1257 = vmatpush1.bf16.msra.mxu0 (!%p173_p3), %v1722_v7  ;;  %1172 = vmatprep.subr.bf16.mxu1 (!%p173_p3), %v1723_v8  ;;  %v1740_v19 = vld [vmem:[%s2473_s1 + $0x240] ss:$8 sps:$4 sm:$0xff] (!%p173_p3)   ;;  %v1743_v21 = vld [vmem:[%s2473_s1 + $0x254] ss:$8 sps:$4 sm:$0xff] (!%p173_p3)   ;;  %v1745_v22 = vld [vmem:[%s2473_s1 + $0x50] ss:$8 sps:$4 sm:$0xff] (!%p173_p3)  }
   0xe   : > { %1258 = vmatprep.subr.bf16.mxu0 %v1725_v9  ;;  %v1746_v23 = vld [vmem:[%s2473_s1 + $0x250] ss:$8 sps:$4 sm:$0xff]   ;;  %v1747_v24 = vld [vmem:[%s2473_s1 + $0x64] ss:$8 sps:$4 sm:$0xff]   ;;  %v1751_v26 = vld [vmem:[%s2473_s1 + $0x60] ss:$8 sps:$4 sm:$0xff]  }
   0xf   : > { %v1749_v25 = vld [vmem:[%s2473_s1 + $0x264] ss:$8 sps:$4 sm:$0xff]   ;;  %v1752_v27 = vld [vmem:[%s2473_s1 + $0x260] ss:$8 sps:$4 sm:$0xff]   ;;  %v1753_v28 = vld [vmem:[%s2473_s1 + $0x74] ss:$8 sps:$4 sm:$0xff]  }
  0x10   : > { %1173 = vmatpush1.bf16.msra.mxu1 %v1727_v10  ;;  %v1755_v29 = vld [vmem:[%s2473_s1 + $0x274] ss:$8 sps:$4 sm:$0xff]   ;;  %v1757_v30 = vld [vmem:[%s2473_s1 + $0x70] ss:$8 sps:$4 sm:$0xff]   ;;  %v1759_v32 = vld [vmem:[%s2473_s1 + $0x84] ss:$8 sps:$4 sm:$0xff]  }
  0x11   : > { %1259 = vmatpush1.bf16.msra.mxu0 %v1728_v11  ;;  %1174 = vmatprep.subr.bf16.mxu1 %v1729_v12  ;;  %v1758_v31 = vld [vmem:[%s2473_s1 + $0x270] ss:$8 sps:$4 sm:$0xff]   ;;  %v1761_v33 = vld [vmem:[%s2473_s1 + $0x284] ss:$8 sps:$4 sm:$0xff]   ;;  %v1763_v34 = vld [vmem:[%s2473_s1 + $0x80] ss:$8 sps:$4 sm:$0xff]  }
  0x12   : > { %1260 = vmatprep.subr.bf16.mxu0 %v1731_v13  ;;  %v1764_v35 = vld [vmem:[%s2473_s1 + $0x280] ss:$8 sps:$4 sm:$0xff]   ;;  %v1765_v36 = vld [vmem:[%s2473_s1 + $0x94] ss:$8 sps:$4 sm:$0xff]   ;;  %s2481_s12 = smov (!%p209_p4, %s1954_s12), 1 }
  0x13   : > { %v1767_v37 = vld [vmem:[%s2473_s1 + $0x294] ss:$8 sps:$4 sm:$0xff]   ;;  %v1769_v38 = vld [vmem:[%s2473_s1 + $0x90] ss:$8 sps:$4 sm:$0xff]   ;;  %v1771_v40 = vld [vmem:[%s2473_s1 + $0xa4] ss:$8 sps:$4 sm:$0xff]  }
  0x14   : > { %1175 = vmatpush1.bf16.msra.mxu1 %v1733_v14  ;;  %v1770_v39 = vld [vmem:[%s2473_s1 + $0x290] ss:$8 sps:$4 sm:$0xff]   ;;  %v1773_v41 = vld [vmem:[%s2473_s1 + $0x2a4] ss:$8 sps:$4 sm:$0xff]   ;;  %s1685_s4 = smul.u32 72, %s2481_s12  ;;  %s1664_s20 = sshll.u32 %s2481_s12, 5 }
  0x15   : > { %1261 = vmatpush1.bf16.msra.mxu0 %v1734_v15  ;;  %1176 = vmatprep.subr.bf16.mxu1 %v1735_v16  ;;  %v1775_v42 = vld [vmem:[%s2473_s1 + $0xa0] ss:$8 sps:$4 sm:$0xff]   ;;  %v1777_v44 = vld [vmem:[%s2473_s1 + $0xb4] ss:$8 sps:$4 sm:$0xff]   ;;  %v1781_v46 = vld [vmem:[%s2473_s1 + $0xb0] ss:$8 sps:$4 sm:$0xff]   ;;  %s233_s22 = scalar_lea.vmem %s2475_s3, %s1664_s20 }
  0x16   : > { %1262 = vmatprep.subr.bf16.mxu0 %v1737_v17  ;;  %v1776_v43 = vld [vmem:[%s2473_s1 + $0x2a0] ss:$8 sps:$4 sm:$0xff]   ;;  %v1779_v45 = vld [vmem:[%s2473_s1 + $0x2b4] ss:$8 sps:$4 sm:$0xff]   ;;  %s2151_s19 = scalar_lea.vmem %s2472_s0, %s1685_s4  ;;  %v1782_v47 = vld [vmem:[%s2473_s1 + $0x2b0] ss:$8 sps:$4 sm:$0xff]  }
  0x17   : > { %v1783_v48 = vld [vmem:[%s2473_s1 + $0xc4] ss:$8 sps:$4 sm:$0xff]   ;;  %v1815_v51 = vld [vmem:[%s2151_s19 + $0x14] ss:$36 sps:$4 sm:$0x1f]  }
  0x18   : > { %1177 = vmatpush1.bf16.msra.mxu1 %v1739_v18  ;;  %v1809_v49 = vld [vmem:[%s2151_s19 + $0x4] ss:$36 sps:$4 sm:$0x1f]   ;;  %v1789_v54 = vld [vmem:[%s2473_s1 + $0xd4] ss:$8 sps:$4 sm:$0xff]   ;;  %1286 = vmatprep.mubr.bf16.mxu0 %v1815_v51 }
  0x19   : > { %1263 = vmatpush1.bf16.msra.mxu0 %v1740_v19  ;;  %1178 = vmatprep.subr.bf16.mxu1 %v1741_v20  ;;  %v1785_v50 = vld [vmem:[%s2473_s1 + $0x2c4] ss:$8 sps:$4 sm:$0xff]   ;;  %v1787_v52 = vld [vmem:[%s2473_s1 + $0xc0] ss:$8 sps:$4 sm:$0xff]   ;;  %v1791_v55 = vld [vmem:[%s2473_s1 + $0x2d4] ss:$8 sps:$4 sm:$0xff]  }
  0x1a   : > { %1264 = vmatprep.subr.bf16.mxu0 %v1743_v21  ;;  %1200 = vmatprep.mubr.bf16.mxu1 %v1809_v49  ;;  %v1788_v53 = vld [vmem:[%s2473_s1 + $0x2c0] ss:$8 sps:$4 sm:$0xff]   ;;  %v1793_v56 = vld [vmem:[%s2473_s1 + $0xd0] ss:$8 sps:$4 sm:$0xff]   ;;  %v1795_v58 = vld [vmem:[%s2473_s1 + $0xe4] ss:$8 sps:$4 sm:$0xff]  }
  0x1b   : > { %v1794_v57 = vld [vmem:[%s2473_s1 + $0x2d0] ss:$8 sps:$4 sm:$0xff]   ;;  %v1797_v59 = vld [vmem:[%s2473_s1 + $0x2e4] ss:$8 sps:$4 sm:$0xff]   ;;  %v1799_v60 = vld [vmem:[%s2473_s1 + $0xe0] ss:$8 sps:$4 sm:$0xff]  }
  0x1c   : > { %1179 = vmatpush1.bf16.msra.mxu1 %v1745_v22  ;;  %v1800_v61 = vld [vmem:[%s2473_s1 + $0x2e0] ss:$8 sps:$4 sm:$0xff]   ;;  %v1801_v62 = vld [vmem:[%s2473_s1 + $0xf4] ss:$8 sps:$4 sm:$0xff]   ;;  %v1805_v0 = vld [vmem:[%s2473_s1 + $0xf0] ss:$8 sps:$4 sm:$0xff]  }
  0x1d   : > { %1265 = vmatpush1.bf16.msra.mxu0 %v1746_v23  ;;  %1180 = vmatprep.subr.bf16.mxu1 %v1747_v24  ;;  %v1803_v63 = vld [vmem:[%s2473_s1 + $0x2f4] ss:$8 sps:$4 sm:$0xff]   ;;  %v1806_v1 = vld [vmem:[%s2473_s1 + $0x2f0] ss:$8 sps:$4 sm:$0xff]   ;;  %v1812_v2 = vld [vmem:[%s2473_s1 + $0x104] ss:$8 sps:$4 sm:$0xff]  }
  0x1e   : > { %1266 = vmatprep.subr.bf16.mxu0 %v1749_v25  ;;  %v1818_v3 = vld [vmem:[%s2473_s1 + $0x304] ss:$8 sps:$4 sm:$0xff]   ;;  %v1810_v5 = vld [vmem:[%s2473_s1 + $0x100] ss:$8 sps:$4 sm:$0xff]   ;;  %v1821_v8 = vld [vmem:[%s2473_s1 + $0x114] ss:$8 sps:$4 sm:$0xff]  }
  0x1f   : > { %v1807_v4 = vld [vmem:[%s2151_s19] ss:$36 sps:$4 sm:$0x1f]   ;;  %v1813_v6 = vld [vmem:[%s2151_s19 + $0x10] ss:$36 sps:$4 sm:$0x1f]  }
  0x20   : > { %1181 = vmatpush1.bf16.msra.mxu1 %v1751_v26  ;;  %v1816_v7 = vld [vmem:[%s2473_s1 + $0x300] ss:$8 sps:$4 sm:$0xff]   ;;  %v1824_v9 = vld [vmem:[%s2473_s1 + $0x314] ss:$8 sps:$4 sm:$0xff]   ;;  %v1819_v10 = vld [vmem:[%s2473_s1 + $0x110] ss:$8 sps:$4 sm:$0xff]  }
  0x21   : > { %1267 = vmatpush1.bf16.msra.mxu0 %v1752_v27  ;;  %1182 = vmatprep.subr.bf16.mxu1 %v1753_v28  ;;  %v1822_v11 = vld [vmem:[%s2473_s1 + $0x310] ss:$8 sps:$4 sm:$0xff]   ;;  %v1827_v12 = vld [vmem:[%s2473_s1 + $0x124] ss:$8 sps:$4 sm:$0xff]   ;;  %v1825_v14 = vld [vmem:[%s2473_s1 + $0x120] ss:$8 sps:$4 sm:$0xff]  }
  0x22   : > { %1268 = vmatprep.subr.bf16.mxu0 %v1755_v29  ;;  %v1830_v13 = vld [vmem:[%s2473_s1 + $0x324] ss:$8 sps:$4 sm:$0xff]   ;;  %v1828_v15 = vld [vmem:[%s2473_s1 + $0x320] ss:$8 sps:$4 sm:$0xff]   ;;  %v1833_v16 = vld [vmem:[%s2473_s1 + $0x134] ss:$8 sps:$4 sm:$0xff]  }
  0x23   : > { %v1836_v17 = vld [vmem:[%s2473_s1 + $0x334] ss:$8 sps:$4 sm:$0xff]   ;;  %v1831_v18 = vld [vmem:[%s2473_s1 + $0x130] ss:$8 sps:$4 sm:$0xff]   ;;  %v1839_v20 = vld [vmem:[%s2473_s1 + $0x144] ss:$8 sps:$4 sm:$0xff]  }
  0x24   : > { %1183 = vmatpush1.bf16.msra.mxu1 %v1757_v30  ;;  %v1834_v19 = vld [vmem:[%s2473_s1 + $0x330] ss:$8 sps:$4 sm:$0xff]   ;;  %v1842_v21 = vld [vmem:[%s2473_s1 + $0x344] ss:$8 sps:$4 sm:$0xff]   ;;  %v1837_v22 = vld [vmem:[%s2473_s1 + $0x140] ss:$8 sps:$4 sm:$0xff]  }
  0x25   : > { %1269 = vmatpush1.bf16.msra.mxu0 %v1758_v31  ;;  %1184 = vmatprep.subr.bf16.mxu1 %v1759_v32  ;;  %v1840_v23 = vld [vmem:[%s2473_s1 + $0x340] ss:$8 sps:$4 sm:$0xff]   ;;  %v1845_v24 = vld [vmem:[%s2473_s1 + $0x154] ss:$8 sps:$4 sm:$0xff]   ;;  %v1843_v26 = vld [vmem:[%s2473_s1 + $0x150] ss:$8 sps:$4 sm:$0xff]  }
  0x26   : > { %1270 = vmatprep.subr.bf16.mxu0 %v1761_v33  ;;  %v1848_v25 = vld [vmem:[%s2473_s1 + $0x354] ss:$8 sps:$4 sm:$0xff]   ;;  %v1846_v27 = vld [vmem:[%s2473_s1 + $0x350] ss:$8 sps:$4 sm:$0xff]   ;;  %v1851_v28 = vld [vmem:[%s2473_s1 + $0x164] ss:$8 sps:$4 sm:$0xff]  }
  0x27   : > { %v1854_v29 = vld [vmem:[%s2473_s1 + $0x364] ss:$8 sps:$4 sm:$0xff]   ;;  %v1849_v30 = vld [vmem:[%s2473_s1 + $0x160] ss:$8 sps:$4 sm:$0xff]   ;;  %v1857_v32 = vld [vmem:[%s2473_s1 + $0x174] ss:$8 sps:$4 sm:$0xff]  }
  0x28   : > { %1185 = vmatpush1.bf16.msra.mxu1 %v1763_v34  ;;  %v1852_v31 = vld [vmem:[%s2473_s1 + $0x360] ss:$8 sps:$4 sm:$0xff]   ;;  %v1860_v33 = vld [vmem:[%s2473_s1 + $0x374] ss:$8 sps:$4 sm:$0xff]  }
  0x29   : > { %1271 = vmatpush1.bf16.msra.mxu0 %v1764_v35  ;;  %1186 = vmatprep.subr.bf16.mxu1 %v1765_v36  ;;  %v1911_v34 = vld [vmem:[%s2151_s19 + $0xc] ss:$36 sps:$4 sm:$0x1f]   ;;  %v1914_v35 = vld [vmem:[%s2151_s19 + $0x1c] ss:$36 sps:$4 sm:$0x1f]  }
  0x2a   : > { %1272 = vmatprep.subr.bf16.mxu0 %v1767_v37  ;;  %v1855_v36 = vld [vmem:[%s2473_s1 + $0x170] ss:$8 sps:$4 sm:$0xff]   ;;  %v1876_v49 = vld [vmem:[%s2473_s1 + $0x3a0] ss:$8 sps:$4 sm:$0xff]   ;;  %v1884_v51 = vld [vmem:[%s2473_s1 + $0x3b4] ss:$8 sps:$4 sm:$0xff]  }
  0x2b   : > { %v1858_v37 = vld [vmem:[%s2473_s1 + $0x370] ss:$8 sps:$4 sm:$0xff]  }
  0x2c   : > { %1187 = vmatpush1.bf16.msra.mxu1 %v1769_v38  ;;  %v1863_v38 = vld [vmem:[%s2473_s1 + $0x184] ss:$8 sps:$4 sm:$0xff]  }
  0x2d   : > { %1273 = vmatpush1.bf16.msra.mxu0 %v1770_v39  ;;  %1188 = vmatprep.subr.bf16.mxu1 %v1771_v40  ;;  %v1866_v39 = vld [vmem:[%s2473_s1 + $0x384] ss:$8 sps:$4 sm:$0xff]   ;;  %v1861_v40 = vld [vmem:[%s2473_s1 + $0x180] ss:$8 sps:$4 sm:$0xff]  }
  0x2e   : > { %1274 = vmatprep.subr.bf16.mxu0 %v1773_v41  ;;  %v1864_v41 = vld [vmem:[%s2473_s1 + $0x380] ss:$8 sps:$4 sm:$0xff]  }
  0x30   : > { %1189 = vmatpush1.bf16.msra.mxu1 %v1775_v42  ;;  %v1869_v42 = vld [vmem:[%s2473_s1 + $0x194] ss:$8 sps:$4 sm:$0xff]  }
  0x31   : > { %1275 = vmatpush1.bf16.msra.mxu0 %v1776_v43  ;;  %1190 = vmatprep.subr.bf16.mxu1 %v1777_v44  ;;  %v1872_v43 = vld [vmem:[%s2473_s1 + $0x394] ss:$8 sps:$4 sm:$0xff]   ;;  %v1867_v44 = vld [vmem:[%s2473_s1 + $0x190] ss:$8 sps:$4 sm:$0xff]  }
  0x32   : > { %1276 = vmatprep.subr.bf16.mxu0 %v1779_v45  ;;  %v1870_v45 = vld [vmem:[%s2473_s1 + $0x390] ss:$8 sps:$4 sm:$0xff]  }
  0x34   : > { %1191 = vmatpush1.bf16.msra.mxu1 %v1781_v46  ;;  %v1875_v46 = vld [vmem:[%s2473_s1 + $0x1a4] ss:$8 sps:$4 sm:$0xff]  }
  0x35   : > { %1277 = vmatpush1.bf16.msra.mxu0 %v1782_v47  ;;  %1192 = vmatprep.subr.bf16.mxu1 %v1783_v48  ;;  %v1878_v47 = vld [vmem:[%s2473_s1 + $0x3a4] ss:$8 sps:$4 sm:$0xff]   ;;  %v1873_v48 = vld [vmem:[%s2473_s1 + $0x1a0] ss:$8 sps:$4 sm:$0xff]  }
  0x36   : > { %1278 = vmatprep.subr.bf16.mxu0 %v1785_v50  ;;  %v1881_v50 = vld [vmem:[%s2473_s1 + $0x1b4] ss:$8 sps:$4 sm:$0xff]  }
  0x38   : > { %1193 = vmatpush1.bf16.msra.mxu1 %v1787_v52  ;;  %v1879_v52 = vld [vmem:[%s2473_s1 + $0x1b0] ss:$8 sps:$4 sm:$0xff]  }
  0x39   : > { %1279 = vmatpush1.bf16.msra.mxu0 %v1788_v53  ;;  %1194 = vmatprep.subr.bf16.mxu1 %v1789_v54  ;;  %v1882_v53 = vld [vmem:[%s2473_s1 + $0x3b0] ss:$8 sps:$4 sm:$0xff]   ;;  %v1887_v54 = vld [vmem:[%s2473_s1 + $0x1c4] ss:$8 sps:$4 sm:$0xff]  }
  0x3a   : > { %1280 = vmatprep.subr.bf16.mxu0 %v1791_v55  ;;  %v1890_v55 = vld [vmem:[%s2473_s1 + $0x3c4] ss:$8 sps:$4 sm:$0xff]  }
  0x3c   : > { %1195 = vmatpush1.bf16.msra.mxu1 %v1793_v56  ;;  %v1885_v56 = vld [vmem:[%s2473_s1 + $0x1c0] ss:$8 sps:$4 sm:$0xff]  }
  0x3d   : > { %1281 = vmatpush1.bf16.msra.mxu0 %v1794_v57  ;;  %1196 = vmatprep.subr.bf16.mxu1 %v1795_v58  ;;  %v1888_v57 = vld [vmem:[%s2473_s1 + $0x3c0] ss:$8 sps:$4 sm:$0xff]   ;;  %v1893_v58 = vld [vmem:[%s2473_s1 + $0x1d4] ss:$8 sps:$4 sm:$0xff]  }
  0x3e   : > { %1282 = vmatprep.subr.bf16.mxu0 %v1797_v59  ;;  %v1896_v59 = vld [vmem:[%s2473_s1 + $0x3d4] ss:$8 sps:$4 sm:$0xff]  }
  0x40   : > { %1197 = vmatpush1.bf16.msra.mxu1 %v1799_v60  ;;  %v1891_v60 = vld [vmem:[%s2473_s1 + $0x1d0] ss:$8 sps:$4 sm:$0xff]  }
  0x41   : > { %1283 = vmatpush1.bf16.msra.mxu0 %v1800_v61  ;;  %1198 = vmatprep.subr.bf16.mxu1 %v1801_v62  ;;  %v1894_v61 = vld [vmem:[%s2473_s1 + $0x3d0] ss:$8 sps:$4 sm:$0xff]   ;;  %v1899_v62 = vld [vmem:[%s2473_s1 + $0x1e4] ss:$8 sps:$4 sm:$0xff]  }
  0x42   : > { %1284 = vmatprep.subr.bf16.mxu0 %v1803_v63  ;;  %v1902_v63 = vld [vmem:[%s2473_s1 + $0x3e4] ss:$8 sps:$4 sm:$0xff]  }
  0x44   : > { %1199 = vmatpush1.bf16.msra.mxu1 %v1805_v0  ;;  %v1897_v0 = vld [vmem:[%s2473_s1 + $0x1e0] ss:$8 sps:$4 sm:$0xff]  }
  0x45   : > { %1285 = vmatpush1.bf16.msra.mxu0 %v1806_v1  ;;  %1211 = vmatprep.subr.bf16.mxu1 %v1812_v2  ;;  %v1900_v1 = vld [vmem:[%s2473_s1 + $0x3e0] ss:$8 sps:$4 sm:$0xff]   ;;  %v1905_v2 = vld [vmem:[%s2473_s1 + $0x1f4] ss:$8 sps:$4 sm:$0xff]  }
  0x46   : > { %1297 = vmatprep.subr.bf16.mxu0 %v1818_v3  ;;  %v1908_v3 = vld [vmem:[%s2473_s1 + $0x3f4] ss:$8 sps:$4 sm:$0xff]  }
  0x47   : > { %1201 = vmatmul.mubr.bf16.vlgmr.msra.gmra.mrb[0].mxu1 %v1807_v4  ;;  %v1903_v4 = vld [vmem:[%s2473_s1 + $0x1f0] ss:$8 sps:$4 sm:$0xff]  }
  0x48   : > { %1287 = vmatmul.mubr.bf16.vlgmr.msra.gmra.mrb[0].mxu0 %v1813_v6  ;;  %1212 = vmatpush1.bf16.msra.mxu1 %v1810_v5  ;;  %v1906_v5 = vld [vmem:[%s2473_s1 + $0x3f0] ss:$8 sps:$4 sm:$0xff]   ;;  %v1917_v6 = vld [vmem:[%s2473_s1 + $0x404] ss:$8 sps:$4 sm:$0xff]  }
  0x49   : > { %1298 = vmatpush1.bf16.msra.mxu0 %v1816_v7  ;;  %1213 = vmatprep.subr.bf16.mxu1 %v1821_v8  ;;  %v1909_v7 = vld [vmem:[%s2151_s19 + $0x8] ss:$36 sps:$4 sm:$0x1f]   ;;  %v1912_v8 = vld [vmem:[%s2151_s19 + $0x18] ss:$36 sps:$4 sm:$0x1f]  }
  0x4a   : > { %1299 = vmatprep.subr.bf16.mxu0 %v1824_v9  ;;  %1243 = vmatprep.mubr.bf16.mxu1 %v1911_v34  ;;  %v1915_v9 = vld [vmem:[%s2473_s1 + $0x400] ss:$8 sps:$4 sm:$0xff]  }
  0x4b   : > { %1329 = vmatprep.mubr.bf16.mxu0 %v1914_v35 }
  0x4c   : > { %1214 = vmatpush1.bf16.msra.mxu1 %v1819_v10  ;;  %v1920_v10 = vld [vmem:[%s2473_s1 + $0x414] ss:$8 sps:$4 sm:$0xff]  }
  0x4d   : > { %1300 = vmatpush1.bf16.msra.mxu0 %v1822_v11  ;;  %1215 = vmatprep.subr.bf16.mxu1 %v1827_v12  ;;  %v1918_v11 = vld [vmem:[%s2473_s1 + $0x410] ss:$8 sps:$4 sm:$0xff]   ;;  %v1964_v12 = vmov 0  }
  0x4e   : > { %1301 = vmatprep.subr.bf16.mxu0 %v1830_v13  ;;  %v1923_v13 = vld [vmem:[%s2473_s1 + $0x424] ss:$8 sps:$4 sm:$0xff]  }
  0x50   : > { %1216 = vmatpush1.bf16.msra.mxu1 %v1825_v14  ;;  %v1921_v14 = vld [vmem:[%s2473_s1 + $0x420] ss:$8 sps:$4 sm:$0xff]  }
  0x51   : > { %1302 = vmatpush1.bf16.msra.mxu0 %v1828_v15  ;;  %1217 = vmatprep.subr.bf16.mxu1 %v1833_v16  ;;  %v1926_v15 = vld [vmem:[%s2473_s1 + $0x434] ss:$8 sps:$4 sm:$0xff]   ;;  %v1924_v16 = vld [vmem:[%s2473_s1 + $0x430] ss:$8 sps:$4 sm:$0xff]  }
  0x52   : > { %1303 = vmatprep.subr.bf16.mxu0 %v1836_v17  ;;  %v1929_v17 = vld [vmem:[%s2473_s1 + $0x444] ss:$8 sps:$4 sm:$0xff]  }
  0x54   : > { %1218 = vmatpush1.bf16.msra.mxu1 %v1831_v18  ;;  %v1927_v18 = vld [vmem:[%s2473_s1 + $0x440] ss:$8 sps:$4 sm:$0xff]  }
  0x55   : > { %1304 = vmatpush1.bf16.msra.mxu0 %v1834_v19  ;;  %1219 = vmatprep.subr.bf16.mxu1 %v1839_v20  ;;  %v1932_v19 = vld [vmem:[%s2473_s1 + $0x454] ss:$8 sps:$4 sm:$0xff]   ;;  %v1930_v20 = vld [vmem:[%s2473_s1 + $0x450] ss:$8 sps:$4 sm:$0xff]  }
  0x56   : > { %1305 = vmatprep.subr.bf16.mxu0 %v1842_v21  ;;  %v1935_v21 = vld [vmem:[%s2473_s1 + $0x464] ss:$8 sps:$4 sm:$0xff]  }
  0x58   : > { %1220 = vmatpush1.bf16.msra.mxu1 %v1837_v22  ;;  %v1933_v22 = vld [vmem:[%s2473_s1 + $0x460] ss:$8 sps:$4 sm:$0xff]  }
  0x59   : > { %1306 = vmatpush1.bf16.msra.mxu0 %v1840_v23  ;;  %1221 = vmatprep.subr.bf16.mxu1 %v1845_v24  ;;  %v1938_v23 = vld [vmem:[%s2473_s1 + $0x474] ss:$8 sps:$4 sm:$0xff]   ;;  %v1936_v24 = vld [vmem:[%s2473_s1 + $0x470] ss:$8 sps:$4 sm:$0xff]  }
  0x5a   : > { %1307 = vmatprep.subr.bf16.mxu0 %v1848_v25  ;;  %v1939_v25 = vld [vmem:[%s2151_s19 + $0x20] ss:$36 sps:$4 sm:$0x1f]  }
  0x5c   : > { %1222 = vmatpush1.bf16.msra.mxu1 %v1843_v26 }
  0x5d   : > { %1308 = vmatpush1.bf16.msra.mxu0 %v1846_v27  ;;  %1223 = vmatprep.subr.bf16.mxu1 %v1851_v28 }
  0x5e   : > { %1309 = vmatprep.subr.bf16.mxu0 %v1854_v29 }
  0x60   : > { %1224 = vmatpush1.bf16.msra.mxu1 %v1849_v30  ;;  %v392_v30 = vlaneseq }
  0x61   : > { %1310 = vmatpush1.bf16.msra.mxu0 %v1852_v31  ;;  %1225 = vmatprep.subr.bf16.mxu1 %v1857_v32 }
  0x62   : > { %1311 = vmatprep.subr.bf16.mxu0 %v1860_v33  ;;  %v393_v31 = vshrl.u32 %v392_v30, 7  ;;  %v390_v33 = vld [vmem:[%s2474_s2] sm:$0x3] }
  0x64   : > { %1226 = vmatpush1.bf16.msra.mxu1 %v1855_v36  ;;  %v394_v32 = vsub.s32 0, %v393_v31  ;;  %v398_v34 = vsub.s32 1, %v393_v31 }
  0x65   : > { %1312 = vmatpush1.bf16.msra.mxu0 %v1858_v37  ;;  %1227 = vmatprep.subr.bf16.mxu1 %v1863_v38 }
  0x66   : > { %1313 = vmatprep.subr.bf16.mxu0 %v1866_v39  ;;  %v395_v35 = vrot.slane %v390_v33, %v394_v32  ;;  %v399_v36 = vrot.slane %v390_v33, %v398_v34 }
  0x68   : > { %1228 = vmatpush1.bf16.msra.mxu1 %v1861_v40 }
  0x69   : > { %1314 = vmatpush1.bf16.msra.mxu0 %v1864_v41  ;;  %1229 = vmatprep.subr.bf16.mxu1 %v1869_v42 }
  0x6a   : > { %1315 = vmatprep.subr.bf16.mxu0 %v1872_v43 }
  0x6c   : > { %1230 = vmatpush1.bf16.msra.mxu1 %v1867_v44 }
  0x6d   : > { %1316 = vmatpush1.bf16.msra.mxu0 %v1870_v45  ;;  %1231 = vmatprep.subr.bf16.mxu1 %v1875_v46 }
  0x6e   : > { %1317 = vmatprep.subr.bf16.mxu0 %v1878_v47 }
  0x70   : > { %1232 = vmatpush1.bf16.msra.mxu1 %v1873_v48 }
  0x71   : > { %1318 = vmatpush1.bf16.msra.mxu0 %v1876_v49  ;;  %1233 = vmatprep.subr.bf16.mxu1 %v1881_v50 }
  0x72   : > { %1319 = vmatprep.subr.bf16.mxu0 %v1884_v51 }
  0x74   : > { %1234 = vmatpush1.bf16.msra.mxu1 %v1879_v52 }
  0x75   : > { %1320 = vmatpush1.bf16.msra.mxu0 %v1882_v53  ;;  %1235 = vmatprep.subr.bf16.mxu1 %v1887_v54 }
  0x76   : > { %1321 = vmatprep.subr.bf16.mxu0 %v1890_v55 }
  0x78   : > { %1236 = vmatpush1.bf16.msra.mxu1 %v1885_v56 }
  0x79   : > { %1322 = vmatpush1.bf16.msra.mxu0 %v1888_v57  ;;  %1237 = vmatprep.subr.bf16.mxu1 %v1893_v58 }
  0x7a   : > { %1323 = vmatprep.subr.bf16.mxu0 %v1896_v59 }
  0x7c   : > { %1238 = vmatpush1.bf16.msra.mxu1 %v1891_v60 }
  0x7d   : > { %1324 = vmatpush1.bf16.msra.mxu0 %v1894_v61  ;;  %1239 = vmatprep.subr.bf16.mxu1 %v1899_v62 }
  0x7e   : > { %1325 = vmatprep.subr.bf16.mxu0 %v1902_v63 }
  0x80   : > { %1240 = vmatpush1.bf16.msra.mxu1 %v1897_v0 }
  0x81   : > { %1326 = vmatpush1.bf16.msra.mxu0 %v1900_v1  ;;  %1241 = vmatprep.subr.bf16.mxu1 %v1905_v2 }
  0x82   : > { %1327 = vmatprep.subr.bf16.mxu0 %v1908_v3 }
  0x84   : > { %1242 = vmatpush1.bf16.msra.mxu1 %v1903_v4 }
  0x85   : > { %1328 = vmatpush1.bf16.msra.mxu0 %v1906_v5 }
  0x86   : > { %1340 = vmatprep.subr.bf16.mxu0 %v1917_v6 }
  0x87   : > { %1244 = vmatmul.mubr.bf16.vlgmr.msra.gmra.mrb[0].mxu1 %v1909_v7 }
  0x88   : > { %1330 = vmatmul.mubr.bf16.vlgmr.msra.gmra.mrb[0].mxu0 %v1912_v8 }
  0x89   : > { %1341 = vmatpush1.bf16.msra.mxu0 %v1915_v9  ;;  %1372 = vmatprep.mubr.bf16.mxu0 %v1964_v12 }
  0x8a   : > { %1342 = vmatprep.subr.bf16.mxu0 %v1920_v10 }
  0x8d   : > { %1343 = vmatpush1.bf16.msra.mxu0 %v1918_v11 }
  0x8e   : > { %1344 = vmatprep.subr.bf16.mxu0 %v1923_v13 }
  0x91   : > { %1345 = vmatpush1.bf16.msra.mxu0 %v1921_v14 }
  0x92   : > { %1346 = vmatprep.subr.bf16.mxu0 %v1926_v15 }
  0x95   : > { %1347 = vmatpush1.bf16.msra.mxu0 %v1924_v16 }
  0x96   : > { %1348 = vmatprep.subr.bf16.mxu0 %v1929_v17 }
  0x99   : > { %1349 = vmatpush1.bf16.msra.mxu0 %v1927_v18 }
  0x9a   : > { %1350 = vmatprep.subr.bf16.mxu0 %v1932_v19 }
  0x9d   : > { %1351 = vmatpush1.bf16.msra.mxu0 %v1930_v20 }
  0x9e   : > { %1352 = vmatprep.subr.bf16.mxu0 %v1935_v21 }
  0xa1   : > { %1353 = vmatpush1.bf16.msra.mxu0 %v1933_v22 }
  0xa2   : > { %1354 = vmatprep.subr.bf16.mxu0 %v1938_v23 }
  0xa5   : > { %1355 = vmatpush1.bf16.msra.mxu0 %v1936_v24 }
  0xa8   : > { %1373 = vmatmul.mubr.bf16.vlgmr.msra.gmra.mrb[0].mxu0 %v1939_v25 }
 0x15a   : > { %v1245_v26 = vpop.f32.mrb[0].mxu1 }
 0x15b   : > { %v1247_v27 = vpop.f32.mrb[1].mxu1  ;;  %v1665_v37 = vadd.f32 %v1245_v26, %v395_v35 }
 0x15c   : > { %v1249_v28 = vpop.f32.mrb[2].mxu1  ;;  %v1667_v38 = vadd.f32 %v1247_v27, %v399_v36 }
 0x15d   : > { %v1251_v29 = vpop.f32.mrb[3].mxu1  ;;  %v1669_v40 = vadd.f32 %v1249_v28, %v395_v35 }
 0x15e   : > { %v1671_v43 = vadd.f32 %v1251_v29, %v399_v36 }
 0x17b   : > { %v1374_v39 = vpop.f32.mrb[0].mxu0 }
 0x17c   : > { %v1666_v41 = vadd.f32 %v1665_v37, %v1374_v39  ;;  %v1376_v42 = vpop.f32.mrb[1].mxu0 }
 0x17d   : > { %v1668_v44 = vadd.f32 %v1667_v38, %v1376_v42  ;;  %v1378_v45 = vpop.f32.mrb[2].mxu0 }
 0x17e   : > { %v1383_v46 = vmax.f32 %v1666_v41, 0.0  ;;  %v1670_v47 = vadd.f32 %v1669_v40, %v1378_v45  ;;  %v1380_v48 = vpop.f32.mrb[3].mxu0 }
 0x17f   : > { %v1384_v49 = vmax.f32 %v1668_v44, 0.0  ;;  %v1672_v50 = vadd.f32 %v1671_v43, %v1380_v48 }
 0x180   : > { %1387 = vst [vmem:[%s233_s22] sm:$0xff] %v1383_v46  ;;  %v1385_v51 = vmax.f32 %v1670_v47, 0.0 }
 0x181   : > { %1388 = vst [vmem:[%s233_s22 + $0x8] sm:$0xff] %v1384_v49  ;;  %v1386_v52 = vmax.f32 %v1672_v50, 0.0 }
 0x182   : > { %1389 = vst [vmem:[%s233_s22 + $0x10] sm:$0x1] %v1385_v51 }
 0x183   : > { %1390 = vst [vmem:[%s233_s22 + $0x18] sm:$0x1] %v1386_v52 }
 0x184 PF: > { %s13_s14 = sadd.s32 1, %s1962_s14   ;;  %s2476_s12 = smov %s1958_s13 }
 0x185   : > { %p10_p5 = scmp.ge.s32.totalorder %s13_s14, 4   ;;  %s2477_s13 = smov %s2479_s15 }
 0x187   :  { %12 = sbr.rel (!%p10_p5) target bundleno = 2 (0x2), region = 68 }

// kernel: aux_convs_forward.15
= control target key start
LH: loop header
LB: loop body
LE: loop exit
PB: predicated region body
PF: predicated region fallthrough
CT: control target
= control target key end

     0   :  { %8 = vsyncpa [#allocation3], 0  ;;  %s2651_s0 = inlined_call_operand.vmem [shape: bf16[2,1,1152], index: 0, kind: input, shape index: {}]   ;;  %s2652_s1 = inlined_call_operand.vmem [shape: bf16[1152,256], index: 1, kind: input, shape index: {}]   ;;  %s2653_s2 = inlined_call_operand.vmem [shape: f32[1,256], index: 2, kind: input, shape index: {}]   ;;  %s2654_s3 = inlined_call_operand.hbm [shape: f32[2,1,256], index: 3, kind: output, shape index: {}]  }
   0x1   :  { %10 = vsyncpa [#allocation3 + $0x1], 0  ;;  %s2072_s12 = smov 0   ;;  %s2074_s13 = smov 0  }
   0x2   :  { %s2076_s14 = smov 0   ;;  %s2078_s15 = smov 0  }
   0x3   :  { %s2080_s16 = smov 0   ;;  %s2082_s17 = smov 0  }
   0x4 LB: > { %s1519_s18 = sadd.s32 4294967295, %s2047_s17   ;;  %s1520_s19 = sadd.s32 4294967294, %s2047_s17   ;;  %s2047_s17 = sphi %s2082_s17, %s16_s17   ;;  %s2043_s16 = sphi %s2080_s16, %s2661_s16   ;;  %s2039_s15 = sphi %s2078_s15, %s2660_s15   ;;  %s2035_s14 = sphi %s2076_s14, %s2659_s14   ;;  %s2031_s13 = sphi %s2074_s13, %s2658_s13   ;;  %s2027_s12 = sphi %s2072_s12, %s2657_s12  }
   0x5   : > { %s28_s20 = sadd.s32 1, %s2043_s16  ;;  %s115_s21 = sadd.s32 1, %s2035_s14 }
   0x6   : > { %p30_p0 = scmp.ge.s32.totalorder %s28_s20, 2  ;;  %p125_p1 = scmp.ne.s32.totalorder %s2035_s14, %s2031_s13 }
   0x7   : > { %p126_p2 = scmp.eq.s32.totalorder %s1519_s18, 1  ;;  %p131_p3 = scmp.ne.s32.totalorder %s2031_s13, %s2027_s12 }
   0x8   : > { %s2663_s20 = smov (%p30_p0, %s28_s20), 0  ;;  %p132_p5 = scmp.eq.s32.totalorder %s1520_s19, 1 }
   0x9   : > { %p2112_p4 = por %p126_p2, %p125_p1  ;;  %s110_s23 = ssub.s32 %s2043_s16, %s2663_s20 }
   0xa   : > { %p1525_p6 = scmp.ge.s32.totalorder %s2047_s17, 1  ;;  %p113_p7 = scmp.eq.s32.totalorder %s110_s23, 0 }
   0xb   : > { %p2119_p8 = por %p132_p5, %p131_p3  ;;  %p174_p9 = scmp.lt.s32.totalorder %s2047_s17, 3 }
   0xc   : > { %s2125_s25 = scalar_select %p113_p7, %s2035_s14, %s115_s21  }
   0xd   : > { %p175_p10 = pnand %p1525_p6, %p174_p9 }
   0xe   : > { %v1752_v0 = vld [vmem:[%s2652_s1 + $0x4] ss:$8 sps:$4 sm:$0xff] (!%p175_p10)   ;;  %v1756_v2 = vld [vmem:[%s2652_s1] ss:$8 sps:$4 sm:$0xff] (!%p175_p10)   ;;  %v1758_v4 = vld [vmem:[%s2652_s1 + $0x14] ss:$8 sps:$4 sm:$0xff] (!%p175_p10)   ;;  %v376_v38 = vlaneseq (!%p175_p10) }
   0xf   : > { %178 = sbr.rel (%p175_p10) target bundleno = 413 (0x19d), region = 32  ;;  %v1754_v1 = vld [vmem:[%s2652_s1 + $0x204] ss:$8 sps:$4 sm:$0xff] (!%p175_p10)   ;;  %1175 = vmatprep.subr.bf16.mxu1 (!%p175_p10), %v1752_v0  ;;  %v1757_v3 = vld [vmem:[%s2652_s1 + $0x200] ss:$8 sps:$4 sm:$0xff] (!%p175_p10)   ;;  %p206_p11 = scmp.lt.s32.totalorder (!%p175_p10), %s2039_s15, 1 }
  0x10   : > { %1257 = vmatprep.subr.bf16.mxu0 (!%p175_p10), %v1754_v1  ;;  %1176 = vmatpush1.bf16.msra.mxu1 (!%p175_p10), %v1756_v2  ;;  %v1760_v5 = vld [vmem:[%s2652_s1 + $0x214] ss:$8 sps:$4 sm:$0xff] (!%p175_p10)   ;;  %v1762_v6 = vld [vmem:[%s2652_s1 + $0x10] ss:$8 sps:$4 sm:$0xff] (!%p175_p10)   ;;  %v1764_v8 = vld [vmem:[%s2652_s1 + $0x24] ss:$8 sps:$4 sm:$0xff] (!%p175_p10)  }
  0x11   : > { %1258 = vmatpush1.bf16.msra.mxu0 (!%p175_p10), %v1757_v3  ;;  %1177 = vmatprep.subr.bf16.mxu1 (!%p175_p10), %v1758_v4  ;;  %v1763_v7 = vld [vmem:[%s2652_s1 + $0x210] ss:$8 sps:$4 sm:$0xff] (!%p175_p10)   ;;  %v1766_v9 = vld [vmem:[%s2652_s1 + $0x224] ss:$8 sps:$4 sm:$0xff] (!%p175_p10)   ;;  %v1768_v10 = vld [vmem:[%s2652_s1 + $0x20] ss:$8 sps:$4 sm:$0xff] (!%p175_p10)  }
  0x12   : > { %1259 = vmatprep.subr.bf16.mxu0 (!%p175_p10), %v1760_v5  ;;  %v1769_v11 = vld [vmem:[%s2652_s1 + $0x220] ss:$8 sps:$4 sm:$0xff] (!%p175_p10)   ;;  %v1770_v12 = vld [vmem:[%s2652_s1 + $0x34] ss:$8 sps:$4 sm:$0xff] (!%p175_p10)   ;;  %v1774_v14 = vld [vmem:[%s2652_s1 + $0x30] ss:$8 sps:$4 sm:$0xff] (!%p175_p10)  }
  0x13   : > { %v1772_v13 = vld [vmem:[%s2652_s1 + $0x234] ss:$8 sps:$4 sm:$0xff] (!%p175_p10)   ;;  %v1775_v15 = vld [vmem:[%s2652_s1 + $0x230] ss:$8 sps:$4 sm:$0xff] (!%p175_p10)   ;;  %v1776_v16 = vld [vmem:[%s2652_s1 + $0x44] ss:$8 sps:$4 sm:$0xff] (!%p175_p10)  }
  0x14   : > { %1178 = vmatpush1.bf16.msra.mxu1 (!%p175_p10), %v1762_v6  ;;  %v1778_v17 = vld [vmem:[%s2652_s1 + $0x244] ss:$8 sps:$4 sm:$0xff] (!%p175_p10)   ;;  %v1780_v18 = vld [vmem:[%s2652_s1 + $0x40] ss:$8 sps:$4 sm:$0xff] (!%p175_p10)   ;;  %v1782_v20 = vld [vmem:[%s2652_s1 + $0x54] ss:$8 sps:$4 sm:$0xff] (!%p175_p10)  }
  0x15   : > { %1260 = vmatpush1.bf16.msra.mxu0 (!%p175_p10), %v1763_v7  ;;  %1179 = vmatprep.subr.bf16.mxu1 (!%p175_p10), %v1764_v8  ;;  %v1781_v19 = vld [vmem:[%s2652_s1 + $0x240] ss:$8 sps:$4 sm:$0xff] (!%p175_p10)   ;;  %v1784_v21 = vld [vmem:[%s2652_s1 + $0x254] ss:$8 sps:$4 sm:$0xff] (!%p175_p10)   ;;  %v1786_v22 = vld [vmem:[%s2652_s1 + $0x50] ss:$8 sps:$4 sm:$0xff] (!%p175_p10)  }
  0x16   : > { %1261 = vmatprep.subr.bf16.mxu0 %v1766_v9  ;;  %v1787_v23 = vld [vmem:[%s2652_s1 + $0x250] ss:$8 sps:$4 sm:$0xff]   ;;  %v1788_v24 = vld [vmem:[%s2652_s1 + $0x64] ss:$8 sps:$4 sm:$0xff]   ;;  %v1792_v26 = vld [vmem:[%s2652_s1 + $0x60] ss:$8 sps:$4 sm:$0xff]  }
  0x17   : > { %v1790_v25 = vld [vmem:[%s2652_s1 + $0x264] ss:$8 sps:$4 sm:$0xff]   ;;  %v1793_v27 = vld [vmem:[%s2652_s1 + $0x260] ss:$8 sps:$4 sm:$0xff]   ;;  %v1794_v28 = vld [vmem:[%s2652_s1 + $0x74] ss:$8 sps:$4 sm:$0xff]  }
  0x18   : > { %1180 = vmatpush1.bf16.msra.mxu1 %v1768_v10  ;;  %v1796_v29 = vld [vmem:[%s2652_s1 + $0x274] ss:$8 sps:$4 sm:$0xff]   ;;  %v1798_v30 = vld [vmem:[%s2652_s1 + $0x70] ss:$8 sps:$4 sm:$0xff]   ;;  %v1800_v32 = vld [vmem:[%s2652_s1 + $0x84] ss:$8 sps:$4 sm:$0xff]  }
  0x19   : > { %1262 = vmatpush1.bf16.msra.mxu0 %v1769_v11  ;;  %1181 = vmatprep.subr.bf16.mxu1 %v1770_v12  ;;  %v1799_v31 = vld [vmem:[%s2652_s1 + $0x270] ss:$8 sps:$4 sm:$0xff]   ;;  %v1802_v33 = vld [vmem:[%s2652_s1 + $0x284] ss:$8 sps:$4 sm:$0xff]   ;;  %v1804_v34 = vld [vmem:[%s2652_s1 + $0x80] ss:$8 sps:$4 sm:$0xff]  }
  0x1a   : > { %1263 = vmatprep.subr.bf16.mxu0 %v1772_v13  ;;  %v1805_v35 = vld [vmem:[%s2652_s1 + $0x280] ss:$8 sps:$4 sm:$0xff]   ;;  %s207_s30 = scalar_select %p206_p11, %s2039_s15, 1  ;;  %v2049_v36 = vmov 1966171168   ;;  %v2247_v43 = vshrl.u32 %v376_v38, 7 }
  0x1b   : > { %v374_v37 = vunpack.c.l.s4 %v2049_v36  ;;  %v1806_v39 = vld [vmem:[%s2652_s1 + $0x94] ss:$8 sps:$4 sm:$0xff]   ;;  %v1810_v41 = vld [vmem:[%s2652_s1 + $0x90] ss:$8 sps:$4 sm:$0xff]   ;;  %v1812_v45 = vld [vmem:[%s2652_s1 + $0xa4] ss:$8 sps:$4 sm:$0xff]  }
  0x1c   : > { %1182 = vmatpush1.bf16.msra.mxu1 %v1774_v14  ;;  %v1808_v40 = vld [vmem:[%s2652_s1 + $0x294] ss:$8 sps:$4 sm:$0xff]   ;;  %s1694_s10 = smul.u32 9, %s207_s30  ;;  %v1811_v44 = vld [vmem:[%s2652_s1 + $0x290] ss:$8 sps:$4 sm:$0xff]   ;;  %s1677_s28 = sshll.u32 %s2039_s15, 5 }
  0x1d   : > { %1264 = vmatpush1.bf16.msra.mxu0 %v1775_v15  ;;  %1183 = vmatprep.subr.bf16.mxu1 %v1776_v16  ;;  %v375_v42 = vunpack.c.0.s8 %v374_v37  ;;  %v1814_v46 = vld [vmem:[%s2652_s1 + $0x2a4] ss:$8 sps:$4 sm:$0xff]   ;;  %v1816_v47 = vld [vmem:[%s2652_s1 + $0xa0] ss:$8 sps:$4 sm:$0xff]   ;;  %v1818_v50 = vld [vmem:[%s2652_s1 + $0xb4] ss:$8 sps:$4 sm:$0xff]   ;;  %s2604_s7 = scalar_lea.hbm %s2654_s3, %s1677_s28 }
  0x1e   : > { %1265 = vmatprep.subr.bf16.mxu0 %v1778_v17  ;;  %v1817_v48 = vld [vmem:[%s2652_s1 + $0x2a0] ss:$8 sps:$4 sm:$0xff]   ;;  %s2267_s6 = scalar_lea.vmem %s2651_s0, %s1694_s10  ;;  %v1820_v51 = vld [vmem:[%s2652_s1 + $0x2b4] ss:$8 sps:$4 sm:$0xff]   ;;  %v1822_v53 = vld [vmem:[%s2652_s1 + $0xb0] ss:$8 sps:$4 sm:$0xff]  }
  0x1f   : > { %v2270_v49 = vsub.s32 %v375_v42, %v2247_v43  ;;  %v223_v52 = vld [vmem:[%s2267_s6] sm:$0xff]  ;;  %v1823_v56 = vld [vmem:[%s2652_s1 + $0x2b0] ss:$8 sps:$4 sm:$0xff]   ;;  %v1830_v1 = vld [vmem:[%s2652_s1 + $0xd4] ss:$8 sps:$4 sm:$0xff]   ;;  %vm1402_vm0 = vcmp.lt.s32.totalorder %v376_v38, 256 }
  0x20   : > { %1184 = vmatpush1.bf16.msra.mxu1 %v1780_v18  ;;  %v372_v55 = vcombine.high %v223_v52, %v223_v52  ;;  %v1824_v57 = vld [vmem:[%s2652_s1 + $0xc4] ss:$8 sps:$4 sm:$0xff]   ;;  %v1828_v61 = vld [vmem:[%s2652_s1 + $0xc0] ss:$8 sps:$4 sm:$0xff]   ;;  %v1832_v2 = vld [vmem:[%s2652_s1 + $0x2d4] ss:$8 sps:$4 sm:$0xff]  }
  0x21   : > { %1266 = vmatpush1.bf16.msra.mxu0 %v1781_v19  ;;  %1185 = vmatprep.subr.bf16.mxu1 %v1782_v20  ;;  %v379_v54 = vrot.slane %v223_v52, %v2270_v49  ;;  %v1826_v58 = vld [vmem:[%s2652_s1 + $0x2c4] ss:$8 sps:$4 sm:$0xff]   ;;  %v1829_v0 = vld [vmem:[%s2652_s1 + $0x2c0] ss:$8 sps:$4 sm:$0xff]   ;;  %v1834_v4 = vld [vmem:[%s2652_s1 + $0xd0] ss:$8 sps:$4 sm:$0xff]  }
  0x22   : > { %1267 = vmatprep.subr.bf16.mxu0 %v1784_v21  ;;  %v386_v60 = vrot.slane %v372_v55, %v2270_v49  ;;  %v1835_v5 = vld [vmem:[%s2652_s1 + $0x2d0] ss:$8 sps:$4 sm:$0xff]   ;;  %v1836_v6 = vld [vmem:[%s2652_s1 + $0xe4] ss:$8 sps:$4 sm:$0xff]   ;;  %v1840_v8 = vld [vmem:[%s2652_s1 + $0xe0] ss:$8 sps:$4 sm:$0xff]  }
  0x23   : > { %v387_v59 = vcombine.high %v379_v54, %v379_v54  ;;  %v1838_v7 = vld [vmem:[%s2652_s1 + $0x2e4] ss:$8 sps:$4 sm:$0xff]   ;;  %v1841_v9 = vld [vmem:[%s2652_s1 + $0x2e0] ss:$8 sps:$4 sm:$0xff]   ;;  %v1842_v10 = vld [vmem:[%s2652_s1 + $0xf4] ss:$8 sps:$4 sm:$0xff]   ;;  %v2347_v17 = vrot.slane %v379_v54, %v2270_v49 }
  0x24   : > { %1186 = vmatpush1.bf16.msra.mxu1 %v1786_v22  ;;  %v388_v63 = vcombine.high %v386_v60, %v386_v60  ;;  %v1844_v11 = vld [vmem:[%s2652_s1 + $0x2f4] ss:$8 sps:$4 sm:$0xff]   ;;  %v1846_v12 = vld [vmem:[%s2652_s1 + $0xf0] ss:$8 sps:$4 sm:$0xff]   ;;  %v1850_v14 = vld [vmem:[%s2652_s1 + $0x104] ss:$8 sps:$4 sm:$0xff]   ;;  %v2350_v18 = vrot.slane %v386_v60, %v2270_v49 }
  0x25   : > { %1268 = vmatpush1.bf16.msra.mxu0 %v1787_v23  ;;  %1187 = vmatprep.subr.bf16.mxu1 %v1788_v24  ;;  %v409_v62 = vrot.slane %v387_v59, %v2270_v49  ;;  %v1847_v13 = vld [vmem:[%s2652_s1 + $0x2f0] ss:$8 sps:$4 sm:$0xff]   ;;  %v1854_v15 = vld [vmem:[%s2652_s1 + $0x304] ss:$8 sps:$4 sm:$0xff]   ;;  %v1848_v16 = vld [vmem:[%s2652_s1 + $0x100] ss:$8 sps:$4 sm:$0xff]  }
  0x26   : > { %1269 = vmatprep.subr.bf16.mxu0 %v1790_v25  ;;  %v416_v3 = vrot.slane %v388_v63, %v2270_v49  ;;  %v1852_v19 = vld [vmem:[%s2652_s1 + $0x300] ss:$8 sps:$4 sm:$0xff]   ;;  %v1857_v20 = vld [vmem:[%s2652_s1 + $0x114] ss:$8 sps:$4 sm:$0xff]   ;;  %v1855_v24 = vld [vmem:[%s2652_s1 + $0x110] ss:$8 sps:$4 sm:$0xff]  }
  0x27   : > { %1207 = vmatprep.mubr.bf16.mxu1 %v409_v62  ;;  %v1860_v21 = vld [vmem:[%s2652_s1 + $0x314] ss:$8 sps:$4 sm:$0xff]   ;;  %v419_v22 = vcombine.high %v409_v62, %v409_v62  ;;  %v1858_v25 = vld [vmem:[%s2652_s1 + $0x310] ss:$8 sps:$4 sm:$0xff]   ;;  %v1873_v36 = vld [vmem:[%s2652_s1 + $0x140] ss:$8 sps:$4 sm:$0xff]  }
  0x28   : > { %1188 = vmatpush1.bf16.msra.mxu1 %v1792_v26  ;;  %1289 = vmatprep.mubr.bf16.mxu0 %v416_v3  ;;  %v420_v23 = vcombine.high %v416_v3, %v416_v3  ;;  %v1863_v26 = vld [vmem:[%s2652_s1 + $0x124] ss:$8 sps:$4 sm:$0xff]   ;;  %v1876_v37 = vld [vmem:[%s2652_s1 + $0x340] ss:$8 sps:$4 sm:$0xff]   ;;  %v1882_v42 = vld [vmem:[%s2652_s1 + $0x350] ss:$8 sps:$4 sm:$0xff]  }
  0x29   : > { %1270 = vmatpush1.bf16.msra.mxu0 %v1793_v27  ;;  %1189 = vmatprep.subr.bf16.mxu1 %v1794_v28  ;;  %v1866_v27 = vld [vmem:[%s2652_s1 + $0x324] ss:$8 sps:$4 sm:$0xff]   ;;  %v1861_v28 = vld [vmem:[%s2652_s1 + $0x120] ss:$8 sps:$4 sm:$0xff]   ;;  %v1894_v52 = vld [vmem:[%s2652_s1 + $0x370] ss:$8 sps:$4 sm:$0xff]  }
  0x2a   : > { %1271 = vmatprep.subr.bf16.mxu0 %v1796_v29  ;;  %v1864_v29 = vld [vmem:[%s2652_s1 + $0x320] ss:$8 sps:$4 sm:$0xff]   ;;  %v1902_v54 = vld [vmem:[%s2652_s1 + $0x384] ss:$8 sps:$4 sm:$0xff]   ;;  %v1903_v59 = vld [vmem:[%s2652_s1 + $0x190] ss:$8 sps:$4 sm:$0xff]  }
  0x2b   : > { %v1897_v55 = vld [vmem:[%s2652_s1 + $0x180] ss:$8 sps:$4 sm:$0xff]   ;;  %v1906_v60 = vld [vmem:[%s2652_s1 + $0x390] ss:$8 sps:$4 sm:$0xff]   ;;  %v1914_v62 = vld [vmem:[%s2652_s1 + $0x3a4] ss:$8 sps:$4 sm:$0xff]  }
  0x2c   : > { %1190 = vmatpush1.bf16.msra.mxu1 %v1798_v30  ;;  %v1869_v30 = vld [vmem:[%s2652_s1 + $0x134] ss:$8 sps:$4 sm:$0xff]   ;;  %v1909_v63 = vld [vmem:[%s2652_s1 + $0x1a0] ss:$8 sps:$4 sm:$0xff]   ;;  %v1915_v3 = vld [vmem:[%s2652_s1 + $0x1b0] ss:$8 sps:$4 sm:$0xff]  }
  0x2d   : > { %1272 = vmatpush1.bf16.msra.mxu0 %v1799_v31  ;;  %1191 = vmatprep.subr.bf16.mxu1 %v1800_v32  ;;  %v1872_v31 = vld [vmem:[%s2652_s1 + $0x334] ss:$8 sps:$4 sm:$0xff]   ;;  %v1867_v32 = vld [vmem:[%s2652_s1 + $0x130] ss:$8 sps:$4 sm:$0xff]   ;;  %s2051_s9 = smov [#allocation2]  }
  0x2e   : > { %1273 = vmatprep.subr.bf16.mxu0 %v1802_v33  ;;  %v1870_v33 = vld [vmem:[%s2652_s1 + $0x330] ss:$8 sps:$4 sm:$0xff]   ;;  %s1973_s11 = sshll.u32 %s2051_s9, 4  ;;  %s1974_s11 = int_to_ptr.vmem [resolvable:$false] %s1973_s11 }
  0x2f   : > { %s1975_s18 = scalar_lea.vmem %s1974_s11, 64 }
  0x30   : > { %1192 = vmatpush1.bf16.msra.mxu1 %v1804_v34  ;;  %v1875_v34 = vld [vmem:[%s2652_s1 + $0x144] ss:$8 sps:$4 sm:$0xff]  }
  0x31   : > { %1274 = vmatpush1.bf16.msra.mxu0 %v1805_v35  ;;  %1193 = vmatprep.subr.bf16.mxu1 %v1806_v39  ;;  %v1878_v35 = vld [vmem:[%s2652_s1 + $0x344] ss:$8 sps:$4 sm:$0xff]   ;;  %v1881_v39 = vld [vmem:[%s2652_s1 + $0x154] ss:$8 sps:$4 sm:$0xff]  }
  0x32   : > { %1275 = vmatprep.subr.bf16.mxu0 %v1808_v40  ;;  %v1884_v40 = vld [vmem:[%s2652_s1 + $0x354] ss:$8 sps:$4 sm:$0xff]  }
  0x34   : > { %1194 = vmatpush1.bf16.msra.mxu1 %v1810_v41  ;;  %v1879_v41 = vld [vmem:[%s2652_s1 + $0x150] ss:$8 sps:$4 sm:$0xff]  }
  0x35   : > { %1276 = vmatpush1.bf16.msra.mxu0 %v1811_v44  ;;  %1195 = vmatprep.subr.bf16.mxu1 %v1812_v45  ;;  %v1887_v44 = vld [vmem:[%s2652_s1 + $0x164] ss:$8 sps:$4 sm:$0xff]  }
  0x36   : > { %1277 = vmatprep.subr.bf16.mxu0 %v1814_v46  ;;  %v1890_v45 = vld [vmem:[%s2652_s1 + $0x364] ss:$8 sps:$4 sm:$0xff]   ;;  %v1885_v46 = vld [vmem:[%s2652_s1 + $0x160] ss:$8 sps:$4 sm:$0xff]  }
  0x38   : > { %1196 = vmatpush1.bf16.msra.mxu1 %v1816_v47  ;;  %v1888_v47 = vld [vmem:[%s2652_s1 + $0x360] ss:$8 sps:$4 sm:$0xff]  }
  0x39   : > { %1278 = vmatpush1.bf16.msra.mxu0 %v1817_v48  ;;  %1197 = vmatprep.subr.bf16.mxu1 %v1818_v50  ;;  %v1893_v48 = vld [vmem:[%s2652_s1 + $0x174] ss:$8 sps:$4 sm:$0xff]  }
  0x3a   : > { %1279 = vmatprep.subr.bf16.mxu0 %v1820_v51  ;;  %v1896_v50 = vld [vmem:[%s2652_s1 + $0x374] ss:$8 sps:$4 sm:$0xff]   ;;  %v1891_v51 = vld [vmem:[%s2652_s1 + $0x170] ss:$8 sps:$4 sm:$0xff]  }
  0x3c   : > { %1198 = vmatpush1.bf16.msra.mxu1 %v1822_v53  ;;  %v1899_v53 = vld [vmem:[%s2652_s1 + $0x184] ss:$8 sps:$4 sm:$0xff]  }
  0x3d   : > { %1280 = vmatpush1.bf16.msra.mxu0 %v1823_v56  ;;  %1199 = vmatprep.subr.bf16.mxu1 %v1824_v57  ;;  %v1900_v56 = vld [vmem:[%s2652_s1 + $0x380] ss:$8 sps:$4 sm:$0xff]   ;;  %v1905_v57 = vld [vmem:[%s2652_s1 + $0x194] ss:$8 sps:$4 sm:$0xff]  }
  0x3e   : > { %1281 = vmatprep.subr.bf16.mxu0 %v1826_v58  ;;  %v1908_v58 = vld [vmem:[%s2652_s1 + $0x394] ss:$8 sps:$4 sm:$0xff]  }
  0x40   : > { %1200 = vmatpush1.bf16.msra.mxu1 %v1828_v61  ;;  %v1911_v61 = vld [vmem:[%s2652_s1 + $0x1a4] ss:$8 sps:$4 sm:$0xff]  }
  0x41   : > { %1282 = vmatpush1.bf16.msra.mxu0 %v1829_v0  ;;  %1201 = vmatprep.subr.bf16.mxu1 %v1830_v1  ;;  %v1912_v0 = vld [vmem:[%s2652_s1 + $0x3a0] ss:$8 sps:$4 sm:$0xff]   ;;  %v1917_v1 = vld [vmem:[%s2652_s1 + $0x1b4] ss:$8 sps:$4 sm:$0xff]  }
  0x42   : > { %1283 = vmatprep.subr.bf16.mxu0 %v1832_v2  ;;  %v1920_v2 = vld [vmem:[%s2652_s1 + $0x3b4] ss:$8 sps:$4 sm:$0xff]  }
  0x44   : > { %1202 = vmatpush1.bf16.msra.mxu1 %v1834_v4  ;;  %v1918_v4 = vld [vmem:[%s2652_s1 + $0x3b0] ss:$8 sps:$4 sm:$0xff]  }
  0x45   : > { %1284 = vmatpush1.bf16.msra.mxu0 %v1835_v5  ;;  %1203 = vmatprep.subr.bf16.mxu1 %v1836_v6  ;;  %v1923_v5 = vld [vmem:[%s2652_s1 + $0x1c4] ss:$8 sps:$4 sm:$0xff]  }
  0x46   : > { %1285 = vmatprep.subr.bf16.mxu0 %v1838_v7  ;;  %v1926_v6 = vld [vmem:[%s2652_s1 + $0x3c4] ss:$8 sps:$4 sm:$0xff]   ;;  %v1921_v7 = vld [vmem:[%s2652_s1 + $0x1c0] ss:$8 sps:$4 sm:$0xff]  }
  0x48   : > { %1204 = vmatpush1.bf16.msra.mxu1 %v1840_v8  ;;  %v1924_v8 = vld [vmem:[%s2652_s1 + $0x3c0] ss:$8 sps:$4 sm:$0xff]  }
  0x49   : > { %1286 = vmatpush1.bf16.msra.mxu0 %v1841_v9  ;;  %1205 = vmatprep.subr.bf16.mxu1 %v1842_v10  ;;  %v1929_v9 = vld [vmem:[%s2652_s1 + $0x1d4] ss:$8 sps:$4 sm:$0xff]  }
  0x4a   : > { %1287 = vmatprep.subr.bf16.mxu0 %v1844_v11  ;;  %v1932_v10 = vld [vmem:[%s2652_s1 + $0x3d4] ss:$8 sps:$4 sm:$0xff]   ;;  %v1927_v11 = vld [vmem:[%s2652_s1 + $0x1d0] ss:$8 sps:$4 sm:$0xff]  }
  0x4c   : > { %1206 = vmatpush1.bf16.msra.mxu1 %v1846_v12  ;;  %v1930_v12 = vld [vmem:[%s2652_s1 + $0x3d0] ss:$8 sps:$4 sm:$0xff]  }
  0x4d   : > { %1288 = vmatpush1.bf16.msra.mxu0 %v1847_v13  ;;  %1216 = vmatprep.subr.bf16.mxu1 %v1850_v14  ;;  %v1935_v13 = vld [vmem:[%s2652_s1 + $0x1e4] ss:$8 sps:$4 sm:$0xff]  }
  0x4e   : > { %1298 = vmatprep.subr.bf16.mxu0 %v1854_v15  ;;  %v1938_v14 = vld [vmem:[%s2652_s1 + $0x3e4] ss:$8 sps:$4 sm:$0xff]   ;;  %v1933_v15 = vld [vmem:[%s2652_s1 + $0x1e0] ss:$8 sps:$4 sm:$0xff]  }
  0x4f   : > { %1208 = vmatmul.mubr.bf16.vlgmr.msra.gmra.mrb[0].mxu1 %v2347_v17 }
  0x50   : > { %1290 = vmatmul.mubr.bf16.vlgmr.msra.gmra.mrb[0].mxu0 %v2350_v18  ;;  %1217 = vmatpush1.bf16.msra.mxu1 %v1848_v16  ;;  %v1936_v16 = vld [vmem:[%s2652_s1 + $0x3e0] ss:$8 sps:$4 sm:$0xff]  }
  0x51   : > { %1299 = vmatpush1.bf16.msra.mxu0 %v1852_v19  ;;  %1218 = vmatprep.subr.bf16.mxu1 %v1857_v20  ;;  %v1941_v19 = vld [vmem:[%s2652_s1 + $0x1f4] ss:$8 sps:$4 sm:$0xff]  }
  0x52   : > { %1300 = vmatprep.subr.bf16.mxu0 %v1860_v21  ;;  %1248 = vmatprep.mubr.bf16.mxu1 %v419_v22  ;;  %v1944_v20 = vld [vmem:[%s2652_s1 + $0x3f4] ss:$8 sps:$4 sm:$0xff]   ;;  %v1939_v21 = vld [vmem:[%s2652_s1 + $0x1f0] ss:$8 sps:$4 sm:$0xff]  }
  0x53   : > { %1330 = vmatprep.mubr.bf16.mxu0 %v420_v23  ;;  %v1942_v22 = vld [vmem:[%s2652_s1 + $0x3f0] ss:$8 sps:$4 sm:$0xff]   ;;  %v1947_v23 = vld [vmem:[%s2652_s1 + $0x404] ss:$8 sps:$4 sm:$0xff]  }
  0x54   : > { %1219 = vmatpush1.bf16.msra.mxu1 %v1855_v24  ;;  %v417_v24 = vcombine.high %v2347_v17, %v2347_v17  ;;  %v1948_v17 = vld [vmem:[%s2652_s1 + $0x410] ss:$8 sps:$4 sm:$0xff]  }
  0x55   : > { %1301 = vmatpush1.bf16.msra.mxu0 %v1858_v25  ;;  %1220 = vmatprep.subr.bf16.mxu1 %v1863_v26  ;;  %v418_v25 = vcombine.high %v2350_v18, %v2350_v18  ;;  %v1945_v26 = vld [vmem:[%s2652_s1 + $0x400] ss:$8 sps:$4 sm:$0xff]   ;;  %v1953_v18 = vld [vmem:[%s2652_s1 + $0x424] ss:$8 sps:$4 sm:$0xff]  }
  0x56   : > { %1302 = vmatprep.subr.bf16.mxu0 %v1866_v27  ;;  %v1950_v27 = vld [vmem:[%s2652_s1 + $0x414] ss:$8 sps:$4 sm:$0xff]  }
  0x58   : > { %1221 = vmatpush1.bf16.msra.mxu1 %v1861_v28  ;;  %v2050_v28 = vmov 0  }
  0x59   : > { %1303 = vmatpush1.bf16.msra.mxu0 %v1864_v29  ;;  %1222 = vmatprep.subr.bf16.mxu1 %v1869_v30  ;;  %v1951_v29 = vld [vmem:[%s2652_s1 + $0x420] ss:$8 sps:$4 sm:$0xff]   ;;  %v1956_v30 = vld [vmem:[%s2652_s1 + $0x434] ss:$8 sps:$4 sm:$0xff]  }
  0x5a   : > { %1304 = vmatprep.subr.bf16.mxu0 %v1872_v31  ;;  %v1954_v31 = vld [vmem:[%s2652_s1 + $0x430] ss:$8 sps:$4 sm:$0xff]  }
  0x5c   : > { %1223 = vmatpush1.bf16.msra.mxu1 %v1867_v32  ;;  %v1959_v32 = vld [vmem:[%s2652_s1 + $0x444] ss:$8 sps:$4 sm:$0xff]  }
  0x5d   : > { %1305 = vmatpush1.bf16.msra.mxu0 %v1870_v33  ;;  %1224 = vmatprep.subr.bf16.mxu1 %v1875_v34  ;;  %v1957_v33 = vld [vmem:[%s2652_s1 + $0x440] ss:$8 sps:$4 sm:$0xff]   ;;  %v1962_v34 = vld [vmem:[%s2652_s1 + $0x454] ss:$8 sps:$4 sm:$0xff]  }
  0x5e   : > { %1306 = vmatprep.subr.bf16.mxu0 %v1878_v35  ;;  %v1960_v35 = vld [vmem:[%s2652_s1 + $0x450] ss:$8 sps:$4 sm:$0xff]  }
  0x60   : > { %1225 = vmatpush1.bf16.msra.mxu1 %v1873_v36  ;;  %v1965_v36 = vld [vmem:[%s2652_s1 + $0x464] ss:$8 sps:$4 sm:$0xff]  }
  0x61   : > { %1307 = vmatpush1.bf16.msra.mxu0 %v1876_v37  ;;  %1226 = vmatprep.subr.bf16.mxu1 %v1881_v39  ;;  %v1963_v37 = vld [vmem:[%s2652_s1 + $0x460] ss:$8 sps:$4 sm:$0xff]   ;;  %v1968_v39 = vld [vmem:[%s2652_s1 + $0x474] ss:$8 sps:$4 sm:$0xff]  }
  0x62   : > { %1308 = vmatprep.subr.bf16.mxu0 %v1884_v40  ;;  %v1966_v40 = vld [vmem:[%s2652_s1 + $0x470] ss:$8 sps:$4 sm:$0xff]  }
  0x64   : > { %1227 = vmatpush1.bf16.msra.mxu1 %v1879_v41  ;;  %v1527_v41 = vld.sshfl [vmem:[%s2267_s6 + $0x8] sm:$0x1 pattern:$0x75316420]  ;;  %s203_s6 = sand.u32 1, %s2031_s13  }
  0x65   : > { %1309 = vmatpush1.bf16.msra.mxu0 %v1882_v42  ;;  %1228 = vmatprep.subr.bf16.mxu1 %v1887_v44  ;;  %v434_v42 = vrot.slane %v1527_v41, %v2270_v49  ;;  %s1526_s27 = sshll.u32 %s203_s6, 1  ;;  %s1406_s15 = scalar_lea.sflag [#allocation3], %s203_s6 }
  0x66   : > { %1310 = vmatprep.subr.bf16.mxu0 %v1890_v45  ;;  %s205_s29 = scalar_lea.vmem [#allocation2], %s1526_s27 }
  0x67   : > { %s1422_s30 = sshll.u32 %s205_s29, 4  ;;  %s2606_s30 = int_to_ptr.vmem [resolvable:$true] %s1422_s30 }
  0x68   : > { %1229 = vmatpush1.bf16.msra.mxu1 %v1885_v46  ;;  %s1969_s8 = scalar_lea.vmem %s2606_s30, 32  ;;  %p1976_p1 = scmp.lt.s32.totalorder %s2606_s30, %s1974_s11 }
  0x69   : > { %1311 = vmatpush1.bf16.msra.mxu0 %v1888_v47  ;;  %1230 = vmatprep.subr.bf16.mxu1 %v1893_v48  ;;  %v1167_v48 = vsub.s32 0, %v2247_v43  ;;  %p1970_p12 = scmp.ne.s32.totalorder %s2606_s30, %s1969_s8  ;;  %p1977_p2 = scmp.lt.s32.totalorder %s1975_s18, %s1969_s8 }
  0x6a   : > { %1312 = vmatprep.subr.bf16.mxu0 %v1896_v50  ;;  %v369_v50 = vld [vmem:[%s2653_s2] sm:$0x3] }
  0x6b   : > { %p1971_p13 = pnand %p1970_p12, %p2112_p4  ;;  %p1978_p3 = por %p1977_p2, %p1976_p1 }
  0x6c   : > { %1231 = vmatpush1.bf16.msra.mxu1 %v1891_v51  ;;  %v1171_v51 = vsub.s32 1, %v2247_v43 }
  0x6d   : > { %1313 = vmatpush1.bf16.msra.mxu0 %v1894_v52  ;;  %1232 = vmatprep.subr.bf16.mxu1 %v1899_v53  ;;  %v1168_v52 = vrot.slane %v369_v50, %v1167_v48  ;;  %p1972_p0 = pneg %p1971_p13 }
  0x6e   : > { %1314 = vmatprep.subr.bf16.mxu0 %v1902_v54  ;;  %v1172_v53 = vrot.slane %v369_v50, %v1171_v51 }
  0x6f   : > { %p1979_p5 = pnand %p1978_p3, %p1972_p0 }
  0x70   : > { %1233 = vmatpush1.bf16.msra.mxu1 %v1897_v55 }
  0x71   : > { %1315 = vmatpush1.bf16.msra.mxu0 %v1900_v56  ;;  %1234 = vmatprep.subr.bf16.mxu1 %v1905_v57 }
  0x72   : > { %1316 = vmatprep.subr.bf16.mxu0 %v1908_v58 }
  0x74   : > { %1235 = vmatpush1.bf16.msra.mxu1 %v1903_v59 }
  0x75   : > { %1317 = vmatpush1.bf16.msra.mxu0 %v1906_v60  ;;  %1236 = vmatprep.subr.bf16.mxu1 %v1911_v61 }
  0x76   : > { %1318 = vmatprep.subr.bf16.mxu0 %v1914_v62 }
  0x78   : > { %1237 = vmatpush1.bf16.msra.mxu1 %v1909_v63 }
  0x79   : > { %1319 = vmatpush1.bf16.msra.mxu0 %v1912_v0  ;;  %1238 = vmatprep.subr.bf16.mxu1 %v1917_v1 }
  0x7a   : > { %1320 = vmatprep.subr.bf16.mxu0 %v1920_v2 }
  0x7c   : > { %1239 = vmatpush1.bf16.msra.mxu1 %v1915_v3 }
  0x7d   : > { %1321 = vmatpush1.bf16.msra.mxu0 %v1918_v4  ;;  %1240 = vmatprep.subr.bf16.mxu1 %v1923_v5 }
  0x7e   : > { %1322 = vmatprep.subr.bf16.mxu0 %v1926_v6 }
  0x80   : > { %1241 = vmatpush1.bf16.msra.mxu1 %v1921_v7 }
  0x81   : > { %1323 = vmatpush1.bf16.msra.mxu0 %v1924_v8  ;;  %1242 = vmatprep.subr.bf16.mxu1 %v1929_v9 }
  0x82   : > { %1324 = vmatprep.subr.bf16.mxu0 %v1932_v10 }
  0x84   : > { %1243 = vmatpush1.bf16.msra.mxu1 %v1927_v11 }
  0x85   : > { %1325 = vmatpush1.bf16.msra.mxu0 %v1930_v12  ;;  %1244 = vmatprep.subr.bf16.mxu1 %v1935_v13 }
  0x86   : > { %1326 = vmatprep.subr.bf16.mxu0 %v1938_v14 }
  0x88   : > { %1245 = vmatpush1.bf16.msra.mxu1 %v1933_v15 }
  0x89   : > { %1327 = vmatpush1.bf16.msra.mxu0 %v1936_v16  ;;  %1246 = vmatprep.subr.bf16.mxu1 %v1941_v19 }
  0x8a   : > { %1328 = vmatprep.subr.bf16.mxu0 %v1944_v20 }
  0x8c   : > { %1247 = vmatpush1.bf16.msra.mxu1 %v1939_v21 }
  0x8d   : > { %1329 = vmatpush1.bf16.msra.mxu0 %v1942_v22 }
  0x8e   : > { %1339 = vmatprep.subr.bf16.mxu0 %v1947_v23 }
  0x8f   : > { %1249 = vmatmul.mubr.bf16.vlgmr.msra.gmra.mrb[0].mxu1 %v417_v24 }
  0x90   : > { %1331 = vmatmul.mubr.bf16.vlgmr.msra.gmra.mrb[0].mxu0 %v418_v25 }
  0x91   : > { %1340 = vmatpush1.bf16.msra.mxu0 %v1945_v26  ;;  %1371 = vmatprep.mubr.bf16.mxu0 %v2050_v28 }
  0x92   : > { %1341 = vmatprep.subr.bf16.mxu0 %v1950_v27 }
  0x95   : > { %1342 = vmatpush1.bf16.msra.mxu0 %v1948_v17 }
  0x96   : > { %1343 = vmatprep.subr.bf16.mxu0 %v1953_v18 }
  0x99   : > { %1344 = vmatpush1.bf16.msra.mxu0 %v1951_v29 }
  0x9a   : > { %1345 = vmatprep.subr.bf16.mxu0 %v1956_v30 }
  0x9d   : > { %1346 = vmatpush1.bf16.msra.mxu0 %v1954_v31 }
  0x9e   : > { %1347 = vmatprep.subr.bf16.mxu0 %v1959_v32 }
  0xa1   : > { %1348 = vmatpush1.bf16.msra.mxu0 %v1957_v33 }
  0xa2   : > { %1349 = vmatprep.subr.bf16.mxu0 %v1962_v34 }
  0xa5   : > { %1350 = vmatpush1.bf16.msra.mxu0 %v1960_v35 }
  0xa6   : > { %1351 = vmatprep.subr.bf16.mxu0 %v1965_v36 }
  0xa9   : > { %1352 = vmatpush1.bf16.msra.mxu0 %v1963_v37 }
  0xaa   : > { %1353 = vmatprep.subr.bf16.mxu0 %v1968_v39 }
  0xad   : > { %1354 = vmatpush1.bf16.msra.mxu0 %v1966_v40 }
  0xb0   : > { %1372 = vmatmul.mubr.bf16.vlgmr.msra.gmra.mrb[0].mxu0 %v434_v42 }
 0x162   : > { %v1250_v44 = vpop.f32.mrb[0].mxu1 }
 0x163   : > { %v1252_v45 = vpop.f32.mrb[1].mxu1  ;;  %v1678_v54 = vadd.f32 %v1250_v44, %v1168_v52 }
 0x164   : > { %v1254_v46 = vpop.f32.mrb[2].mxu1  ;;  %v1680_v55 = vadd.f32 %v1252_v45, %v1172_v53 }
 0x165   : > { %v1255_v47 = vpop.f32.mrb[3].mxu1 }
 0x183   : > { %v1373_v56 = vpop.f32.mrb[0].mxu0 }
 0x184   : > { %v1679_v57 = vadd.f32 %v1678_v54, %v1373_v56  ;;  %v1375_v58 = vpop.f32.mrb[1].mxu0 }
 0x185   : > { %v1681_v59 = vadd.f32 %v1680_v55, %v1375_v58  ;;  %v1377_v60 = vpop.f32.mrb[2].mxu0 }
 0x186   : > { %v1380_v61 = vmax.f32 %v1679_v57, 0.0  ;;  %v1378_v62 = vpop.f32.mrb[3].mxu0 }
 0x187   : > { %v1381_v63 = vmax.f32 %v1681_v59, 0.0 }
 0x189   : > { %v1384_v0 = vcombine.low %v1380_v61, %v1381_v63 }
 0x18b   : > { %v1391_v43 = vrot.slane %v1384_v0, %v2270_v49 }
 0x18d   : > { %v1398_v1 = vrot.slane %v1391_v43, %v2270_v49 }
 0x18f   : > { %1404 = vst.msk [vmem:[%s205_s29] sm:$0x3] %vm1402_vm0, %v1398_v1 }
 0x190   : > { %1982 = shalt.err (!%p1979_p5)
}
 0x191   : > { %s1983_s10 = scalar_lea.hbm %s2604_s7, 32  ;;  %s1987_s23 = scalar_lea.hbm %s2654_s3, 64 }
 0x192   : > { %p1984_p6 = scmp.ne.s32.totalorder %s2604_s7, %s1983_s10  ;;  %p1988_p10 = scmp.lt.u32.totalorder %s2604_s7, %s2654_s3 }
 0x193   : > { %p1989_p11 = scmp.lt.u32.totalorder %s1987_s23, %s1983_s10  ;;  %p1991_p13 = scmp.lt.u32.totalorder %s1983_s10, %s2604_s7 }
 0x194   : > { %p1985_p7 = pnand %p1984_p6, %p2112_p4 }
 0x195   : > { %p1990_p12 = por %p1989_p11, %p1988_p10 }
 0x196   : > { %p1986_p9 = pneg %p1985_p7 }
 0x197   : > { %p1992_p0 = por %p1991_p13, %p1990_p12 }
 0x199   : > { %p1993_p1 = pnand %p1992_p0, %p1986_p9 }
 0x19b   : > { %1996 = shalt.err (!%p1993_p1)
}
 0x19c   : > { %1695 = dma.vmem_to_hbm [thread:$0]  (%p2112_p4), %s2606_s30, 32, %s2604_s7, %s1406_s15  }
 0x19d PF: > { %p1701_p2 = scmp.ge.s32.totalorder %s2047_s17, 2  ;;  %s1434_s27 = sand.u32 1, %s2027_s12  }
 0x19e   : > { %s1435_s28 = scalar_lea.sflag [#allocation3], %s1434_s27 }
 0x19f   : > { %p1698_p3 = pnand %p1701_p2, %p2119_p8 }
 0x1a1   : > { %2022 = dma.done.wait (!%p1698_p3), %s1435_s28, 32  }
 0x1a2   : > { %2024 = vsyncadd (!%p1698_p3), %s1435_s28, 4294967264  ;;  %s16_s17 = sadd.s32 1, %s2047_s17   ;;  %s2657_s12 = smov %s2031_s13 }
 0x1a3   : > { %p13_p5 = scmp.ge.s32.totalorder %s16_s17, 4   ;;  %s2658_s13 = smov %s2035_s14 }
 0x1a4   : > { %s2659_s14 = smov %s2125_s25  ;;  %s2660_s15 = smov %s2043_s16 }
 0x1a5   : > { %s2661_s16 = smov %s2663_s20  ;;  %15 = sbr.rel (!%p13_p5) target bundleno = 4 (0x4), region = 73 }
 0x1ac   :  { %1440 = vsyncpa [#allocation3], 1 }
 0x1ad   :  { %1442 = vsyncpa [#allocation3 + $0x1], 1 }

</bundles_post_ra>
